<compile_context>
chip_gen: v6e
topology: v6e:2x2x1
jax: 0.10.0
libtpu: 0.0.40
codegen_flags: <defaults>
</compile_context>

<pallas_src>
import jax
import jax.numpy as jnp
from jax import lax
from jax.experimental import pallas as pl
from jax.experimental.pallas import tpu as pltpu

EPS = 1e-5
LANE = 128


def _round_up(x, m):
    return (x + m - 1) // m * m


def _tile_bytes(shape, itemsize=4):
    """VMEM bytes of an f32 array after (8,128) tiling of the last two dims."""
    s = list(shape)
    s[-1] = _round_up(s[-1], 128)
    if len(s) >= 2:
        s[-2] = _round_up(s[-2], 8)
    n = itemsize
    for d in s:
        n *= d
    return n


def identity_block_kernel(xcol_ref, w1_ref, w2_ref, xc_ref, wr_ref, br_ref,
                          o_ref, pad2_ref, p2_ref):
    # xcol_ref: (NHW, KK*Cin)        conv1 im2col patches (built host-side)
    # w1_ref  : (KK*Cin, Cp)         conv1 weights flattened, Cout lane-padded
    # w2_ref  : (KK*Cp, Cp)          conv2 weights, im2col-flattened
    # xc_ref  : (NHW, Cin)           flat input for the residual 1x1 conv
    # wr_ref  : (Cin, Cp)            residual weights
    # br_ref  : (1, Cp)              residual bias
    # o_ref   : (N, H, W, Cp)        lane-dense output
    # pad2_ref: (N, H+2p, W+2p, Cp)  scratch: spatially padded hidden activation
    # p2_ref  : (NHW, KK*Cp)         scratch: conv2 im2col staging
    N, H, W, Cp = o_ref.shape
    NHW = N * H * W
    pad = (pad2_ref.shape[1] - H) // 2
    Kk = 2 * pad + 1
    inv_nhw = 1.0 / NHW

    # ---------------- conv1: single MXU dot over host-built im2col --------------
    acc1 = jnp.dot(xcol_ref[...], w1_ref[...], preferred_element_type=jnp.float32)

    # ---------------- bn1 (one-pass biased batch stats, clamped) + ReLU ---------
    m1 = jnp.sum(acc1, axis=0, keepdims=True) * inv_nhw
    v1 = jnp.maximum(jnp.sum(acc1 * acc1, axis=0, keepdims=True) * inv_nhw
                     - m1 * m1, 0.0)
    h1 = jnp.maximum((acc1 - m1) * lax.rsqrt(v1 + EPS), 0.0)

    # ---------------- stage h1 into padded scratch (halo-only zeroing) ----------
    if pad > 0:
        Wp = W + 2 * pad
        pad2_ref[:, 0:pad, :, :] = jnp.zeros((N, pad, Wp, Cp), jnp.float32)
        pad2_ref[:, H + pad:H + 2 * pad, :, :] = jnp.zeros((N, pad, Wp, Cp),
                                                           jnp.float32)
        pad2_ref[:, pad:H + pad, 0:pad, :] = jnp.zeros((N, H, pad, Cp), jnp.float32)
        pad2_ref[:, pad:H + pad, W + pad:W + 2 * pad, :] = jnp.zeros(
            (N, H, pad, Cp), jnp.float32)
    pad2_ref[:, pad:H + pad, pad:W + pad, :] = h1.reshape(N, H, W, Cp)

    # ---------------- conv2: stage taps into im2col scratch, ONE big-K dot ------
    for t in range(Kk * Kk):
        kh, kw = t // Kk, t % Kk
        p2_ref[:, t * Cp:(t + 1) * Cp] = (
            pad2_ref[:, kh:kh + H, kw:kw + W, :].reshape(NHW, Cp))
    acc2 = jnp.dot(p2_ref[...], w2_ref[...], preferred_element_type=jnp.float32)

    # ---------------- bn2 --------------------------------------------------------
    m2 = jnp.sum(acc2, axis=0, keepdims=True) * inv_nhw
    v2 = jnp.maximum(jnp.sum(acc2 * acc2, axis=0, keepdims=True) * inv_nhw
                     - m2 * m2, 0.0)
    h2 = (acc2 - m2) * lax.rsqrt(v2 + EPS)

    # ---------------- residual 1x1 conv, add, ReLU, lane-dense store ------------
    # (kept separate: fusing it into conv2's contraction would corrupt bn2's
    #  batch statistics, which are taken over conv2's output only)
    res = jnp.dot(xc_ref[...], wr_ref[...],
                  preferred_element_type=jnp.float32) + br_ref[...]
    o_ref[...] = jnp.maximum(h2 + res, 0.0).reshape(N, H, W, Cp)


def identity_block(x, w1, b1, w2, b2, wr, br):
    """x: (N,H,W,Cin) f32; w1: (K,K,Cin,Cout); w2: (K,K,Cout,Cout); wr: (Cin,Cout);
    b1/b2/br: (1,Cout).  Returns (N,H,W,Cout) f32.

    b1/b2 are accepted for interface parity but unused: a per-channel constant
    added right before a training-mode BN with gamma=1/beta=0 is cancelled
    exactly by the mean subtraction.  br is kept (residual path has no BN).
    """
    del b1, b2
    N, H, W, Cin = x.shape
    K = w1.shape[0]            # kernel_size (module default 3)
    Cout = w1.shape[-1]
    Cp = _round_up(Cout, LANE)
    pc = Cp - Cout
    NHW = N * H * W
    padn = K // 2

    # Host-side layout plumbing (cheap XLA ops): conv1 im2col + lane padding of
    # the output-channel dims.  Contraction dims of conv1/residual stay unpadded.
    x_pad = jnp.pad(x, ((0, 0), (padn, padn), (padn, padn), (0, 0)))
    xcol = jnp.concatenate(
        [x_pad[:, kh:kh + H, kw:kw + W, :] for kh in range(K) for kw in range(K)],
        axis=-1).reshape(NHW, K * K * Cin)
    xc = x.reshape(NHW, Cin)
    w1_p = jnp.pad(w1.reshape(K * K * Cin, Cout), ((0, 0), (0, pc)))
    w2_p = jnp.pad(w2, ((0, 0), (0, 0), (0, pc), (0, pc))).reshape(K * K * Cp, Cp)
    wr_p = jnp.pad(wr, ((0, 0), (0, pc)))
    br_p = jnp.pad(br, ((0, 0), (0, pc)))

    # VMEM budget: tile-padded sizes of inputs/output/scratch plus headroom for
    # the live accumulators, clamped to this chip's physical VMEM (64 MiB on v7x).
    footprint = (
        _tile_bytes((NHW, K * K * Cin)) + _tile_bytes((K * K * Cin, Cp))
        + _tile_bytes((K * K * Cp, Cp)) + _tile_bytes((NHW, Cin))
        + _tile_bytes((Cin, Cp)) + _tile_bytes((1, Cp))
        + _tile_bytes((N, H, W, Cp))                          # output
        + _tile_bytes((N, H + 2 * padn, W + 2 * padn, Cp))    # hidden-act scratch
        + _tile_bytes((NHW, K * K * Cp))                      # im2col scratch
        + 6 * _tile_bytes((NHW, Cp)))                         # live temporaries
    phys_vmem = 64 * 1024 * 1024
    try:
        phys_vmem = int(getattr(pltpu.get_tpu_info(), "vmem_capacity_bytes",
                                phys_vmem))
    except Exception:
        pass
    vmem_limit = int(min(max(32 * 1024 * 1024, footprint + (4 << 20)),
                         phys_vmem - (2 << 20)))

    vmem = pl.BlockSpec(memory_space=pltpu.MemorySpace.VMEM)
    out = pl.pallas_call(
        identity_block_kernel,
        out_shape=jax.ShapeDtypeStruct((N, H, W, Cp), jnp.float32),
        in_specs=[vmem] * 6,
        out_specs=vmem,
        scratch_shapes=[
            pltpu.VMEM((N, H + 2 * padn, W + 2 * padn, Cp), jnp.float32),
            pltpu.VMEM((NHW, K * K * Cp), jnp.float32),
        ],
        compiler_params=pltpu.CompilerParams(vmem_limit_bytes=vmem_limit),
    )(xcol, w1_p, w2_p, xc, wr_p, br_p)
    return out[..., :Cout]


# ---------------- pure-JAX reference (for verification) ----------------
def reference(x, w1, b1, w2, b2, wr, br):
    dn = ("NHWC", "HWIO", "NHWC")

    def conv(inp, w, b, pad):
        y = lax.conv_general_dilated(inp, w, (1, 1), [(pad, pad), (pad, pad)],
                                     dimension_numbers=dn)
        return y + b.reshape(1, 1, 1, -1)

    def bn(y):
        m = jnp.mean(y, axis=(0, 1, 2), keepdims=True)
        v = jnp.mean((y - m) ** 2, axis=(0, 1, 2), keepdims=True)
        return (y - m) * lax.rsqrt(v + EPS)

    h = jnp.maximum(bn(conv(x, w1, b1, 1)), 0.0)
    h = bn(conv(h, w2, b2, 1))
    r = conv(x, wr.reshape(1, 1, *wr.shape), br, 0)
    return jnp.maximum(h + r, 0.0)


if __name__ == "__main__":
    N, H, W = 2, 16, 16
    Cin, Cout, K = 4, 8, 3

    key = jax.random.PRNGKey(0)
    k = jax.random.split(key, 7)
    x = jax.random.normal(k[0], (N, H, W, Cin), jnp.float32)
    w1 = jax.random.normal(k[1], (K, K, Cin, Cout), jnp.float32) * 0.1
    b1 = jax.random.normal(k[2], (1, Cout), jnp.float32) * 0.1
    w2 = jax.random.normal(k[3], (K, K, Cout, Cout), jnp.float32) * 0.1
    b2 = jax.random.normal(k[4], (1, Cout), jnp.float32) * 0.1
    wr = jax.random.normal(k[5], (Cin, Cout), jnp.float32) * 0.1
    br = jax.random.normal(k[6], (1, Cout), jnp.float32) * 0.1

    out = identity_block(x, w1, b1, w2, b2, wr, br)
    out = jax.block_until_ready(out)

    ref = reference(x, w1, b1, w2, b2, wr, br)
    assert out.shape == (N, H, W, Cout)
    err = float(jnp.max(jnp.abs(out - ref)))
    assert jnp.allclose(out, ref, rtol=1e-3, atol=1e-3), err
    print("KERNEL_OK")
</pallas_src>

<mosaic_0001>
module attributes {stable_mosaic.version = 11 : i64} {
  func.func @identity_block_kernel(%arg0: memref<512x36xf32, #tpu.memory_space<vmem>>, %arg1: memref<36x128xf32, #tpu.memory_space<vmem>>, %arg2: memref<1152x128xf32, #tpu.memory_space<vmem>>, %arg3: memref<512x4xf32, #tpu.memory_space<vmem>>, %arg4: memref<4x128xf32, #tpu.memory_space<vmem>>, %arg5: memref<1x128xf32, #tpu.memory_space<vmem>>, %arg6: memref<2x16x16x128xf32, #tpu.memory_space<vmem>>, %arg7: memref<2x18x18x128xf32, #tpu.memory_space<vmem>>, %arg8: memref<512x1152xf32, #tpu.memory_space<vmem>>) attributes {dimension_semantics = [], scalar_prefetch = 0 : i64, scratch_operands = 2 : i64, tpu.core_type = #tpu.core_type<tc>} {
    %c0 = arith.constant 0 : index
    %c0_0 = arith.constant 0 : index
    %0 = vector.load %arg0[%c0, %c0_0] : memref<512x36xf32, #tpu.memory_space<vmem>>, vector<512x36xf32>
    %c0_1 = arith.constant 0 : index
    %c0_2 = arith.constant 0 : index
    %1 = vector.load %arg1[%c0_1, %c0_2] : memref<36x128xf32, #tpu.memory_space<vmem>>, vector<36x128xf32>
    %cst = arith.constant dense<0.000000e+00> : vector<512x128xf32>
    %2 = tpu.matmul %0, %1, %cst {dimension_numbers = #tpu.dot_dimension_numbers<[1], [0], [0], [1], [0, 0, 1, 1], [], []>} : vector<512x36xf32>, vector<36x128xf32>, vector<512x128xf32> -> vector<512x128xf32>
    %cst_3 = arith.constant dense<0.000000e+00> : vector<128xf32>
    %3 = vector.multi_reduction <add>, %2, %cst_3 [0] : vector<512x128xf32> to vector<128xf32>
    %4 = vector.shape_cast %3 : vector<128xf32> to vector<1x128xf32>
    %cst_4 = arith.constant 0.001953125 : f32
    %5 = vector.broadcast %cst_4 : f32 to vector<1x128xf32>
    %6 = arith.mulf %4, %5 : vector<1x128xf32>
    %7 = arith.mulf %2, %2 : vector<512x128xf32>
    %cst_5 = arith.constant dense<0.000000e+00> : vector<128xf32>
    %8 = vector.multi_reduction <add>, %7, %cst_5 [0] : vector<512x128xf32> to vector<128xf32>
    %9 = vector.shape_cast %8 : vector<128xf32> to vector<1x128xf32>
    %cst_6 = arith.constant 0.001953125 : f32
    %10 = vector.broadcast %cst_6 : f32 to vector<1x128xf32>
    %11 = arith.mulf %9, %10 : vector<1x128xf32>
    %12 = arith.mulf %6, %6 : vector<1x128xf32>
    %13 = arith.subf %11, %12 : vector<1x128xf32>
    %cst_7 = arith.constant 0.000000e+00 : f32
    %14 = vector.broadcast %cst_7 : f32 to vector<1x128xf32>
    %15 = arith.maximumf %13, %14 : vector<1x128xf32>
    %16 = vector.broadcast %6 : vector<1x128xf32> to vector<512x128xf32>
    %17 = arith.subf %2, %16 : vector<512x128xf32>
    %cst_8 = arith.constant 9.99999974E-6 : f32
    %18 = vector.broadcast %cst_8 : f32 to vector<1x128xf32>
    %19 = arith.addf %15, %18 : vector<1x128xf32>
    %20 = math.rsqrt %19 : vector<1x128xf32>
    %21 = vector.broadcast %20 : vector<1x128xf32> to vector<512x128xf32>
    %22 = arith.mulf %17, %21 : vector<512x128xf32>
    %cst_9 = arith.constant 0.000000e+00 : f32
    %23 = vector.broadcast %cst_9 : f32 to vector<512x128xf32>
    %24 = arith.maximumf %22, %23 : vector<512x128xf32>
    %cst_10 = arith.constant 0.000000e+00 : f32
    %25 = vector.broadcast %cst_10 : f32 to vector<2x1x18x128xf32>
    %c0_11 = arith.constant 0 : index
    %c0_12 = arith.constant 0 : index
    %c0_13 = arith.constant 0 : index
    %c0_14 = arith.constant 0 : index
    %26 = vector.load %arg7[%c0_11, %c0_12, %c0_13, %c0_14] : memref<2x18x18x128xf32, #tpu.memory_space<vmem>>, vector<2x1x18x128xf32>
    tpu.vector_store %arg7[%c0_11, %c0_12, %c0_13, %c0_14], %25 {strides = array<i32>} : memref<2x18x18x128xf32, #tpu.memory_space<vmem>>, vector<2x1x18x128xf32>,
    %cst_15 = arith.constant 0.000000e+00 : f32
    %27 = vector.broadcast %cst_15 : f32 to vector<2x1x18x128xf32>
    %c0_16 = arith.constant 0 : index
    %c17 = arith.constant 17 : index
    %c0_17 = arith.constant 0 : index
    %c0_18 = arith.constant 0 : index
    %28 = vector.load %arg7[%c0_16, %c17, %c0_17, %c0_18] : memref<2x18x18x128xf32, #tpu.memory_space<vmem>>, vector<2x1x18x128xf32>
    tpu.vector_store %arg7[%c0_16, %c17, %c0_17, %c0_18], %27 {strides = array<i32>} : memref<2x18x18x128xf32, #tpu.memory_space<vmem>>, vector<2x1x18x128xf32>,
    %cst_19 = arith.constant 0.000000e+00 : f32
    %29 = vector.broadcast %cst_19 : f32 to vector<2x16x1x128xf32>
    %c0_20 = arith.constant 0 : index
    %c1 = arith.constant 1 : index
    %c0_21 = arith.constant 0 : index
    %c0_22 = arith.constant 0 : index
    %30 = vector.load %arg7[%c0_20, %c1, %c0_21, %c0_22] : memref<2x18x18x128xf32, #tpu.memory_space<vmem>>, vector<2x16x1x128xf32>
    tpu.vector_store %arg7[%c0_20, %c1, %c0_21, %c0_22], %29 {strides = array<i32>} : memref<2x18x18x128xf32, #tpu.memory_space<vmem>>, vector<2x16x1x128xf32>,
    %cst_23 = arith.constant 0.000000e+00 : f32
    %31 = vector.broadcast %cst_23 : f32 to vector<2x16x1x128xf32>
    %c0_24 = arith.constant 0 : index
    %c1_25 = arith.constant 1 : index
    %c17_26 = arith.constant 17 : index
    %c0_27 = arith.constant 0 : index
    %32 = vector.load %arg7[%c0_24, %c1_25, %c17_26, %c0_27] : memref<2x18x18x128xf32, #tpu.memory_space<vmem>>, vector<2x16x1x128xf32>
    tpu.vector_store %arg7[%c0_24, %c1_25, %c17_26, %c0_27], %31 {strides = array<i32>} : memref<2x18x18x128xf32, #tpu.memory_space<vmem>>, vector<2x16x1x128xf32>,
    %33 = vector.shape_cast %24 : vector<512x128xf32> to vector<2x16x16x128xf32>
    %c0_28 = arith.constant 0 : index
    %c1_29 = arith.constant 1 : index
    %c1_30 = arith.constant 1 : index
    %c0_31 = arith.constant 0 : index
    %34 = vector.load %arg7[%c0_28, %c1_29, %c1_30, %c0_31] : memref<2x18x18x128xf32, #tpu.memory_space<vmem>>, vector<2x16x16x128xf32>
    tpu.vector_store %arg7[%c0_28, %c1_29, %c1_30, %c0_31], %33 {strides = array<i32>} : memref<2x18x18x128xf32, #tpu.memory_space<vmem>>, vector<2x16x16x128xf32>,
    %c0_32 = arith.constant 0 : index
    %c0_33 = arith.constant 0 : index
    %c0_34 = arith.constant 0 : index
    %c0_35 = arith.constant 0 : index
    %35 = vector.load %arg7[%c0_32, %c0_33, %c0_34, %c0_35] : memref<2x18x18x128xf32, #tpu.memory_space<vmem>>, vector<2x16x16x128xf32>
    %36 = vector.shape_cast %35 : vector<2x16x16x128xf32> to vector<512x128xf32>
    %c0_36 = arith.constant 0 : index
    %c0_37 = arith.constant 0 : index
    %37 = vector.load %arg8[%c0_36, %c0_37] : memref<512x1152xf32, #tpu.memory_space<vmem>>, vector<512x128xf32>
    tpu.vector_store %arg8[%c0_36, %c0_37], %36 {strides = array<i32>} : memref<512x1152xf32, #tpu.memory_space<vmem>>, vector<512x128xf32>,
    %c0_38 = arith.constant 0 : index
    %c0_39 = arith.constant 0 : index
    %c1_40 = arith.constant 1 : index
    %c0_41 = arith.constant 0 : index
    %38 = vector.load %arg7[%c0_38, %c0_39, %c1_40, %c0_41] : memref<2x18x18x128xf32, #tpu.memory_space<vmem>>, vector<2x16x16x128xf32>
    %39 = vector.shape_cast %38 : vector<2x16x16x128xf32> to vector<512x128xf32>
    %c0_42 = arith.constant 0 : index
    %c128 = arith.constant 128 : index
    %40 = vector.load %arg8[%c0_42, %c128] : memref<512x1152xf32, #tpu.memory_space<vmem>>, vector<512x128xf32>
    tpu.vector_store %arg8[%c0_42, %c128], %39 {strides = array<i32>} : memref<512x1152xf32, #tpu.memory_space<vmem>>, vector<512x128xf32>,
    %c0_43 = arith.constant 0 : index
    %c0_44 = arith.constant 0 : index
    %c2 = arith.constant 2 : index
    %c0_45 = arith.constant 0 : index
    %41 = vector.load %arg7[%c0_43, %c0_44, %c2, %c0_45] : memref<2x18x18x128xf32, #tpu.memory_space<vmem>>, vector<2x16x16x128xf32>
    %42 = vector.shape_cast %41 : vector<2x16x16x128xf32> to vector<512x128xf32>
    %c0_46 = arith.constant 0 : index
    %c256 = arith.constant 256 : index
    %43 = vector.load %arg8[%c0_46, %c256] : memref<512x1152xf32, #tpu.memory_space<vmem>>, vector<512x128xf32>
    tpu.vector_store %arg8[%c0_46, %c256], %42 {strides = array<i32>} : memref<512x1152xf32, #tpu.memory_space<vmem>>, vector<512x128xf32>,
    %c0_47 = arith.constant 0 : index
    %c1_48 = arith.constant 1 : index
    %c0_49 = arith.constant 0 : index
    %c0_50 = arith.constant 0 : index
    %44 = vector.load %arg7[%c0_47, %c1_48, %c0_49, %c0_50] : memref<2x18x18x128xf32, #tpu.memory_space<vmem>>, vector<2x16x16x128xf32>
    %45 = vector.shape_cast %44 : vector<2x16x16x128xf32> to vector<512x128xf32>
    %c0_51 = arith.constant 0 : index
    %c384 = arith.constant 384 : index
    %46 = vector.load %arg8[%c0_51, %c384] : memref<512x1152xf32, #tpu.memory_space<vmem>>, vector<512x128xf32>
    tpu.vector_store %arg8[%c0_51, %c384], %45 {strides = array<i32>} : memref<512x1152xf32, #tpu.memory_space<vmem>>, vector<512x128xf32>,
    %c0_52 = arith.constant 0 : index
    %c1_53 = arith.constant 1 : index
    %c1_54 = arith.constant 1 : index
    %c0_55 = arith.constant 0 : index
    %47 = vector.load %arg7[%c0_52, %c1_53, %c1_54, %c0_55] : memref<2x18x18x128xf32, #tpu.memory_space<vmem>>, vector<2x16x16x128xf32>
    %48 = vector.shape_cast %47 : vector<2x16x16x128xf32> to vector<512x128xf32>
    %c0_56 = arith.constant 0 : index
    %c512 = arith.constant 512 : index
    %49 = vector.load %arg8[%c0_56, %c512] : memref<512x1152xf32, #tpu.memory_space<vmem>>, vector<512x128xf32>
    tpu.vector_store %arg8[%c0_56, %c512], %48 {strides = array<i32>} : memref<512x1152xf32, #tpu.memory_space<vmem>>, vector<512x128xf32>,
    %c0_57 = arith.constant 0 : index
    %c1_58 = arith.constant 1 : index
    %c2_59 = arith.constant 2 : index
    %c0_60 = arith.constant 0 : index
    %50 = vector.load %arg7[%c0_57, %c1_58, %c2_59, %c0_60] : memref<2x18x18x128xf32, #tpu.memory_space<vmem>>, vector<2x16x16x128xf32>
    %51 = vector.shape_cast %50 : vector<2x16x16x128xf32> to vector<512x128xf32>
    %c0_61 = arith.constant 0 : index
    %c640 = arith.constant 640 : index
    %52 = vector.load %arg8[%c0_61, %c640] : memref<512x1152xf32, #tpu.memory_space<vmem>>, vector<512x128xf32>
    tpu.vector_store %arg8[%c0_61, %c640], %51 {strides = array<i32>} : memref<512x1152xf32, #tpu.memory_space<vmem>>, vector<512x128xf32>,
    %c0_62 = arith.constant 0 : index
    %c2_63 = arith.constant 2 : index
    %c0_64 = arith.constant 0 : index
    %c0_65 = arith.constant 0 : index
    %53 = vector.load %arg7[%c0_62, %c2_63, %c0_64, %c0_65] : memref<2x18x18x128xf32, #tpu.memory_space<vmem>>, vector<2x16x16x128xf32>
    %54 = vector.shape_cast %53 : vector<2x16x16x128xf32> to vector<512x128xf32>
    %c0_66 = arith.constant 0 : index
    %c768 = arith.constant 768 : index
    %55 = vector.load %arg8[%c0_66, %c768] : memref<512x1152xf32, #tpu.memory_space<vmem>>, vector<512x128xf32>
    tpu.vector_store %arg8[%c0_66, %c768], %54 {strides = array<i32>} : memref<512x1152xf32, #tpu.memory_space<vmem>>, vector<512x128xf32>,
    %c0_67 = arith.constant 0 : index
    %c2_68 = arith.constant 2 : index
    %c1_69 = arith.constant 1 : index
    %c0_70 = arith.constant 0 : index
    %56 = vector.load %arg7[%c0_67, %c2_68, %c1_69, %c0_70] : memref<2x18x18x128xf32, #tpu.memory_space<vmem>>, vector<2x16x16x128xf32>
    %57 = vector.shape_cast %56 : vector<2x16x16x128xf32> to vector<512x128xf32>
    %c0_71 = arith.constant 0 : index
    %c896 = arith.constant 896 : index
    %58 = vector.load %arg8[%c0_71, %c896] : memref<512x1152xf32, #tpu.memory_space<vmem>>, vector<512x128xf32>
    tpu.vector_store %arg8[%c0_71, %c896], %57 {strides = array<i32>} : memref<512x1152xf32, #tpu.memory_space<vmem>>, vector<512x128xf32>,
    %c0_72 = arith.constant 0 : index
    %c2_73 = arith.constant 2 : index
    %c2_74 = arith.constant 2 : index
    %c0_75 = arith.constant 0 : index
    %59 = vector.load %arg7[%c0_72, %c2_73, %c2_74, %c0_75] : memref<2x18x18x128xf32, #tpu.memory_space<vmem>>, vector<2x16x16x128xf32>
    %60 = vector.shape_cast %59 : vector<2x16x16x128xf32> to vector<512x128xf32>
    %c0_76 = arith.constant 0 : index
    %c1024 = arith.constant 1024 : index
    %61 = vector.load %arg8[%c0_76, %c1024] : memref<512x1152xf32, #tpu.memory_space<vmem>>, vector<512x128xf32>
    tpu.vector_store %arg8[%c0_76, %c1024], %60 {strides = array<i32>} : memref<512x1152xf32, #tpu.memory_space<vmem>>, vector<512x128xf32>,
    %c0_77 = arith.constant 0 : index
    %c0_78 = arith.constant 0 : index
    %62 = vector.load %arg8[%c0_77, %c0_78] : memref<512x1152xf32, #tpu.memory_space<vmem>>, vector<512x1152xf32>
    %c0_79 = arith.constant 0 : index
    %c0_80 = arith.constant 0 : index
    %63 = vector.load %arg2[%c0_79, %c0_80] : memref<1152x128xf32, #tpu.memory_space<vmem>>, vector<1152x128xf32>
    %cst_81 = arith.constant dense<0.000000e+00> : vector<512x128xf32>
    %64 = tpu.matmul %62, %63, %cst_81 {dimension_numbers = #tpu.dot_dimension_numbers<[1], [0], [0], [1], [0, 0, 1, 1], [], []>} : vector<512x1152xf32>, vector<1152x128xf32>, vector<512x128xf32> -> vector<512x128xf32>
    %cst_82 = arith.constant dense<0.000000e+00> : vector<128xf32>
    %65 = vector.multi_reduction <add>, %64, %cst_82 [0] : vector<512x128xf32> to vector<128xf32>
    %66 = vector.shape_cast %65 : vector<128xf32> to vector<1x128xf32>
    %cst_83 = arith.constant 0.001953125 : f32
    %67 = vector.broadcast %cst_83 : f32 to vector<1x128xf32>
    %68 = arith.mulf %66, %67 : vector<1x128xf32>
    %69 = arith.mulf %64, %64 : vector<512x128xf32>
    %cst_84 = arith.constant dense<0.000000e+00> : vector<128xf32>
    %70 = vector.multi_reduction <add>, %69, %cst_84 [0] : vector<512x128xf32> to vector<128xf32>
    %71 = vector.shape_cast %70 : vector<128xf32> to vector<1x128xf32>
    %cst_85 = arith.constant 0.001953125 : f32
    %72 = vector.broadcast %cst_85 : f32 to vector<1x128xf32>
    %73 = arith.mulf %71, %72 : vector<1x128xf32>
    %74 = arith.mulf %68, %68 : vector<1x128xf32>
    %75 = arith.subf %73, %74 : vector<1x128xf32>
    %cst_86 = arith.constant 0.000000e+00 : f32
    %76 = vector.broadcast %cst_86 : f32 to vector<1x128xf32>
    %77 = arith.maximumf %75, %76 : vector<1x128xf32>
    %78 = vector.broadcast %68 : vector<1x128xf32> to vector<512x128xf32>
    %79 = arith.subf %64, %78 : vector<512x128xf32>
    %cst_87 = arith.constant 9.99999974E-6 : f32
    %80 = vector.broadcast %cst_87 : f32 to vector<1x128xf32>
    %81 = arith.addf %77, %80 : vector<1x128xf32>
    %82 = math.rsqrt %81 : vector<1x128xf32>
    %83 = vector.broadcast %82 : vector<1x128xf32> to vector<512x128xf32>
    %84 = arith.mulf %79, %83 : vector<512x128xf32>
    %c0_88 = arith.constant 0 : index
    %c0_89 = arith.constant 0 : index
    %85 = vector.load %arg3[%c0_88, %c0_89] : memref<512x4xf32, #tpu.memory_space<vmem>>, vector<512x4xf32>
    %c0_90 = arith.constant 0 : index
    %c0_91 = arith.constant 0 : index
    %86 = vector.load %arg4[%c0_90, %c0_91] : memref<4x128xf32, #tpu.memory_space<vmem>>, vector<4x128xf32>
    %cst_92 = arith.constant dense<0.000000e+00> : vector<512x128xf32>
    %87 = tpu.matmul %85, %86, %cst_92 {dimension_numbers = #tpu.dot_dimension_numbers<[1], [0], [0], [1], [0, 0, 1, 1], [], []>} : vector<512x4xf32>, vector<4x128xf32>, vector<512x128xf32> -> vector<512x128xf32>
    %c0_93 = arith.constant 0 : index
    %c0_94 = arith.constant 0 : index
    %88 = vector.load %arg5[%c0_93, %c0_94] : memref<1x128xf32, #tpu.memory_space<vmem>>, vector<1x128xf32>
    %89 = vector.broadcast %88 : vector<1x128xf32> to vector<512x128xf32>
    %90 = arith.addf %87, %89 : vector<512x128xf32>
    %91 = arith.addf %84, %90 : vector<512x128xf32>
    %cst_95 = arith.constant 0.000000e+00 : f32
    %92 = vector.broadcast %cst_95 : f32 to vector<512x128xf32>
    %93 = arith.maximumf %91, %92 : vector<512x128xf32>
    %94 = vector.shape_cast %93 : vector<512x128xf32> to vector<2x16x16x128xf32>
    %c0_96 = arith.constant 0 : index
    %c0_97 = arith.constant 0 : index
    %c0_98 = arith.constant 0 : index
    %c0_99 = arith.constant 0 : index
    %95 = vector.load %arg6[%c0_96, %c0_97, %c0_98, %c0_99] : memref<2x16x16x128xf32, #tpu.memory_space<vmem>>, vector<2x16x16x128xf32>
    tpu.vector_store %arg6[%c0_96, %c0_97, %c0_98, %c0_99], %94 {strides = array<i32>} : memref<2x16x16x128xf32, #tpu.memory_space<vmem>>, vector<2x16x16x128xf32>,
    return
  }
}

</mosaic_0001>

<bundles_post_ra>
// kernel: tpu_custom_call.1
= control target key start
LH: loop header
LB: loop body
LE: loop exit
PB: predicated region body
PF: predicated region fallthrough
CT: control target
= control target key end

     0   :  { %vm286_vm0 = vcmask 1043456   ;;  %vm93_vm1 = vcmask 293888   ;;  %s10830_s0 = inlined_call_operand.vmem [shape: f32[512,36], index: 0, kind: input, shape index: {}]   ;;  %s10831_s1 = inlined_call_operand.vmem [shape: f32[36,128], index: 1, kind: input, shape index: {}]   ;;  %s10832_s2 = inlined_call_operand.vmem [shape: f32[1152,128], index: 2, kind: input, shape index: {}]   ;;  %s10833_s3 = inlined_call_operand.vmem [shape: f32[512,4], index: 3, kind: input, shape index: {}]   ;;  %s10834_s4 = inlined_call_operand.vmem [shape: f32[4,128], index: 4, kind: input, shape index: {}]   ;;  %s10835_s5 = inlined_call_operand.vmem [shape: f32[1,128], index: 5, kind: input, shape index: {}]   ;;  %s10836_s6 = inlined_call_operand.hbm [shape: f32[2,16,16,128], index: 6, kind: output, shape index: {}]  }
   0x1   :  { %v92_v0 = vld [vmem:[%s10831_s1 + $0x20] sm:$0xf]  ;;  %v91_v1 = vld [vmem:[%s10831_s1 + $0x18] sm:$0xff]  ;;  %v90_v3 = vld [vmem:[%s10831_s1 + $0x10] sm:$0xff] }
   0x2   :  { %6559 = vmatprep.subr.msk.mxu0 %vm286_vm0, %v92_v0  ;;  %v24_v2 = vld [vmem:[%s10830_s0] sm:$0xff]  ;;  %6891 = vmatprep.subr.msk.mxu1 %vm286_vm0, %v92_v0  ;;  %v89_v4 = vld [vmem:[%s10831_s1 + $0x8] sm:$0xff]  ;;  %v26_v7 = vld [vmem:[%s10830_s0 + $0x10] sm:$0xff] }
   0x3   :  { %6560 = vmatpush3.msk.msra.mxu0 %vm286_vm0, %v92_v0  ;;  %6569 = vmatprep.mubr.msk.f32.mxu0 %vm93_vm1, %v24_v2  ;;  %v88_v5 = vld [vmem:[%s10831_s1] sm:$0xff]  ;;  %v25_v6 = vld [vmem:[%s10830_s0 + $0x8] sm:$0xff]  ;;  %v27_v8 = vld [vmem:[%s10830_s0 + $0x18] sm:$0xff] }
   0x4   :  { %6561 = vmatprep.subr.mxu0 %v91_v1  ;;  %6896 = vmatpush3.msk.msra.mxu1 %vm286_vm0, %v92_v0  ;;  %v56_v9 = vld [vmem:[%s10830_s0 + $0x100] sm:$0xff]  ;;  %v57_v10 = vld [vmem:[%s10830_s0 + $0x108] sm:$0xff]  ;;  %v58_v12 = vld [vmem:[%s10830_s0 + $0x110] sm:$0xff] }
   0x5   :  { %6562 = vmatpush3.msra.mxu0 %v91_v1  ;;  %6892 = vmatprep.subr.mxu1 %v91_v1  ;;  %v28_v11 = vld [vmem:[%s10830_s0 + $0x20] sm:$0xff]  ;;  %v59_v13 = vld [vmem:[%s10830_s0 + $0x118] sm:$0xff]  ;;  %v29_v14 = vld [vmem:[%s10830_s0 + $0x28] sm:$0xff] }
   0x6   :  { %6563 = vmatprep.subr.mxu0 %v90_v3  ;;  %6897 = vmatpush3.msra.mxu1 %v91_v1  ;;  %v60_v15 = vld [vmem:[%s10830_s0 + $0x120] sm:$0xff]  ;;  %v30_v16 = vld [vmem:[%s10830_s0 + $0x30] sm:$0xff]  ;;  %v61_v17 = vld [vmem:[%s10830_s0 + $0x128] sm:$0xff] }
   0x7   :  { %6564 = vmatpush3.msra.mxu0 %v90_v3  ;;  %6893 = vmatprep.subr.mxu1 %v90_v3  ;;  %v31_v18 = vld [vmem:[%s10830_s0 + $0x38] sm:$0xff]  ;;  %v62_v19 = vld [vmem:[%s10830_s0 + $0x130] sm:$0xff]  ;;  %v32_v20 = vld [vmem:[%s10830_s0 + $0x40] sm:$0xff] }
   0x8   :  { %6565 = vmatprep.subr.mxu0 %v89_v4  ;;  %6898 = vmatpush3.msra.mxu1 %v90_v3  ;;  %v63_v21 = vld [vmem:[%s10830_s0 + $0x138] sm:$0xff] }
   0x9   :  { %6566 = vmatpush3.msra.mxu0 %v89_v4  ;;  %6894 = vmatprep.subr.mxu1 %v89_v4 }
   0xa   :  { %6567 = vmatprep.subr.mxu0 %v88_v5  ;;  %6899 = vmatpush3.msra.mxu1 %v89_v4 }
   0xb   :  { %6568 = vmatpush3.msra.mxu0 %v88_v5  ;;  %6895 = vmatprep.subr.mxu1 %v88_v5 }
   0xc   :  { %6570 = vmatmul.mubr.msk.f32.vlgmr.msra.gmra.mxu0 %vm93_vm1, %v25_v6  ;;  %6900 = vmatpush3.msra.mxu1 %v88_v5 }
   0xd   :  { %6572 = vmatprep.mubr.msk.f32.mxu0 %vm93_vm1, %v26_v7  ;;  %6617 = vmatprep.mubr.msk.f32.mxu1 %vm93_vm1, %v56_v9 }
   0xe   :  { %6618 = vmatmul.mubr.msk.f32.vlgmr.msra.gmra.mxu1 %vm93_vm1, %v57_v10 }
   0xf   :  { %6620 = vmatprep.mubr.msk.f32.mxu1 %vm93_vm1, %v58_v12 }
  0x10   :  { %6573 = vmatmul.mubr.msk.f32.gmra.mxu0 %vm93_vm1, %v27_v8 }
  0x11   :  { %6575 = vmatprep.mubr.msk.f32.mxu0 %vm93_vm1, %v28_v11 }
  0x12   :  { %6621 = vmatmul.mubr.msk.f32.gmra.mxu1 %vm93_vm1, %v59_v13 }
  0x13   :  { %6623 = vmatprep.mubr.msk.f32.mxu1 %vm93_vm1, %v60_v15 }
  0x14   :  { %6576 = vmatmul.mubr.msk.f32.gmra.mxu0 %vm93_vm1, %v29_v14 }
  0x15   :  { %6578 = vmatprep.mubr.msk.f32.mxu0 %vm93_vm1, %v30_v16 }
  0x16   :  { %6624 = vmatmul.mubr.msk.f32.gmra.mxu1 %vm93_vm1, %v61_v17 }
  0x17   :  { %6626 = vmatprep.mubr.msk.f32.mxu1 %vm93_vm1, %v62_v19 }
  0x18   :  { %6579 = vmatmul.mubr.msk.f32.gmra.mxu0 %vm93_vm1, %v31_v18 }
  0x19   :  { %11 = vsyncpa [#allocation5], 0  ;;  %6581 = vmatprep.mubr.msk.f32.mxu0 %vm93_vm1, %v32_v20  ;;  %v33_v22 = vld [vmem:[%s10830_s0 + $0x48] sm:$0xff]  ;;  %v64_v23 = vld [vmem:[%s10830_s0 + $0x140] sm:$0xff]  ;;  %v6936_v5 = vmov 0.0   ;;  %vm5425_vm2 = vcmask 31744  }
  0x1a   :  { %v34_v24 = vld [vmem:[%s10830_s0 + $0x50] sm:$0xff]  ;;  %6627 = vmatmul.mubr.msk.f32.gmra.mxu1 %vm93_vm1, %v63_v21  ;;  %v65_v25 = vld [vmem:[%s10830_s0 + $0x148] sm:$0xff]  ;;  %v35_v26 = vld [vmem:[%s10830_s0 + $0x58] sm:$0xff]  ;;  %3091 = vmatprep.subr.mxu1 %v6936_v5  ;;  %1076 = vst [vmem:[#allocation2] sm:$0xff] %v6936_v5 }
  0x1b   :  { %6629 = vmatprep.mubr.msk.f32.mxu1 %vm93_vm1, %v64_v23  ;;  %v66_v27 = vld [vmem:[%s10830_s0 + $0x150] sm:$0xff]  ;;  %v36_v28 = vld [vmem:[%s10830_s0 + $0x60] sm:$0xff]  ;;  %v67_v29 = vld [vmem:[%s10830_s0 + $0x158] sm:$0xff]  ;;  %1077 = vst [vmem:[#allocation2 + $0x8] sm:$0xff] %v6936_v5  ;;  %3476 = vmatprep.subr.mxu0 %v6936_v5 }
  0x1c   :  { %6582 = vmatmul.mubr.msk.f32.gmra.mxu0 %vm93_vm1, %v33_v22  ;;  %v37_v30 = vld [vmem:[%s10830_s0 + $0x68] sm:$0xff]  ;;  %v68_v31 = vld [vmem:[%s10830_s0 + $0x160] sm:$0xff]  ;;  %v38_v32 = vld [vmem:[%s10830_s0 + $0x70] sm:$0xff]  ;;  %1078 = vst [vmem:[#allocation2 + $0x10] sm:$0x3] %v6936_v5 }
  0x1d   :  { %6584 = vmatprep.mubr.msk.f32.mxu0 %vm93_vm1, %v34_v24  ;;  %v69_v33 = vld [vmem:[%s10830_s0 + $0x168] sm:$0xff]  ;;  %v39_v34 = vld [vmem:[%s10830_s0 + $0x78] sm:$0xff]  ;;  %v70_v35 = vld [vmem:[%s10830_s0 + $0x170] sm:$0xff]  ;;  %1079 = vst [vmem:[#allocation2 + $0x1b0] sm:$0xff] %v6936_v5 }
  0x1e   :  { %6630 = vmatmul.mubr.msk.f32.gmra.mxu1 %vm93_vm1, %v65_v25  ;;  %v40_v36 = vld [vmem:[%s10830_s0 + $0x80] sm:$0xff]  ;;  %v71_v37 = vld [vmem:[%s10830_s0 + $0x178] sm:$0xff]  ;;  %v41_v38 = vld [vmem:[%s10830_s0 + $0x88] sm:$0xff]  ;;  %1080 = vst [vmem:[#allocation2 + $0x1b8] sm:$0xff] %v6936_v5 }
  0x1f   :  { %6632 = vmatprep.mubr.msk.f32.mxu1 %vm93_vm1, %v66_v27  ;;  %v72_v39 = vld [vmem:[%s10830_s0 + $0x180] sm:$0xff]  ;;  %v42_v40 = vld [vmem:[%s10830_s0 + $0x90] sm:$0xff]  ;;  %v73_v41 = vld [vmem:[%s10830_s0 + $0x188] sm:$0xff]  ;;  %1081 = vst [vmem:[#allocation2 + $0x1c0] sm:$0x3] %v6936_v5 }
  0x20   :  { %6585 = vmatmul.mubr.msk.f32.gmra.mxu0 %vm93_vm1, %v35_v26  ;;  %v43_v42 = vld [vmem:[%s10830_s0 + $0x98] sm:$0xff]  ;;  %v74_v43 = vld [vmem:[%s10830_s0 + $0x190] sm:$0xff]  ;;  %v44_v44 = vld [vmem:[%s10830_s0 + $0xa0] sm:$0xff]  ;;  %1083 = vst [vmem:[#allocation2 + $0x198] sm:$0xff] %v6936_v5 }
  0x21   :  { %6587 = vmatprep.mubr.msk.f32.mxu0 %vm93_vm1, %v36_v28  ;;  %v75_v45 = vld [vmem:[%s10830_s0 + $0x198] sm:$0xff]  ;;  %v45_v46 = vld [vmem:[%s10830_s0 + $0xa8] sm:$0xff]  ;;  %v76_v47 = vld [vmem:[%s10830_s0 + $0x1a0] sm:$0xff]  ;;  %1084 = vst [vmem:[#allocation2 + $0x1a0] sm:$0xff] %v6936_v5 }
  0x22   :  { %6633 = vmatmul.mubr.msk.f32.gmra.mxu1 %vm93_vm1, %v67_v29  ;;  %v46_v48 = vld [vmem:[%s10830_s0 + $0xb0] sm:$0xff]  ;;  %v77_v49 = vld [vmem:[%s10830_s0 + $0x1a8] sm:$0xff]  ;;  %v47_v50 = vld [vmem:[%s10830_s0 + $0xb8] sm:$0xff]  ;;  %1085 = vst [vmem:[#allocation2 + $0x1a8] sm:$0x3] %v6936_v5 }
  0x23   :  { %6635 = vmatprep.mubr.msk.f32.mxu1 %vm93_vm1, %v68_v31  ;;  %v78_v51 = vld [vmem:[%s10830_s0 + $0x1b0] sm:$0xff]  ;;  %v48_v52 = vld [vmem:[%s10830_s0 + $0xc0] sm:$0xff]  ;;  %v79_v53 = vld [vmem:[%s10830_s0 + $0x1b8] sm:$0xff]  ;;  %1086 = vst [vmem:[#allocation2 + $0x348] sm:$0xff] %v6936_v5 }
  0x24   :  { %6588 = vmatmul.mubr.msk.f32.gmra.mxu0 %vm93_vm1, %v37_v30  ;;  %v49_v54 = vld [vmem:[%s10830_s0 + $0xc8] sm:$0xff]  ;;  %v80_v55 = vld [vmem:[%s10830_s0 + $0x1c0] sm:$0xff]  ;;  %v50_v56 = vld [vmem:[%s10830_s0 + $0xd0] sm:$0xff]  ;;  %1087 = vst [vmem:[#allocation2 + $0x350] sm:$0xff] %v6936_v5 }
  0x25   :  { %6590 = vmatprep.mubr.msk.f32.mxu0 %vm93_vm1, %v38_v32  ;;  %v81_v57 = vld [vmem:[%s10830_s0 + $0x1c8] sm:$0xff]  ;;  %v51_v58 = vld [vmem:[%s10830_s0 + $0xd8] sm:$0xff]  ;;  %v82_v59 = vld [vmem:[%s10830_s0 + $0x1d0] sm:$0xff]  ;;  %1088 = vst [vmem:[#allocation2 + $0x358] sm:$0x3] %v6936_v5 }
  0x26   :  { %6636 = vmatmul.mubr.msk.f32.gmra.mxu1 %vm93_vm1, %v69_v33  ;;  %v52_v60 = vld [vmem:[%s10830_s0 + $0xe0] sm:$0xff]  ;;  %v83_v61 = vld [vmem:[%s10830_s0 + $0x1d8] sm:$0xff]  ;;  %v53_v62 = vld [vmem:[%s10830_s0 + $0xe8] sm:$0xff]  ;;  %1090 = vst [vmem:[#allocation2 + $0x18] sm:$0x1] %v6936_v5 }
  0x27   :  { %6638 = vmatprep.mubr.msk.f32.mxu1 %vm93_vm1, %v70_v35  ;;  %v84_v63 = vld [vmem:[%s10830_s0 + $0x1e0] sm:$0xff]  ;;  %v54_v0 = vld [vmem:[%s10830_s0 + $0xf0] sm:$0xff]  ;;  %v85_v1 = vld [vmem:[%s10830_s0 + $0x1e8] sm:$0xff]  ;;  %1091 = vst [vmem:[#allocation2 + $0x30] sm:$0x1] %v6936_v5 }
  0x28   :  { %6591 = vmatmul.mubr.msk.f32.gmra.mxu0 %vm93_vm1, %v39_v34  ;;  %v55_v2 = vld [vmem:[%s10830_s0 + $0xf8] sm:$0xff]  ;;  %v86_v3 = vld [vmem:[%s10830_s0 + $0x1f0] sm:$0xff]  ;;  %1092 = vst [vmem:[#allocation2 + $0x48] sm:$0x1] %v6936_v5  ;;  %1093 = vst [vmem:[#allocation2 + $0x60] sm:$0x1] %v6936_v5 }
  0x29   :  { %6593 = vmatprep.mubr.msk.f32.mxu0 %vm93_vm1, %v40_v36  ;;  %v87_v4 = vld [vmem:[%s10830_s0 + $0x1f8] sm:$0xff]  ;;  %1094 = vst [vmem:[#allocation2 + $0x78] sm:$0x1] %v6936_v5  ;;  %1095 = vst [vmem:[#allocation2 + $0x90] sm:$0x1] %v6936_v5  ;;  %v2961_v7 = vld [vmem:[%s10832_s2 + $0x70] sm:$0xff] }
  0x2a   :  { %6639 = vmatmul.mubr.msk.f32.gmra.mxu1 %vm93_vm1, %v71_v37  ;;  %1096 = vst [vmem:[#allocation2 + $0xa8] sm:$0x1] %v6936_v5  ;;  %1097 = vst [vmem:[#allocation2 + $0xc0] sm:$0x1] %v6936_v5  ;;  %v2962_v6 = vld [vmem:[%s10832_s2 + $0x78] sm:$0xff]  ;;  %v2960_v8 = vld [vmem:[%s10832_s2 + $0x68] sm:$0xff] }
  0x2b   :  { %6641 = vmatprep.mubr.msk.f32.mxu1 %vm93_vm1, %v72_v39  ;;  %1098 = vst [vmem:[#allocation2 + $0xd8] sm:$0x1] %v6936_v5  ;;  %1099 = vst [vmem:[#allocation2 + $0xf0] sm:$0x1] %v6936_v5  ;;  %3092 = vmatpush1.msra.mxu1 %v2962_v6  ;;  %v2959_v9 = vld [vmem:[%s10832_s2 + $0x60] sm:$0xff]  ;;  %v2958_v10 = vld [vmem:[%s10832_s2 + $0x58] sm:$0xff] }
  0x2c   :  { %6594 = vmatmul.mubr.msk.f32.gmra.mxu0 %vm93_vm1, %v41_v38  ;;  %1100 = vst [vmem:[#allocation2 + $0x108] sm:$0x1] %v6936_v5  ;;  %1101 = vst [vmem:[#allocation2 + $0x120] sm:$0x1] %v6936_v5  ;;  %3093 = vmatprep.subr.mxu1 %v6936_v5  ;;  %v2957_v11 = vld [vmem:[%s10832_s2 + $0x50] sm:$0xff]  ;;  %v2956_v12 = vld [vmem:[%s10832_s2 + $0x48] sm:$0xff] }
  0x2d   :  { %6596 = vmatprep.mubr.msk.f32.mxu0 %vm93_vm1, %v42_v40  ;;  %1102 = vst [vmem:[#allocation2 + $0x138] sm:$0x1] %v6936_v5  ;;  %1103 = vst [vmem:[#allocation2 + $0x150] sm:$0x1] %v6936_v5  ;;  %3094 = vmatpush1.msra.mxu1 %v2961_v7  ;;  %v2994_v13 = vld [vmem:[%s10832_s2 + $0x178] sm:$0xff]  ;;  %v2955_v14 = vld [vmem:[%s10832_s2 + $0x40] sm:$0xff] }
  0x2e   :  { %6642 = vmatmul.mubr.msk.f32.gmra.mxu1 %vm93_vm1, %v73_v41  ;;  %1104 = vst [vmem:[#allocation2 + $0x168] sm:$0x1] %v6936_v5  ;;  %1105 = vst [vmem:[#allocation2 + $0x180] sm:$0x1] %v6936_v5  ;;  %3095 = vmatprep.subr.mxu1 %v6936_v5  ;;  %v2993_v15 = vld [vmem:[%s10832_s2 + $0x170] sm:$0xff]  ;;  %v2954_v16 = vld [vmem:[%s10832_s2 + $0x38] sm:$0xff] }
  0x2f   :  { %6644 = vmatprep.mubr.msk.f32.mxu1 %vm93_vm1, %v74_v43  ;;  %1106 = vst [vmem:[#allocation2 + $0x1c8] sm:$0x1] %v6936_v5  ;;  %1107 = vst [vmem:[#allocation2 + $0x1e0] sm:$0x1] %v6936_v5  ;;  %3096 = vmatpush1.msra.mxu1 %v2960_v8  ;;  %v2992_v17 = vld [vmem:[%s10832_s2 + $0x168] sm:$0xff]  ;;  %v2991_v18 = vld [vmem:[%s10832_s2 + $0x160] sm:$0xff] }
  0x30   :  { %6597 = vmatmul.mubr.msk.f32.gmra.mxu0 %vm93_vm1, %v43_v42  ;;  %1108 = vst [vmem:[#allocation2 + $0x1f8] sm:$0x1] %v6936_v5  ;;  %1109 = vst [vmem:[#allocation2 + $0x210] sm:$0x1] %v6936_v5  ;;  %3097 = vmatprep.subr.mxu1 %v6936_v5 }
  0x31   :  { %6599 = vmatprep.mubr.msk.f32.mxu0 %vm93_vm1, %v44_v44  ;;  %1110 = vst [vmem:[#allocation2 + $0x228] sm:$0x1] %v6936_v5  ;;  %1111 = vst [vmem:[#allocation2 + $0x240] sm:$0x1] %v6936_v5  ;;  %3098 = vmatpush1.msra.mxu1 %v2959_v9 }
  0x32   :  { %6645 = vmatmul.mubr.msk.f32.gmra.mxu1 %vm93_vm1, %v75_v45  ;;  %1112 = vst [vmem:[#allocation2 + $0x258] sm:$0x1] %v6936_v5  ;;  %1113 = vst [vmem:[#allocation2 + $0x270] sm:$0x1] %v6936_v5  ;;  %3099 = vmatprep.subr.mxu1 %v6936_v5 }
  0x33   :  { %6647 = vmatprep.mubr.msk.f32.mxu1 %vm93_vm1, %v76_v47  ;;  %1114 = vst [vmem:[#allocation2 + $0x288] sm:$0x1] %v6936_v5  ;;  %1115 = vst [vmem:[#allocation2 + $0x2a0] sm:$0x1] %v6936_v5  ;;  %3100 = vmatpush1.msra.mxu1 %v2958_v10 }
  0x34   :  { %6600 = vmatmul.mubr.msk.f32.gmra.mxu0 %vm93_vm1, %v45_v46  ;;  %1116 = vst [vmem:[#allocation2 + $0x2b8] sm:$0x1] %v6936_v5  ;;  %1117 = vst [vmem:[#allocation2 + $0x2d0] sm:$0x1] %v6936_v5  ;;  %3101 = vmatprep.subr.mxu1 %v6936_v5 }
  0x35   :  { %6602 = vmatprep.mubr.msk.f32.mxu0 %vm93_vm1, %v46_v48  ;;  %1118 = vst [vmem:[#allocation2 + $0x2e8] sm:$0x1] %v6936_v5  ;;  %1119 = vst [vmem:[#allocation2 + $0x300] sm:$0x1] %v6936_v5  ;;  %3102 = vmatpush1.msra.mxu1 %v2957_v11  ;;  %v2990_v11 = vld [vmem:[%s10832_s2 + $0x158] sm:$0xff] }
  0x36   :  { %6648 = vmatmul.mubr.msk.f32.gmra.mxu1 %vm93_vm1, %v77_v49  ;;  %1120 = vst [vmem:[#allocation2 + $0x318] sm:$0x1] %v6936_v5  ;;  %1121 = vst [vmem:[#allocation2 + $0x330] sm:$0x1] %v6936_v5  ;;  %3103 = vmatprep.subr.mxu1 %v6936_v5 }
  0x37   :  { %6650 = vmatprep.mubr.msk.f32.mxu1 %vm93_vm1, %v78_v51  ;;  %1122 = vst [vmem:[#allocation2 + $0x29] sm:$0x1] %v6936_v5  ;;  %1123 = vst [vmem:[#allocation2 + $0x41] sm:$0x1] %v6936_v5  ;;  %3104 = vmatpush1.msra.mxu1 %v2956_v12  ;;  %v2951_v12 = vld [vmem:[%s10832_s2 + $0x20] sm:$0xff] }
  0x38   :  { %6603 = vmatmul.mubr.msk.f32.gmra.mxu0 %vm93_vm1, %v47_v50  ;;  %1124 = vst [vmem:[#allocation2 + $0x59] sm:$0x1] %v6936_v5  ;;  %1125 = vst [vmem:[#allocation2 + $0x71] sm:$0x1] %v6936_v5  ;;  %3105 = vmatprep.subr.mxu1 %v6936_v5 }
  0x39   :  { %6605 = vmatprep.mubr.msk.f32.mxu0 %vm93_vm1, %v48_v52  ;;  %1126 = vst [vmem:[#allocation2 + $0x89] sm:$0x1] %v6936_v5  ;;  %1127 = vst [vmem:[#allocation2 + $0xa1] sm:$0x1] %v6936_v5  ;;  %3477 = vmatpush1.msra.mxu0 %v2994_v13 }
  0x3a   :  { %6651 = vmatmul.mubr.msk.f32.gmra.mxu1 %vm93_vm1, %v79_v53  ;;  %1128 = vst [vmem:[#allocation2 + $0xb9] sm:$0x1] %v6936_v5  ;;  %1129 = vst [vmem:[#allocation2 + $0xd1] sm:$0x1] %v6936_v5  ;;  %3478 = vmatprep.subr.mxu0 %v6936_v5 }
  0x3b   :  { %6653 = vmatprep.mubr.msk.f32.mxu1 %vm93_vm1, %v80_v55  ;;  %1130 = vst [vmem:[#allocation2 + $0xe9] sm:$0x1] %v6936_v5  ;;  %1131 = vst [vmem:[#allocation2 + $0x101] sm:$0x1] %v6936_v5  ;;  %3106 = vmatpush1.msra.mxu1 %v2955_v14 }
  0x3c   :  { %6606 = vmatmul.mubr.msk.f32.gmra.mxu0 %vm93_vm1, %v49_v54  ;;  %1132 = vst [vmem:[#allocation2 + $0x119] sm:$0x1] %v6936_v5  ;;  %1133 = vst [vmem:[#allocation2 + $0x131] sm:$0x1] %v6936_v5  ;;  %3107 = vmatprep.subr.mxu1 %v6936_v5 }
  0x3d   :  { %6608 = vmatprep.mubr.msk.f32.mxu0 %vm93_vm1, %v50_v56  ;;  %1134 = vst [vmem:[#allocation2 + $0x149] sm:$0x1] %v6936_v5  ;;  %1135 = vst [vmem:[#allocation2 + $0x161] sm:$0x1] %v6936_v5  ;;  %3479 = vmatpush1.msra.mxu0 %v2993_v15 }
  0x3e   :  { %6654 = vmatmul.mubr.msk.f32.gmra.mxu1 %vm93_vm1, %v81_v57  ;;  %1136 = vst [vmem:[#allocation2 + $0x179] sm:$0x1] %v6936_v5  ;;  %1137 = vst [vmem:[#allocation2 + $0x191] sm:$0x1] %v6936_v5  ;;  %3480 = vmatprep.subr.mxu0 %v6936_v5 }
  0x3f   :  { %6656 = vmatprep.mubr.msk.f32.mxu1 %vm93_vm1, %v82_v59  ;;  %1138 = vst [vmem:[#allocation2 + $0x1d9] sm:$0x1] %v6936_v5  ;;  %1139 = vst [vmem:[#allocation2 + $0x1f1] sm:$0x1] %v6936_v5  ;;  %3108 = vmatpush1.msra.mxu1 %v2954_v16 }
  0x40   :  { %6609 = vmatmul.mubr.msk.f32.gmra.mxu0 %vm93_vm1, %v51_v58  ;;  %1140 = vst [vmem:[#allocation2 + $0x209] sm:$0x1] %v6936_v5  ;;  %1141 = vst [vmem:[#allocation2 + $0x221] sm:$0x1] %v6936_v5  ;;  %3109 = vmatprep.subr.mxu1 %v6936_v5 }
  0x41   :  { %6611 = vmatprep.mubr.msk.f32.mxu0 %vm93_vm1, %v52_v60  ;;  %1142 = vst [vmem:[#allocation2 + $0x239] sm:$0x1] %v6936_v5  ;;  %1143 = vst [vmem:[#allocation2 + $0x251] sm:$0x1] %v6936_v5  ;;  %3481 = vmatpush1.msra.mxu0 %v2992_v17  ;;  %v2989_v17 = vld [vmem:[%s10832_s2 + $0x150] sm:$0xff] }
  0x42   :  { %6657 = vmatmul.mubr.msk.f32.gmra.mxu1 %vm93_vm1, %v83_v61  ;;  %1144 = vst [vmem:[#allocation2 + $0x269] sm:$0x1] %v6936_v5  ;;  %1145 = vst [vmem:[#allocation2 + $0x281] sm:$0x1] %v6936_v5  ;;  %3482 = vmatprep.subr.mxu0 %v6936_v5 }
  0x43   :  { %6659 = vmatprep.mubr.msk.f32.mxu1 %vm93_vm1, %v84_v63  ;;  %1146 = vst [vmem:[#allocation2 + $0x299] sm:$0x1] %v6936_v5  ;;  %1147 = vst [vmem:[#allocation2 + $0x2b1] sm:$0x1] %v6936_v5  ;;  %3483 = vmatpush1.msra.mxu0 %v2991_v18  ;;  %v2953_v63 = vld [vmem:[%s10832_s2 + $0x30] sm:$0xff]  ;;  %v2950_v18 = vld [vmem:[%s10832_s2 + $0x18] sm:$0xff] }
  0x44   :  { %6612 = vmatmul.mubr.msk.f32.gmra.mxu0 %vm93_vm1, %v53_v62  ;;  %1148 = vst [vmem:[#allocation2 + $0x2c9] sm:$0x1] %v6936_v5  ;;  %1149 = vst [vmem:[#allocation2 + $0x2e1] sm:$0x1] %v6936_v5  ;;  %3484 = vmatprep.subr.mxu0 %v6936_v5 }
  0x45   :  { %6614 = vmatprep.mubr.msk.f32.mxu0 %vm93_vm1, %v54_v0  ;;  %1150 = vst [vmem:[#allocation2 + $0x2f9] sm:$0x1] %v6936_v5  ;;  %1151 = vst [vmem:[#allocation2 + $0x311] sm:$0x1] %v6936_v5  ;;  %3110 = vmatpush1.msra.mxu1 %v2953_v63 }
  0x46   :  { %6660 = vmatmul.mubr.msk.f32.gmra.mxu1 %vm93_vm1, %v85_v1  ;;  %1152 = vst [vmem:[#allocation2 + $0x329] sm:$0x1] %v6936_v5  ;;  %1153 = vst [vmem:[#allocation2 + $0x341] sm:$0x1] %v6936_v5  ;;  %3111 = vmatprep.subr.mxu1 %v6936_v5 }
  0x47   :  { %6662 = vmatprep.mubr.msk.f32.mxu1 %vm93_vm1, %v86_v3  ;;  %3485 = vmatpush1.msra.mxu0 %v2990_v11 }
  0x48   :  { %6615 = vmatmul.mubr.msk.f32.gmra.mxu0 %vm93_vm1, %v55_v2  ;;  %3486 = vmatprep.subr.mxu0 %v6936_v5 }
  0x49   :  { %3487 = vmatpush1.msra.mxu0 %v2989_v17 }
  0x4a   :  { %6663 = vmatmul.mubr.msk.f32.gmra.mxu1 %vm93_vm1, %v87_v4  ;;  %v2952_v4 = vld [vmem:[%s10832_s2 + $0x28] sm:$0xff]  ;;  %3488 = vmatprep.subr.mxu0 %v6936_v5 }
  0x4b   :  { %3112 = vmatpush1.msra.mxu1 %v2952_v4  ;;  %v2984_v4 = vld [vmem:[%s10832_s2 + $0x128] sm:$0xff] }
  0x4c   :  { %3113 = vmatprep.subr.mxu1 %v6936_v5 }
  0x4d   :  { %3114 = vmatpush1.msra.mxu1 %v2951_v12 }
  0x4e   :  { %3115 = vmatprep.subr.mxu1 %v6936_v5 }
  0x4f   :  { %3116 = vmatpush1.msra.mxu1 %v2950_v18 }
  0x50   :  { %3117 = vmatprep.subr.mxu1 %v6936_v5 }
  0xcc   :  { %v7380_v19 = vpop.f32.mrf.mxu0 }
  0xcd   :  { %v746_v24 = vmul.f32 %v7380_v19, %v7380_v19 }
  0xce   :  { %v7382_v20 = vpop.f32.mrf.mxu0  ;;  %v7386_v22 = vpop.f32.mrf.mxu1 }
  0xcf   :  { %v745_v21 = vmul.f32 %v7382_v20, %v7382_v20  ;;  %v675_v25 = vadd.f32 %v7380_v19, %v7382_v20 }
  0xd0   :  { %v7388_v23 = vpop.f32.mrf.mxu0  ;;  %v7394_v26 = vpop.f32.mrf.mxu1 }
  0xd1   :  { %v809_v28 = vadd.f32 %v746_v24, %v745_v21  ;;  %v748_v33 = vmul.f32 %v7388_v23, %v7388_v23 }
  0xd2   :  { %v7396_v27 = vpop.f32.mrf.mxu0  ;;  %v7403_v32 = vpop.f32.mrf.mxu1 }
  0xd3   :  { %v676_v29 = vadd.f32 %v675_v25, %v7396_v27  ;;  %v747_v30 = vmul.f32 %v7396_v27, %v7396_v27  ;;  %11010 = vst [vmem:[#allocation7_spill] sm:$0xff] %v7403_v32 }
  0xd4   :  { %v7401_v31 = vpop.f32.mrf.mxu0  ;;  %v7415_v41 = vpop.f32.mrf.mxu1 }
  0xd5   :  { %v677_v34 = vadd.f32 %v7388_v23, %v676_v29  ;;  %v810_v35 = vadd.f32 %v809_v28, %v747_v30  ;;  %v750_v42 = vmul.f32 %v7401_v31, %v7401_v31  ;;  %v2988_v30 = vld [vmem:[%s10832_s2 + $0x148] sm:$0xff] }
  0xd6   :  { %v7408_v36 = vpop.f32.mrf.mxu0  ;;  %v7427_v50 = vpop.f32.mrf.mxu1  ;;  %3489 = vmatpush1.msra.mxu0 %v2988_v30  ;;  %v2975_v30 = vld [vmem:[%s10832_s2 + $0xe0] sm:$0xff] }
  0xd7   :  { %v811_v37 = vadd.f32 %v810_v35, %v748_v33  ;;  %v678_v38 = vadd.f32 %v677_v34, %v7408_v36  ;;  %v749_v39 = vmul.f32 %v7408_v36, %v7408_v36  ;;  %11011 = vst [vmem:[#allocation8_spill] sm:$0xff] %v7427_v50  ;;  %v2949_v33 = vld [vmem:[%s10832_s2 + $0x10] sm:$0xff]  ;;  %3490 = vmatprep.subr.mxu0 %v6936_v5 }
  0xd8   :  { %v7413_v40 = vpop.f32.mrf.mxu0  ;;  %v7439_v59 = vpop.f32.mrf.mxu1  ;;  %3118 = vmatpush1.msra.mxu1 %v2949_v33 }
  0xd9   :  { %v812_v43 = vadd.f32 %v811_v37, %v749_v39  ;;  %v679_v44 = vadd.f32 %v7401_v31, %v678_v38  ;;  %v752_v51 = vmul.f32 %v7413_v40, %v7413_v40  ;;  %v2987_v39 = vld [vmem:[%s10832_s2 + $0x140] sm:$0xff]  ;;  %3119 = vmatprep.subr.mxu1 %v6936_v5 }
  0xda   :  { %v7420_v45 = vpop.f32.mrf.mxu0  ;;  %v7458_v7 = vpop.f32.mrf.mxu1  ;;  %3491 = vmatpush1.msra.mxu0 %v2987_v39  ;;  %v2981_v39 = vld [vmem:[%s10832_s2 + $0x110] sm:$0xff] }
  0xdb   :  { %v680_v46 = vadd.f32 %v679_v44, %v7420_v45  ;;  %v751_v47 = vmul.f32 %v7420_v45, %v7420_v45  ;;  %v813_v48 = vadd.f32 %v812_v43, %v750_v42  ;;  %11012 = vst [vmem:[#allocation9_spill] sm:$0xff] %v7458_v7  ;;  %v2948_v42 = vld [vmem:[%s10832_s2 + $0x8] sm:$0xff]  ;;  %3492 = vmatprep.subr.mxu0 %v6936_v5 }
  0xdc   :  { %v7425_v49 = vpop.f32.mrf.mxu0  ;;  %v7485_v24 = vpop.f32.mrf.mxu1  ;;  %3120 = vmatpush1.msra.mxu1 %v2948_v42  ;;  %v2974_v42 = vld [vmem:[%s10832_s2 + $0xd8] sm:$0xff] }
  0xdd   :  { %v814_v52 = vadd.f32 %v813_v48, %v751_v47  ;;  %v681_v53 = vadd.f32 %v7413_v40, %v680_v46  ;;  %v754_v60 = vmul.f32 %v7425_v49, %v7425_v49  ;;  %11013 = vst [vmem:[#allocation10_spill] sm:$0xff] %v7485_v24  ;;  %3121 = vmatprep.subr.mxu1 %v6936_v5 }
  0xde   :  { %v7432_v54 = vpop.f32.mrf.mxu0  ;;  %v7513_v44 = vpop.f32.mrf.mxu1 }
  0xdf   :  { %v682_v55 = vadd.f32 %v681_v53, %v7432_v54  ;;  %v753_v56 = vmul.f32 %v7432_v54, %v7432_v54  ;;  %v815_v57 = vadd.f32 %v814_v52, %v752_v51  ;;  %v2986_v51 = vld [vmem:[%s10832_s2 + $0x138] sm:$0xff]  ;;  %v2947_v52 = vld [vmem:[%s10832_s2] sm:$0xff] }
  0xe0   :  { %v7437_v58 = vpop.f32.mrf.mxu0  ;;  %3493 = vmatpush1.msra.mxu0 %v2986_v51  ;;  %3122 = vmatpush1.msra.mxu1 %v2947_v52  ;;  %v7541_v63 = vpop.f32.mrf.mxu1 }
  0xe1   :  { %v816_v61 = vadd.f32 %v815_v57, %v753_v56  ;;  %v683_v62 = vadd.f32 %v7425_v49, %v682_v55  ;;  %v756_v8 = vmul.f32 %v7437_v58, %v7437_v58  ;;  %3494 = vmatprep.subr.mxu0 %v6936_v5  ;;  %3123 = vmatprep.subr.mxu1 %v6936_v5 }
  0xe2   :  { %v7447_v0 = vpop.f32.mrf.mxu0  ;;  %v7569_v17 = vpop.f32.mrf.mxu1 }
  0xe3   :  { %v684_v1 = vadd.f32 %v683_v62, %v7447_v0  ;;  %v755_v2 = vmul.f32 %v7447_v0, %v7447_v0  ;;  %v817_v3 = vadd.f32 %v816_v61, %v754_v60  ;;  %v2985_v60 = vld [vmem:[%s10832_s2 + $0x130] sm:$0xff]  ;;  %v2978_v61 = vld [vmem:[%s10832_s2 + $0xf8] sm:$0xff]  ;;  %11014 = vst [vmem:[#allocation11_spill] sm:$0xff] %v7569_v17 }
  0xe4   :  { %v7456_v6 = vpop.f32.mrf.mxu0  ;;  %3495 = vmatpush1.msra.mxu0 %v2985_v60  ;;  %3124 = vmatpush2.msra.mxu1 %v2978_v61 }
  0xe5   :  { %v818_v9 = vadd.f32 %v817_v3, %v755_v2  ;;  %v685_v10 = vadd.f32 %v7437_v58, %v684_v1  ;;  %v758_v25 = vmul.f32 %v7456_v6, %v7456_v6  ;;  %3496 = vmatprep.subr.mxu0 %v6936_v5  ;;  %3125 = vmatprep.subr.mxu1 %v6936_v5 }
  0xe6   :  { %v7470_v13 = vpop.f32.mrf.mxu0  ;;  %3497 = vmatpush1.msra.mxu0 %v2984_v4 }
  0xe7   :  { %v686_v14 = vadd.f32 %v685_v10, %v7470_v13  ;;  %v757_v15 = vmul.f32 %v7470_v13, %v7470_v13  ;;  %v819_v16 = vadd.f32 %v818_v9, %v756_v8  ;;  %v2977_v8 = vld [vmem:[%s10832_s2 + $0xf0] sm:$0xff]  ;;  %3498 = vmatprep.subr.mxu0 %v6936_v5 }
  0xe8   :  { %v7483_v21 = vpop.f32.mrf.mxu0  ;;  %3126 = vmatpush2.msra.mxu1 %v2977_v8 }
  0xe9   :  { %v820_v28 = vadd.f32 %v819_v16, %v757_v15  ;;  %v687_v29 = vadd.f32 %v7456_v6, %v686_v14  ;;  %v760_v46 = vmul.f32 %v7483_v21, %v7483_v21  ;;  %v2983_v14 = vld [vmem:[%s10832_s2 + $0x120] sm:$0xff]  ;;  %3127 = vmatprep.subr.mxu1 %v6936_v5  ;;  %v2976_v15 = vld [vmem:[%s10832_s2 + $0xe8] sm:$0xff] }
  0xea   :  { %v7498_v34 = vpop.f32.mrf.mxu0  ;;  %3499 = vmatpush1.msra.mxu0 %v2983_v14  ;;  %3128 = vmatpush2.msra.mxu1 %v2976_v15  ;;  %v3010_v14 = vld [vmem:[%s10832_s2 + $0x1f8] sm:$0xff]  ;;  %v2971_v15 = vld [vmem:[%s10832_s2 + $0xc0] sm:$0xff] }
  0xeb   :  { %v688_v35 = vadd.f32 %v687_v29, %v7498_v34  ;;  %v759_v37 = vmul.f32 %v7498_v34, %v7498_v34  ;;  %v821_v38 = vadd.f32 %v820_v28, %v758_v25  ;;  %3500 = vmatprep.subr.mxu0 %v6936_v5  ;;  %v2982_v29 = vld [vmem:[%s10832_s2 + $0x118] sm:$0xff]  ;;  %3129 = vmatprep.subr.mxu1 %v6936_v5 }
  0xec   :  { %v7511_v43 = vpop.f32.mrf.mxu0  ;;  %3501 = vmatpush1.msra.mxu0 %v2982_v29  ;;  %3130 = vmatpush2.msra.mxu1 %v2975_v30  ;;  %v3009_v30 = vld [vmem:[%s10832_s2 + $0x1f0] sm:$0xff] }
  0xed   :  { %v822_v47 = vadd.f32 %v821_v38, %v759_v37  ;;  %v689_v48 = vadd.f32 %v7483_v21, %v688_v35  ;;  %v762_v1 = vmul.f32 %v7511_v43, %v7511_v43  ;;  %3502 = vmatprep.subr.mxu0 %v6936_v5  ;;  %3131 = vmatprep.subr.mxu1 %v6936_v5 }
  0xee   :  { %v7526_v53 = vpop.f32.mrf.mxu0  ;;  %3503 = vmatpush1.msra.mxu0 %v2981_v39  ;;  %3132 = vmatpush2.msra.mxu1 %v2974_v42 }
  0xef   :  { %v690_v55 = vadd.f32 %v689_v48, %v7526_v53  ;;  %v761_v56 = vmul.f32 %v7526_v53, %v7526_v53  ;;  %v823_v57 = vadd.f32 %v822_v47, %v760_v46  ;;  %v7597_v47 = vpop.f32.mrf.mxu1  ;;  %3504 = vmatprep.subr.mxu0 %v6936_v5  ;;  %3133 = vmatprep.subr.mxu1 %v6936_v5 }
  0xf0   :  { %v7539_v62 = vpop.f32.mrf.mxu0  ;;  %11015 = vst [vmem:[#allocation12_spill] sm:$0xff] %v7597_v47 }
  0xf1   :  { %v824_v2 = vadd.f32 %v823_v57, %v761_v56  ;;  %v691_v3 = vadd.f32 %v7511_v43, %v690_v55  ;;  %v764_v18 = vmul.f32 %v7539_v62, %v7539_v62  ;;  %v2980_v55 = vld [vmem:[%s10832_s2 + $0x108] sm:$0xff]  ;;  %v2973_v56 = vld [vmem:[%s10832_s2 + $0xd0] sm:$0xff]  ;;  %v7625_v8 = vpop.f32.mrf.mxu1 }
  0xf2   :  { %v7554_v9 = vpop.f32.mrf.mxu0  ;;  %3505 = vmatpush1.msra.mxu0 %v2980_v55  ;;  %3134 = vmatpush2.msra.mxu1 %v2973_v56  ;;  %11016 = vst [vmem:[#allocation13_spill] sm:$0xff] %v7625_v8 }
  0xf3   :  { %v692_v10 = vadd.f32 %v691_v3, %v7554_v9  ;;  %v763_v11 = vmul.f32 %v7554_v9, %v7554_v9  ;;  %v825_v12 = vadd.f32 %v824_v2, %v762_v1  ;;  %3506 = vmatprep.subr.mxu0 %v6936_v5  ;;  %v2979_v2 = vld [vmem:[%s10832_s2 + $0x100] sm:$0xff]  ;;  %3135 = vmatprep.subr.mxu1 %v6936_v5  ;;  %v2972_v3 = vld [vmem:[%s10832_s2 + $0xc8] sm:$0xff] }
  0xf4   :  { %v7567_v16 = vpop.f32.mrf.mxu0  ;;  %3507 = vmatpush1.msra.mxu0 %v2979_v2  ;;  %3136 = vmatpush2.msra.mxu1 %v2972_v3  ;;  %v2968_v2 = vld [vmem:[%s10832_s2 + $0xa8] sm:$0xff] }
  0xf5   :  { %v826_v25 = vadd.f32 %v825_v12, %v763_v11  ;;  %v693_v28 = vadd.f32 %v7539_v62, %v692_v10  ;;  %v766_v48 = vmul.f32 %v7567_v16, %v7567_v16  ;;  %3508 = vmatprep.subr.mxu0 %v6936_v5  ;;  %3137 = vmatprep.subr.mxu1 %v6936_v5 }
  0xf6   :  { %v7582_v33 = vpop.f32.mrf.mxu0  ;;  %3509 = vmatpush2.msra.mxu0 %v3010_v14  ;;  %3138 = vmatpush2.msra.mxu1 %v2971_v15  ;;  %v3006_v15 = vld [vmem:[%s10832_s2 + $0x1d8] sm:$0xff] }
  0xf7   :  { %v694_v35 = vadd.f32 %v693_v28, %v7582_v33  ;;  %v765_v37 = vmul.f32 %v7582_v33, %v7582_v33  ;;  %v827_v38 = vadd.f32 %v826_v25, %v764_v18  ;;  %3510 = vmatprep.subr.mxu0 %v6936_v5  ;;  %3139 = vmatprep.subr.mxu1 %v6936_v5 }
  0xf8   :  { %v7595_v46 = vpop.f32.mrf.mxu0  ;;  %3511 = vmatpush2.msra.mxu0 %v3009_v30 }
  0xf9   :  { %v828_v51 = vadd.f32 %v827_v38, %v765_v37  ;;  %v695_v52 = vadd.f32 %v7567_v16, %v694_v35  ;;  %v768_v10 = vmul.f32 %v7595_v46, %v7595_v46  ;;  %v2970_v35 = vld [vmem:[%s10832_s2 + $0xb8] sm:$0xff]  ;;  %v7653_v38 = vpop.f32.mrf.mxu1  ;;  %3512 = vmatprep.subr.mxu0 %v6936_v5 }
  0xfa   :  { %v7610_v57 = vpop.f32.mrf.mxu0  ;;  %11017 = vst [vmem:[#allocation14_spill] sm:$0xff] %v7653_v38  ;;  %3140 = vmatpush2.msra.mxu1 %v2970_v35 }
  0xfb   :  { %v696_v60 = vadd.f32 %v695_v52, %v7610_v57  ;;  %v767_v61 = vmul.f32 %v7610_v57, %v7610_v57  ;;  %v829_v1 = vadd.f32 %v828_v51, %v766_v48  ;;  %v3008_v51 = vld [vmem:[%s10832_s2 + $0x1e8] sm:$0xff]  ;;  %3141 = vmatprep.subr.mxu1 %v6936_v5  ;;  %v2969_v52 = vld [vmem:[%s10832_s2 + $0xb0] sm:$0xff] }
  0xfc   :  { %v7623_v4 = vpop.f32.mrf.mxu0  ;;  %3513 = vmatpush2.msra.mxu0 %v3008_v51  ;;  %3142 = vmatpush2.msra.mxu1 %v2969_v52 }
  0xfd   :  { %v830_v11 = vadd.f32 %v829_v1, %v767_v61  ;;  %v697_v12 = vadd.f32 %v7595_v46, %v696_v60  ;;  %v770_v39 = vmul.f32 %v7623_v4, %v7623_v4  ;;  %3514 = vmatprep.subr.mxu0 %v6936_v5  ;;  %v3007_v1 = vld [vmem:[%s10832_s2 + $0x1e0] sm:$0xff]  ;;  %3143 = vmatprep.subr.mxu1 %v6936_v5 }
  0xfe   :  { %v7638_v18 = vpop.f32.mrf.mxu0  ;;  %3515 = vmatpush2.msra.mxu0 %v3007_v1  ;;  %3144 = vmatpush2.msra.mxu1 %v2968_v2  ;;  %v2965_v1 = vld [vmem:[%s10832_s2 + $0x90] sm:$0xff] }
  0xff   :  { %v698_v25 = vadd.f32 %v697_v12, %v7638_v18  ;;  %v769_v28 = vmul.f32 %v7638_v18, %v7638_v18  ;;  %v831_v29 = vadd.f32 %v830_v11, %v768_v10  ;;  %v7681_v10 = vpop.f32.mrf.mxu1  ;;  %3516 = vmatprep.subr.mxu0 %v6936_v5  ;;  %3145 = vmatprep.subr.mxu1 %v6936_v5 }
 0x100   :  { %v7651_v37 = vpop.f32.mrf.mxu0  ;;  %11018 = vst [vmem:[#allocation15_spill] sm:$0xff] %v7681_v10  ;;  %3517 = vmatpush2.msra.mxu0 %v3006_v15  ;;  %v3003_v15 = vld [vmem:[%s10832_s2 + $0x1c0] sm:$0xff] }
 0x101   :  { %v832_v42 = vadd.f32 %v831_v29, %v769_v28  ;;  %v699_v48 = vadd.f32 %v7623_v4, %v698_v25  ;;  %v772_v11 = vmul.f32 %v7651_v37, %v7651_v37  ;;  %v2967_v25 = vld [vmem:[%s10832_s2 + $0xa0] sm:$0xff]  ;;  %3518 = vmatprep.subr.mxu0 %v6936_v5  ;;  %v7709_v51 = vpop.f32.mrf.mxu1 }
 0x102   :  { %v7666_v55 = vpop.f32.mrf.mxu0  ;;  %3146 = vmatpush2.msra.mxu1 %v2967_v25  ;;  %11019 = vst [vmem:[#allocation16_spill] sm:$0xff] %v7709_v51  ;;  %v2964_v25 = vld [vmem:[%s10832_s2 + $0x88] sm:$0xff] }
 0x103   :  { %v700_v56 = vadd.f32 %v699_v48, %v7666_v55  ;;  %v771_v60 = vmul.f32 %v7666_v55, %v7666_v55  ;;  %v833_v61 = vadd.f32 %v832_v42, %v770_v39  ;;  %v3005_v39 = vld [vmem:[%s10832_s2 + $0x1d0] sm:$0xff]  ;;  %3147 = vmatprep.subr.mxu1 %v6936_v5  ;;  %v2966_v42 = vld [vmem:[%s10832_s2 + $0x98] sm:$0xff] }
 0x104   :  { %v7679_v3 = vpop.f32.mrf.mxu0  ;;  %3519 = vmatpush2.msra.mxu0 %v3005_v39  ;;  %3148 = vmatpush2.msra.mxu1 %v2966_v42  ;;  %v3002_v42 = vld [vmem:[%s10832_s2 + $0x1b8] sm:$0xff] }
 0x105   :  { %v834_v12 = vadd.f32 %v833_v61, %v771_v60  ;;  %v701_v14 = vadd.f32 %v7651_v37, %v700_v56  ;;  %v774_v52 = vmul.f32 %v7679_v3, %v7679_v3  ;;  %3520 = vmatprep.subr.mxu0 %v6936_v5  ;;  %v3004_v61 = vld [vmem:[%s10832_s2 + $0x1c8] sm:$0xff]  ;;  %3149 = vmatprep.subr.mxu1 %v6936_v5 }
 0x106   :  { %v7694_v28 = vpop.f32.mrf.mxu0  ;;  %3521 = vmatpush2.msra.mxu0 %v3004_v61  ;;  %3150 = vmatpush2.msra.mxu1 %v2965_v1  ;;  %v777_v61 = vmul.f32 %v7394_v26, %v7394_v26 }
 0x107   :  { %v702_v29 = vadd.f32 %v701_v14, %v7694_v28  ;;  %v773_v30 = vmul.f32 %v7694_v28, %v7694_v28  ;;  %v835_v35 = vadd.f32 %v834_v12, %v772_v11  ;;  %3522 = vmatprep.subr.mxu0 %v6936_v5  ;;  %3151 = vmatprep.subr.mxu1 %v6936_v5 }
 0x108   :  { %v7707_v48 = vpop.f32.mrf.mxu0  ;;  %3523 = vmatpush2.msra.mxu0 %v3003_v15  ;;  %3152 = vmatpush2.msra.mxu1 %v2964_v25 }
 0x109   :  { %v836_v56 = vadd.f32 %v835_v35, %v773_v30  ;;  %v703_v60 = vadd.f32 %v7679_v3, %v702_v29  ;;  %v7735_v29 = vpop.f32.mrf.mxu1  ;;  %v776_v30 = vmul.f32 %v7707_v48, %v7707_v48  ;;  %3524 = vmatprep.subr.mxu0 %v6936_v5  ;;  %3153 = vmatprep.subr.mxu1 %v6936_v5 }
 0x10a   :  { %v7722_v2 = vpop.f32.mrf.mxu0  ;;  %3525 = vmatpush2.msra.mxu0 %v3002_v42  ;;  %v779_v42 = vmul.f32 %v7415_v41, %v7415_v41 }
 0x10b   :  { %v704_v11 = vadd.f32 %v703_v60, %v7722_v2  ;;  %v775_v12 = vmul.f32 %v7722_v2, %v7722_v2  ;;  %v837_v14 = vadd.f32 %v836_v56, %v774_v52  ;;  %v2963_v52 = vld [vmem:[%s10832_s2 + $0x80] sm:$0xff]  ;;  %3526 = vmatprep.subr.mxu0 %v6936_v5 }
 0x10c   :  { %v1346_v56 = vld [vmem:[#allocation2 + $0x1] sm:$0xff]  ;;  %3154 = vmatpush2.msra.mxu1 %v2963_v52 }
 0x10d   :  { %v838_v35 = vadd.f32 %v837_v14, %v775_v12  ;;  %v705_v39 = vadd.f32 %v7707_v48, %v704_v11  ;;  %v3001_v11 = vld [vmem:[%s10832_s2 + $0x1b0] sm:$0xff]  ;;  %3155 = vmatprep.mubr.f32.mxu1 %v1346_v56  ;;  %v7755_v12 = vpop.f32.mrf.mxu1  ;;  %v778_v14 = vmul.f32 %v7386_v22, %v7386_v22  ;;  %3861 = vmatprep.subr.mxu1 %v6936_v5  ;;  %v2999_v56 = vld [vmem:[%s10832_s2 + $0x1a0] sm:$0xff] }
 0x10e   :  { %3527 = vmatpush2.msra.mxu0 %v3001_v11  ;;  %3156 = vmatmul.mubr.f32.vlgmr.msra.gmra.mxu1 %v6936_v5  ;;  %v780_v11 = vmul.f32 %v7403_v32, %v7403_v32 }
 0x10f   :  { %v706_v60 = vadd.f32 %v705_v39, %v7394_v26  ;;  %v839_v1 = vadd.f32 %v838_v35, %v776_v30  ;;  %3528 = vmatprep.subr.mxu0 %v6936_v5  ;;  %v3000_v30 = vld [vmem:[%s10832_s2 + $0x1a8] sm:$0xff] }
 0x110   :  { %v1347_v35 = vld [vmem:[#allocation2 + $0x9] sm:$0xff]  ;;  %3529 = vmatpush2.msra.mxu0 %v3000_v30 }
 0x111   :  { %v840_v15 = vadd.f32 %v839_v1, %v777_v61  ;;  %v707_v25 = vadd.f32 %v7386_v22, %v706_v60  ;;  %3160 = vmatprep.mubr.f32.mxu1 %v1347_v35  ;;  %3530 = vmatprep.subr.mxu0 %v6936_v5  ;;  %v7773_v60 = vpop.f32.mrf.mxu1  ;;  %v3026_v61 = vld [vmem:[%s10832_s2 + $0x278] sm:$0xff]  ;;  %v3025_v30 = vld [vmem:[%s10832_s2 + $0x270] sm:$0xff]  ;;  %v3024_v35 = vld [vmem:[%s10832_s2 + $0x268] sm:$0xff] }
 0x112   :  { %11020 = vst [vmem:[#allocation17_spill] sm:$0xff] %v7773_v60  ;;  %3531 = vmatpush2.msra.mxu0 %v2999_v56  ;;  %v2998_v1 = vld [vmem:[%s10832_s2 + $0x198] sm:$0xff]  ;;  %3161 = vmatmul.mubr.f32.gmra.mxu1 %v6936_v5  ;;  %v2996_v56 = vld [vmem:[%s10832_s2 + $0x188] sm:$0xff] }
 0x113   :  { %v708_v39 = vadd.f32 %v707_v25, %v7415_v41  ;;  %v841_v52 = vadd.f32 %v840_v15, %v778_v14  ;;  %3532 = vmatprep.subr.mxu0 %v6936_v5  ;;  %3862 = vmatpush1.msra.mxu1 %v3026_v61  ;;  %v2997_v25 = vld [vmem:[%s10832_s2 + $0x190] sm:$0xff]  ;;  %v7803_v61 = vpop.f32.mrf.mxu1 }
 0x114   :  { %3533 = vmatpush2.msra.mxu0 %v2998_v1  ;;  %3863 = vmatprep.subr.mxu1 %v6936_v5  ;;  %11021 = vst [vmem:[#allocation18_spill] sm:$0xff] %v7803_v61  ;;  %v782_v1 = vmul.f32 %v7427_v50, %v7427_v50 }
 0x115   :  { %v842_v14 = vadd.f32 %v841_v52, %v779_v42  ;;  %v709_v15 = vadd.f32 %v7403_v32, %v708_v39  ;;  %v781_v42 = vmul.f32 %v7439_v59, %v7439_v59  ;;  %3534 = vmatprep.subr.mxu0 %v6936_v5  ;;  %3864 = vmatpush1.msra.mxu1 %v3025_v30 }
 0x116   :  { %3535 = vmatpush2.msra.mxu0 %v2997_v25  ;;  %3865 = vmatprep.subr.mxu1 %v6936_v5  ;;  %v783_v25 = vmul.f32 %v7485_v24, %v7485_v24 }
 0x117   :  { %v710_v39 = vadd.f32 %v709_v15, %v7439_v59  ;;  %v843_v52 = vadd.f32 %v842_v14, %v780_v11  ;;  %3536 = vmatprep.subr.mxu0 %v6936_v5  ;;  %v2995_v11 = vld [vmem:[%s10832_s2 + $0x180] sm:$0xff]  ;;  %3866 = vmatpush1.msra.mxu1 %v3024_v35 }
 0x118   :  { %3537 = vmatpush2.msra.mxu0 %v2996_v56  ;;  %3867 = vmatprep.subr.mxu1 %v6936_v5 }
 0x119   :  { %v844_v15 = vadd.f32 %v843_v52, %v781_v42  ;;  %v711_v32 = vadd.f32 %v7427_v50, %v710_v39  ;;  %3538 = vmatprep.subr.mxu0 %v6936_v5  ;;  %v7818_v42 = vpop.f32.mrf.mxu1  ;;  %v784_v39 = vmul.f32 %v7458_v7, %v7458_v7 }
 0x11a   :  { %11022 = vst [vmem:[#allocation19_spill] sm:$0xff] %v7818_v42  ;;  %3539 = vmatpush2.msra.mxu0 %v2995_v11 }
 0x11b   :  { %v712_v14 = vadd.f32 %v711_v32, %v7485_v24  ;;  %v845_v30 = vadd.f32 %v844_v15, %v782_v1  ;;  %4246 = vmatprep.subr.mxu0 %v6936_v5  ;;  %v3023_v32 = vld [vmem:[%s10832_s2 + $0x260] sm:$0xff]  ;;  %v785_v1 = vmul.f32 %v7541_v63, %v7541_v63  ;;  %v7830_v11 = vpop.f32.mrf.mxu1 }
 0x11c   :  { %3868 = vmatpush1.msra.mxu1 %v3023_v32  ;;  %11023 = vst [vmem:[#allocation20_spill] sm:$0xff] %v7830_v11 }
 0x11d   :  { %v846_v52 = vadd.f32 %v845_v30, %v783_v25  ;;  %v713_v35 = vadd.f32 %v7458_v7, %v712_v14  ;;  %3869 = vmatprep.subr.mxu1 %v6936_v5  ;;  %v786_v14 = vmul.f32 %v7513_v44, %v7513_v44  ;;  %v7839_v50 = vpop.f32.mrf.mxu1 }
 0x11e   :  { %11024 = vst [vmem:[#allocation21_spill] sm:$0xff] %v7839_v50 }
 0x11f   :  { %v714_v56 = vadd.f32 %v713_v35, %v7541_v63  ;;  %v847_v15 = vadd.f32 %v846_v52, %v784_v39  ;;  %v787_v35 = vmul.f32 %v7597_v47, %v7597_v47  ;;  %v788_v39 = vmul.f32 %v7569_v17, %v7569_v17 }
 0x121   :  { %v848_v25 = vadd.f32 %v847_v15, %v785_v1  ;;  %v715_v30 = vadd.f32 %v7513_v44, %v714_v56  ;;  %v3022_v1 = vld [vmem:[%s10832_s2 + $0x258] sm:$0xff]  ;;  %v789_v15 = vmul.f32 %v7653_v38, %v7653_v38 }
 0x122   :  { %3870 = vmatpush1.msra.mxu1 %v3022_v1 }
 0x123   :  { %v716_v7 = vadd.f32 %v715_v30, %v7597_v47  ;;  %v849_v24 = vadd.f32 %v848_v25, %v786_v14  ;;  %v7850_v14 = vpop.f32.mrf.mxu1  ;;  %3871 = vmatprep.subr.mxu1 %v6936_v5 }
 0x124   :  { %11025 = vst [vmem:[#allocation22_spill] sm:$0xff] %v7850_v14 }
 0x125   :  { %v850_v52 = vadd.f32 %v849_v24, %v787_v35  ;;  %v717_v32 = vadd.f32 %v7569_v17, %v716_v7  ;;  %v790_v24 = vmul.f32 %v7625_v8, %v7625_v8  ;;  %v7859_v47 = vpop.f32.mrf.mxu1 }
 0x126   :  { %11026 = vst [vmem:[#allocation23_spill] sm:$0xff] %v7859_v47 }
 0x127   :  { %v718_v56 = vadd.f32 %v717_v32, %v7653_v38  ;;  %v851_v30 = vadd.f32 %v850_v52, %v788_v39  ;;  %v791_v32 = vmul.f32 %v7709_v51, %v7709_v51  ;;  %v792_v39 = vmul.f32 %v7681_v10, %v7681_v10 }
 0x129   :  { %v852_v25 = vadd.f32 %v851_v30, %v789_v15  ;;  %v719_v7 = vadd.f32 %v7625_v8, %v718_v56  ;;  %v3021_v15 = vld [vmem:[%s10832_s2 + $0x250] sm:$0xff]  ;;  %v793_v30 = vmul.f32 %v7755_v12, %v7755_v12 }
 0x12a   :  { %3872 = vmatpush1.msra.mxu1 %v3021_v15 }
 0x12b   :  { %v720_v35 = vadd.f32 %v719_v7, %v7709_v51  ;;  %v853_v17 = vadd.f32 %v852_v25, %v790_v24  ;;  %v7870_v24 = vpop.f32.mrf.mxu1  ;;  %3873 = vmatprep.subr.mxu1 %v6936_v5 }
 0x12c   :  { %11027 = vst [vmem:[#allocation24_spill] sm:$0xff] %v7870_v24 }
 0x12d   :  { %v854_v52 = vadd.f32 %v853_v17, %v791_v32  ;;  %v721_v1 = vadd.f32 %v7681_v10, %v720_v35  ;;  %v794_v17 = vmul.f32 %v7735_v29, %v7735_v29  ;;  %v7879_v51 = vpop.f32.mrf.mxu1 }
 0x12e   :  { %11028 = vst [vmem:[#allocation25_spill] sm:$0xff] %v7879_v51 }
 0x12f   :  { %v722_v56 = vadd.f32 %v721_v1, %v7755_v12  ;;  %v855_v7 = vadd.f32 %v854_v52, %v792_v39  ;;  %v795_v1 = vmul.f32 %v7803_v61, %v7803_v61  ;;  %v796_v39 = vmul.f32 %v7773_v60, %v7773_v60 }
 0x131   :  { %v856_v25 = vadd.f32 %v855_v7, %v793_v30  ;;  %v723_v35 = vadd.f32 %v7735_v29, %v722_v56  ;;  %v3020_v30 = vld [vmem:[%s10832_s2 + $0x248] sm:$0xff]  ;;  %v797_v7 = vmul.f32 %v7830_v11, %v7830_v11 }
 0x132   :  { %3874 = vmatpush1.msra.mxu1 %v3020_v30  ;;  %v3019_v30 = vld [vmem:[%s10832_s2 + $0x240] sm:$0xff] }
 0x133   :  { %v724_v32 = vadd.f32 %v723_v35, %v7803_v61  ;;  %v857_v10 = vadd.f32 %v856_v25, %v794_v17  ;;  %v7890_v17 = vpop.f32.mrf.mxu1  ;;  %3875 = vmatprep.subr.mxu1 %v6936_v5  ;;  %v11044_v38 = vld [vmem:[#allocation24_spill] sm:$0xff] }
 0x134   :  { %11029 = vst [vmem:[#allocation26_spill] sm:$0xff] %v7890_v17  ;;  %3876 = vmatpush1.msra.mxu1 %v3019_v30 }
 0x135   :  { %v858_v52 = vadd.f32 %v857_v10, %v795_v1  ;;  %v725_v15 = vadd.f32 %v7773_v60, %v724_v32  ;;  %v798_v10 = vmul.f32 %v7818_v42, %v7818_v42  ;;  %v7899_v61 = vpop.f32.mrf.mxu1  ;;  %v11046_v8 = vld [vmem:[#allocation25_spill] sm:$0xff] }
 0x136   :  { %11030 = vst [vmem:[#allocation27_spill] sm:$0xff] %v7899_v61 }
 0x137   :  { %v726_v56 = vadd.f32 %v725_v15, %v7830_v11  ;;  %v859_v35 = vadd.f32 %v858_v52, %v796_v39  ;;  %v799_v15 = vmul.f32 %v7850_v14, %v7850_v14  ;;  %v800_v39 = vmul.f32 %v7839_v50, %v7839_v50 }
 0x139   :  { %v860_v25 = vadd.f32 %v859_v35, %v797_v7  ;;  %v727_v32 = vadd.f32 %v7818_v42, %v726_v56  ;;  %v801_v7 = vmul.f32 %v7870_v24, %v7870_v24 }
 0x13b   :  { %v728_v1 = vadd.f32 %v727_v32, %v7850_v14  ;;  %v861_v60 = vadd.f32 %v860_v25, %v798_v10  ;;  %v7910_v10 = vpop.f32.mrf.mxu1  ;;  %v7912_v25 = vld [vmem:[#allocation2] sm:$0xff] }
 0x13c   :  { %11031 = vst [vmem:[#allocation28_spill] sm:$0xff] %v7910_v10  ;;  %3877 = vmatprep.subr.mxu1 %v7912_v25 }
 0x13d   :  { %v862_v52 = vadd.f32 %v861_v60, %v799_v15  ;;  %v729_v5 = vadd.f32 %v7839_v50, %v728_v1  ;;  %v802_v60 = vmul.f32 %v7859_v47, %v7859_v47 }
 0x13f   :  { %v730_v56 = vadd.f32 %v729_v5, %v7870_v24  ;;  %v863_v35 = vadd.f32 %v862_v52, %v800_v39  ;;  %v803_v5 = vmul.f32 %v7890_v17, %v7890_v17  ;;  %v7921_v39 = vpop.f32.mrf.mxu1  ;;  %v804_v52 = vmul.f32 %v7879_v51, %v7879_v51 }
 0x140   :  { %11032 = vst [vmem:[#allocation29_spill] sm:$0xff] %v7921_v39 }
 0x141   :  { %v864_v32 = vadd.f32 %v863_v35, %v801_v7  ;;  %v731_v1 = vadd.f32 %v7859_v47, %v730_v56  ;;  %v3018_v7 = vld [vmem:[%s10832_s2 + $0x238] sm:$0xff]  ;;  %v805_v35 = vmul.f32 %v7910_v10, %v7910_v10 }
 0x142   :  { %3878 = vmatpush1.msra.mxu1 %v3018_v7 }
 0x143   :  { %v732_v15 = vadd.f32 %v731_v1, %v7890_v17  ;;  %v865_v24 = vadd.f32 %v864_v32, %v802_v60  ;;  %v7932_v60 = vpop.f32.mrf.mxu1  ;;  %3879 = vmatprep.subr.mxu1 %v7912_v25 }
 0x145   :  { %v866_v30 = vadd.f32 %v865_v24, %v803_v5  ;;  %v733_v50 = vadd.f32 %v7879_v51, %v732_v15  ;;  %v806_v24 = vmul.f32 %v7899_v61, %v7899_v61 }
 0x147   :  { %v734_v56 = vadd.f32 %v733_v50, %v7910_v10  ;;  %v867_v1 = vadd.f32 %v866_v30, %v804_v52  ;;  %v807_v50 = vmul.f32 %v7932_v60, %v7932_v60  ;;  %v808_v52 = vmul.f32 %v7921_v39, %v7921_v39  ;;  %v3017_v10 = vld [vmem:[%s10832_s2 + $0x230] sm:$0xff] }
 0x148   :  { %3880 = vmatpush1.msra.mxu1 %v3017_v10 }
 0x149   :  { %v868_v32 = vadd.f32 %v867_v1, %v805_v35  ;;  %v735_v15 = vadd.f32 %v7899_v61, %v734_v56  ;;  %3881 = vmatprep.subr.mxu1 %v7912_v25 }
 0x14b   :  { %v736_v5 = vadd.f32 %v735_v15, %v7932_v60  ;;  %v869_v51 = vadd.f32 %v868_v32, %v806_v24 }
 0x14d   :  { %v737_v30 = vadd.f32 %v7921_v39, %v736_v5  ;;  %v870_v7 = vadd.f32 %v869_v51, %v807_v50  ;;  %v3016_v5 = vld [vmem:[%s10832_s2 + $0x228] sm:$0xff] }
 0x14e   :  { %3882 = vmatpush1.msra.mxu1 %v3016_v5 }
 0x14f   :  { %v738_v17 = vrot.slane %v737_v30, 4  ;;  %v871_v35 = vadd.f32 %v870_v7, %v808_v52  ;;  %3883 = vmatprep.subr.mxu1 %v7912_v25 }
 0x151   :  { %v739_v56 = vadd.f32 %v738_v17, %v737_v30  ;;  %v872_v1 = vrot.slane %v871_v35, 4 }
 0x153   :  { %v740_v15 = vrot.slane %v739_v56, 2  ;;  %v873_v61 = vadd.f32 %v872_v1, %v871_v35  ;;  %v3015_v35 = vld [vmem:[%s10832_s2 + $0x220] sm:$0xff]  ;;  %v11047_v1 = vld [vmem:[#allocation28_spill] sm:$0xff] }
 0x154   :  { %3884 = vmatpush1.msra.mxu1 %v3015_v35  ;;  %v11037_v35 = vld [vmem:[#allocation12_spill] sm:$0xff] }
 0x155   :  { %v741_v24 = vadd.f32 %v740_v15, %v739_v56  ;;  %v874_v32 = vrot.slane %v873_v61, 2  ;;  %3885 = vmatprep.subr.mxu1 %v7912_v25 }
 0x157   :  { %v742_v51 = vrot.slane %v741_v24, 1  ;;  %v875_v50 = vadd.f32 %v874_v32, %v873_v61 }
 0x159   :  { %v743_v39 = vadd.f32 %v742_v51, %v741_v24  ;;  %v876_v52 = vrot.slane %v875_v50, 1  ;;  %v11049_v24 = vld [vmem:[#allocation29_spill] sm:$0xff] }
 0x15b   :  { %v7952_v10 = vmul.f32 0.001953125, %v743_v39  ;;  %v877_v7 = vadd.f32 %v876_v52, %v875_v50  ;;  %v3013_v52 = vld [vmem:[%s10832_s2 + $0x210] sm:$0xff]  ;;  %v11048_v50 = vld [vmem:[#allocation27_spill] sm:$0xff] }
 0x15d   :  { %v878_v17 = vmul.f32 0.001953125, %v877_v7  ;;  %v879_v30 = vmul.f32 %v7952_v10, %v7952_v10  ;;  %v11040_v7 = vld [vmem:[#allocation15_spill] sm:$0xff]  ;;  %v11050_v39 = vsub.f32 %v7932_v60, %v7952_v10  ;;  %v11051_v5 = vsub.f32 %v7382_v20, %v7952_v10 }
 0x15e   :  { %v11052_v14 = vsub.f32 %v7380_v19, %v7952_v10  ;;  %v11054_v60 = vsub.f32 %v7388_v23, %v7952_v10 }
 0x15f   :  { %v880_v56 = vsub.f32 %v878_v17, %v879_v30  ;;  %v3014_v17 = vld [vmem:[%s10832_s2 + $0x218] sm:$0xff]  ;;  %v11033_v30 = vld [vmem:[#allocation7_spill] sm:$0xff] }
 0x160   :  { %3886 = vmatpush1.msra.mxu1 %v3014_v17  ;;  %v11035_v17 = vld [vmem:[#allocation10_spill] sm:$0xff] }
 0x161   :  { %v881_v61 = vmax.f32 %v880_v56, 0.0  ;;  %3887 = vmatprep.subr.mxu1 %v7912_v25  ;;  %v11034_v56 = vld [vmem:[#allocation8_spill] sm:$0xff] }
 0x162   :  { %3888 = vmatpush1.msra.mxu1 %v3013_v52  ;;  %v11053_v52 = vsub.f32 %v7396_v27, %v7952_v10 }
 0x163   :  { %v946_v15 = vadd.f32 1e-05, %v881_v61  ;;  %v11038_v61 = vld [vmem:[#allocation11_spill] sm:$0xff]  ;;  %3889 = vmatprep.subr.mxu1 %v7912_v25 }
 0x165   :  { %6905 = vrsqrt.f32 %v946_v15  ;;  %v11036_v15 = vld [vmem:[#allocation9_spill] sm:$0xff] }
 0x172   :  { %v8088_v11 = vpop.eup %6905 }
 0x173   :  { %v1010_v47 = vmul.f32 %v8088_v11, %v11050_v39  ;;  %v8106_v51 = vmul.f32 %v8088_v11, %v11051_v5  ;;  %v8112_v42 = vmul.f32 %v8088_v11, %v11052_v14  ;;  %v8118_v32 = vmul.f32 %v8088_v11, %v11053_v52 }
 0x174   :  { %v8124_v20 = vmul.f32 %v8088_v11, %v11054_v60  ;;  %v11055_v39 = vsub.f32 %v7408_v36, %v7952_v10  ;;  %v11056_v14 = vsub.f32 %v7401_v31, %v7952_v10  ;;  %v11057_v5 = vsub.f32 %v7420_v45, %v7952_v10 }
 0x175   :  { %v1074_v52 = vmax.f32 %v1010_v47, 0.0  ;;  %v11058_v60 = vsub.f32 %v7413_v40, %v7952_v10  ;;  %v11061_v47 = vsub.f32 %v7447_v0, %v7952_v10 }
 0x176   :  { %v8130_v19 = vmul.f32 %v8088_v11, %v11055_v39  ;;  %v8136_v27 = vmul.f32 %v8088_v11, %v11056_v14  ;;  %v8142_v23 = vmul.f32 %v8088_v11, %v11057_v5  ;;  %v11059_v39 = vsub.f32 %v7432_v54, %v7952_v10 }
 0x177   :  { %v8148_v36 = vmul.f32 %v8088_v11, %v11058_v60  ;;  %v11060_v14 = vsub.f32 %v7425_v49, %v7952_v10  ;;  %v8166_v40 = vmul.f32 %v8088_v11, %v11061_v47  ;;  %v11062_v5 = vsub.f32 %v7437_v58, %v7952_v10  ;;  %1216 = vst [vmem:[#allocation2 + $0x331] sm:$0xff] %v1074_v52 }
 0x178   :  { %v8154_v31 = vmul.f32 %v8088_v11, %v11059_v39  ;;  %v11063_v60 = vsub.f32 %v7470_v13, %v7952_v10  ;;  %v11064_v39 = vsub.f32 %v7456_v6, %v7952_v10  ;;  %v11065_v58 = vsub.f32 %v7498_v34, %v7952_v10 }
 0x179   :  { %v8160_v45 = vmul.f32 %v8088_v11, %v11060_v14  ;;  %v8172_v54 = vmul.f32 %v8088_v11, %v11062_v5  ;;  %v3012_v14 = vld [vmem:[%s10832_s2 + $0x208] sm:$0xff]  ;;  %v11066_v13 = vsub.f32 %v7483_v21, %v7952_v10  ;;  %v11067_v6 = vsub.f32 %v7526_v53, %v7952_v10 }
 0x17a   :  { %v8178_v49 = vmul.f32 %v8088_v11, %v11063_v60  ;;  %v8184_v0 = vmul.f32 %v8088_v11, %v11064_v39  ;;  %v8193_v47 = vmul.f32 %v8088_v11, %v11065_v58  ;;  %v11068_v52 = vsub.f32 %v7511_v43, %v7952_v10  ;;  %3890 = vmatpush1.msra.mxu1 %v3012_v14 }
 0x17b   :  { %v8199_v5 = vmul.f32 %v8088_v11, %v11066_v13  ;;  %v8205_v60 = vmul.f32 %v8088_v11, %v11067_v6  ;;  %v11069_v39 = vsub.f32 %v7554_v9, %v7952_v10  ;;  %v11070_v58 = vsub.f32 %v7539_v62, %v7952_v10  ;;  %3891 = vmatprep.subr.mxu1 %v7912_v25 }
 0x17c   :  { %v8211_v34 = vmul.f32 %v8088_v11, %v11068_v52  ;;  %v11071_v13 = vsub.f32 %v7582_v33, %v7952_v10  ;;  %v11072_v14 = vsub.f32 %v7567_v16, %v7952_v10  ;;  %v11073_v62 = vsub.f32 %v7610_v57, %v7952_v10 }
 0x17d   :  { %v8217_v21 = vmul.f32 %v8088_v11, %v11069_v39  ;;  %v8223_v53 = vmul.f32 %v8088_v11, %v11070_v58  ;;  %v11074_v33 = vsub.f32 %v7595_v46, %v7952_v10  ;;  %v11075_v16 = vsub.f32 %v7638_v18, %v7952_v10 }
 0x17e   :  { %v8229_v43 = vmul.f32 %v8088_v11, %v11071_v13  ;;  %v8235_v9 = vmul.f32 %v8088_v11, %v11072_v14  ;;  %v8242_v6 = vmul.f32 %v8088_v11, %v11073_v62  ;;  %v11076_v58 = vsub.f32 %v7623_v4, %v7952_v10 }
 0x17f   :  { %v8248_v52 = vmul.f32 %v8088_v11, %v11074_v33  ;;  %v8254_v39 = vmul.f32 %v8088_v11, %v11075_v16  ;;  %v11077_v13 = vsub.f32 %v7666_v55, %v7952_v10  ;;  %v11078_v14 = vsub.f32 %v7651_v37, %v7952_v10 }
 0x180   :  { %v8260_v57 = vmul.f32 %v8088_v11, %v11076_v58  ;;  %v11079_v62 = vsub.f32 %v7694_v28, %v7952_v10  ;;  %v11080_v33 = vsub.f32 %v7679_v3, %v7952_v10  ;;  %v11081_v16 = vsub.f32 %v7722_v2, %v7952_v10 }
 0x181   :  { %v8266_v46 = vmul.f32 %v8088_v11, %v11077_v13  ;;  %v8272_v18 = vmul.f32 %v8088_v11, %v11078_v14  ;;  %v11082_v58 = vsub.f32 %v7707_v48, %v7952_v10  ;;  %v11083_v13 = vsub.f32 %v7394_v26, %v7952_v10 }
 0x182   :  { %v8278_v4 = vmul.f32 %v8088_v11, %v11079_v62  ;;  %v8284_v55 = vmul.f32 %v8088_v11, %v11080_v33  ;;  %v8290_v37 = vmul.f32 %v8088_v11, %v11081_v16  ;;  %v11084_v14 = vsub.f32 %v7386_v22, %v7952_v10 }
 0x183   :  { %v8296_v28 = vmul.f32 %v8088_v11, %v11082_v58  ;;  %v8302_v3 = vmul.f32 %v8088_v11, %v11083_v13  ;;  %v11085_v62 = vsub.f32 %v7415_v41, %v7952_v10  ;;  %v11086_v33 = vsub.f32 %v11033_v30, %v7952_v10 }
 0x184   :  { %v8308_v2 = vmul.f32 %v8088_v11, %v11084_v14  ;;  %v11087_v16 = vsub.f32 %v7439_v59, %v7952_v10  ;;  %v11088_v58 = vsub.f32 %v11034_v56, %v7952_v10  ;;  %v11089_v13 = vsub.f32 %v11035_v17, %v7952_v10 }
 0x185   :  { %v8314_v48 = vmul.f32 %v8088_v11, %v11085_v62  ;;  %v8320_v26 = vmul.f32 %v8088_v11, %v11086_v33  ;;  %v11090_v14 = vsub.f32 %v11036_v15, %v7952_v10  ;;  %v11091_v62 = vsub.f32 %v7541_v63, %v7952_v10 }
 0x186   :  { %v8326_v22 = vmul.f32 %v8088_v11, %v11087_v16  ;;  %v8332_v41 = vmul.f32 %v8088_v11, %v11088_v58  ;;  %v8338_v30 = vmul.f32 %v8088_v11, %v11089_v13  ;;  %v11092_v33 = vsub.f32 %v7513_v44, %v7952_v10  ;;  %v11096_v13 = vld [vmem:[#allocation14_spill] sm:$0xff] }
 0x187   :  { %v8344_v59 = vmul.f32 %v8088_v11, %v11090_v14  ;;  %v8350_v56 = vmul.f32 %v8088_v11, %v11091_v62  ;;  %v11093_v16 = vsub.f32 %v11037_v35, %v7952_v10  ;;  %v11094_v58 = vsub.f32 %v11038_v61, %v7952_v10  ;;  %v11098_v62 = vld [vmem:[#allocation13_spill] sm:$0xff]  ;;  %v11101_v61 = vld [vmem:[#allocation16_spill] sm:$0xff] }
 0x188   :  { %v8356_v17 = vmul.f32 %v8088_v11, %v11092_v33  ;;  %v11097_v14 = vsub.f32 %v11096_v13, %v7952_v10  ;;  %v11099_v33 = vsub.f32 %v11098_v62, %v7952_v10  ;;  %v11104_v13 = vsub.f32 %v11040_v7, %v7952_v10 }
 0x189   :  { %v8362_v15 = vmul.f32 %v8088_v11, %v11093_v16  ;;  %v8368_v63 = vmul.f32 %v8088_v11, %v11094_v58  ;;  %v3011_v16 = vld [vmem:[%s10832_s2 + $0x200] sm:$0xff]  ;;  %v11102_v58 = vsub.f32 %v11101_v61, %v7952_v10  ;;  %v11106_v62 = vsub.f32 %v7755_v12, %v7952_v10 }
 0x18a   :  { %v8374_v44 = vmul.f32 %v8088_v11, %v11097_v14  ;;  %v8380_v35 = vmul.f32 %v8088_v11, %v11099_v33  ;;  %v8395_v14 = vmul.f32 %v8088_v11, %v11104_v13  ;;  %3892 = vmatpush1.msra.mxu1 %v3011_v16  ;;  %v11111_v13 = vld [vmem:[#allocation17_spill] sm:$0xff] }
 0x18b   :  { %11095 = vst [vmem:[#allocation7_spill] sm:$0xff] %v8368_v63  ;;  %v8389_v63 = vmul.f32 %v8088_v11, %v11102_v58  ;;  %v8401_v33 = vmul.f32 %v8088_v11, %v11106_v62  ;;  %v11109_v58 = vld [vmem:[#allocation18_spill] sm:$0xff]  ;;  %v11114_v62 = vld [vmem:[#allocation20_spill] sm:$0xff]  ;;  %3893 = vmatprep.subr.mxu1 %v7912_v25 }
 0x18c   :  { %11100 = vst [vmem:[#allocation8_spill] sm:$0xff] %v8380_v35  ;;  %11105 = vst [vmem:[#allocation9_spill] sm:$0xff] %v8395_v14  ;;  %v11108_v35 = vsub.f32 %v7735_v29, %v7952_v10  ;;  %v11112_v14 = vsub.f32 %v11111_v13, %v7952_v10 }
 0x18d   :  { %11103 = vst [vmem:[#allocation10_spill] sm:$0xff] %v8389_v63  ;;  %11107 = vst [vmem:[#allocation12_spill] sm:$0xff] %v8401_v33  ;;  %v11110_v63 = vsub.f32 %v11109_v58, %v7952_v10  ;;  %v11115_v33 = vsub.f32 %v11114_v62, %v7952_v10 }
 0x18e   :  { %v8407_v61 = vmul.f32 %v8088_v11, %v11108_v35  ;;  %v8419_v12 = vmul.f32 %v8088_v11, %v11112_v14  ;;  %v11117_v35 = vld [vmem:[#allocation19_spill] sm:$0xff] }
 0x18f   :  { %v8413_v7 = vmul.f32 %v8088_v11, %v11110_v63  ;;  %v8425_v29 = vmul.f32 %v8088_v11, %v11115_v33  ;;  %v11118_v16 = vsub.f32 %v11117_v35, %v7952_v10  ;;  %v11120_v63 = vld [vmem:[#allocation22_spill] sm:$0xff]  ;;  %v11125_v35 = vsub.f32 %v11044_v38, %v7952_v10 }
 0x190   :  { %11113 = vst [vmem:[#allocation11_spill] sm:$0xff] %v8419_v12  ;;  %v11121_v13 = vsub.f32 %v11120_v63, %v7952_v10  ;;  %v11123_v12 = vld [vmem:[#allocation21_spill] sm:$0xff] }
 0x191   :  { %11116 = vst [vmem:[#allocation15_spill] sm:$0xff] %v8425_v29  ;;  %v8431_v58 = vmul.f32 %v8088_v11, %v11118_v16  ;;  %v11124_v62 = vsub.f32 %v11123_v12, %v7952_v10  ;;  %v8450_v16 = vmul.f32 %v8088_v11, %v11125_v35  ;;  %v11132_v35 = vsub.f32 %v11047_v1, %v7952_v10 }
 0x192   :  { %v8438_v14 = vmul.f32 %v8088_v11, %v11121_v13  ;;  %v11128_v13 = vld [vmem:[#allocation26_spill] sm:$0xff]  ;;  %v10877_v1 = vmax.f32 %v8118_v32, 0.0 }
 0x193   :  { %11119 = vst [vmem:[#allocation24_spill] sm:$0xff] %v8431_v58  ;;  %v8444_v33 = vmul.f32 %v8088_v11, %v11124_v62  ;;  %v11126_v58 = vld [vmem:[#allocation23_spill] sm:$0xff]  ;;  %v11130_v62 = vsub.f32 %v11046_v8, %v7952_v10 }
 0x194   :  { %11122 = vst [vmem:[#allocation25_spill] sm:$0xff] %v8438_v14  ;;  %v11127_v29 = vsub.f32 %v11126_v58, %v7952_v10  ;;  %v11129_v14 = vsub.f32 %v11128_v13, %v7952_v10  ;;  %v8474_v58 = vmul.f32 %v8088_v11, %v11132_v35  ;;  %v10879_v35 = vmax.f32 %v8124_v20, 0.0  ;;  %1156 = vst [vmem:[#allocation2 + $0x31] sm:$0xff] %v10877_v1 }
 0x195   :  { %v8468_v38 = vmul.f32 %v8088_v11, %v11130_v62  ;;  %v1012_v62 = vmax.f32 %v8106_v51, 0.0  ;;  %v10887_v51 = vmax.f32 %v8172_v54, 0.0  ;;  %v1027_v1 = vmax.f32 %v8199_v5, 0.0 }
 0x196   :  { %v8456_v63 = vmul.f32 %v8088_v11, %v11127_v29  ;;  %v8462_v12 = vmul.f32 %v8088_v11, %v11129_v14  ;;  %11133 = vst [vmem:[#allocation27_spill] sm:$0xff] %v8474_v58  ;;  %v11134_v29 = vsub.f32 %v11048_v50, %v7952_v10  ;;  %v11136_v14 = vsub.f32 %v11049_v24, %v7952_v10 }
 0x197   :  { %11131 = vst [vmem:[#allocation28_spill] sm:$0xff] %v8468_v38  ;;  %v10878_v38 = vmax.f32 %v8112_v42, 0.0  ;;  %v10880_v58 = vmax.f32 %v8130_v19, 0.0  ;;  %v10881_v50 = vmax.f32 %v8136_v27, 0.0  ;;  %v10883_v24 = vmax.f32 %v8166_v40, 0.0  ;;  %1154 = vst [vmem:[#allocation2 + $0x19] sm:$0xff] %v1012_v62  ;;  %3165 = vmatprep.mubr.f32.mxu1 %v1012_v62 }
 0x198   :  { %v8480_v13 = vmul.f32 %v8088_v11, %v11134_v29  ;;  %v8486_v8 = vmul.f32 %v8088_v11, %v11136_v14  ;;  %v10882_v29 = vmax.f32 %v8142_v23, 0.0  ;;  %v10884_v11 = vmax.f32 %v8160_v45, 0.0  ;;  %1157 = vst [vmem:[#allocation2 + $0x39] sm:$0xff] %v10879_v35  ;;  %v3042_v62 = vld [vmem:[%s10832_s2 + $0x2f8] sm:$0xff]  ;;  %1165 = vst [vmem:[#allocation2 + $0x99] sm:$0xff] %v10887_v51 }
 0x199   :  { %1155 = vst [vmem:[#allocation2 + $0x21] sm:$0xff] %v10878_v38  ;;  %v10885_v14 = vmax.f32 %v8178_v49, 0.0  ;;  %1158 = vst [vmem:[#allocation2 + $0x49] sm:$0xff] %v10880_v58  ;;  %v11137_v58 = vmax.f32 %v8148_v36, 0.0  ;;  %3894 = vmatpush2.msra.mxu1 %v3042_v62  ;;  %v10889_v38 = vmax.f32 %v8229_v43, 0.0  ;;  %v10890_v10 = vmax.f32 %v8235_v9, 0.0 }
 0x19a   :  { %11135 = vst [vmem:[#allocation29_spill] sm:$0xff] %v8480_v13  ;;  %v10886_v13 = vmax.f32 %v8184_v0, 0.0  ;;  %1159 = vst [vmem:[#allocation2 + $0x51] sm:$0xff] %v10881_v50  ;;  %v11138_v50 = vmax.f32 %v8154_v31, 0.0  ;;  %v10891_v35 = vmax.f32 %v8242_v6, 0.0  ;;  %3895 = vmatprep.subr.mxu1 %v7912_v25  ;;  %v10894_v51 = vmax.f32 %v8272_v18, 0.0 }
 0x19b   :  { %1160 = vst [vmem:[#allocation2 + $0x61] sm:$0xff] %v10882_v29  ;;  %1161 = vst [vmem:[#allocation2 + $0x69] sm:$0xff] %v11137_v58  ;;  %v10888_v29 = vmax.f32 %v8223_v53, 0.0  ;;  %v11139_v58 = vmax.f32 %v8193_v47, 0.0  ;;  %v10893_v62 = vmax.f32 %v8278_v4, 0.0  ;;  %v11172_v5 = vmax.f32 %v8205_v60, 0.0 }
 0x19c   :  { %1162 = vst [vmem:[#allocation2 + $0x79] sm:$0xff] %v11138_v50  ;;  %1163 = vst [vmem:[#allocation2 + $0x81] sm:$0xff] %v10884_v11  ;;  %v10895_v50 = vmax.f32 %v8248_v52, 0.0  ;;  %v1042_v11 = vmax.f32 %v8290_v37, 0.0  ;;  %v1046_v37 = vmax.f32 %v8314_v48, 0.0  ;;  %v1050_v48 = vmax.f32 %v8338_v30, 0.0 }
 0x19d   :  { %1164 = vst [vmem:[#allocation2 + $0x91] sm:$0xff] %v10883_v24  ;;  %1166 = vst [vmem:[#allocation2 + $0xa9] sm:$0xff] %v10885_v14  ;;  %v11140_v14 = vmax.f32 %v8205_v60, 0.0  ;;  %v10892_v24 = vmax.f32 %v8284_v55, 0.0  ;;  %v1053_v30 = vmax.f32 %v8356_v17, 0.0 }
 0x19e   :  { %1167 = vst [vmem:[#allocation2 + $0xb1] sm:$0xff] %v10886_v13  ;;  %1168 = vst [vmem:[#allocation2 + $0xc1] sm:$0xff] %v11139_v58  ;;  %v11141_v13 = vmax.f32 %v8211_v34, 0.0  ;;  %v11142_v58 = vmax.f32 %v8217_v21, 0.0 }
 0x19f   :  { %1169 = vst [vmem:[#allocation2 + $0xc9] sm:$0xff] %v1027_v1  ;;  %1170 = vst [vmem:[#allocation2 + $0xd9] sm:$0xff] %v11140_v14  ;;  %v1044_v14 = vmax.f32 %v8302_v3, 0.0  ;;  %v1048_v3 = vmax.f32 %v8326_v22, 0.0  ;;  %v1051_v22 = vmax.f32 %v8344_v59, 0.0 }
 0x1a0   :  { %1171 = vst [vmem:[#allocation2 + $0xe1] sm:$0xff] %v11141_v13  ;;  %1172 = vst [vmem:[#allocation2 + $0xf1] sm:$0xff] %v11142_v58  ;;  %v1043_v13 = vmax.f32 %v8296_v28, 0.0  ;;  %v1045_v58 = vmax.f32 %v8308_v2, 0.0  ;;  %v1047_v28 = vmax.f32 %v8320_v26, 0.0  ;;  %v1049_v2 = vmax.f32 %v8332_v41, 0.0 }
 0x1a1   :  { %1173 = vst [vmem:[#allocation2 + $0xf9] sm:$0xff] %v10888_v29  ;;  %1174 = vst [vmem:[#allocation2 + $0x109] sm:$0xff] %v10889_v38  ;;  %v11143_v29 = vmax.f32 %v8254_v39, 0.0  ;;  %v11144_v38 = vmax.f32 %v8260_v57, 0.0  ;;  %v3058_v26 = vld [vmem:[%s10832_s2 + $0x378] sm:$0xff]  ;;  %v1052_v41 = vmax.f32 %v8350_v56, 0.0 }
 0x1a2   :  { %1175 = vst [vmem:[#allocation2 + $0x111] sm:$0xff] %v10890_v10  ;;  %1176 = vst [vmem:[#allocation2 + $0x121] sm:$0xff] %v10891_v35  ;;  %v11145_v10 = vmax.f32 %v8266_v46, 0.0  ;;  %v1474_v35 = vld [vmem:[#allocation2 + $0x2] sm:$0xff]  ;;  %v11149_v56 = vmax.f32 %v8112_v42, 0.0  ;;  %v1475_v42 = vld [vmem:[#allocation2 + $0xa] sm:$0xff] }
 0x1a3   :  { %1177 = vst [vmem:[#allocation2 + $0x129] sm:$0xff] %v10895_v50  ;;  %1178 = vst [vmem:[#allocation2 + $0x139] sm:$0xff] %v11143_v29  ;;  %v1054_v29 = vmax.f32 %v8362_v15, 0.0  ;;  %v11148_v50 = vld [vmem:[#allocation10_spill] sm:$0xff]  ;;  %v1603_v17 = vld [vmem:[#allocation2 + $0x20] sm:$0xff] }
 0x1a4   :  { %1179 = vst [vmem:[#allocation2 + $0x141] sm:$0xff] %v11144_v38  ;;  %1180 = vst [vmem:[#allocation2 + $0x151] sm:$0xff] %v11145_v10  ;;  %v1602_v38 = vld [vmem:[#allocation2 + $0x18] sm:$0xff]  ;;  %v11146_v10 = vld [vmem:[#allocation7_spill] sm:$0xff]  ;;  %v1058_v59 = vmax.f32 %v11148_v50, 0.0  ;;  %v1062_v50 = vmax.f32 %v8413_v7, 0.0 }
 0x1a5   :  { %1181 = vst [vmem:[#allocation2 + $0x159] sm:$0xff] %v10894_v51  ;;  %1182 = vst [vmem:[#allocation2 + $0x169] sm:$0xff] %v10893_v62  ;;  %3540 = vmatprep.mubr.f32.mxu0 %v1602_v38  ;;  %3166 = vmatmul.mubr.f32.gmra.mxu1 %v1602_v38  ;;  %v11147_v62 = vld [vmem:[#allocation8_spill] sm:$0xff]  ;;  %v3057_v15 = vld [vmem:[%s10832_s2 + $0x370] sm:$0xff]  ;;  %v1068_v7 = vmax.f32 %v8450_v16, 0.0 }
 0x1a6   :  { %1183 = vst [vmem:[#allocation2 + $0x171] sm:$0xff] %v10892_v24  ;;  %1184 = vst [vmem:[#allocation2 + $0x181] sm:$0xff] %v1042_v11  ;;  %v1055_v11 = vmax.f32 %v11146_v10, 0.0  ;;  %v1056_v24 = vmax.f32 %v8374_v44, 0.0  ;;  %v1057_v51 = vmax.f32 %v11147_v62, 0.0  ;;  %3541 = vmatmul.mubr.f32.vlgmr.msra.gmra.mxu0 %v1474_v35  ;;  %3170 = vmatprep.mubr.f32.mxu1 %v11149_v56  ;;  %v11151_v44 = vld [vmem:[#allocation12_spill] sm:$0xff] }
 0x1a7   :  { %1185 = vst [vmem:[#allocation2 + $0x189] sm:$0xff] %v1043_v13  ;;  %1186 = vst [vmem:[#allocation2 + $0x1c9] sm:$0xff] %v1044_v14  ;;  %v11150_v13 = vld [vmem:[#allocation9_spill] sm:$0xff]  ;;  %v1061_v62 = vmax.f32 %v8407_v61, 0.0  ;;  %3545 = vmatprep.mubr.f32.mxu0 %v1603_v17  ;;  %4247 = vmatpush1.msra.mxu0 %v3058_v26  ;;  %v11152_v35 = vld [vmem:[#allocation11_spill] sm:$0xff]  ;;  %v1067_v61 = vmax.f32 %v8444_v33, 0.0 }
 0x1a8   :  { %1187 = vst [vmem:[#allocation2 + $0x1d1] sm:$0xff] %v1045_v58  ;;  %1188 = vst [vmem:[#allocation2 + $0x1e1] sm:$0xff] %v1046_v37  ;;  %v1059_v14 = vmax.f32 %v11150_v13, 0.0  ;;  %v1060_v58 = vmax.f32 %v11151_v44, 0.0  ;;  %v1063_v37 = vmax.f32 %v11152_v35, 0.0  ;;  %v11155_v38 = vld [vmem:[#allocation25_spill] sm:$0xff]  ;;  %4248 = vmatprep.subr.mxu0 %v7912_v25 }
 0x1a9   :  { %1189 = vst [vmem:[#allocation2 + $0x1e9] sm:$0xff] %v1047_v28  ;;  %1190 = vst [vmem:[#allocation2 + $0x1f9] sm:$0xff] %v1048_v3  ;;  %v11153_v28 = vld [vmem:[#allocation15_spill] sm:$0xff]  ;;  %v1066_v10 = vmax.f32 %v11155_v38, 0.0  ;;  %v1069_v26 = vmax.f32 %v8456_v63, 0.0  ;;  %3171 = vmatmul.mubr.f32.gmra.mxu1 %v1603_v17  ;;  %4249 = vmatpush1.msra.mxu0 %v3057_v15  ;;  %v1075_v63 = vmax.f32 %v8486_v8, 0.0 }
 0x1aa   :  { %1191 = vst [vmem:[#allocation2 + $0x201] sm:$0xff] %v1049_v2  ;;  %1192 = vst [vmem:[#allocation2 + $0x211] sm:$0xff] %v1050_v48  ;;  %v1064_v3 = vmax.f32 %v11153_v28, 0.0  ;;  %v11154_v2 = vld [vmem:[#allocation24_spill] sm:$0xff]  ;;  %3546 = vmatmul.mubr.f32.gmra.mxu0 %v1475_v42  ;;  %4250 = vmatprep.subr.mxu0 %v7912_v25  ;;  %v3055_v8 = vld [vmem:[%s10832_s2 + $0x360] sm:$0xff] }
 0x1ab   :  { %1193 = vst [vmem:[#allocation2 + $0x219] sm:$0xff] %v1051_v22  ;;  %1194 = vst [vmem:[#allocation2 + $0x229] sm:$0xff] %v1052_v41  ;;  %v1065_v48 = vmax.f32 %v11154_v2, 0.0  ;;  %v1070_v22 = vmax.f32 %v8462_v12, 0.0  ;;  %v11159_v12 = vmax.f32 %v8118_v32, 0.0  ;;  %v1476_v32 = vld [vmem:[#allocation2 + $0x1a] sm:$0xff] }
 0x1ac   :  { %1195 = vst [vmem:[#allocation2 + $0x231] sm:$0xff] %v1053_v30  ;;  %1196 = vst [vmem:[#allocation2 + $0x241] sm:$0xff] %v1054_v29  ;;  %v11157_v30 = vld [vmem:[#allocation27_spill] sm:$0xff]  ;;  %v11158_v29 = vld [vmem:[#allocation29_spill] sm:$0xff] }
 0x1ad   :  { %1197 = vst [vmem:[#allocation2 + $0x249] sm:$0xff] %v1055_v11  ;;  %1198 = vst [vmem:[#allocation2 + $0x259] sm:$0xff] %v1056_v24  ;;  %v3056_v24 = vld [vmem:[%s10832_s2 + $0x368] sm:$0xff]  ;;  %v1072_v33 = vmax.f32 %v11157_v30, 0.0  ;;  %v1073_v16 = vmax.f32 %v11158_v29, 0.0  ;;  %3175 = vmatprep.mubr.f32.mxu1 %v11159_v12  ;;  %v1604_v11 = vld [vmem:[#allocation2 + $0x30] sm:$0xff] }
 0x1ae   :  { %1199 = vst [vmem:[#allocation2 + $0x261] sm:$0xff] %v1057_v51  ;;  %1200 = vst [vmem:[#allocation2 + $0x271] sm:$0xff] %v1058_v59  ;;  %v11156_v51 = vld [vmem:[#allocation28_spill] sm:$0xff]  ;;  %3550 = vmatprep.mubr.f32.mxu0 %v1604_v11  ;;  %4251 = vmatpush1.msra.mxu0 %v3056_v24  ;;  %v11160_v59 = vmax.f32 %v8124_v20, 0.0  ;;  %v1605_v56 = vld [vmem:[#allocation2 + $0x38] sm:$0xff]  ;;  %v11161_v20 = vmax.f32 %v8130_v19, 0.0 }
 0x1af   :  { %1201 = vst [vmem:[#allocation2 + $0x279] sm:$0xff] %v1059_v14  ;;  %1202 = vst [vmem:[#allocation2 + $0x289] sm:$0xff] %v1060_v58  ;;  %v1071_v41 = vmax.f32 %v11156_v51, 0.0  ;;  %3176 = vmatmul.mubr.f32.gmra.mxu1 %v1604_v11  ;;  %4252 = vmatprep.subr.mxu0 %v7912_v25  ;;  %v3054_v17 = vld [vmem:[%s10832_s2 + $0x358] sm:$0xff]  ;;  %v1477_v15 = vld [vmem:[#allocation2 + $0x22] sm:$0xff]  ;;  %v11166_v24 = vmax.f32 %v8160_v45, 0.0 }
 0x1b0   :  { %1203 = vst [vmem:[#allocation2 + $0x291] sm:$0xff] %v1061_v62  ;;  %1204 = vst [vmem:[#allocation2 + $0x2a1] sm:$0xff] %v1062_v50  ;;  %3551 = vmatmul.mubr.f32.gmra.mxu0 %v1476_v32  ;;  %3180 = vmatprep.mubr.f32.mxu1 %v11160_v59  ;;  %v3053_v13 = vld [vmem:[%s10832_s2 + $0x350] sm:$0xff]  ;;  %v1606_v14 = vld [vmem:[#allocation2 + $0x48] sm:$0xff]  ;;  %v11162_v62 = vmax.f32 %v8136_v27, 0.0  ;;  %v11163_v27 = vmax.f32 %v8142_v23, 0.0 }
 0x1b1   :  { %1205 = vst [vmem:[#allocation2 + $0x2a9] sm:$0xff] %v1063_v37  ;;  %1206 = vst [vmem:[#allocation2 + $0x2b9] sm:$0xff] %v1064_v3  ;;  %3555 = vmatprep.mubr.f32.mxu0 %v1605_v56  ;;  %4253 = vmatpush1.msra.mxu0 %v3055_v8  ;;  %v3052_v44 = vld [vmem:[%s10832_s2 + $0x348] sm:$0xff]  ;;  %v1478_v58 = vld [vmem:[#allocation2 + $0x32] sm:$0xff]  ;;  %v11164_v23 = vmax.f32 %v8148_v36, 0.0  ;;  %v11165_v36 = vmax.f32 %v8154_v31, 0.0 }
 0x1b2   :  { %1207 = vst [vmem:[#allocation2 + $0x2c1] sm:$0xff] %v1065_v48  ;;  %1208 = vst [vmem:[#allocation2 + $0x2d1] sm:$0xff] %v1066_v10  ;;  %4254 = vmatprep.subr.mxu0 %v7912_v25  ;;  %v1607_v50 = vld [vmem:[#allocation2 + $0x50] sm:$0xff]  ;;  %v3051_v19 = vld [vmem:[%s10832_s2 + $0x340] sm:$0xff]  ;;  %v11167_v45 = vmax.f32 %v8166_v40, 0.0  ;;  %v11168_v40 = vmax.f32 %v8172_v54, 0.0 }
 0x1b3   :  { %1209 = vst [vmem:[#allocation2 + $0x2d9] sm:$0xff] %v1067_v61  ;;  %1210 = vst [vmem:[#allocation2 + $0x2e9] sm:$0xff] %v1068_v7  ;;  %3181 = vmatmul.mubr.f32.gmra.mxu1 %v1605_v56  ;;  %4255 = vmatpush1.msra.mxu0 %v3054_v17  ;;  %v1479_v42 = vld [vmem:[#allocation2 + $0x3a] sm:$0xff]  ;;  %v3049_v28 = vld [vmem:[%s10832_s2 + $0x330] sm:$0xff]  ;;  %v11169_v54 = vmax.f32 %v8178_v49, 0.0  ;;  %v11170_v49 = vmax.f32 %v8184_v0, 0.0 }
 0x1b4   :  { %1211 = vst [vmem:[#allocation2 + $0x2f1] sm:$0xff] %v1069_v26  ;;  %1212 = vst [vmem:[#allocation2 + $0x301] sm:$0xff] %v1070_v22  ;;  %3556 = vmatmul.mubr.f32.gmra.mxu0 %v1477_v15  ;;  %3185 = vmatprep.mubr.f32.mxu1 %v11161_v20  ;;  %v3050_v35 = vld [vmem:[%s10832_s2 + $0x338] sm:$0xff]  ;;  %v1608_v37 = vld [vmem:[#allocation2 + $0x60] sm:$0xff]  ;;  %v11171_v0 = vmax.f32 %v8193_v47, 0.0 }
 0x1b5   :  { %1213 = vst [vmem:[#allocation2 + $0x309] sm:$0xff] %v1071_v41  ;;  %1214 = vst [vmem:[#allocation2 + $0x319] sm:$0xff] %v1072_v33  ;;  %3560 = vmatprep.mubr.f32.mxu0 %v1606_v14  ;;  %4256 = vmatprep.subr.mxu0 %v7912_v25  ;;  %v1480_v3 = vld [vmem:[#allocation2 + $0x4a] sm:$0xff]  ;;  %v1481_v10 = vld [vmem:[#allocation2 + $0x52] sm:$0xff] }
 0x1b6   :  { %1215 = vst [vmem:[#allocation2 + $0x321] sm:$0xff] %v1073_v16  ;;  %1217 = vst [vmem:[#allocation2 + $0x339] sm:$0xff] %v1075_v63  ;;  %4257 = vmatpush1.msra.mxu0 %v3053_v13  ;;  %v3041_v2 = vld [vmem:[%s10832_s2 + $0x2f0] sm:$0xff]  ;;  %v1609_v48 = vld [vmem:[#allocation2 + $0x68] sm:$0xff] }
 0x1b7   :  { %3186 = vmatmul.mubr.f32.gmra.mxu1 %v1606_v14  ;;  %4258 = vmatprep.subr.mxu0 %v7912_v25  ;;  %v3048_v38 = vld [vmem:[%s10832_s2 + $0x328] sm:$0xff]  ;;  %v3047_v61 = vld [vmem:[%s10832_s2 + $0x320] sm:$0xff]  ;;  %v1610_v7 = vld [vmem:[#allocation2 + $0x78] sm:$0xff] }
 0x1b8   :  { %3561 = vmatmul.mubr.f32.gmra.mxu0 %v1478_v58  ;;  %3190 = vmatprep.mubr.f32.mxu1 %v11162_v62  ;;  %v3046_v26 = vld [vmem:[%s10832_s2 + $0x318] sm:$0xff]  ;;  %v1482_v22 = vld [vmem:[#allocation2 + $0x62] sm:$0xff]  ;;  %v3045_v41 = vld [vmem:[%s10832_s2 + $0x310] sm:$0xff] }
 0x1b9   :  { %3565 = vmatprep.mubr.f32.mxu0 %v1607_v50  ;;  %4259 = vmatpush1.msra.mxu0 %v3052_v44  ;;  %v3040_v31 = vld [vmem:[%s10832_s2 + $0x2e8] sm:$0xff]  ;;  %v1611_v51 = vld [vmem:[#allocation2 + $0x80] sm:$0xff]  ;;  %v1612_v29 = vld [vmem:[#allocation2 + $0x90] sm:$0xff] }
 0x1ba   :  { %4260 = vmatprep.subr.mxu0 %v7912_v25  ;;  %3896 = vmatpush2.msra.mxu1 %v3041_v2  ;;  %v1483_v30 = vld [vmem:[#allocation2 + $0x6a] sm:$0xff]  ;;  %v3039_v33 = vld [vmem:[%s10832_s2 + $0x2e0] sm:$0xff]  ;;  %v3038_v12 = vld [vmem:[%s10832_s2 + $0x2d8] sm:$0xff] }
 0x1bb   :  { %3191 = vmatmul.mubr.f32.gmra.mxu1 %v1607_v50  ;;  %4261 = vmatpush1.msra.mxu0 %v3051_v19  ;;  %v3044_v16 = vld [vmem:[%s10832_s2 + $0x308] sm:$0xff]  ;;  %v1484_v63 = vld [vmem:[#allocation2 + $0x7a] sm:$0xff]  ;;  %v3037_v59 = vld [vmem:[%s10832_s2 + $0x2d0] sm:$0xff] }
 0x1bc   :  { %3566 = vmatmul.mubr.f32.gmra.mxu0 %v1479_v42  ;;  %3195 = vmatprep.mubr.f32.mxu1 %v11163_v27  ;;  %v1613_v11 = vld [vmem:[#allocation2 + $0x98] sm:$0xff]  ;;  %v3043_v8 = vld [vmem:[%s10832_s2 + $0x300] sm:$0xff]  ;;  %v1614_v56 = vld [vmem:[#allocation2 + $0xa8] sm:$0xff] }
 0x1bd   :  { %3570 = vmatprep.mubr.f32.mxu0 %v1608_v37  ;;  %4262 = vmatprep.subr.mxu0 %v7912_v25  ;;  %v1485_v32 = vld [vmem:[#allocation2 + $0x82] sm:$0xff]  ;;  %v3074_v17 = vld [vmem:[%s10832_s2 + $0x3f8] sm:$0xff]  ;;  %v1615_v20 = vld [vmem:[#allocation2 + $0xb0] sm:$0xff] }
 0x1be   :  { %4263 = vmatpush1.msra.mxu0 %v3050_v35  ;;  %3897 = vmatprep.subr.mxu1 %v7912_v25  ;;  %v1486_v15 = vld [vmem:[#allocation2 + $0x92] sm:$0xff]  ;;  %v3036_v13 = vld [vmem:[%s10832_s2 + $0x2c8] sm:$0xff]  ;;  %v1487_v44 = vld [vmem:[#allocation2 + $0x9a] sm:$0xff] }
 0x1bf   :  { %3196 = vmatmul.mubr.f32.gmra.mxu1 %v1608_v37  ;;  %4264 = vmatprep.subr.mxu0 %v7912_v25  ;;  %v3073_v14 = vld [vmem:[%s10832_s2 + $0x3f0] sm:$0xff]  ;;  %v3035_v58 = vld [vmem:[%s10832_s2 + $0x2c0] sm:$0xff]  ;;  %v3072_v50 = vld [vmem:[%s10832_s2 + $0x3e8] sm:$0xff] }
 0x1c0   :  { %3571 = vmatmul.mubr.f32.gmra.mxu0 %v1480_v3  ;;  %3200 = vmatprep.mubr.f32.mxu1 %v11164_v23  ;;  %v1616_v62 = vld [vmem:[#allocation2 + $0xc0] sm:$0xff]  ;;  %v1488_v19 = vld [vmem:[#allocation2 + $0xaa] sm:$0xff]  ;;  %v3034_v42 = vld [vmem:[%s10832_s2 + $0x2b8] sm:$0xff] }
 0x1c1   :  { %3575 = vmatprep.mubr.f32.mxu0 %v1609_v48  ;;  %4265 = vmatpush1.msra.mxu0 %v3049_v28  ;;  %v1617_v47 = vld [vmem:[#allocation2 + $0xc8] sm:$0xff]  ;;  %v3071_v35 = vld [vmem:[%s10832_s2 + $0x3e0] sm:$0xff]  ;;  %v1489_v27 = vld [vmem:[#allocation2 + $0xb2] sm:$0xff]  ;;  %v11173_v28 = vmax.f32 %v8211_v34, 0.0  ;;  %v11174_v34 = vmax.f32 %v8217_v21, 0.0 }
 0x1c2   :  { %4266 = vmatprep.subr.mxu0 %v7912_v25  ;;  %3898 = vmatpush2.msra.mxu1 %v3040_v31  ;;  %v1490_v37 = vld [vmem:[#allocation2 + $0xc2] sm:$0xff]  ;;  %v3033_v2 = vld [vmem:[%s10832_s2 + $0x2b0] sm:$0xff]  ;;  %v3070_v23 = vld [vmem:[%s10832_s2 + $0x3d8] sm:$0xff] }
 0x1c3   :  { %3201 = vmatmul.mubr.f32.gmra.mxu1 %v1609_v48  ;;  %4267 = vmatpush1.msra.mxu0 %v3048_v38  ;;  %v1619_v3 = vld [vmem:[#allocation2 + $0xe0] sm:$0xff]  ;;  %v1620_v48 = vld [vmem:[#allocation2 + $0xf0] sm:$0xff] }
 0x1c4   :  { %3576 = vmatmul.mubr.f32.gmra.mxu0 %v1481_v10  ;;  %3205 = vmatprep.mubr.f32.mxu1 %v11165_v36  ;;  %v8769_v10 = vld [vmem:[#allocation2] sm:$0xff]  ;;  %v3069_v31 = vld [vmem:[%s10832_s2 + $0x3d0] sm:$0xff] }
 0x1c5   :  { %3580 = vmatprep.mubr.f32.mxu0 %v1610_v7  ;;  %4268 = vmatprep.subr.mxu0 %v7912_v25  ;;  %v1492_v36 = vld [vmem:[#allocation2 + $0xda] sm:$0xff] }
 0x1c6   :  { %4269 = vmatpush1.msra.mxu0 %v3047_v61  ;;  %3899 = vmatprep.subr.mxu1 %v7912_v25 }
 0x1c7   :  { %3206 = vmatmul.mubr.f32.gmra.mxu1 %v1610_v7  ;;  %4270 = vmatprep.subr.mxu0 %v7912_v25  ;;  %v11175_v7 = vmax.f32 %v8223_v53, 0.0  ;;  %v1622_v53 = vld [vmem:[#allocation2 + $0x108] sm:$0xff] }
 0x1c8   :  { %3581 = vmatmul.mubr.f32.gmra.mxu0 %v1482_v22  ;;  %3210 = vmatprep.mubr.f32.mxu1 %v11166_v24  ;;  %v3032_v22 = vld [vmem:[%s10832_s2 + $0x2a8] sm:$0xff] }
 0x1c9   :  { %3585 = vmatprep.mubr.f32.mxu0 %v1611_v51  ;;  %4271 = vmatpush1.msra.mxu0 %v3046_v26  ;;  %v1621_v26 = vld [vmem:[#allocation2 + $0xf8] sm:$0xff]  ;;  %v1493_v24 = vld [vmem:[#allocation2 + $0xe2] sm:$0xff] }
 0x1ca   :  { %4272 = vmatprep.subr.mxu0 %v7912_v25  ;;  %3900 = vmatpush2.msra.mxu1 %v3039_v33  ;;  %v1623_v33 = vld [vmem:[#allocation2 + $0x110] sm:$0xff] }
 0x1cb   :  { %3211 = vmatmul.mubr.f32.gmra.mxu1 %v1611_v51  ;;  %4273 = vmatpush1.msra.mxu0 %v3045_v41  ;;  %v11176_v51 = vmax.f32 %v8229_v43, 0.0  ;;  %v1494_v41 = vld [vmem:[#allocation2 + $0xf2] sm:$0xff]  ;;  %v3068_v43 = vld [vmem:[%s10832_s2 + $0x3c8] sm:$0xff] }
 0x1cc   :  { %3586 = vmatmul.mubr.f32.gmra.mxu0 %v1483_v30  ;;  %3215 = vmatprep.mubr.f32.mxu1 %v11167_v45  ;;  %v11177_v30 = vmax.f32 %v8235_v9, 0.0  ;;  %v3031_v45 = vld [vmem:[%s10832_s2 + $0x2a0] sm:$0xff] }
 0x1cd   :  { %3590 = vmatprep.mubr.f32.mxu0 %v1612_v29  ;;  %4274 = vmatprep.subr.mxu0 %v7912_v25  ;;  %v1624_v9 = vld [vmem:[#allocation2 + $0x120] sm:$0xff] }
 0x1ce   :  { %4275 = vmatpush1.msra.mxu0 %v3044_v16  ;;  %3901 = vmatprep.subr.mxu1 %v7912_v25  ;;  %v8762_v60 = vpop.f32.mrf.mxu1  ;;  %v11178_v16 = vmax.f32 %v8242_v6, 0.0  ;;  %v3067_v6 = vld [vmem:[%s10832_s2 + $0x3c0] sm:$0xff] }
 0x1cf   :  { %3216 = vmatmul.mubr.f32.gmra.mxu1 %v1612_v29  ;;  %4276 = vmatprep.subr.mxu0 %v7912_v25  ;;  %v1495_v29 = vld [vmem:[#allocation2 + $0xfa] sm:$0xff] }
 0x1d0   :  { %3591 = vmatmul.mubr.f32.gmra.mxu0 %v1484_v63  ;;  %3220 = vmatprep.mubr.f32.mxu1 %v11168_v40  ;;  %v3159_v38 = vpop.f32.mrf.mxu1  ;;  %v1496_v63 = vld [vmem:[#allocation2 + $0x10a] sm:$0xff] }
 0x1d1   :  { %3595 = vmatprep.mubr.f32.mxu0 %v1613_v11  ;;  %3902 = vmatpush2.msra.mxu1 %v3038_v12  ;;  %v11179_v12 = vmax.f32 %v8248_v52, 0.0  ;;  %v1625_v40 = vld [vmem:[#allocation2 + $0x128] sm:$0xff]  ;;  %v1626_v52 = vld [vmem:[#allocation2 + $0x138] sm:$0xff] }
 0x1d2   :  { %4277 = vmatpush1.msra.mxu0 %v3043_v8  ;;  %3903 = vmatprep.subr.mxu1 %v7912_v25  ;;  %v8772_v61 = vpop.f32.mrf.mxu1  ;;  %v1497_v8 = vld [vmem:[#allocation2 + $0x112] sm:$0xff]  ;;  %v3060_v38 = vld [vmem:[%s10832_s2 + $0x388] sm:$0xff] }
 0x1d3   :  { %3221 = vmatmul.mubr.f32.gmra.mxu1 %v1613_v11  ;;  %4278 = vmatprep.subr.mxu0 %v7912_v25  ;;  %v3030_v11 = vld [vmem:[%s10832_s2 + $0x298] sm:$0xff] }
 0x1d4   :  { %3596 = vmatmul.mubr.f32.gmra.mxu0 %v1485_v32  ;;  %3225 = vmatprep.mubr.f32.mxu1 %v11169_v54  ;;  %v3164_v21 = vpop.f32.mrf.mxu1  ;;  %v11180_v32 = vmax.f32 %v8254_v39, 0.0  ;;  %v11181_v54 = vmax.f32 %v8260_v57, 0.0  ;;  %v3066_v39 = vld [vmem:[%s10832_s2 + $0x3b8] sm:$0xff]  ;;  %v1628_v57 = vld [vmem:[#allocation2 + $0x150] sm:$0xff] }
 0x1d5   :  { %3600 = vmatprep.mubr.f32.mxu0 %v1614_v56  ;;  %3904 = vmatpush2.msra.mxu1 %v3037_v59  ;;  %v1498_v59 = vld [vmem:[#allocation2 + $0x122] sm:$0xff]  ;;  %v1507_v21 = vld [vmem:[#allocation2 + $0x1ba] sm:$0xff] }
 0x1d6   :  { %4279 = vmatpush2.msra.mxu0 %v3074_v17  ;;  %3905 = vmatprep.subr.mxu1 %v7912_v25  ;;  %v3029_v17 = vld [vmem:[%s10832_s2 + $0x290] sm:$0xff] }
 0x1d7   :  { %3226 = vmatmul.mubr.f32.gmra.mxu1 %v1614_v56  ;;  %4280 = vmatprep.subr.mxu0 %v7912_v25  ;;  %v1627_v56 = vld [vmem:[#allocation2 + $0x140] sm:$0xff] }
 0x1d8   :  { %3601 = vmatmul.mubr.f32.gmra.mxu0 %v1486_v15  ;;  %3230 = vmatprep.mubr.f32.mxu1 %v11170_v49  ;;  %v1499_v15 = vld [vmem:[#allocation2 + $0x12a] sm:$0xff]  ;;  %v1500_v49 = vld [vmem:[#allocation2 + $0x13a] sm:$0xff] }
 0x1d9   :  { %3605 = vmatprep.mubr.f32.mxu0 %v1615_v20  ;;  %3906 = vmatpush2.msra.mxu1 %v3036_v13  ;;  %v11182_v13 = vmax.f32 %v8266_v46, 0.0  ;;  %v3065_v46 = vld [vmem:[%s10832_s2 + $0x3b0] sm:$0xff] }
 0x1da   :  { %4281 = vmatpush2.msra.mxu0 %v3073_v14  ;;  %3907 = vmatprep.subr.mxu1 %v7912_v25  ;;  %v1629_v14 = vld [vmem:[#allocation2 + $0x158] sm:$0xff] }
 0x1db   :  { %3231 = vmatmul.mubr.f32.gmra.mxu1 %v1615_v20  ;;  %4282 = vmatprep.subr.mxu0 %v7912_v25  ;;  %v11183_v20 = vmax.f32 %v8272_v18, 0.0  ;;  %v1630_v18 = vld [vmem:[#allocation2 + $0x168] sm:$0xff] }
 0x1dc   :  { %3606 = vmatmul.mubr.f32.gmra.mxu0 %v1487_v44  ;;  %3235 = vmatprep.mubr.f32.mxu1 %v11171_v0  ;;  %v3028_v44 = vld [vmem:[%s10832_s2 + $0x288] sm:$0xff]  ;;  %v11184_v0 = vmax.f32 %v8278_v4, 0.0  ;;  %v3027_v4 = vld [vmem:[%s10832_s2 + $0x280] sm:$0xff] }
 0x1dd   :  { %3610 = vmatprep.mubr.f32.mxu0 %v1616_v62  ;;  %3908 = vmatpush2.msra.mxu1 %v3035_v58  ;;  %v1501_v58 = vld [vmem:[#allocation2 + $0x142] sm:$0xff] }
 0x1de   :  { %4283 = vmatpush2.msra.mxu0 %v3072_v50  ;;  %3909 = vmatprep.subr.mxu1 %v7912_v25  ;;  %v11185_v50 = vmax.f32 %v8284_v55, 0.0  ;;  %v1379_v55 = vld [vmem:[#allocation2 + $0x1b9] sm:$0xff] }
 0x1df   :  { %3236 = vmatmul.mubr.f32.gmra.mxu1 %v1616_v62  ;;  %4284 = vmatprep.subr.mxu0 %v7912_v25  ;;  %v1502_v62 = vld [vmem:[#allocation2 + $0x152] sm:$0xff] }
 0x1e0   :  { %3611 = vmatmul.mubr.f32.gmra.mxu0 %v1488_v19  ;;  %3240 = vmatprep.mubr.f32.mxu1 %v1027_v1  ;;  %v1618_v1 = vld [vmem:[#allocation2 + $0xd8] sm:$0xff]  ;;  %v1631_v19 = vld [vmem:[#allocation2 + $0x170] sm:$0xff] }
 0x1e1   :  { %3615 = vmatprep.mubr.f32.mxu0 %v1617_v47  ;;  %3910 = vmatpush2.msra.mxu1 %v3034_v42  ;;  %v3064_v42 = vld [vmem:[%s10832_s2 + $0x3a8] sm:$0xff] }
 0x1e2   :  { %4285 = vmatpush2.msra.mxu0 %v3071_v35  ;;  %3911 = vmatprep.subr.mxu1 %v7912_v25  ;;  %v1503_v35 = vld [vmem:[#allocation2 + $0x15a] sm:$0xff] }
 0x1e3   :  { %3241 = vmatmul.mubr.f32.gmra.mxu1 %v1617_v47  ;;  %4286 = vmatprep.subr.mxu0 %v7912_v25  ;;  %v1491_v25 = vld [vmem:[#allocation2 + $0xca] sm:$0xff] }
 0x1e4   :  { %3616 = vmatmul.mubr.f32.gmra.mxu0 %v1489_v27  ;;  %3245 = vmatprep.mubr.f32.mxu1 %v11172_v5  ;;  %v1378_v47 = vld [vmem:[#allocation2 + $0x1b1] sm:$0xff]  ;;  %v1632_v27 = vld [vmem:[#allocation2 + $0x180] sm:$0xff] }
 0x1e5   :  { %3620 = vmatprep.mubr.f32.mxu0 %v1618_v1  ;;  %3912 = vmatpush2.msra.mxu1 %v3033_v2  ;;  %v3063_v5 = vld [vmem:[%s10832_s2 + $0x3a0] sm:$0xff]  ;;  %v1505_v2 = vld [vmem:[#allocation2 + $0x172] sm:$0xff] }
 0x1e6   :  { %4287 = vmatpush2.msra.mxu0 %v3070_v23  ;;  %3913 = vmatprep.subr.mxu1 %v8769_v10  ;;  %v1380_v23 = vld [vmem:[#allocation2 + $0x1c9] sm:$0xff] }
 0x1e7   :  { %3246 = vmatmul.mubr.f32.gmra.mxu1 %v1618_v1  ;;  %4288 = vmatprep.subr.mxu0 %v8769_v10  ;;  %v8850_v1 = vld [vmem:[%s10832_s2 + $0x478] sm:$0xff] }
 0x1e8   :  { %3621 = vmatmul.mubr.f32.gmra.mxu0 %v1490_v37  ;;  %3250 = vmatprep.mubr.f32.mxu1 %v11173_v28  ;;  %v1504_v37 = vld [vmem:[#allocation2 + $0x16a] sm:$0xff] }
 0x1e9   :  { %3625 = vmatprep.mubr.f32.mxu0 %v1619_v3  ;;  %3914 = vmatpush2.msra.mxu1 %v3032_v22  ;;  %v1633_v28 = vld [vmem:[#allocation2 + $0x188] sm:$0xff] }
 0x1ea   :  { %4289 = vmatpush2.msra.mxu0 %v3069_v31  ;;  %3915 = vmatprep.subr.mxu1 %v8769_v10  ;;  %v1382_v22 = vld [vmem:[#allocation2 + $0x1e1] sm:$0xff] }
 0x1eb   :  { %3251 = vmatmul.mubr.f32.gmra.mxu1 %v1619_v3  ;;  %4290 = vmatprep.subr.mxu0 %v8769_v10  ;;  %v3062_v3 = vld [vmem:[%s10832_s2 + $0x398] sm:$0xff]  ;;  %v1636_v31 = vld [vmem:[#allocation2 + $0x1e0] sm:$0xff] }
 0x1ec   :  { %3626 = vmatmul.mubr.f32.gmra.mxu0 %v1491_v25  ;;  %3255 = vmatprep.mubr.f32.mxu1 %v11174_v34  ;;  %v3061_v25 = vld [vmem:[%s10832_s2 + $0x390] sm:$0xff]  ;;  %v1634_v34 = vld [vmem:[#allocation2 + $0x1c8] sm:$0xff] }
 0x1ed   :  { %3630 = vmatprep.mubr.f32.mxu0 %v1620_v48  ;;  %3916 = vmatpush2.msra.mxu1 %v3031_v45  ;;  %v1385_v45 = vld [vmem:[#allocation2 + $0x201] sm:$0xff] }
 0x1ee   :  { %4291 = vmatpush2.msra.mxu0 %v3068_v43  ;;  %3917 = vmatprep.subr.mxu1 %v8769_v10  ;;  %v1639_v43 = vld [vmem:[#allocation2 + $0x200] sm:$0xff] }
 0x1ef   :  { %3256 = vmatmul.mubr.f32.gmra.mxu1 %v1620_v48  ;;  %4292 = vmatprep.subr.mxu0 %v8769_v10  ;;  %v1506_v48 = vld [vmem:[#allocation2 + $0x1b2] sm:$0xff] }
 0x1f0   :  { %3631 = vmatmul.mubr.f32.gmra.mxu0 %v1492_v36  ;;  %3260 = vmatprep.mubr.f32.mxu1 %v11175_v7  ;;  %v1381_v36 = vld [vmem:[#allocation2 + $0x1d1] sm:$0xff] }
 0x1f1   :  { %3635 = vmatprep.mubr.f32.mxu0 %v1621_v26  ;;  %3918 = vmatpush2.msra.mxu1 %v3030_v11  ;;  %v1635_v7 = vld [vmem:[#allocation2 + $0x1d0] sm:$0xff]  ;;  %v1513_v11 = vld [vmem:[#allocation2 + $0x202] sm:$0xff] }
 0x1f2   :  { %4293 = vmatpush2.msra.mxu0 %v3067_v6  ;;  %3919 = vmatprep.subr.mxu1 %v8769_v10  ;;  %v1388_v6 = vld [vmem:[#allocation2 + $0x229] sm:$0xff] }
 0x1f3   :  { %3261 = vmatmul.mubr.f32.gmra.mxu1 %v1621_v26  ;;  %4294 = vmatprep.subr.mxu0 %v8769_v10  ;;  %v3059_v26 = vld [vmem:[%s10832_s2 + $0x380] sm:$0xff] }
 0x1f4   :  { %3636 = vmatmul.mubr.f32.gmra.mxu0 %v1493_v24  ;;  %3265 = vmatprep.mubr.f32.mxu1 %v11176_v51  ;;  %v1508_v24 = vld [vmem:[#allocation2 + $0x1ca] sm:$0xff] }
 0x1f5   :  { %3640 = vmatprep.mubr.f32.mxu0 %v1622_v53  ;;  %3920 = vmatpush2.msra.mxu1 %v3029_v17  ;;  %v1383_v51 = vld [vmem:[#allocation2 + $0x1e9] sm:$0xff]  ;;  %v1390_v17 = vld [vmem:[#allocation2 + $0x241] sm:$0xff] }
 0x1f6   :  { %4295 = vmatpush2.msra.mxu0 %v3066_v39  ;;  %3921 = vmatprep.subr.mxu1 %v8769_v10  ;;  %v1644_v39 = vld [vmem:[#allocation2 + $0x240] sm:$0xff] }
 0x1f7   :  { %3266 = vmatmul.mubr.f32.gmra.mxu1 %v1622_v53  ;;  %4296 = vmatprep.subr.mxu0 %v8769_v10  ;;  %v1637_v53 = vld [vmem:[#allocation2 + $0x1e8] sm:$0xff] }
 0x1f8   :  { %3641 = vmatmul.mubr.f32.gmra.mxu0 %v1494_v41  ;;  %3270 = vmatprep.mubr.f32.mxu1 %v11177_v30  ;;  %v1509_v41 = vld [vmem:[#allocation2 + $0x1d2] sm:$0xff] }
 0x1f9   :  { %3645 = vmatprep.mubr.f32.mxu0 %v1623_v33  ;;  %3922 = vmatpush2.msra.mxu1 %v3028_v44  ;;  %v1384_v30 = vld [vmem:[#allocation2 + $0x1f9] sm:$0xff]  ;;  %v1518_v44 = vld [vmem:[#allocation2 + $0x242] sm:$0xff] }
 0x1fa   :  { %4297 = vmatpush2.msra.mxu0 %v3065_v46  ;;  %3923 = vmatprep.subr.mxu1 %v8769_v10  ;;  %v1393_v46 = vld [vmem:[#allocation2 + $0x261] sm:$0xff] }
 0x1fb   :  { %3271 = vmatmul.mubr.f32.gmra.mxu1 %v1623_v33  ;;  %4298 = vmatprep.subr.mxu0 %v8769_v10  ;;  %v1510_v33 = vld [vmem:[#allocation2 + $0x1e2] sm:$0xff] }
 0x1fc   :  { %3646 = vmatmul.mubr.f32.gmra.mxu0 %v1495_v29  ;;  %3275 = vmatprep.mubr.f32.mxu1 %v11178_v16  ;;  %v1511_v29 = vld [vmem:[#allocation2 + $0x1ea] sm:$0xff] }
 0x1fd   :  { %3650 = vmatprep.mubr.f32.mxu0 %v1624_v9  ;;  %3924 = vmatpush2.msra.mxu1 %v3027_v4  ;;  %v1386_v16 = vld [vmem:[#allocation2 + $0x211] sm:$0xff]  ;;  %v1521_v4 = vld [vmem:[#allocation2 + $0x262] sm:$0xff] }
 0x1fe   :  { %4299 = vmatpush2.msra.mxu0 %v3064_v42  ;;  %6665 = vmatprep.subr.mxu1 %v8850_v1  ;;  %v1396_v42 = vld [vmem:[#allocation2 + $0x289] sm:$0xff] }
 0x1ff   :  { %3276 = vmatmul.mubr.f32.gmra.mxu1 %v1624_v9  ;;  %4300 = vmatprep.subr.mxu0 %v8769_v10  ;;  %v1640_v9 = vld [vmem:[#allocation2 + $0x210] sm:$0xff] }
 0x200   :  { %3651 = vmatmul.mubr.f32.gmra.mxu0 %v1496_v63  ;;  %3280 = vmatprep.mubr.f32.mxu1 %v11179_v12  ;;  %v1512_v63 = vld [vmem:[#allocation2 + $0x1fa] sm:$0xff] }
 0x201   :  { %3655 = vmatprep.mubr.f32.mxu0 %v1625_v40  ;;  %4301 = vmatpush2.msra.mxu0 %v3063_v5  ;;  %v1387_v12 = vld [vmem:[#allocation2 + $0x219] sm:$0xff]  ;;  %v1397_v5 = vld [vmem:[#allocation2 + $0x291] sm:$0xff] }
 0x202   :  { %4302 = vmatprep.subr.mxu0 %v8769_v10 }
 0x203   :  { %3281 = vmatmul.mubr.f32.gmra.mxu1 %v1625_v40  ;;  %4303 = vmatpush2.msra.mxu0 %v3062_v3  ;;  %v1641_v40 = vld [vmem:[#allocation2 + $0x218] sm:$0xff] }
 0x204   :  { %3656 = vmatmul.mubr.f32.gmra.mxu0 %v1497_v8  ;;  %3285 = vmatprep.mubr.f32.mxu1 %v11180_v32  ;;  %v1642_v8 = vld [vmem:[#allocation2 + $0x228] sm:$0xff]  ;;  %v1514_v32 = vld [vmem:[#allocation2 + $0x212] sm:$0xff] }
 0x205   :  { %3660 = vmatprep.mubr.f32.mxu0 %v1626_v52  ;;  %4304 = vmatprep.subr.mxu0 %v8769_v10 }
 0x206   :  { %4305 = vmatpush2.msra.mxu0 %v3061_v25  ;;  %v1523_v25 = vld [vmem:[#allocation2 + $0x27a] sm:$0xff] }
 0x207   :  { %3286 = vmatmul.mubr.f32.gmra.mxu1 %v1626_v52  ;;  %4306 = vmatprep.subr.mxu0 %v8769_v10  ;;  %v1389_v52 = vld [vmem:[#allocation2 + $0x231] sm:$0xff] }
 0x208   :  { %3661 = vmatmul.mubr.f32.gmra.mxu0 %v1498_v59  ;;  %3290 = vmatprep.mubr.f32.mxu1 %v11181_v54  ;;  %v1643_v59 = vld [vmem:[#allocation2 + $0x230] sm:$0xff]  ;;  %v8874_v54 = vld [vmem:[%s10834_s4] sm:$0xf] }
 0x209   :  { %3665 = vmatprep.mubr.f32.mxu0 %v1627_v56  ;;  %4307 = vmatpush2.msra.mxu0 %v3060_v38  ;;  %v1652_v38 = vld [vmem:[#allocation2 + $0x2a0] sm:$0xff] }
 0x20a   :  { %4308 = vmatprep.subr.mxu0 %v8769_v10 }
 0x20b   :  { %3291 = vmatmul.mubr.f32.gmra.mxu1 %v1627_v56  ;;  %4309 = vmatpush2.msra.mxu0 %v3059_v26  ;;  %v1515_v56 = vld [vmem:[#allocation2 + $0x21a] sm:$0xff] }
 0x20c   :  { %3666 = vmatmul.mubr.f32.gmra.mxu0 %v1499_v15  ;;  %3295 = vmatprep.mubr.f32.mxu1 %v11182_v13  ;;  %v1516_v15 = vld [vmem:[#allocation2 + $0x22a] sm:$0xff] }
 0x20d   :  { %3670 = vmatprep.mubr.f32.mxu0 %v1628_v57  ;;  %6793 = vmatprep.subr.msk.mxu0 %vm286_vm0, %v8874_v54  ;;  %v1391_v13 = vld [vmem:[#allocation2 + $0x249] sm:$0xff] }
 0x20f   :  { %3296 = vmatmul.mubr.f32.gmra.mxu1 %v1628_v57  ;;  %v1645_v57 = vld [vmem:[#allocation2 + $0x248] sm:$0xff] }
 0x210   :  { %3671 = vmatmul.mubr.f32.gmra.mxu0 %v1500_v49  ;;  %3300 = vmatprep.mubr.f32.mxu1 %v11183_v20  ;;  %v1517_v49 = vld [vmem:[#allocation2 + $0x232] sm:$0xff] }
 0x211   :  { %3675 = vmatprep.mubr.f32.mxu0 %v1629_v14  ;;  %v1392_v20 = vld [vmem:[#allocation2 + $0x259] sm:$0xff] }
 0x213   :  { %3301 = vmatmul.mubr.f32.gmra.mxu1 %v1629_v14  ;;  %v1646_v14 = vld [vmem:[#allocation2 + $0x258] sm:$0xff] }
 0x214   :  { %3676 = vmatmul.mubr.f32.gmra.mxu0 %v1501_v58  ;;  %3305 = vmatprep.mubr.f32.mxu1 %v11184_v0  ;;  %v1647_v58 = vld [vmem:[#allocation2 + $0x260] sm:$0xff]  ;;  %v1519_v0 = vld [vmem:[#allocation2 + $0x24a] sm:$0xff] }
 0x215   :  { %3680 = vmatprep.mubr.f32.mxu0 %v1630_v18 }
 0x217   :  { %3306 = vmatmul.mubr.f32.gmra.mxu1 %v1630_v18  ;;  %v1394_v18 = vld [vmem:[#allocation2 + $0x271] sm:$0xff] }
 0x218   :  { %3681 = vmatmul.mubr.f32.gmra.mxu0 %v1502_v62  ;;  %3310 = vmatprep.mubr.f32.mxu1 %v11185_v50  ;;  %v1648_v62 = vld [vmem:[#allocation2 + $0x270] sm:$0xff]  ;;  %v1520_v50 = vld [vmem:[#allocation2 + $0x25a] sm:$0xff] }
 0x219   :  { %3685 = vmatprep.mubr.f32.mxu0 %v1631_v19 }
 0x21b   :  { %3311 = vmatmul.mubr.f32.gmra.mxu1 %v1631_v19  ;;  %v1395_v19 = vld [vmem:[#allocation2 + $0x279] sm:$0xff] }
 0x21c   :  { %3686 = vmatmul.mubr.f32.gmra.mxu0 %v1503_v35  ;;  %3315 = vmatprep.mubr.f32.mxu1 %v1378_v47  ;;  %v1649_v47 = vld [vmem:[#allocation2 + $0x278] sm:$0xff]  ;;  %v1650_v35 = vld [vmem:[#allocation2 + $0x288] sm:$0xff] }
 0x21d   :  { %3690 = vmatprep.mubr.f32.mxu0 %v1632_v27 }
 0x21f   :  { %3316 = vmatmul.mubr.f32.gmra.mxu1 %v8769_v10 }
 0x220   :  { %3691 = vmatmul.mubr.f32.gmra.mxu0 %v1504_v37  ;;  %3320 = vmatprep.mubr.f32.mxu1 %v1379_v55  ;;  %v1522_v55 = vld [vmem:[#allocation2 + $0x272] sm:$0xff] }
 0x221   :  { %3695 = vmatprep.mubr.f32.mxu0 %v1633_v28  ;;  %v1651_v28 = vld [vmem:[#allocation2 + $0x290] sm:$0xff] }
 0x223   :  { %3321 = vmatmul.mubr.f32.gmra.mxu1 %v8769_v10  ;;  %v1638_v10 = vld [vmem:[#allocation2 + $0x1f8] sm:$0xff] }
 0x224   :  { %3696 = vmatmul.mubr.f32.gmra.mxu0 %v1505_v2  ;;  %3325 = vmatprep.mubr.f32.mxu1 %v1380_v23 }
 0x225   :  { %3700 = vmatprep.mubr.f32.mxu0 %v1634_v34 }
 0x227   :  { %3326 = vmatmul.mubr.f32.gmra.mxu1 %v1634_v34  ;;  %v1398_v34 = vld [vmem:[#allocation2 + $0x2a1] sm:$0xff] }
 0x228   :  { %3701 = vmatmul.mubr.f32.gmra.mxu0 %v1506_v48  ;;  %3330 = vmatprep.mubr.f32.mxu1 %v1381_v36 }
 0x229   :  { %3705 = vmatprep.mubr.f32.mxu0 %v1635_v7 }
 0x22b   :  { %3331 = vmatmul.mubr.f32.gmra.mxu1 %v1635_v7 }
 0x22c   :  { %3706 = vmatmul.mubr.f32.gmra.mxu0 %v1507_v21  ;;  %3335 = vmatprep.mubr.f32.mxu1 %v1382_v22  ;;  %v1524_v21 = vld [vmem:[#allocation2 + $0x28a] sm:$0xff] }
 0x22d   :  { %3710 = vmatprep.mubr.f32.mxu0 %v1636_v31  ;;  %v1399_v22 = vld [vmem:[#allocation2 + $0x2a9] sm:$0xff] }
 0x22f   :  { %3336 = vmatmul.mubr.f32.gmra.mxu1 %v1636_v31 }
 0x230   :  { %3711 = vmatmul.mubr.f32.gmra.mxu0 %v1508_v24  ;;  %3340 = vmatprep.mubr.f32.mxu1 %v1383_v51  ;;  %v1653_v24 = vld [vmem:[#allocation2 + $0x2a8] sm:$0xff] }
 0x231   :  { %3715 = vmatprep.mubr.f32.mxu0 %v1637_v53 }
 0x233   :  { %3341 = vmatmul.mubr.f32.gmra.mxu1 %v1637_v53 }
 0x234   :  { %3716 = vmatmul.mubr.f32.gmra.mxu0 %v1509_v41  ;;  %3345 = vmatprep.mubr.f32.mxu1 %v1384_v30 }
 0x235   :  { %3720 = vmatprep.mubr.f32.mxu0 %v1638_v10 }
 0x237   :  { %3346 = vmatmul.mubr.f32.gmra.mxu1 %v1638_v10  ;;  %v1525_v10 = vld [vmem:[#allocation2 + $0x292] sm:$0xff] }
 0x238   :  { %3721 = vmatmul.mubr.f32.gmra.mxu0 %v1510_v33  ;;  %3350 = vmatprep.mubr.f32.mxu1 %v1385_v45  ;;  %v1400_v33 = vld [vmem:[#allocation2 + $0x2b9] sm:$0xff] }
 0x239   :  { %3725 = vmatprep.mubr.f32.mxu0 %v1639_v43 }
 0x23b   :  { %3351 = vmatmul.mubr.f32.gmra.mxu1 %v1639_v43  ;;  %v1654_v43 = vld [vmem:[#allocation2 + $0x2b8] sm:$0xff] }
 0x23c   :  { %3726 = vmatmul.mubr.f32.gmra.mxu0 %v1511_v29  ;;  %3355 = vmatprep.mubr.f32.mxu1 %v1386_v16 }
 0x23d   :  { %3730 = vmatprep.mubr.f32.mxu0 %v1640_v9 }
 0x23f   :  { %3356 = vmatmul.mubr.f32.gmra.mxu1 %v1640_v9 }
 0x240   :  { %3731 = vmatmul.mubr.f32.gmra.mxu0 %v1512_v63  ;;  %3360 = vmatprep.mubr.f32.mxu1 %v1387_v12  ;;  %v1526_v12 = vld [vmem:[#allocation2 + $0x2a2] sm:$0xff] }
 0x241   :  { %3735 = vmatprep.mubr.f32.mxu0 %v1641_v40 }
 0x243   :  { %3361 = vmatmul.mubr.f32.gmra.mxu1 %v1641_v40  ;;  %v1401_v40 = vld [vmem:[#allocation2 + $0x2c1] sm:$0xff] }
 0x244   :  { %3736 = vmatmul.mubr.f32.gmra.mxu0 %v1513_v11  ;;  %3365 = vmatprep.mubr.f32.mxu1 %v1388_v6  ;;  %v1655_v6 = vld [vmem:[#allocation2 + $0x2c0] sm:$0xff] }
 0x245   :  { %3740 = vmatprep.mubr.f32.mxu0 %v1642_v8 }
 0x247   :  { %3366 = vmatmul.mubr.f32.gmra.mxu1 %v1642_v8 }
 0x248   :  { %3741 = vmatmul.mubr.f32.gmra.mxu0 %v1514_v32  ;;  %3370 = vmatprep.mubr.f32.mxu1 %v1389_v52 }
 0x249   :  { %3745 = vmatprep.mubr.f32.mxu0 %v1643_v59 }
 0x24b   :  { %3371 = vmatmul.mubr.f32.gmra.mxu1 %v1643_v59 }
 0x24c   :  { %3746 = vmatmul.mubr.f32.gmra.mxu0 %v1515_v56  ;;  %3375 = vmatprep.mubr.f32.mxu1 %v1390_v17  ;;  %v1527_v56 = vld [vmem:[#allocation2 + $0x2aa] sm:$0xff] }
 0x24d   :  { %3750 = vmatprep.mubr.f32.mxu0 %v1644_v39  ;;  %v1402_v17 = vld [vmem:[#allocation2 + $0x2d1] sm:$0xff] }
 0x24f   :  { %3376 = vmatmul.mubr.f32.gmra.mxu1 %v1644_v39 }
 0x250   :  { %3751 = vmatmul.mubr.f32.gmra.mxu0 %v1516_v15  ;;  %3380 = vmatprep.mubr.f32.mxu1 %v1391_v13  ;;  %v1656_v15 = vld [vmem:[#allocation2 + $0x2d0] sm:$0xff] }
 0x251   :  { %3755 = vmatprep.mubr.f32.mxu0 %v1645_v57 }
 0x253   :  { %3381 = vmatmul.mubr.f32.gmra.mxu1 %v1645_v57 }
 0x254   :  { %3756 = vmatmul.mubr.f32.gmra.mxu0 %v1517_v49  ;;  %3385 = vmatprep.mubr.f32.mxu1 %v1392_v20 }
 0x255   :  { %3760 = vmatprep.mubr.f32.mxu0 %v1646_v14 }
 0x257   :  { %3386 = vmatmul.mubr.f32.gmra.mxu1 %v1646_v14  ;;  %v1528_v14 = vld [vmem:[#allocation2 + $0x2ba] sm:$0xff] }
 0x258   :  { %3761 = vmatmul.mubr.f32.gmra.mxu0 %v1518_v44  ;;  %3390 = vmatprep.mubr.f32.mxu1 %v1393_v46  ;;  %v1403_v44 = vld [vmem:[#allocation2 + $0x2d9] sm:$0xff] }
 0x259   :  { %3765 = vmatprep.mubr.f32.mxu0 %v1647_v58 }
 0x25b   :  { %3391 = vmatmul.mubr.f32.gmra.mxu1 %v1647_v58  ;;  %v1657_v58 = vld [vmem:[#allocation2 + $0x2d8] sm:$0xff] }
 0x25c   :  { %3766 = vmatmul.mubr.f32.gmra.mxu0 %v1519_v0  ;;  %3395 = vmatprep.mubr.f32.mxu1 %v1394_v18 }
 0x25d   :  { %3770 = vmatprep.mubr.f32.mxu0 %v1648_v62 }
 0x25f   :  { %3396 = vmatmul.mubr.f32.gmra.mxu1 %v1648_v62 }
 0x260   :  { %3771 = vmatmul.mubr.f32.gmra.mxu0 %v1520_v50  ;;  %3400 = vmatprep.mubr.f32.mxu1 %v1395_v19  ;;  %v1529_v19 = vld [vmem:[#allocation2 + $0x2c2] sm:$0xff] }
 0x261   :  { %3775 = vmatprep.mubr.f32.mxu0 %v1649_v47 }
 0x263   :  { %3401 = vmatmul.mubr.f32.gmra.mxu1 %v1649_v47  ;;  %v1404_v47 = vld [vmem:[#allocation2 + $0x2e9] sm:$0xff] }
 0x264   :  { %3776 = vmatmul.mubr.f32.gmra.mxu0 %v1521_v4  ;;  %3405 = vmatprep.mubr.f32.mxu1 %v1396_v42  ;;  %v1658_v42 = vld [vmem:[#allocation2 + $0x2e8] sm:$0xff] }
 0x265   :  { %3780 = vmatprep.mubr.f32.mxu0 %v1650_v35  ;;  %v3167_v27 = vpop.f32.mrf.mxu1 }
 0x266   :  { %v8878_v37 = vpop.f32.mrf.mxu0 }
 0x267   :  { %3406 = vmatmul.mubr.f32.gmra.mxu1 %v1650_v35  ;;  %v3169_v3 = vpop.f32.mrf.mxu1 }
 0x268   :  { %3781 = vmatmul.mubr.f32.gmra.mxu0 %v1522_v55  ;;  %3410 = vmatprep.mubr.f32.mxu1 %v1397_v5  ;;  %v3544_v2 = vpop.f32.mrf.mxu0  ;;  %v1405_v3 = vld [vmem:[#allocation2 + $0x2f1] sm:$0xff] }
 0x269   :  { %3785 = vmatprep.mubr.f32.mxu0 %v1651_v28  ;;  %v3172_v23 = vpop.f32.mrf.mxu1 }
 0x26a   :  { %v8880_v48 = vpop.f32.mrf.mxu0 }
 0x26b   :  { %3411 = vmatmul.mubr.f32.gmra.mxu1 %v1651_v28  ;;  %v3174_v36 = vpop.f32.mrf.mxu1  ;;  %v1530_v28 = vld [vmem:[#allocation2 + $0x2d2] sm:$0xff] }
 0x26c   :  { %3786 = vmatmul.mubr.f32.gmra.mxu0 %v1523_v25  ;;  %3415 = vmatprep.mubr.f32.mxu1 %v1398_v34  ;;  %v3549_v7 = vpop.f32.mrf.mxu0 }
 0x26d   :  { %3790 = vmatprep.mubr.f32.mxu0 %v1652_v38  ;;  %v1531_v7 = vld [vmem:[#allocation2 + $0x2da] sm:$0xff] }
 0x26f   :  { %v3177_v26 = vpop.f32.mrf.mxu1  ;;  %3416 = vmatmul.mubr.f32.gmra.mxu1 %v1652_v38 }
 0x270   :  { %v3552_v31 = vpop.f32.mrf.mxu0  ;;  %3791 = vmatmul.mubr.f32.gmra.mxu0 %v1524_v21  ;;  %3420 = vmatprep.mubr.f32.mxu1 %v1399_v22  ;;  %v1660_v22 = vld [vmem:[#allocation2 + $0x300] sm:$0xff] }
 0x271   :  { %v8882_v51 = vadd.f32 %v3552_v31, %v3167_v27  ;;  %3795 = vmatprep.mubr.f32.mxu0 %v1653_v24  ;;  %v3179_v53 = vpop.f32.mrf.mxu1 }
 0x272   :  { %v3554_v41 = vpop.f32.mrf.mxu0 }
 0x273   :  { %v3182_v30 = vpop.f32.mrf.mxu1  ;;  %3421 = vmatmul.mubr.f32.gmra.mxu1 %v1653_v24 }
 0x274   :  { %v3557_v45 = vpop.f32.mrf.mxu0  ;;  %3796 = vmatmul.mubr.f32.gmra.mxu0 %v1525_v10  ;;  %3425 = vmatprep.mubr.f32.mxu1 %v1400_v33  ;;  %v1407_v10 = vld [vmem:[#allocation2 + $0x309] sm:$0xff] }
 0x275   :  { %v8884_v29 = vadd.f32 %v3557_v45, %v3172_v23  ;;  %3800 = vmatprep.mubr.f32.mxu0 %v1654_v43  ;;  %v3184_v16 = vpop.f32.mrf.mxu1  ;;  %v1659_v23 = vld [vmem:[#allocation2 + $0x2f0] sm:$0xff]  ;;  %v1661_v45 = vld [vmem:[#allocation2 + $0x308] sm:$0xff] }
 0x276   :  { %v3559_v9 = vpop.f32.mrf.mxu0 }
 0x277   :  { %v3187_v63 = vpop.f32.mrf.mxu1  ;;  %3426 = vmatmul.mubr.f32.gmra.mxu1 %v1654_v43 }
 0x278   :  { %v3562_v11 = vpop.f32.mrf.mxu0  ;;  %3801 = vmatmul.mubr.f32.gmra.mxu0 %v1526_v12  ;;  %3430 = vmatprep.mubr.f32.mxu1 %v1401_v40  ;;  %v1533_v12 = vld [vmem:[#allocation2 + $0x2f2] sm:$0xff] }
 0x279   :  { %v8886_v8 = vadd.f32 %v3562_v11, %v3177_v26  ;;  %3805 = vmatprep.mubr.f32.mxu0 %v1655_v6  ;;  %v3189_v32 = vpop.f32.mrf.mxu1  ;;  %v1406_v26 = vld [vmem:[#allocation2 + $0x301] sm:$0xff]  ;;  %v1408_v40 = vld [vmem:[#allocation2 + $0x319] sm:$0xff] }
 0x27a   :  { %v3564_v52 = vpop.f32.mrf.mxu0 }
 0x27b   :  { %v3192_v59 = vpop.f32.mrf.mxu1  ;;  %3431 = vmatmul.mubr.f32.gmra.mxu1 %v1655_v6  ;;  %v1662_v6 = vld [vmem:[#allocation2 + $0x318] sm:$0xff] }
 0x27c   :  { %v3567_v39 = vpop.f32.mrf.mxu0  ;;  %3806 = vmatmul.mubr.f32.gmra.mxu0 %v1527_v56  ;;  %3435 = vmatprep.mubr.f32.mxu1 %v1402_v17  ;;  %v1534_v17 = vld [vmem:[#allocation2 + $0x302] sm:$0xff] }
 0x27d   :  { %v8888_v13 = vadd.f32 %v3567_v39, %v3182_v30  ;;  %3810 = vmatprep.mubr.f32.mxu0 %v1656_v15  ;;  %v3194_v57 = vpop.f32.mrf.mxu1  ;;  %v1532_v30 = vld [vmem:[#allocation2 + $0x2ea] sm:$0xff]  ;;  %v1409_v39 = vld [vmem:[#allocation2 + $0x321] sm:$0xff] }
 0x27e   :  { %v3569_v49 = vpop.f32.mrf.mxu0  ;;  %v1663_v57 = vld [vmem:[#allocation2 + $0x320] sm:$0xff] }
 0x27f   :  { %v3197_v20 = vpop.f32.mrf.mxu1  ;;  %3436 = vmatmul.mubr.f32.gmra.mxu1 %v1656_v15 }
 0x280   :  { %v3572_v46 = vpop.f32.mrf.mxu0  ;;  %3811 = vmatmul.mubr.f32.gmra.mxu0 %v1528_v14  ;;  %3440 = vmatprep.mubr.f32.mxu1 %v1403_v44 }
 0x281   :  { %v8890_v0 = vadd.f32 %v3572_v46, %v3187_v63  ;;  %3815 = vmatprep.mubr.f32.mxu0 %v1657_v58  ;;  %v3199_v18 = vpop.f32.mrf.mxu1  ;;  %v1535_v46 = vld [vmem:[#allocation2 + $0x30a] sm:$0xff] }
 0x282   :  { %v3574_v62 = vpop.f32.mrf.mxu0 }
 0x283   :  { %v3202_v50 = vpop.f32.mrf.mxu1  ;;  %3441 = vmatmul.mubr.f32.gmra.mxu1 %v1657_v58  ;;  %v1858_v58 = vld [vmem:[#allocation2 + $0x1a] sm:$0xff]  ;;  %v1664_v62 = vld [vmem:[#allocation2 + $0x330] sm:$0xff] }
 0x284   :  { %v3577_v4 = vpop.f32.mrf.mxu0  ;;  %3816 = vmatmul.mubr.f32.gmra.mxu0 %v1529_v19  ;;  %3445 = vmatprep.mubr.f32.mxu1 %v1404_v47 }
 0x285   :  { %v8892_v35 = vadd.f32 %v3577_v4, %v3192_v59  ;;  %3820 = vmatprep.mubr.f32.mxu0 %v1658_v42  ;;  %v3204_v27 = vpop.f32.mrf.mxu1  ;;  %v1730_v4 = vld [vmem:[#allocation2 + $0x19] sm:$0xff] }
 0x286   :  { %v3579_v55 = vpop.f32.mrf.mxu0  ;;  %v1536_v27 = vld [vmem:[#allocation2 + $0x31a] sm:$0xff] }
 0x287   :  { %v3207_v5 = vpop.f32.mrf.mxu1  ;;  %3446 = vmatmul.mubr.f32.gmra.mxu1 %v1658_v42  ;;  %v3089_v55 = vld [vmem:[%s10832_s2 + $0x470] sm:$0xff] }
 0x288   :  { %v3582_v2 = vpop.f32.mrf.mxu0  ;;  %3821 = vmatmul.mubr.f32.gmra.mxu0 %v1530_v28  ;;  %3450 = vmatprep.mubr.f32.mxu1 %v1405_v3  ;;  %v1665_v28 = vld [vmem:[#allocation2 + $0x338] sm:$0xff]  ;;  %v1859_v3 = vld [vmem:[#allocation2 + $0x22] sm:$0xff] }
 0x289   :  { %v8894_v25 = vadd.f32 %v3582_v2, %v3197_v20  ;;  %3825 = vmatprep.mubr.f32.mxu0 %v1659_v23  ;;  %v3209_v34 = vpop.f32.mrf.mxu1 }
 0x28a   :  { %v3584_v38 = vpop.f32.mrf.mxu0 }
 0x28b   :  { %v3212_v36 = vpop.f32.mrf.mxu1  ;;  %3451 = vmatmul.mubr.f32.gmra.mxu1 %v1659_v23  ;;  %v1731_v38 = vld [vmem:[#allocation2 + $0x21] sm:$0xff] }
 0x28c   :  { %v3587_v21 = vpop.f32.mrf.mxu0  ;;  %3826 = vmatmul.mubr.f32.gmra.mxu0 %v1531_v7  ;;  %3455 = vmatprep.mubr.f32.mxu1 %v1406_v26  ;;  %v1537_v7 = vld [vmem:[#allocation2 + $0x322] sm:$0xff]  ;;  %v1860_v26 = vld [vmem:[#allocation2 + $0x32] sm:$0xff] }
 0x28d   :  { %v8896_v31 = vadd.f32 %v3587_v21, %v3202_v50  ;;  %3830 = vmatprep.mubr.f32.mxu0 %v1660_v22  ;;  %v3214_v24 = vpop.f32.mrf.mxu1  ;;  %v3088_v21 = vld [vmem:[%s10832_s2 + $0x468] sm:$0xff] }
 0x28e   :  { %v3589_v53 = vpop.f32.mrf.mxu0 }
 0x28f   :  { %v3217_v41 = vpop.f32.mrf.mxu1  ;;  %3456 = vmatmul.mubr.f32.gmra.mxu1 %v1660_v22 }
 0x290   :  { %v3592_v33 = vpop.f32.mrf.mxu0  ;;  %3831 = vmatmul.mubr.f32.gmra.mxu0 %v1532_v30  ;;  %3460 = vmatprep.mubr.f32.mxu1 %v1407_v10  ;;  %v1987_v10 = vld [vmem:[#allocation2 + $0x30] sm:$0xff] }
 0x291   :  { %v8898_v43 = vadd.f32 %v3592_v33, %v3207_v5  ;;  %3835 = vmatprep.mubr.f32.mxu0 %v1661_v45  ;;  %v3219_v16 = vpop.f32.mrf.mxu1  ;;  %v1861_v33 = vld [vmem:[#allocation2 + $0x3a] sm:$0xff] }
 0x292   :  { %v3594_v9 = vpop.f32.mrf.mxu0 }
 0x293   :  { %v3222_v63 = vpop.f32.mrf.mxu1  ;;  %3461 = vmatmul.mubr.f32.gmra.mxu1 %v1661_v45  ;;  %v3087_v45 = vld [vmem:[%s10832_s2 + $0x460] sm:$0xff] }
 0x294   :  { %v3597_v11 = vpop.f32.mrf.mxu0  ;;  %3836 = vmatmul.mubr.f32.gmra.mxu0 %v1533_v12  ;;  %3465 = vmatprep.mubr.f32.mxu1 %v1408_v40  ;;  %v2116_v9 = vld [vmem:[#allocation2 + $0x39] sm:$0xff] }
 0x295   :  { %v8900_v32 = vadd.f32 %v3597_v11, %v3212_v36  ;;  %3840 = vmatprep.mubr.f32.mxu0 %v1662_v6  ;;  %v3224_v52 = vpop.f32.mrf.mxu1 }
 0x296   :  { %v3599_v59 = vpop.f32.mrf.mxu0  ;;  %v1862_v52 = vld [vmem:[#allocation2 + $0x4a] sm:$0xff] }
 0x297   :  { %v3227_v56 = vpop.f32.mrf.mxu1  ;;  %3466 = vmatmul.mubr.f32.gmra.mxu1 %v1662_v6  ;;  %v1988_v6 = vld [vmem:[#allocation2 + $0x38] sm:$0xff] }
 0x298   :  { %v3602_v15 = vpop.f32.mrf.mxu0  ;;  %3841 = vmatmul.mubr.f32.gmra.mxu0 %v1534_v17  ;;  %3470 = vmatprep.mubr.f32.mxu1 %v1409_v39  ;;  %v3086_v59 = vld [vmem:[%s10832_s2 + $0x458] sm:$0xff]  ;;  %v2117_v17 = vld [vmem:[#allocation2 + $0x49] sm:$0xff] }
 0x299   :  { %v8902_v49 = vadd.f32 %v3602_v15, %v3217_v41  ;;  %3845 = vmatprep.mubr.f32.mxu0 %v1663_v57  ;;  %v3229_v20 = vpop.f32.mrf.mxu1 }
 0x29a   :  { %v3604_v14 = vpop.f32.mrf.mxu0  ;;  %v1989_v20 = vld [vmem:[#allocation2 + $0x48] sm:$0xff] }
 0x29b   :  { %v3232_v44 = vpop.f32.mrf.mxu1  ;;  %3471 = vmatmul.mubr.f32.gmra.mxu1 %v1663_v57  ;;  %v1863_v14 = vld [vmem:[#allocation2 + $0x52] sm:$0xff] }
 0x29c   :  { %v3607_v18 = vpop.f32.mrf.mxu0  ;;  %3846 = vmatmul.mubr.f32.gmra.mxu0 %v1535_v46  ;;  %3925 = vmatprep.mubr.f32.mxu1 %v1858_v58  ;;  %v2118_v58 = vld [vmem:[#allocation2 + $0x51] sm:$0xff] }
 0x29d   :  { %v8904_v50 = vadd.f32 %v3607_v18, %v3222_v63  ;;  %3850 = vmatprep.mubr.f32.mxu0 %v1664_v62  ;;  %v3234_v19 = vpop.f32.mrf.mxu1 }
 0x29e   :  { %v3609_v47 = vpop.f32.mrf.mxu0 }
 0x29f   :  { %v3237_v42 = vpop.f32.mrf.mxu1  ;;  %3926 = vmatmul.mubr.f32.vlgmr.msra.gmra.mxu1 %v1730_v4  ;;  %v1990_v4 = vld [vmem:[#allocation2 + $0x50] sm:$0xff] }
 0x2a0   :  { %v3612_v5 = vpop.f32.mrf.mxu0  ;;  %3851 = vmatmul.mubr.f32.gmra.mxu0 %v1536_v27  ;;  %6666 = vmatpush3.msra.mxu1 %v8850_v1  ;;  %v2115_v1 = vld [vmem:[#allocation2 + $0x31] sm:$0xff]  ;;  %v3084_v27 = vld [vmem:[%s10832_s2 + $0x448] sm:$0xff] }
 0x2a1   :  { %v8910_v2 = vadd.f32 %v3612_v5, %v3227_v56  ;;  %3855 = vmatprep.mubr.f32.mxu0 %v1665_v28  ;;  %3930 = vmatprep.mubr.f32.mxu1 %v1859_v3  ;;  %v3239_v23 = vpop.f32.mrf.mxu1  ;;  %v2119_v5 = vld [vmem:[#allocation2 + $0x61] sm:$0xff] }
 0x2a2   :  { %v3614_v34 = vpop.f32.mrf.mxu0  ;;  %6667 = vmatprep.subr.mxu1 %v3089_v55 }
 0x2a3   :  { %v3242_v36 = vpop.f32.mrf.mxu1  ;;  %3931 = vmatmul.mubr.f32.gmra.mxu1 %v1731_v38  ;;  %v1991_v38 = vld [vmem:[#allocation2 + $0x60] sm:$0xff] }
 0x2a4   :  { %v3617_v22 = vpop.f32.mrf.mxu0  ;;  %3856 = vmatmul.mubr.f32.gmra.mxu0 %v1537_v7  ;;  %3935 = vmatprep.mubr.f32.mxu1 %v1860_v26  ;;  %v3083_v7 = vld [vmem:[%s10832_s2 + $0x440] sm:$0xff] }
 0x2a5   :  { %v8915_v24 = vadd.f32 %v3617_v22, %v3232_v44  ;;  %4310 = vmatprep.mubr.f32.mxu0 %v2115_v1  ;;  %v3244_v53 = vpop.f32.mrf.mxu1  ;;  %6668 = vmatpush3.msra.mxu1 %v3089_v55  ;;  %v3085_v44 = vld [vmem:[%s10832_s2 + $0x450] sm:$0xff] }
 0x2a6   :  { %v3619_v41 = vpop.f32.mrf.mxu0  ;;  %6669 = vmatprep.subr.mxu1 %v3088_v21 }
 0x2a7   :  { %v3247_v30 = vpop.f32.mrf.mxu1  ;;  %3936 = vmatmul.mubr.f32.gmra.mxu1 %v2115_v1 }
 0x2a8   :  { %v3622_v16 = vpop.f32.mrf.mxu0  ;;  %4311 = vmatmul.mubr.f32.vlgmr.msra.gmra.mxu0 %v1987_v10  ;;  %3940 = vmatprep.mubr.f32.mxu1 %v1861_v33  ;;  %v1866_v10 = vld [vmem:[#allocation2 + $0x7a] sm:$0xff] }
 0x2a9   :  { %v8920_v63 = vadd.f32 %v3622_v16, %v3237_v42  ;;  %4315 = vmatprep.mubr.f32.mxu0 %v2116_v9  ;;  %v3249_v12 = vpop.f32.mrf.mxu1  ;;  %6670 = vmatpush3.msra.mxu1 %v3088_v21  ;;  %v1864_v42 = vld [vmem:[#allocation2 + $0x62] sm:$0xff]  ;;  %v3082_v33 = vld [vmem:[%s10832_s2 + $0x438] sm:$0xff] }
 0x2aa   :  { %v3624_v40 = vpop.f32.mrf.mxu0  ;;  %6794 = vmatpush3.msk.msra.mxu0 %vm286_vm0, %v8874_v54  ;;  %6671 = vmatprep.subr.mxu1 %v3087_v45  ;;  %v2120_v21 = vld [vmem:[#allocation2 + $0x69] sm:$0xff]  ;;  %v2121_v16 = vld [vmem:[#allocation2 + $0x79] sm:$0xff] }
 0x2ab   :  { %v3252_v11 = vpop.f32.mrf.mxu1  ;;  %3941 = vmatmul.mubr.f32.gmra.mxu1 %v2116_v9 }
 0x2ac   :  { %v3627_v56 = vpop.f32.mrf.mxu0  ;;  %4316 = vmatmul.mubr.f32.gmra.mxu0 %v1988_v6  ;;  %3945 = vmatprep.mubr.f32.mxu1 %v1862_v52  ;;  %v1993_v6 = vld [vmem:[#allocation2 + $0x78] sm:$0xff]  ;;  %v1867_v52 = vld [vmem:[#allocation2 + $0x82] sm:$0xff] }
 0x2ad   :  { %v8927_v39 = vadd.f32 %v3627_v56, %v3242_v36  ;;  %4320 = vmatprep.mubr.f32.mxu0 %v2117_v17  ;;  %v3254_v15 = vpop.f32.mrf.mxu1  ;;  %6672 = vmatpush3.msra.mxu1 %v3087_v45  ;;  %v1865_v36 = vld [vmem:[#allocation2 + $0x6a] sm:$0xff] }
 0x2ae   :  { %v3629_v57 = vpop.f32.mrf.mxu0  ;;  %6673 = vmatprep.subr.mxu1 %v3086_v59 }
 0x2af   :  { %v3257_v54 = vpop.f32.mrf.mxu1  ;;  %3946 = vmatmul.mubr.f32.gmra.mxu1 %v2117_v17  ;;  %v2122_v17 = vld [vmem:[#allocation2 + $0x81] sm:$0xff] }
 0x2b0   :  { %v3632_v46 = vpop.f32.mrf.mxu0  ;;  %4321 = vmatmul.mubr.f32.gmra.mxu0 %v1989_v20  ;;  %3950 = vmatprep.mubr.f32.mxu1 %v1863_v14  ;;  %v1994_v14 = vld [vmem:[#allocation2 + $0x80] sm:$0xff] }
 0x2b1   :  { %v8932_v18 = vadd.f32 %v3632_v46, %v3247_v30  ;;  %4325 = vmatprep.mubr.f32.mxu0 %v2118_v58  ;;  %v3259_v62 = vpop.f32.mrf.mxu1  ;;  %6674 = vmatpush3.msra.mxu1 %v3086_v59  ;;  %v1992_v30 = vld [vmem:[#allocation2 + $0x68] sm:$0xff]  ;;  %v3081_v59 = vld [vmem:[%s10832_s2 + $0x430] sm:$0xff] }
 0x2b2   :  { %v3634_v19 = vpop.f32.mrf.mxu0  ;;  %6675 = vmatprep.subr.mxu1 %v3085_v44  ;;  %v3080_v46 = vld [vmem:[%s10832_s2 + $0x428] sm:$0xff]  ;;  %v2123_v62 = vld [vmem:[#allocation2 + $0x91] sm:$0xff] }
 0x2b3   :  { %v3262_v47 = vpop.f32.mrf.mxu1  ;;  %3951 = vmatmul.mubr.f32.gmra.mxu1 %v2118_v58 }
 0x2b4   :  { %v3637_v55 = vpop.f32.mrf.mxu0  ;;  %4326 = vmatmul.mubr.f32.gmra.mxu0 %v1990_v4  ;;  %3955 = vmatprep.mubr.f32.mxu1 %v1864_v42 }
 0x2b5   :  { %v8937_v28 = vadd.f32 %v3637_v55, %v3252_v11  ;;  %4330 = vmatprep.mubr.f32.mxu0 %v2119_v5  ;;  %v3264_v3 = vpop.f32.mrf.mxu1  ;;  %6676 = vmatpush3.msra.mxu1 %v3085_v44  ;;  %v1868_v44 = vld [vmem:[#allocation2 + $0x92] sm:$0xff]  ;;  %v1869_v55 = vld [vmem:[#allocation2 + $0x9a] sm:$0xff] }
 0x2b6   :  { %v3639_v23 = vpop.f32.mrf.mxu0  ;;  %6677 = vmatprep.subr.mxu1 %v3084_v27  ;;  %v2124_v3 = vld [vmem:[#allocation2 + $0x99] sm:$0xff] }
 0x2b7   :  { %v3267_v34 = vpop.f32.mrf.mxu1  ;;  %3956 = vmatmul.mubr.f32.gmra.mxu1 %v2119_v5 }
 0x2b8   :  { %v3642_v26 = vpop.f32.mrf.mxu0  ;;  %4331 = vmatmul.mubr.f32.gmra.mxu0 %v1991_v38  ;;  %3960 = vmatprep.mubr.f32.mxu1 %v1865_v36 }
 0x2b9   :  { %v8942_v22 = vadd.f32 %v3642_v26, %v3257_v54  ;;  %4335 = vmatprep.mubr.f32.mxu0 %v2120_v21  ;;  %v3269_v1 = vpop.f32.mrf.mxu1  ;;  %6678 = vmatpush3.msra.mxu1 %v3084_v27  ;;  %v1995_v27 = vld [vmem:[#allocation2 + $0x90] sm:$0xff] }
 0x2ba   :  { %v3644_v53 = vpop.f32.mrf.mxu0  ;;  %6679 = vmatprep.subr.mxu1 %v3083_v7  ;;  %v1870_v26 = vld [vmem:[#allocation2 + $0xaa] sm:$0xff] }
 0x2bb   :  { %v3272_v41 = vpop.f32.mrf.mxu1  ;;  %3961 = vmatmul.mubr.f32.gmra.mxu1 %v2120_v21  ;;  %v2125_v1 = vld [vmem:[#allocation2 + $0xa9] sm:$0xff] }
 0x2bc   :  { %v3647_v45 = vpop.f32.mrf.mxu0  ;;  %4336 = vmatmul.mubr.f32.gmra.mxu0 %v1992_v30  ;;  %3965 = vmatprep.mubr.f32.mxu1 %v1866_v10  ;;  %v3079_v10 = vld [vmem:[%s10832_s2 + $0x420] sm:$0xff] }
 0x2bd   :  { %v8947_v9 = vadd.f32 %v3647_v45, %v3262_v47  ;;  %4340 = vmatprep.mubr.f32.mxu0 %v2121_v16  ;;  %v3274_v12 = vpop.f32.mrf.mxu1  ;;  %6680 = vmatpush3.msra.mxu1 %v3083_v7  ;;  %v1996_v7 = vld [vmem:[#allocation2 + $0x98] sm:$0xff]  ;;  %v1997_v45 = vld [vmem:[#allocation2 + $0xa8] sm:$0xff] }
 0x2be   :  { %v3649_v40 = vpop.f32.mrf.mxu0  ;;  %6681 = vmatprep.subr.mxu1 %v3082_v33 }
 0x2bf   :  { %v3277_v11 = vpop.f32.mrf.mxu1  ;;  %3966 = vmatmul.mubr.f32.gmra.mxu1 %v2121_v16  ;;  %v1871_v16 = vld [vmem:[#allocation2 + $0xb2] sm:$0xff] }
 0x2c0   :  { %v3652_v56 = vpop.f32.mrf.mxu0  ;;  %4341 = vmatmul.mubr.f32.gmra.mxu0 %v1993_v6  ;;  %3970 = vmatprep.mubr.f32.mxu1 %v1867_v52  ;;  %v2126_v40 = vld [vmem:[#allocation2 + $0xb1] sm:$0xff] }
 0x2c1   :  { %v8952_v15 = vadd.f32 %v3652_v56, %v3267_v34  ;;  %4345 = vmatprep.mubr.f32.mxu0 %v2122_v17  ;;  %v3279_v57 = vpop.f32.mrf.mxu1  ;;  %6682 = vmatpush3.msra.mxu1 %v3082_v33  ;;  %v1998_v56 = vld [vmem:[#allocation2 + $0xb0] sm:$0xff] }
 0x2c2   :  { %v3654_v54 = vpop.f32.mrf.mxu0  ;;  %6683 = vmatprep.subr.mxu1 %v3081_v59 }
 0x2c3   :  { %v3282_v20 = vpop.f32.mrf.mxu1  ;;  %3971 = vmatmul.mubr.f32.gmra.mxu1 %v2122_v17  ;;  %v1872_v17 = vld [vmem:[#allocation2 + $0xc2] sm:$0xff] }
 0x2c4   :  { %v3657_v58 = vpop.f32.mrf.mxu0  ;;  %4346 = vmatmul.mubr.f32.gmra.mxu0 %v1994_v14  ;;  %3975 = vmatprep.mubr.f32.mxu1 %v1868_v44  ;;  %v2127_v54 = vld [vmem:[#allocation2 + $0xc1] sm:$0xff] }
 0x2c5   :  { %v8957_v19 = vadd.f32 %v3657_v58, %v3272_v41  ;;  %4350 = vmatprep.mubr.f32.mxu0 %v2123_v62  ;;  %v3284_v47 = vpop.f32.mrf.mxu1  ;;  %6684 = vmatpush3.msra.mxu1 %v3081_v59  ;;  %v1999_v58 = vld [vmem:[#allocation2 + $0xc0] sm:$0xff] }
 0x2c6   :  { %v3659_v4 = vpop.f32.mrf.mxu0  ;;  %6685 = vmatprep.subr.mxu1 %v3080_v46 }
 0x2c7   :  { %v3287_v42 = vpop.f32.mrf.mxu1  ;;  %3976 = vmatmul.mubr.f32.gmra.mxu1 %v2123_v62  ;;  %v1873_v62 = vld [vmem:[#allocation2 + $0xca] sm:$0xff] }
 0x2c8   :  { %v3662_v5 = vpop.f32.mrf.mxu0  ;;  %4351 = vmatmul.mubr.f32.gmra.mxu0 %v1995_v27  ;;  %3980 = vmatprep.mubr.f32.mxu1 %v1869_v55  ;;  %v2128_v4 = vld [vmem:[#allocation2 + $0xc9] sm:$0xff] }
 0x2c9   :  { %v8959_v23 = vadd.f32 %v3662_v5, %v3277_v11  ;;  %4355 = vmatprep.mubr.f32.mxu0 %v2124_v3  ;;  %v3289_v34 = vpop.f32.mrf.mxu1  ;;  %6686 = vmatpush3.msra.mxu1 %v3080_v46 }
 0x2ca   :  { %v3664_v38 = vpop.f32.mrf.mxu0  ;;  %6687 = vmatprep.subr.mxu1 %v3079_v10  ;;  %v1874_v34 = vld [vmem:[#allocation2 + $0xda] sm:$0xff] }
 0x2cb   :  { %v3292_v36 = vpop.f32.mrf.mxu1  ;;  %3981 = vmatmul.mubr.f32.gmra.mxu1 %v2124_v3  ;;  %v2000_v3 = vld [vmem:[#allocation2 + $0xc8] sm:$0xff] }
 0x2cc   :  { %v3667_v21 = vpop.f32.mrf.mxu0  ;;  %4356 = vmatmul.mubr.f32.gmra.mxu0 %v1996_v7  ;;  %3985 = vmatprep.mubr.f32.mxu1 %v1870_v26 }
 0x2cd   :  { %v8961_v53 = vadd.f32 %v3667_v21, %v3282_v20  ;;  %4360 = vmatprep.mubr.f32.mxu0 %v2125_v1  ;;  %v3294_v41 = vpop.f32.mrf.mxu1  ;;  %6688 = vmatpush3.msra.mxu1 %v3079_v10  ;;  %v1875_v10 = vld [vmem:[#allocation2 + $0xe2] sm:$0xff] }
 0x2ce   :  { %v3669_v30 = vpop.f32.mrf.mxu0 }
 0x2cf   :  { %v3297_v33 = vpop.f32.mrf.mxu1  ;;  %3986 = vmatmul.mubr.f32.gmra.mxu1 %v2125_v1  ;;  %v3078_v1 = vld [vmem:[%s10832_s2 + $0x418] sm:$0xff] }
 0x2d0   :  { %v3672_v12 = vpop.f32.mrf.mxu0  ;;  %4361 = vmatmul.mubr.f32.gmra.mxu0 %v1997_v45  ;;  %3990 = vmatprep.mubr.f32.mxu1 %v1871_v16  ;;  %v2001_v30 = vld [vmem:[#allocation2 + $0xd8] sm:$0xff]  ;;  %v2130_v45 = vld [vmem:[#allocation2 + $0xe1] sm:$0xff] }
 0x2d1   :  { %v8966_v11 = vadd.f32 %v3672_v12, %v3287_v42  ;;  %4365 = vmatprep.mubr.f32.mxu0 %v2126_v40  ;;  %v3299_v6 = vpop.f32.mrf.mxu1  ;;  %6689 = vmatprep.subr.mxu1 %v3078_v1 }
 0x2d2   :  { %v3674_v52 = vpop.f32.mrf.mxu0  ;;  %6690 = vmatpush3.msra.mxu1 %v3078_v1 }
 0x2d3   :  { %v3302_v59 = vpop.f32.mrf.mxu1  ;;  %3991 = vmatmul.mubr.f32.gmra.mxu1 %v2126_v40  ;;  %v2002_v52 = vld [vmem:[#allocation2 + $0xe0] sm:$0xff] }
 0x2d4   :  { %v3677_v57 = vpop.f32.mrf.mxu0  ;;  %4366 = vmatmul.mubr.f32.gmra.mxu0 %v1998_v56  ;;  %3995 = vmatprep.mubr.f32.mxu1 %v1872_v17  ;;  %v2131_v17 = vld [vmem:[#allocation2 + $0xf1] sm:$0xff] }
 0x2d5   :  { %v8968_v20 = vadd.f32 %v3677_v57, %v3292_v36  ;;  %4370 = vmatprep.mubr.f32.mxu0 %v2127_v54  ;;  %v3304_v14 = vpop.f32.mrf.mxu1  ;;  %v2129_v36 = vld [vmem:[#allocation2 + $0xd9] sm:$0xff] }
 0x2d6   :  { %v3679_v44 = vpop.f32.mrf.mxu0 }
 0x2d7   :  { %v3307_v46 = vpop.f32.mrf.mxu1  ;;  %3996 = vmatmul.mubr.f32.gmra.mxu1 %v2127_v54 }
 0x2d8   :  { %v3682_v47 = vpop.f32.mrf.mxu0  ;;  %4371 = vmatmul.mubr.f32.gmra.mxu0 %v1999_v58  ;;  %4000 = vmatprep.mubr.f32.mxu1 %v1873_v62  ;;  %v1877_v58 = vld [vmem:[#allocation2 + $0xfa] sm:$0xff] }
 0x2d9   :  { %v8970_v42 = vadd.f32 %v3682_v47, %v3297_v33  ;;  %4375 = vmatprep.mubr.f32.mxu0 %v2128_v4  ;;  %v3309_v27 = vpop.f32.mrf.mxu1  ;;  %v2132_v47 = vld [vmem:[#allocation2 + $0xf9] sm:$0xff] }
 0x2da   :  { %v3684_v55 = vpop.f32.mrf.mxu0 }
 0x2db   :  { %v3312_v5 = vpop.f32.mrf.mxu1  ;;  %4001 = vmatmul.mubr.f32.gmra.mxu1 %v2128_v4 }
 0x2dc   :  { %v3687_v38 = vpop.f32.mrf.mxu0  ;;  %4376 = vmatmul.mubr.f32.gmra.mxu0 %v2000_v3  ;;  %4005 = vmatprep.mubr.f32.mxu1 %v1874_v34  ;;  %v1878_v34 = vld [vmem:[#allocation2 + $0x10a] sm:$0xff] }
 0x2dd   :  { %v8972_v7 = vadd.f32 %v3687_v38, %v3302_v59  ;;  %4380 = vmatprep.mubr.f32.mxu0 %v2129_v36  ;;  %v3314_v26 = vpop.f32.mrf.mxu1  ;;  %v1876_v59 = vld [vmem:[#allocation2 + $0xf2] sm:$0xff] }
 0x2de   :  { %v3689_v21 = vpop.f32.mrf.mxu0 }
 0x2df   :  { %v3317_v41 = vpop.f32.mrf.mxu1  ;;  %4006 = vmatmul.mubr.f32.gmra.mxu1 %v2129_v36  ;;  %v2133_v36 = vld [vmem:[#allocation2 + $0x109] sm:$0xff] }
 0x2e0   :  { %v3692_v33 = vpop.f32.mrf.mxu0  ;;  %4381 = vmatmul.mubr.f32.gmra.mxu0 %v2001_v30  ;;  %4010 = vmatprep.mubr.f32.mxu1 %v1875_v10  ;;  %v2005_v10 = vld [vmem:[#allocation2 + $0x108] sm:$0xff] }
 0x2e1   :  { %v8977_v16 = vadd.f32 %v3692_v33, %v3307_v46  ;;  %4385 = vmatprep.mubr.f32.mxu0 %v2130_v45  ;;  %v3319_v12 = vpop.f32.mrf.mxu1  ;;  %v2003_v46 = vld [vmem:[#allocation2 + $0xf0] sm:$0xff] }
 0x2e2   :  { %v3694_v40 = vpop.f32.mrf.mxu0  ;;  %v1879_v33 = vld [vmem:[#allocation2 + $0x112] sm:$0xff] }
 0x2e3   :  { %v3322_v6 = vpop.f32.mrf.mxu1  ;;  %4011 = vmatmul.mubr.f32.gmra.mxu1 %v2130_v45  ;;  %v2134_v12 = vld [vmem:[#allocation2 + $0x111] sm:$0xff] }
 0x2e4   :  { %v3697_v56 = vpop.f32.mrf.mxu0  ;;  %4386 = vmatmul.mubr.f32.gmra.mxu0 %v2002_v52  ;;  %4015 = vmatprep.mubr.f32.mxu1 %v1876_v59 }
 0x2e5   :  { %v8979_v57 = vadd.f32 %v3697_v56, %v3312_v5  ;;  %4390 = vmatprep.mubr.f32.mxu0 %v2131_v17  ;;  %v3324_v54 = vpop.f32.mrf.mxu1  ;;  %v2004_v5 = vld [vmem:[#allocation2 + $0xf8] sm:$0xff]  ;;  %v2006_v56 = vld [vmem:[#allocation2 + $0x110] sm:$0xff] }
 0x2e6   :  { %v3699_v14 = vpop.f32.mrf.mxu0 }
 0x2e7   :  { %v3327_v44 = vpop.f32.mrf.mxu1  ;;  %4016 = vmatmul.mubr.f32.gmra.mxu1 %v2131_v17  ;;  %v1880_v17 = vld [vmem:[#allocation2 + $0x122] sm:$0xff] }
 0x2e8   :  { %v3702_v62 = vpop.f32.mrf.mxu0  ;;  %4391 = vmatmul.mubr.f32.gmra.mxu0 %v2003_v46  ;;  %4020 = vmatprep.mubr.f32.mxu1 %v1877_v58  ;;  %v2135_v14 = vld [vmem:[#allocation2 + $0x121] sm:$0xff] }
 0x2e9   :  { %v8981_v4 = vadd.f32 %v3702_v62, %v3317_v41  ;;  %4395 = vmatprep.mubr.f32.mxu0 %v2132_v47  ;;  %v3329_v27 = vpop.f32.mrf.mxu1  ;;  %v3077_v41 = vld [vmem:[%s10832_s2 + $0x410] sm:$0xff] }
 0x2ea   :  { %v3704_v55 = vpop.f32.mrf.mxu0  ;;  %6691 = vmatprep.subr.mxu1 %v3077_v41  ;;  %v1881_v27 = vld [vmem:[#allocation2 + $0x12a] sm:$0xff] }
 0x2eb   :  { %v3332_v3 = vpop.f32.mrf.mxu1  ;;  %4021 = vmatmul.mubr.f32.gmra.mxu1 %v2132_v47 }
 0x2ec   :  { %v3707_v38 = vpop.f32.mrf.mxu0  ;;  %4396 = vmatmul.mubr.f32.gmra.mxu0 %v2004_v5  ;;  %4025 = vmatprep.mubr.f32.mxu1 %v1878_v34  ;;  %v2136_v5 = vld [vmem:[#allocation2 + $0x129] sm:$0xff] }
 0x2ed   :  { %v8983_v26 = vadd.f32 %v3707_v38, %v3322_v6  ;;  %4400 = vmatprep.mubr.f32.mxu0 %v2133_v36  ;;  %v3334_v21 = vpop.f32.mrf.mxu1  ;;  %6692 = vmatpush3.msra.mxu1 %v3077_v41 }
 0x2ee   :  { %v3709_v1 = vpop.f32.mrf.mxu0 }
 0x2ef   :  { %v3337_v30 = vpop.f32.mrf.mxu1  ;;  %4026 = vmatmul.mubr.f32.gmra.mxu1 %v2133_v36  ;;  %v1882_v1 = vld [vmem:[#allocation2 + $0x13a] sm:$0xff] }
 0x2f0   :  { %v3712_v45 = vpop.f32.mrf.mxu0  ;;  %4401 = vmatmul.mubr.f32.gmra.mxu0 %v2005_v10  ;;  %4030 = vmatprep.mubr.f32.mxu1 %v1879_v33  ;;  %v2137_v10 = vld [vmem:[#allocation2 + $0x139] sm:$0xff] }
 0x2f1   :  { %v8988_v40 = vadd.f32 %v3712_v45, %v3327_v44  ;;  %4405 = vmatprep.mubr.f32.mxu0 %v2134_v12  ;;  %v3339_v6 = vpop.f32.mrf.mxu1  ;;  %v2007_v44 = vld [vmem:[#allocation2 + $0x120] sm:$0xff] }
 0x2f2   :  { %v3714_v52 = vpop.f32.mrf.mxu0 }
 0x2f3   :  { %v3342_v59 = vpop.f32.mrf.mxu1  ;;  %4031 = vmatmul.mubr.f32.gmra.mxu1 %v2134_v12  ;;  %v2009_v52 = vld [vmem:[#allocation2 + $0x138] sm:$0xff] }
 0x2f4   :  { %v3717_v54 = vpop.f32.mrf.mxu0  ;;  %4406 = vmatmul.mubr.f32.gmra.mxu0 %v2006_v56  ;;  %4035 = vmatprep.mubr.f32.mxu1 %v1880_v17  ;;  %v1883_v56 = vld [vmem:[#allocation2 + $0x142] sm:$0xff] }
 0x2f5   :  { %v8990_v46 = vadd.f32 %v3717_v54, %v3332_v3  ;;  %4410 = vmatprep.mubr.f32.mxu0 %v2135_v14  ;;  %v3344_v58 = vpop.f32.mrf.mxu1  ;;  %v2008_v3 = vld [vmem:[#allocation2 + $0x128] sm:$0xff] }
 0x2f6   :  { %v3719_v62 = vpop.f32.mrf.mxu0  ;;  %v2138_v54 = vld [vmem:[#allocation2 + $0x141] sm:$0xff] }
 0x2f7   :  { %v3347_v47 = vpop.f32.mrf.mxu1  ;;  %4036 = vmatmul.mubr.f32.gmra.mxu1 %v2135_v14 }
 0x2f8   :  { %v3722_v55 = vpop.f32.mrf.mxu0  ;;  %4411 = vmatmul.mubr.f32.gmra.mxu0 %v2007_v44  ;;  %4040 = vmatprep.mubr.f32.mxu1 %v1881_v27  ;;  %v2010_v44 = vld [vmem:[#allocation2 + $0x140] sm:$0xff]  ;;  %v1884_v27 = vld [vmem:[#allocation2 + $0x152] sm:$0xff] }
 0x2f9   :  { %v8992_v34 = vadd.f32 %v3722_v55, %v3337_v30  ;;  %4415 = vmatprep.mubr.f32.mxu0 %v2136_v5  ;;  %v3349_v38 = vpop.f32.mrf.mxu1  ;;  %v3076_v30 = vld [vmem:[%s10832_s2 + $0x408] sm:$0xff] }
 0x2fa   :  { %v3724_v36 = vpop.f32.mrf.mxu0  ;;  %6693 = vmatprep.subr.mxu1 %v3076_v30 }
 0x2fb   :  { %v3352_v21 = vpop.f32.mrf.mxu1  ;;  %4041 = vmatmul.mubr.f32.gmra.mxu1 %v2136_v5  ;;  %v2139_v5 = vld [vmem:[#allocation2 + $0x151] sm:$0xff] }
 0x2fc   :  { %v3727_v41 = vpop.f32.mrf.mxu0  ;;  %4416 = vmatmul.mubr.f32.gmra.mxu0 %v2008_v3  ;;  %4045 = vmatprep.mubr.f32.mxu1 %v1882_v1 }
 0x2fd   :  { %v8994_v33 = vadd.f32 %v3727_v41, %v3342_v59  ;;  %4420 = vmatprep.mubr.f32.mxu0 %v2137_v10  ;;  %v3354_v45 = vpop.f32.mrf.mxu1  ;;  %6694 = vmatpush3.msra.mxu1 %v3076_v30  ;;  %v1885_v41 = vld [vmem:[#allocation2 + $0x15a] sm:$0xff] }
 0x2fe   :  { %v3729_v12 = vpop.f32.mrf.mxu0  ;;  %v2140_v45 = vld [vmem:[#allocation2 + $0x159] sm:$0xff] }
 0x2ff   :  { %v3357_v6 = vpop.f32.mrf.mxu1  ;;  %4046 = vmatmul.mubr.f32.gmra.mxu1 %v2137_v10 }
 0x300   :  { %v3732_v17 = vpop.f32.mrf.mxu0  ;;  %4421 = vmatmul.mubr.f32.gmra.mxu0 %v2009_v52  ;;  %4050 = vmatprep.mubr.f32.mxu1 %v1883_v56 }
 0x301   :  { %v8999_v14 = vadd.f32 %v3732_v17, %v3347_v47  ;;  %4425 = vmatprep.mubr.f32.mxu0 %v2138_v54  ;;  %v3359_v59 = vpop.f32.mrf.mxu1  ;;  %v2011_v47 = vld [vmem:[#allocation2 + $0x150] sm:$0xff] }
 0x302   :  { %v3734_v58 = vpop.f32.mrf.mxu0  ;;  %v1886_v17 = vld [vmem:[#allocation2 + $0x16a] sm:$0xff] }
 0x303   :  { %v3362_v62 = vpop.f32.mrf.mxu1  ;;  %4051 = vmatmul.mubr.f32.gmra.mxu1 %v2138_v54  ;;  %v2141_v59 = vld [vmem:[#allocation2 + $0x169] sm:$0xff] }
 0x304   :  { %v3737_v55 = vpop.f32.mrf.mxu0  ;;  %4426 = vmatmul.mubr.f32.gmra.mxu0 %v2010_v44  ;;  %4055 = vmatprep.mubr.f32.mxu1 %v1884_v27 }
 0x305   :  { %v9001_v38 = vadd.f32 %v3737_v55, %v3352_v21  ;;  %4430 = vmatprep.mubr.f32.mxu0 %v2139_v5  ;;  %v3364_v36 = vpop.f32.mrf.mxu1  ;;  %v2012_v21 = vld [vmem:[#allocation2 + $0x158] sm:$0xff] }
 0x306   :  { %v3739_v3 = vpop.f32.mrf.mxu0  ;;  %v1887_v36 = vld [vmem:[#allocation2 + $0x172] sm:$0xff] }
 0x307   :  { %v3367_v1 = vpop.f32.mrf.mxu1  ;;  %4056 = vmatmul.mubr.f32.gmra.mxu1 %v2139_v5  ;;  %v2013_v5 = vld [vmem:[#allocation2 + $0x168] sm:$0xff] }
 0x308   :  { %v3742_v10 = vpop.f32.mrf.mxu0  ;;  %4431 = vmatmul.mubr.f32.gmra.mxu0 %v2011_v47  ;;  %4060 = vmatprep.mubr.f32.mxu1 %v1885_v41  ;;  %v2142_v47 = vld [vmem:[#allocation2 + $0x171] sm:$0xff] }
 0x309   :  { %v9003_v12 = vadd.f32 %v3742_v10, %v3357_v6  ;;  %4435 = vmatprep.mubr.f32.mxu0 %v2140_v45  ;;  %v3369_v30 = vpop.f32.mrf.mxu1  ;;  %v3075_v6 = vld [vmem:[%s10832_s2 + $0x400] sm:$0xff] }
 0x30a   :  { %v3744_v52 = vpop.f32.mrf.mxu0  ;;  %6695 = vmatprep.subr.mxu1 %v3075_v6  ;;  %v2014_v30 = vld [vmem:[#allocation2 + $0x170] sm:$0xff] }
 0x30b   :  { %v3372_v56 = vpop.f32.mrf.mxu1  ;;  %4061 = vmatmul.mubr.f32.gmra.mxu1 %v2140_v45  ;;  %v1888_v52 = vld [vmem:[#allocation2 + $0x182] sm:$0xff] }
 0x30c   :  { %v3747_v54 = vpop.f32.mrf.mxu0  ;;  %4436 = vmatmul.mubr.f32.gmra.mxu0 %v2012_v21  ;;  %4065 = vmatprep.mubr.f32.mxu1 %v1886_v17  ;;  %v2143_v17 = vld [vmem:[#allocation2 + $0x181] sm:$0xff] }
 0x30d   :  { %v9005_v58 = vadd.f32 %v3747_v54, %v3362_v62  ;;  %4440 = vmatprep.mubr.f32.mxu0 %v2141_v59  ;;  %v3374_v44 = vpop.f32.mrf.mxu1  ;;  %6696 = vmatpush3.msra.mxu1 %v3075_v6  ;;  %v2144_v6 = vld [vmem:[#allocation2 + $0x189] sm:$0xff] }
 0x30e   :  { %v3749_v27 = vpop.f32.mrf.mxu0 }
 0x30f   :  { %v3377_v55 = vpop.f32.mrf.mxu1  ;;  %4066 = vmatmul.mubr.f32.gmra.mxu1 %v2141_v59 }
 0x310   :  { %v3752_v3 = vpop.f32.mrf.mxu0  ;;  %4441 = vmatmul.mubr.f32.gmra.mxu0 %v2013_v5  ;;  %4070 = vmatprep.mubr.f32.mxu1 %v1887_v36  ;;  %v1889_v5 = vld [vmem:[#allocation2 + $0x18a] sm:$0xff] }
 0x311   :  { %v9010_v41 = vadd.f32 %v3752_v3, %v3367_v1  ;;  %4445 = vmatprep.mubr.f32.mxu0 %v2142_v47  ;;  %v3379_v62 = vpop.f32.mrf.mxu1  ;;  %v2015_v1 = vld [vmem:[#allocation2 + $0x180] sm:$0xff] }
 0x312   :  { %v3754_v10 = vpop.f32.mrf.mxu0 }
 0x313   :  { %v3382_v45 = vpop.f32.mrf.mxu1  ;;  %4071 = vmatmul.mubr.f32.gmra.mxu1 %v2142_v47  ;;  %v2145_v10 = vld [vmem:[#allocation2 + $0x199] sm:$0xff] }
 0x314   :  { %v3757_v21 = vpop.f32.mrf.mxu0  ;;  %4446 = vmatmul.mubr.f32.gmra.mxu0 %v2014_v30  ;;  %4075 = vmatprep.mubr.f32.mxu1 %v1888_v52  ;;  %v1890_v52 = vld [vmem:[#allocation2 + $0x1ca] sm:$0xff] }
 0x315   :  { %v9012_v54 = vadd.f32 %v3757_v21, %v3372_v56  ;;  %4450 = vmatprep.mubr.f32.mxu0 %v2143_v17  ;;  %v3384_v59 = vpop.f32.mrf.mxu1  ;;  %v2016_v56 = vld [vmem:[#allocation2 + $0x188] sm:$0xff] }
 0x316   :  { %v3759_v44 = vpop.f32.mrf.mxu0 }
 0x317   :  { %v3387_v27 = vpop.f32.mrf.mxu1  ;;  %4076 = vmatmul.mubr.f32.gmra.mxu1 %v2143_v17 }
 0x318   :  { %v3762_v36 = vpop.f32.mrf.mxu0  ;;  %4451 = vmatmul.mubr.f32.gmra.mxu0 %v2015_v1  ;;  %4080 = vmatprep.mubr.f32.mxu1 %v1889_v5  ;;  %v1762_v1 = vld [vmem:[#allocation2 + $0x1c9] sm:$0xff]  ;;  %v2146_v5 = vld [vmem:[#allocation2 + $0x1a1] sm:$0xff] }
 0x319   :  { %v9014_v3 = vadd.f32 %v3762_v36, %v3377_v55  ;;  %4455 = vmatprep.mubr.f32.mxu0 %v2144_v6  ;;  %v3389_v47 = vpop.f32.mrf.mxu1  ;;  %v1891_v36 = vld [vmem:[#allocation2 + $0x1d2] sm:$0xff] }
 0x31a   :  { %v3764_v62 = vpop.f32.mrf.mxu0 }
 0x31b   :  { %11186 = vst [vmem:[#allocation14_spill] sm:$0xff] %v9014_v3  ;;  %v3392_v30 = vpop.f32.mrf.mxu1  ;;  %4081 = vmatmul.mubr.f32.gmra.mxu1 %v2144_v6  ;;  %v9018_v62 = vld [vmem:[#allocation2] sm:$0xff] }
 0x31c   :  { %v3767_v21 = vpop.f32.mrf.mxu0  ;;  %4456 = vmatmul.mubr.f32.gmra.mxu0 %v2016_v56  ;;  %4085 = vmatprep.mubr.f32.mxu1 %v1890_v52  ;;  %v1763_v52 = vld [vmem:[#allocation2 + $0x1d1] sm:$0xff] }
 0x31d   :  { %v9016_v17 = vadd.f32 %v3767_v21, %v3382_v45  ;;  %v3394_v59 = vpop.f32.mrf.mxu1  ;;  %4460 = vmatprep.mubr.f32.mxu0 %v2145_v10  ;;  %v1892_v10 = vld [vmem:[#allocation2 + $0x1e2] sm:$0xff] }
 0x31e   :  { %v3769_v44 = vpop.f32.mrf.mxu0 }
 0x31f   :  { %11187 = vst [vmem:[#allocation13_spill] sm:$0xff] %v9016_v17  ;;  %v3397_v55 = vpop.f32.mrf.mxu1  ;;  %4086 = vmatmul.mubr.f32.gmra.mxu1 %v1762_v1  ;;  %v2147_v44 = vld [vmem:[#allocation2 + $0x1e1] sm:$0xff] }
 0x320   :  { %v3772_v47 = vpop.f32.mrf.mxu0  ;;  %4461 = vmatmul.mubr.f32.gmra.mxu0 %v9018_v62  ;;  %4090 = vmatprep.mubr.f32.mxu1 %v1891_v36 }
 0x321   :  { %v9021_v6 = vadd.f32 %v3772_v47, %v3387_v27  ;;  %v3399_v56 = vpop.f32.mrf.mxu1  ;;  %4465 = vmatprep.mubr.f32.mxu0 %v2146_v5  ;;  %v2019_v27 = vld [vmem:[#allocation2 + $0x1e0] sm:$0xff]  ;;  %v1893_v47 = vld [vmem:[#allocation2 + $0x1ea] sm:$0xff] }
 0x322   :  { %v3774_v45 = vpop.f32.mrf.mxu0  ;;  %v2148_v56 = vld [vmem:[#allocation2 + $0x1e9] sm:$0xff] }
 0x323   :  { %11188 = vst [vmem:[#allocation16_spill] sm:$0xff] %v9021_v6  ;;  %v3402_v21 = vpop.f32.mrf.mxu1  ;;  %4091 = vmatmul.mubr.f32.gmra.mxu1 %v1763_v52 }
 0x324   :  { %v3777_v59 = vpop.f32.mrf.mxu0  ;;  %4466 = vmatmul.mubr.f32.gmra.mxu0 %v9018_v62  ;;  %4095 = vmatprep.mubr.f32.mxu1 %v1892_v10 }
 0x325   :  { %v9024_v1 = vadd.f32 %v3777_v59, %v3392_v30  ;;  %4470 = vmatprep.mubr.f32.mxu0 %v2147_v44  ;;  %v3404_v17 = vpop.f32.mrf.mxu1  ;;  %v2020_v30 = vld [vmem:[#allocation2 + $0x1e8] sm:$0xff]  ;;  %v1894_v59 = vld [vmem:[#allocation2 + $0x1fa] sm:$0xff] }
 0x326   :  { %v3779_v3 = vpop.f32.mrf.mxu0 }
 0x327   :  { %11189 = vst [vmem:[#allocation18_spill] sm:$0xff] %v9024_v1  ;;  %v3407_v36 = vpop.f32.mrf.mxu1  ;;  %4096 = vmatmul.mubr.f32.gmra.mxu1 %v2147_v44  ;;  %v2149_v3 = vld [vmem:[#allocation2 + $0x1f9] sm:$0xff] }
 0x328   :  { %v3782_v5 = vpop.f32.mrf.mxu0  ;;  %4471 = vmatmul.mubr.f32.gmra.mxu0 %v2019_v27  ;;  %4100 = vmatprep.mubr.f32.mxu1 %v1893_v47 }
 0x329   :  { %v9026_v45 = vadd.f32 %v3782_v5, %v3397_v55  ;;  %4475 = vmatprep.mubr.f32.mxu0 %v2148_v56  ;;  %v3409_v52 = vpop.f32.mrf.mxu1  ;;  %v2021_v55 = vld [vmem:[#allocation2 + $0x1f8] sm:$0xff]  ;;  %v1895_v5 = vld [vmem:[#allocation2 + $0x202] sm:$0xff] }
 0x32a   :  { %v3784_v6 = vpop.f32.mrf.mxu0 }
 0x32b   :  { %11190 = vst [vmem:[#allocation17_spill] sm:$0xff] %v9026_v45  ;;  %v3412_v10 = vpop.f32.mrf.mxu1  ;;  %4101 = vmatmul.mubr.f32.gmra.mxu1 %v2148_v56  ;;  %v2150_v6 = vld [vmem:[#allocation2 + $0x201] sm:$0xff] }
 0x32c   :  { %v3787_v1 = vpop.f32.mrf.mxu0  ;;  %4476 = vmatmul.mubr.f32.gmra.mxu0 %v2020_v30  ;;  %4105 = vmatprep.mubr.f32.mxu1 %v1894_v59 }
 0x32d   :  { %v9028_v17 = vadd.f32 %v3787_v1, %v3402_v21  ;;  %4480 = vmatprep.mubr.f32.mxu0 %v2149_v3  ;;  %v3414_v44 = vpop.f32.mrf.mxu1  ;;  %v2022_v21 = vld [vmem:[#allocation2 + $0x200] sm:$0xff]  ;;  %v1896_v1 = vld [vmem:[#allocation2 + $0x212] sm:$0xff] }
 0x32e   :  { %v3789_v27 = vpop.f32.mrf.mxu0  ;;  %v2151_v44 = vld [vmem:[#allocation2 + $0x211] sm:$0xff] }
 0x32f   :  { %11191 = vst [vmem:[#allocation20_spill] sm:$0xff] %v9028_v17  ;;  %v3417_v47 = vpop.f32.mrf.mxu1  ;;  %4106 = vmatmul.mubr.f32.gmra.mxu1 %v2149_v3 }
 0x330   :  { %v3792_v45 = vpop.f32.mrf.mxu0  ;;  %4481 = vmatmul.mubr.f32.gmra.mxu0 %v2021_v55  ;;  %4110 = vmatprep.mubr.f32.mxu1 %v1895_v5 }
 0x331   :  { %v9030_v56 = vadd.f32 %v3792_v45, %v3407_v36  ;;  %4485 = vmatprep.mubr.f32.mxu0 %v2150_v6  ;;  %v3419_v52 = vpop.f32.mrf.mxu1  ;;  %v2023_v36 = vld [vmem:[#allocation2 + $0x210] sm:$0xff]  ;;  %v1897_v45 = vld [vmem:[#allocation2 + $0x21a] sm:$0xff] }
 0x332   :  { %v3794_v30 = vpop.f32.mrf.mxu0  ;;  %v2152_v52 = vld [vmem:[#allocation2 + $0x219] sm:$0xff] }
 0x333   :  { %11192 = vst [vmem:[#allocation19_spill] sm:$0xff] %v9030_v56  ;;  %v3422_v59 = vpop.f32.mrf.mxu1  ;;  %4111 = vmatmul.mubr.f32.gmra.mxu1 %v2150_v6 }
 0x334   :  { %v3797_v17 = vpop.f32.mrf.mxu0  ;;  %4486 = vmatmul.mubr.f32.gmra.mxu0 %v2022_v21  ;;  %4115 = vmatprep.mubr.f32.mxu1 %v1896_v1 }
 0x335   :  { %v9032_v3 = vadd.f32 %v3797_v17, %v3412_v10  ;;  %4490 = vmatprep.mubr.f32.mxu0 %v2151_v44  ;;  %v3424_v27 = vpop.f32.mrf.mxu1  ;;  %v2024_v10 = vld [vmem:[#allocation2 + $0x218] sm:$0xff]  ;;  %v1898_v17 = vld [vmem:[#allocation2 + $0x22a] sm:$0xff] }
 0x336   :  { %v3799_v55 = vpop.f32.mrf.mxu0  ;;  %v2153_v27 = vld [vmem:[#allocation2 + $0x229] sm:$0xff] }
 0x337   :  { %11193 = vst [vmem:[#allocation22_spill] sm:$0xff] %v9032_v3  ;;  %v3427_v5 = vpop.f32.mrf.mxu1  ;;  %4116 = vmatmul.mubr.f32.gmra.mxu1 %v2151_v44 }
 0x338   :  { %v3802_v56 = vpop.f32.mrf.mxu0  ;;  %4491 = vmatmul.mubr.f32.gmra.mxu0 %v2023_v36  ;;  %4120 = vmatprep.mubr.f32.mxu1 %v1897_v45 }
 0x339   :  { %v9034_v6 = vadd.f32 %v3802_v56, %v3417_v47  ;;  %4495 = vmatprep.mubr.f32.mxu0 %v2152_v52  ;;  %v3429_v30 = vpop.f32.mrf.mxu1  ;;  %v2025_v47 = vld [vmem:[#allocation2 + $0x228] sm:$0xff]  ;;  %v1899_v56 = vld [vmem:[#allocation2 + $0x232] sm:$0xff] }
 0x33a   :  { %v3804_v21 = vpop.f32.mrf.mxu0  ;;  %v2154_v30 = vld [vmem:[#allocation2 + $0x231] sm:$0xff] }
 0x33b   :  { %11194 = vst [vmem:[#allocation21_spill] sm:$0xff] %v9034_v6  ;;  %v3432_v1 = vpop.f32.mrf.mxu1  ;;  %4121 = vmatmul.mubr.f32.gmra.mxu1 %v2152_v52 }
 0x33c   :  { %v3807_v3 = vpop.f32.mrf.mxu0  ;;  %4496 = vmatmul.mubr.f32.gmra.mxu0 %v2024_v10  ;;  %4125 = vmatprep.mubr.f32.mxu1 %v1898_v17 }
 0x33d   :  { %v9036_v44 = vadd.f32 %v3807_v3, %v3422_v59  ;;  %4500 = vmatprep.mubr.f32.mxu0 %v2153_v27  ;;  %v3434_v55 = vpop.f32.mrf.mxu1  ;;  %v2026_v59 = vld [vmem:[#allocation2 + $0x230] sm:$0xff]  ;;  %v1900_v3 = vld [vmem:[#allocation2 + $0x242] sm:$0xff] }
 0x33e   :  { %v3809_v36 = vpop.f32.mrf.mxu0  ;;  %v2155_v55 = vld [vmem:[#allocation2 + $0x241] sm:$0xff] }
 0x33f   :  { %11195 = vst [vmem:[#allocation23_spill] sm:$0xff] %v9036_v44  ;;  %v3437_v45 = vpop.f32.mrf.mxu1  ;;  %4126 = vmatmul.mubr.f32.gmra.mxu1 %v2153_v27 }
 0x340   :  { %v3812_v6 = vpop.f32.mrf.mxu0  ;;  %4501 = vmatmul.mubr.f32.gmra.mxu0 %v2025_v47  ;;  %4130 = vmatprep.mubr.f32.mxu1 %v1899_v56 }
 0x341   :  { %v9038_v52 = vadd.f32 %v3812_v6, %v3427_v5  ;;  %4505 = vmatprep.mubr.f32.mxu0 %v2154_v30  ;;  %v3439_v21 = vpop.f32.mrf.mxu1  ;;  %v2027_v5 = vld [vmem:[#allocation2 + $0x240] sm:$0xff]  ;;  %v1901_v6 = vld [vmem:[#allocation2 + $0x24a] sm:$0xff] }
 0x342   :  { %v3814_v10 = vpop.f32.mrf.mxu0  ;;  %v2156_v21 = vld [vmem:[#allocation2 + $0x249] sm:$0xff] }
 0x343   :  { %11196 = vst [vmem:[#allocation26_spill] sm:$0xff] %v9038_v52  ;;  %v3442_v17 = vpop.f32.mrf.mxu1  ;;  %4131 = vmatmul.mubr.f32.gmra.mxu1 %v2154_v30 }
 0x344   :  { %v3817_v44 = vpop.f32.mrf.mxu0  ;;  %4506 = vmatmul.mubr.f32.gmra.mxu0 %v2026_v59  ;;  %4135 = vmatprep.mubr.f32.mxu1 %v1900_v3 }
 0x345   :  { %v9040_v27 = vadd.f32 %v3817_v44, %v3432_v1  ;;  %4510 = vmatprep.mubr.f32.mxu0 %v2155_v55  ;;  %v3444_v36 = vpop.f32.mrf.mxu1  ;;  %v2028_v1 = vld [vmem:[#allocation2 + $0x248] sm:$0xff]  ;;  %v1902_v44 = vld [vmem:[#allocation2 + $0x25a] sm:$0xff] }
 0x346   :  { %v3819_v47 = vpop.f32.mrf.mxu0  ;;  %v2157_v36 = vld [vmem:[#allocation2 + $0x259] sm:$0xff] }
 0x347   :  { %11197 = vst [vmem:[#allocation7_spill] sm:$0xff] %v9040_v27  ;;  %v3447_v56 = vpop.f32.mrf.mxu1  ;;  %4136 = vmatmul.mubr.f32.gmra.mxu1 %v2155_v55 }
 0x348   :  { %v3822_v52 = vpop.f32.mrf.mxu0  ;;  %4511 = vmatmul.mubr.f32.gmra.mxu0 %v2027_v5  ;;  %4140 = vmatprep.mubr.f32.mxu1 %v1901_v6 }
 0x349   :  { %v9042_v30 = vadd.f32 %v3822_v52, %v3437_v45  ;;  %4515 = vmatprep.mubr.f32.mxu0 %v2156_v21  ;;  %v3449_v10 = vpop.f32.mrf.mxu1  ;;  %v2029_v45 = vld [vmem:[#allocation2 + $0x258] sm:$0xff]  ;;  %v1903_v52 = vld [vmem:[#allocation2 + $0x262] sm:$0xff] }
 0x34a   :  { %v3824_v59 = vpop.f32.mrf.mxu0  ;;  %v2158_v10 = vld [vmem:[#allocation2 + $0x261] sm:$0xff] }
 0x34b   :  { %11198 = vst [vmem:[#allocation8_spill] sm:$0xff] %v9042_v30  ;;  %v3452_v3 = vpop.f32.mrf.mxu1  ;;  %4141 = vmatmul.mubr.f32.gmra.mxu1 %v2156_v21 }
 0x34c   :  { %v3827_v27 = vpop.f32.mrf.mxu0  ;;  %4516 = vmatmul.mubr.f32.gmra.mxu0 %v2028_v1  ;;  %4145 = vmatprep.mubr.f32.mxu1 %v1902_v44 }
 0x34d   :  { %v9044_v55 = vadd.f32 %v3827_v27, %v3442_v17  ;;  %4520 = vmatprep.mubr.f32.mxu0 %v2157_v36  ;;  %v3454_v47 = vpop.f32.mrf.mxu1  ;;  %v2030_v17 = vld [vmem:[#allocation2 + $0x260] sm:$0xff]  ;;  %v1904_v27 = vld [vmem:[#allocation2 + $0x272] sm:$0xff] }
 0x34e   :  { %v3829_v5 = vpop.f32.mrf.mxu0  ;;  %v2159_v47 = vld [vmem:[#allocation2 + $0x271] sm:$0xff] }
 0x34f   :  { %11199 = vst [vmem:[#allocation10_spill] sm:$0xff] %v9044_v55  ;;  %v3457_v6 = vpop.f32.mrf.mxu1  ;;  %4146 = vmatmul.mubr.f32.gmra.mxu1 %v2157_v36 }
 0x350   :  { %v3832_v30 = vpop.f32.mrf.mxu0  ;;  %4521 = vmatmul.mubr.f32.gmra.mxu0 %v2029_v45  ;;  %4150 = vmatprep.mubr.f32.mxu1 %v1903_v52 }
 0x351   :  { %v9046_v21 = vadd.f32 %v3832_v30, %v3447_v56  ;;  %4525 = vmatprep.mubr.f32.mxu0 %v2158_v10  ;;  %v3459_v59 = vpop.f32.mrf.mxu1  ;;  %v2031_v56 = vld [vmem:[#allocation2 + $0x270] sm:$0xff]  ;;  %v1905_v30 = vld [vmem:[#allocation2 + $0x27a] sm:$0xff] }
 0x352   :  { %v3834_v1 = vpop.f32.mrf.mxu0  ;;  %v2160_v59 = vld [vmem:[#allocation2 + $0x279] sm:$0xff] }
 0x353   :  { %11200 = vst [vmem:[#allocation9_spill] sm:$0xff] %v9046_v21  ;;  %v3462_v44 = vpop.f32.mrf.mxu1  ;;  %4151 = vmatmul.mubr.f32.gmra.mxu1 %v2158_v10 }
 0x354   :  { %v3837_v55 = vpop.f32.mrf.mxu0  ;;  %4526 = vmatmul.mubr.f32.gmra.mxu0 %v2030_v17  ;;  %4155 = vmatprep.mubr.f32.mxu1 %v1904_v27 }
 0x355   :  { %v9048_v36 = vadd.f32 %v3837_v55, %v3452_v3  ;;  %4530 = vmatprep.mubr.f32.mxu0 %v2159_v47  ;;  %v3464_v5 = vpop.f32.mrf.mxu1  ;;  %v2032_v3 = vld [vmem:[#allocation2 + $0x278] sm:$0xff]  ;;  %v1906_v55 = vld [vmem:[#allocation2 + $0x28a] sm:$0xff] }
 0x356   :  { %v3839_v45 = vpop.f32.mrf.mxu0  ;;  %v2161_v5 = vld [vmem:[#allocation2 + $0x289] sm:$0xff] }
 0x357   :  { %11201 = vst [vmem:[#allocation12_spill] sm:$0xff] %v9048_v36  ;;  %v3467_v52 = vpop.f32.mrf.mxu1  ;;  %4156 = vmatmul.mubr.f32.gmra.mxu1 %v2159_v47 }
 0x358   :  { %v3842_v21 = vpop.f32.mrf.mxu0  ;;  %4531 = vmatmul.mubr.f32.gmra.mxu0 %v2031_v56  ;;  %4160 = vmatprep.mubr.f32.mxu1 %v1905_v30  ;;  %v3543_v56 = vadd.f32 %v8878_v37, %v8762_v60  ;;  %v2033_v30 = vld [vmem:[#allocation2 + $0x288] sm:$0xff]  ;;  %v2034_v60 = vld [vmem:[#allocation2 + $0x290] sm:$0xff] }
 0x359   :  { %v9050_v10 = vadd.f32 %v3842_v21, %v3457_v6  ;;  %4535 = vmatprep.mubr.f32.mxu0 %v2160_v59  ;;  %v3469_v1 = vpop.f32.mrf.mxu1  ;;  %v1908_v37 = vld [vmem:[#allocation2 + $0x2a2] sm:$0xff] }
 0x35a   :  { %v3844_v17 = vpop.f32.mrf.mxu0  ;;  %v1907_v1 = vld [vmem:[#allocation2 + $0x292] sm:$0xff] }
 0x35b   :  { %11202 = vst [vmem:[#allocation11_spill] sm:$0xff] %v9050_v10  ;;  %v3472_v27 = vpop.f32.mrf.mxu1  ;;  %4161 = vmatmul.mubr.f32.gmra.mxu1 %v2160_v59  ;;  %v2162_v10 = vld [vmem:[#allocation2 + $0x291] sm:$0xff] }
 0x35c   :  { %v3847_v36 = vpop.f32.mrf.mxu0  ;;  %4536 = vmatmul.mubr.f32.gmra.mxu0 %v2032_v3  ;;  %4165 = vmatprep.mubr.f32.mxu1 %v1906_v55 }
 0x35d   :  { %v9052_v47 = vadd.f32 %v3847_v36, %v3462_v44  ;;  %4540 = vmatprep.mubr.f32.mxu0 %v2161_v5  ;;  %v3474_v45 = vpop.f32.mrf.mxu1  ;;  %v3548_v36 = vadd.f32 %v8880_v48, %v8772_v61 }
 0x35e   :  { %v3849_v6 = vpop.f32.mrf.mxu0 }
 0x35f   :  { %v3927_v21 = vpop.f32.mrf.mxu1  ;;  %4166 = vmatmul.mubr.f32.gmra.mxu1 %v2161_v5 }
 0x360   :  { %v3852_v17 = vpop.f32.mrf.mxu0  ;;  %v3928_v59 = vadd.f32 %v3927_v21, %v3543_v56  ;;  %4541 = vmatmul.mubr.f32.gmra.mxu0 %v2033_v30  ;;  %4170 = vmatprep.mubr.f32.mxu1 %v1907_v1  ;;  %v2163_v56 = vld [vmem:[#allocation2 + $0x2a1] sm:$0xff] }
 0x361   :  { %v9056_v3 = vadd.f32 %v3852_v17, %v3467_v52  ;;  %4545 = vmatprep.mubr.f32.mxu0 %v2162_v10  ;;  %v3929_v44 = vpop.f32.mrf.mxu1  ;;  %v2035_v17 = vld [vmem:[#allocation2 + $0x2a0] sm:$0xff] }
 0x362   :  { %v3854_v55 = vpop.f32.mrf.mxu0  ;;  %v1909_v44 = vld [vmem:[#allocation2 + $0x2aa] sm:$0xff] }
 0x363   :  { %v3932_v45 = vpop.f32.mrf.mxu1  ;;  %4171 = vmatmul.mubr.f32.gmra.mxu1 %v2162_v10  ;;  %v2164_v10 = vld [vmem:[#allocation2 + $0x2a9] sm:$0xff] }
 0x364   :  { %v3857_v5 = vpop.f32.mrf.mxu0  ;;  %v3933_v6 = vadd.f32 %v3932_v45, %v3548_v36  ;;  %4546 = vmatmul.mubr.f32.gmra.mxu0 %v2034_v60  ;;  %4175 = vmatprep.mubr.f32.mxu1 %v1908_v37  ;;  %v2036_v60 = vld [vmem:[#allocation2 + $0x2a8] sm:$0xff]  ;;  %v9065_v37 = vld [vmem:[#allocation2 + $0x2ba] sm:$0xff] }
 0x365   :  { %v9060_v21 = vadd.f32 %v3857_v5, %v3472_v27  ;;  %4550 = vmatprep.mubr.f32.mxu0 %v2163_v56  ;;  %v3934_v52 = vpop.f32.mrf.mxu1 }
 0x366   :  { %v3859_v30 = vpop.f32.mrf.mxu0 }
 0x367   :  { %v3937_v1 = vpop.f32.mrf.mxu1  ;;  %4176 = vmatmul.mubr.f32.gmra.mxu1 %v2163_v56 }
 0x368   :  { %v3938_v61 = vadd.f32 %v3937_v1, %v8882_v51  ;;  %v4312_v48 = vpop.f32.mrf.mxu0  ;;  %4551 = vmatmul.mubr.f32.gmra.mxu0 %v2035_v17  ;;  %4180 = vmatprep.mubr.f32.mxu1 %v1909_v44  ;;  %v2165_v51 = vld [vmem:[#allocation2 + $0x2b9] sm:$0xff]  ;;  %v9071_v44 = vld [vmem:[#allocation2 + $0x2c2] sm:$0xff] }
 0x369   :  { %v9063_v55 = vadd.f32 %v4312_v48, %v3928_v59  ;;  %4555 = vmatprep.mubr.f32.mxu0 %v2164_v10  ;;  %v3939_v36 = vpop.f32.mrf.mxu1  ;;  %v2037_v17 = vld [vmem:[#allocation2 + $0x2b8] sm:$0xff] }
 0x36a   :  { %v4314_v45 = vpop.f32.mrf.mxu0 }
 0x36b   :  { %v3942_v27 = vpop.f32.mrf.mxu1  ;;  %4181 = vmatmul.mubr.f32.gmra.mxu1 %v2164_v10 }
 0x36c   :  { %v3943_v5 = vadd.f32 %v3942_v27, %v8884_v29  ;;  %v4317_v56 = vpop.f32.mrf.mxu0  ;;  %4556 = vmatmul.mubr.f32.gmra.mxu0 %v2036_v60  ;;  %4185 = vmatprep.mubr.f32.mxu1 %v9065_v37  ;;  %v2166_v29 = vld [vmem:[#allocation2 + $0x2c1] sm:$0xff] }
 0x36d   :  { %v9069_v52 = vadd.f32 %v4317_v56, %v3933_v6  ;;  %4560 = vmatprep.mubr.f32.mxu0 %v2165_v51  ;;  %v3944_v59 = vpop.f32.mrf.mxu1  ;;  %v2038_v60 = vld [vmem:[#allocation2 + $0x2c0] sm:$0xff]  ;;  %v9077_v56 = vld [vmem:[#allocation2 + $0x2d2] sm:$0xff] }
 0x36e   :  { %v4319_v30 = vpop.f32.mrf.mxu0 }
 0x36f   :  { %v3947_v1 = vpop.f32.mrf.mxu1  ;;  %4186 = vmatmul.mubr.f32.gmra.mxu1 %v2165_v51 }
 0x370   :  { %v3948_v48 = vadd.f32 %v3947_v1, %v8886_v8  ;;  %v4322_v10 = vpop.f32.mrf.mxu0  ;;  %4561 = vmatmul.mubr.f32.gmra.mxu0 %v2037_v17  ;;  %4190 = vmatprep.mubr.f32.mxu1 %v9071_v44  ;;  %v2167_v8 = vld [vmem:[#allocation2 + $0x2d1] sm:$0xff] }
 0x371   :  { %v9075_v36 = vadd.f32 %v4322_v10, %v3938_v61  ;;  %4565 = vmatprep.mubr.f32.mxu0 %v2166_v29  ;;  %v3949_v6 = vpop.f32.mrf.mxu1  ;;  %v2039_v10 = vld [vmem:[#allocation2 + $0x2d0] sm:$0xff] }
 0x372   :  { %v4324_v45 = vpop.f32.mrf.mxu0  ;;  %v9083_v6 = vld [vmem:[#allocation2 + $0x2da] sm:$0xff] }
 0x373   :  { %11203 = vst [vmem:[#allocation15_spill] sm:$0xff] %v9075_v36  ;;  %v3952_v27 = vpop.f32.mrf.mxu1  ;;  %4191 = vmatmul.mubr.f32.gmra.mxu1 %v2166_v29 }
 0x374   :  { %v3953_v51 = vadd.f32 %v3952_v27, %v8888_v13  ;;  %v4327_v59 = vpop.f32.mrf.mxu0  ;;  %4566 = vmatmul.mubr.f32.gmra.mxu0 %v2038_v60  ;;  %4195 = vmatprep.mubr.f32.mxu1 %v9077_v56  ;;  %v2168_v13 = vld [vmem:[#allocation2 + $0x2d9] sm:$0xff] }
 0x375   :  { %v9081_v30 = vadd.f32 %v4327_v59, %v3943_v5  ;;  %4570 = vmatprep.mubr.f32.mxu0 %v2167_v8  ;;  %v3954_v61 = vpop.f32.mrf.mxu1 }
 0x376   :  { %v4329_v1 = vpop.f32.mrf.mxu0  ;;  %v2040_v61 = vld [vmem:[#allocation2 + $0x2d8] sm:$0xff] }
 0x377   :  { %11204 = vst [vmem:[#allocation24_spill] sm:$0xff] %v9081_v30  ;;  %v3957_v17 = vpop.f32.mrf.mxu1  ;;  %4196 = vmatmul.mubr.f32.gmra.mxu1 %v2167_v8  ;;  %v9089_v1 = vld [vmem:[#allocation2 + $0x2ea] sm:$0xff] }
 0x378   :  { %v3958_v29 = vadd.f32 %v3957_v17, %v8890_v0  ;;  %v4332_v45 = vpop.f32.mrf.mxu0  ;;  %4571 = vmatmul.mubr.f32.gmra.mxu0 %v2039_v10  ;;  %4200 = vmatprep.mubr.f32.mxu1 %v9083_v6  ;;  %v2169_v0 = vld [vmem:[#allocation2 + $0x2e9] sm:$0xff] }
 0x379   :  { %v9087_v27 = vadd.f32 %v4332_v45, %v3948_v48  ;;  %4575 = vmatprep.mubr.f32.mxu0 %v2168_v13  ;;  %v3959_v5 = vpop.f32.mrf.mxu1 }
 0x37a   :  { %v4334_v60 = vpop.f32.mrf.mxu0  ;;  %v2041_v5 = vld [vmem:[#allocation2 + $0x2e8] sm:$0xff] }
 0x37b   :  { %11205 = vst [vmem:[#allocation25_spill] sm:$0xff] %v9087_v27  ;;  %v3962_v59 = vpop.f32.mrf.mxu1  ;;  %4201 = vmatmul.mubr.f32.gmra.mxu1 %v2168_v13  ;;  %v9095_v60 = vld [vmem:[#allocation2 + $0x2f2] sm:$0xff] }
 0x37c   :  { %v3963_v8 = vadd.f32 %v3962_v59, %v8892_v35  ;;  %v4337_v36 = vpop.f32.mrf.mxu0  ;;  %4576 = vmatmul.mubr.f32.gmra.mxu0 %v2040_v61  ;;  %4205 = vmatprep.mubr.f32.mxu1 %v9089_v1  ;;  %v2170_v35 = vld [vmem:[#allocation2 + $0x2f1] sm:$0xff] }
 0x37d   :  { %v9093_v17 = vadd.f32 %v4337_v36, %v3953_v51  ;;  %4580 = vmatprep.mubr.f32.mxu0 %v2169_v0  ;;  %v3964_v48 = vpop.f32.mrf.mxu1 }
 0x37e   :  { %v4339_v10 = vpop.f32.mrf.mxu0  ;;  %v2042_v48 = vld [vmem:[#allocation2 + $0x2f0] sm:$0xff] }
 0x37f   :  { %11206 = vst [vmem:[#allocation28_spill] sm:$0xff] %v9093_v17  ;;  %v3967_v45 = vpop.f32.mrf.mxu1  ;;  %4206 = vmatmul.mubr.f32.gmra.mxu1 %v2169_v0  ;;  %v9101_v10 = vld [vmem:[#allocation2 + $0x302] sm:$0xff] }
 0x380   :  { %v3968_v13 = vadd.f32 %v3967_v45, %v8894_v25  ;;  %v4342_v27 = vpop.f32.mrf.mxu0  ;;  %4581 = vmatmul.mubr.f32.gmra.mxu0 %v2041_v5  ;;  %4210 = vmatprep.mubr.f32.mxu1 %v9095_v60  ;;  %v2171_v25 = vld [vmem:[#allocation2 + $0x301] sm:$0xff] }
 0x381   :  { %v9099_v59 = vadd.f32 %v4342_v27, %v3958_v29  ;;  %4585 = vmatprep.mubr.f32.mxu0 %v2170_v35  ;;  %v3969_v36 = vpop.f32.mrf.mxu1 }
 0x382   :  { %v4344_v51 = vpop.f32.mrf.mxu0  ;;  %v2043_v36 = vld [vmem:[#allocation2 + $0x300] sm:$0xff] }
 0x383   :  { %11207 = vst [vmem:[#allocation27_spill] sm:$0xff] %v9099_v59  ;;  %v3972_v61 = vpop.f32.mrf.mxu1  ;;  %4211 = vmatmul.mubr.f32.gmra.mxu1 %v2170_v35  ;;  %v9107_v51 = vld [vmem:[#allocation2 + $0x30a] sm:$0xff] }
 0x384   :  { %v3973_v0 = vadd.f32 %v3972_v61, %v8896_v31  ;;  %v4347_v17 = vpop.f32.mrf.mxu0  ;;  %4586 = vmatmul.mubr.f32.gmra.mxu0 %v2042_v48  ;;  %4215 = vmatprep.mubr.f32.mxu1 %v9101_v10  ;;  %v2172_v31 = vld [vmem:[#allocation2 + $0x309] sm:$0xff] }
 0x385   :  { %v9105_v45 = vadd.f32 %v4347_v17, %v3963_v8  ;;  %4590 = vmatprep.mubr.f32.mxu0 %v2171_v25  ;;  %v3974_v29 = vpop.f32.mrf.mxu1 }
 0x386   :  { %v4349_v27 = vpop.f32.mrf.mxu0  ;;  %v2044_v29 = vld [vmem:[#allocation2 + $0x308] sm:$0xff] }
 0x387   :  { %11208 = vst [vmem:[#allocation29_spill] sm:$0xff] %v9105_v45  ;;  %v3977_v5 = vpop.f32.mrf.mxu1  ;;  %4216 = vmatmul.mubr.f32.gmra.mxu1 %v2171_v25  ;;  %v9113_v27 = vld [vmem:[#allocation2 + $0x31a] sm:$0xff] }
 0x388   :  { %v3978_v35 = vadd.f32 %v3977_v5, %v8898_v43  ;;  %v4352_v59 = vpop.f32.mrf.mxu0  ;;  %4591 = vmatmul.mubr.f32.gmra.mxu0 %v2043_v36  ;;  %4220 = vmatprep.mubr.f32.mxu1 %v9107_v51  ;;  %v2173_v43 = vld [vmem:[#allocation2 + $0x319] sm:$0xff] }
 0x389   :  { %v9111_v61 = vadd.f32 %v4352_v59, %v3968_v13  ;;  %4595 = vmatprep.mubr.f32.mxu0 %v2172_v31  ;;  %v3979_v8 = vpop.f32.mrf.mxu1 }
 0x38a   :  { %v4354_v17 = vpop.f32.mrf.mxu0  ;;  %v2045_v8 = vld [vmem:[#allocation2 + $0x318] sm:$0xff] }
 0x38b   :  { %11209 = vst [vmem:[#allocation30_spill] sm:$0xff] %v9111_v61  ;;  %v3982_v48 = vpop.f32.mrf.mxu1  ;;  %4221 = vmatmul.mubr.f32.gmra.mxu1 %v2172_v31  ;;  %v9119_v17 = vld [vmem:[#allocation2 + $0x322] sm:$0xff] }
 0x38c   :  { %v3983_v25 = vadd.f32 %v3982_v48, %v8900_v32  ;;  %v4357_v45 = vpop.f32.mrf.mxu0  ;;  %4596 = vmatmul.mubr.f32.gmra.mxu0 %v2044_v29  ;;  %4225 = vmatprep.mubr.f32.mxu1 %v9113_v27  ;;  %v2174_v32 = vld [vmem:[#allocation2 + $0x321] sm:$0xff] }
 0x38d   :  { %v9117_v5 = vadd.f32 %v4357_v45, %v3973_v0  ;;  %4600 = vmatprep.mubr.f32.mxu0 %v2173_v43  ;;  %v3984_v13 = vpop.f32.mrf.mxu1 }
 0x38e   :  { %v4359_v59 = vpop.f32.mrf.mxu0  ;;  %v2046_v13 = vld [vmem:[#allocation2 + $0x320] sm:$0xff] }
 0x38f   :  { %11210 = vst [vmem:[#allocation31_spill] sm:$0xff] %v9117_v5  ;;  %v3987_v36 = vpop.f32.mrf.mxu1  ;;  %4226 = vmatmul.mubr.f32.gmra.mxu1 %v2173_v43  ;;  %v9125_v59 = vld [vmem:[#allocation2 + $0x332] sm:$0xff] }
 0x390   :  { %v3988_v31 = vadd.f32 %v3987_v36, %v8902_v49  ;;  %v4362_v61 = vpop.f32.mrf.mxu0  ;;  %4601 = vmatmul.mubr.f32.gmra.mxu0 %v2045_v8  ;;  %4230 = vmatprep.mubr.f32.mxu1 %v9119_v17  ;;  %v2175_v49 = vld [vmem:[#allocation2 + $0x331] sm:$0xff] }
 0x391   :  { %v9123_v48 = vadd.f32 %v4362_v61, %v3978_v35  ;;  %4605 = vmatprep.mubr.f32.mxu0 %v2174_v32  ;;  %v3989_v0 = vpop.f32.mrf.mxu1 }
 0x392   :  { %v4364_v45 = vpop.f32.mrf.mxu0  ;;  %v2047_v0 = vld [vmem:[#allocation2 + $0x330] sm:$0xff] }
 0x393   :  { %11211 = vst [vmem:[#allocation32_spill] sm:$0xff] %v9123_v48  ;;  %v3992_v29 = vpop.f32.mrf.mxu1  ;;  %4231 = vmatmul.mubr.f32.gmra.mxu1 %v2174_v32  ;;  %v9131_v45 = vld [vmem:[#allocation2 + $0x33a] sm:$0xff] }
 0x394   :  { %v3993_v43 = vadd.f32 %v3992_v29, %v8904_v50  ;;  %v4367_v5 = vpop.f32.mrf.mxu0  ;;  %4606 = vmatmul.mubr.f32.gmra.mxu0 %v2046_v13  ;;  %4235 = vmatprep.mubr.f32.mxu1 %v9125_v59  ;;  %v2176_v50 = vld [vmem:[#allocation2 + $0x339] sm:$0xff]  ;;  %v2177_v13 = vld [vmem:[#allocation2 + $0x349] sm:$0xff] }
 0x395   :  { %v9129_v36 = vadd.f32 %v4367_v5, %v3983_v25  ;;  %4610 = vmatprep.mubr.f32.mxu0 %v2175_v49  ;;  %v3994_v35 = vpop.f32.mrf.mxu1 }
 0x396   :  { %v4369_v61 = vpop.f32.mrf.mxu0 }
 0x397   :  { %11212 = vst [vmem:[#allocation33_spill] sm:$0xff] %v9129_v36  ;;  %v3997_v8 = vpop.f32.mrf.mxu1  ;;  %4236 = vmatmul.mubr.f32.gmra.mxu1 %v2175_v49  ;;  %v2048_v61 = vld [vmem:[#allocation2 + $0x338] sm:$0xff] }
 0x398   :  { %v3998_v32 = vadd.f32 %v3997_v8, %v8910_v2  ;;  %v4372_v48 = vpop.f32.mrf.mxu0  ;;  %4611 = vmatmul.mubr.f32.gmra.mxu0 %v2047_v0  ;;  %4240 = vmatprep.mubr.f32.mxu1 %v9131_v45  ;;  %v2243_v49 = vld [vmem:[#allocation2 + $0x32] sm:$0xff] }
 0x399   :  { %v9135_v29 = vadd.f32 %v4372_v48, %v3988_v31  ;;  %4615 = vmatprep.mubr.f32.mxu0 %v2176_v50  ;;  %v3999_v25 = vpop.f32.mrf.mxu1  ;;  %v2244_v31 = vld [vmem:[#allocation2 + $0x3a] sm:$0xff]  ;;  %v2178_v48 = vld [vmem:[#allocation2 + $0x351] sm:$0xff] }
 0x39a   :  { %v4374_v5 = vpop.f32.mrf.mxu0  ;;  %v2245_v25 = vld [vmem:[#allocation2 + $0x4a] sm:$0xff] }
 0x39b   :  { %11213 = vst [vmem:[#allocation34_spill] sm:$0xff] %v9135_v29  ;;  %v4002_v35 = vpop.f32.mrf.mxu1  ;;  %4241 = vmatmul.mubr.f32.gmra.mxu1 %v2176_v50 }
 0x39c   :  { %v4003_v36 = vadd.f32 %v4002_v35, %v8915_v24  ;;  %v4377_v30 = vpop.f32.mrf.mxu0  ;;  %4616 = vmatmul.mubr.f32.gmra.mxu0 %v2048_v61  ;;  %6697 = vmatprep.mubr.f32.mxu1 %v2243_v49  ;;  %v2247_v49 = vld [vmem:[#allocation2 + $0x62] sm:$0xff] }
 0x39d   :  { %v9138_v2 = vadd.f32 %v4377_v30, %v3993_v43  ;;  %v4004_v8 = vpop.f32.mrf.mxu1  ;;  %4620 = vmatprep.mubr.f32.mxu0 %v2177_v13  ;;  %v2246_v43 = vld [vmem:[#allocation2 + $0x52] sm:$0xff]  ;;  %v5353_v13 = vld [vmem:[%s10833_s3] sm:$0xff] }
 0x39e   :  { %v4379_v0 = vpop.f32.mrf.mxu0 }
 0x39f   :  { %v4007_v29 = vpop.f32.mrf.mxu1  ;;  %6698 = vmatmul.mubr.f32.vlgmr.msra.gmra.mxu1 %v2244_v31  ;;  %v5354_v0 = vld [vmem:[%s10833_s3 + $0x8] sm:$0xff] }
 0x3a0   :  { %v4008_v5 = vadd.f32 %v4007_v29, %v8920_v63  ;;  %v4382_v50 = vpop.f32.mrf.mxu0  ;;  %4621 = vmatmul.mubr.f32.gmra.mxu0 %v9018_v62  ;;  %6700 = vmatprep.mubr.f32.mxu1 %v2245_v25  ;;  %v5355_v25 = vld [vmem:[%s10833_s3 + $0x10] sm:$0xff] }
 0x3a1   :  { %v9142_v24 = vadd.f32 %v4382_v50, %v3998_v32  ;;  %v4009_v35 = vpop.f32.mrf.mxu1  ;;  %4625 = vmatprep.mubr.f32.mxu0 %v2178_v48  ;;  %v2248_v48 = vld [vmem:[#allocation2 + $0x6a] sm:$0xff]  ;;  %v2249_v50 = vld [vmem:[#allocation2 + $0x7a] sm:$0xff] }
 0x3a2   :  { %v4384_v30 = vpop.f32.mrf.mxu0 }
 0x3a3   :  { %v4012_v61 = vpop.f32.mrf.mxu1  ;;  %6701 = vmatmul.mubr.f32.gmra.mxu1 %v2246_v43  ;;  %v5356_v43 = vld [vmem:[%s10833_s3 + $0x18] sm:$0xff] }
 0x3a4   :  { %v4013_v63 = vadd.f32 %v4012_v61, %v8927_v39  ;;  %v4387_v29 = vpop.f32.mrf.mxu0  ;;  %4626 = vmatmul.mubr.f32.gmra.mxu0 %v9018_v62  ;;  %6703 = vmatprep.mubr.f32.mxu1 %v2247_v49  ;;  %v2250_v61 = vld [vmem:[#allocation2 + $0x82] sm:$0xff] }
 0x3a5   :  { %v9149_v32 = vadd.f32 %v4387_v29, %v4003_v36  ;;  %v4014_v8 = vpop.f32.mrf.mxu1  ;;  %6795 = vmatprep.mubr.msk.f32.mxu0 %vm5425_vm2, %v5353_v13  ;;  %v5357_v49 = vld [vmem:[%s10833_s3 + $0x20] sm:$0xff]  ;;  %v2251_v29 = vld [vmem:[#allocation2 + $0x92] sm:$0xff] }
 0x3a6   :  { %v4389_v31 = vpop.f32.mrf.mxu0 }
 0x3a7   :  { %v4017_v39 = vpop.f32.mrf.mxu1  ;;  %6704 = vmatmul.mubr.f32.gmra.mxu1 %v2248_v48  ;;  %v5358_v48 = vld [vmem:[%s10833_s3 + $0x28] sm:$0xff] }
 0x3a8   :  { %v4018_v62 = vadd.f32 %v4017_v39, %v8932_v18  ;;  %v4392_v36 = vpop.f32.mrf.mxu0  ;;  %6706 = vmatprep.mubr.f32.mxu1 %v2249_v50  ;;  %6796 = vmatmul.mubr.msk.f32.vlgmr.msra.gmra.mxu0 %vm5425_vm2, %v5354_v0  ;;  %v2252_v39 = vld [vmem:[#allocation2 + $0x9a] sm:$0xff]  ;;  %v5359_v50 = vld [vmem:[%s10833_s3 + $0x30] sm:$0xff] }
 0x3a9   :  { %v9160_v35 = vadd.f32 %v4392_v36, %v4008_v5  ;;  %v4019_v30 = vpop.f32.mrf.mxu1  ;;  %6798 = vmatprep.mubr.msk.f32.mxu0 %vm5425_vm2, %v5355_v25  ;;  %v2253_v36 = vld [vmem:[#allocation2 + $0xaa] sm:$0xff] }
 0x3aa   :  { %v4394_v13 = vpop.f32.mrf.mxu0 }
 0x3ab   :  { %v4022_v18 = vpop.f32.mrf.mxu1  ;;  %6707 = vmatmul.mubr.f32.gmra.mxu1 %v2250_v61  ;;  %v5360_v61 = vld [vmem:[%s10833_s3 + $0x38] sm:$0xff] }
 0x3ac   :  { %v4023_v8 = vadd.f32 %v4022_v18, %v8937_v28  ;;  %v4397_v5 = vpop.f32.mrf.mxu0  ;;  %6709 = vmatprep.mubr.f32.mxu1 %v2251_v29  ;;  %6799 = vmatmul.mubr.msk.f32.gmra.mxu0 %vm5425_vm2, %v5356_v43  ;;  %v2254_v18 = vld [vmem:[#allocation2 + $0xb2] sm:$0xff]  ;;  %v5361_v29 = vld [vmem:[%s10833_s3 + $0x40] sm:$0xff] }
 0x3ad   :  { %v9171_v0 = vadd.f32 %v4397_v5, %v4013_v63  ;;  %v4024_v31 = vpop.f32.mrf.mxu1  ;;  %6801 = vmatprep.mubr.msk.f32.mxu0 %vm5425_vm2, %v5357_v49  ;;  %v2255_v5 = vld [vmem:[#allocation2 + $0xc2] sm:$0xff] }
 0x3ae   :  { %v4399_v25 = vpop.f32.mrf.mxu0 }
 0x3af   :  { %v4027_v28 = vpop.f32.mrf.mxu1  ;;  %6710 = vmatmul.mubr.f32.gmra.mxu1 %v2252_v39  ;;  %v5362_v39 = vld [vmem:[%s10833_s3 + $0x48] sm:$0xff] }
 0x3b0   :  { %v4028_v30 = vadd.f32 %v4027_v28, %v8942_v22  ;;  %v4402_v63 = vpop.f32.mrf.mxu0  ;;  %6712 = vmatprep.mubr.f32.mxu1 %v2253_v36  ;;  %6802 = vmatmul.mubr.msk.f32.gmra.mxu0 %vm5425_vm2, %v5358_v48  ;;  %v2256_v28 = vld [vmem:[#allocation2 + $0xca] sm:$0xff] }
 0x3b1   :  { %v9182_v43 = vadd.f32 %v4402_v63, %v4018_v62  ;;  %v4029_v13 = vpop.f32.mrf.mxu1  ;;  %6804 = vmatprep.mubr.msk.f32.mxu0 %vm5425_vm2, %v5359_v50  ;;  %v5363_v36 = vld [vmem:[%s10833_s3 + $0x50] sm:$0xff]  ;;  %v2257_v63 = vld [vmem:[#allocation2 + $0xda] sm:$0xff] }
 0x3b2   :  { %v4404_v49 = vpop.f32.mrf.mxu0 }
 0x3b3   :  { %v4032_v22 = vpop.f32.mrf.mxu1  ;;  %6713 = vmatmul.mubr.f32.gmra.mxu1 %v2254_v18  ;;  %v5364_v18 = vld [vmem:[%s10833_s3 + $0x58] sm:$0xff] }
 0x3b4   :  { %v4033_v31 = vadd.f32 %v4032_v22, %v8947_v9  ;;  %v4407_v62 = vpop.f32.mrf.mxu0  ;;  %6715 = vmatprep.mubr.f32.mxu1 %v2255_v5  ;;  %6805 = vmatmul.mubr.msk.f32.gmra.mxu0 %vm5425_vm2, %v5360_v61  ;;  %v2258_v22 = vld [vmem:[#allocation2 + $0xe2] sm:$0xff] }
 0x3b5   :  { %v9193_v48 = vadd.f32 %v4407_v62, %v4023_v8  ;;  %v4034_v25 = vpop.f32.mrf.mxu1  ;;  %6807 = vmatprep.mubr.msk.f32.mxu0 %vm5425_vm2, %v5361_v29  ;;  %v5365_v5 = vld [vmem:[%s10833_s3 + $0x60] sm:$0xff]  ;;  %v2259_v62 = vld [vmem:[#allocation2 + $0xf2] sm:$0xff] }
 0x3b6   :  { %v4409_v50 = vpop.f32.mrf.mxu0 }
 0x3b7   :  { %v4037_v9 = vpop.f32.mrf.mxu1  ;;  %6716 = vmatmul.mubr.f32.gmra.mxu1 %v2256_v28  ;;  %v5366_v28 = vld [vmem:[%s10833_s3 + $0x68] sm:$0xff] }
 0x3b8   :  { %v4038_v13 = vadd.f32 %v4037_v9, %v8952_v15  ;;  %v4412_v8 = vpop.f32.mrf.mxu0  ;;  %6718 = vmatprep.mubr.f32.mxu1 %v2257_v63  ;;  %6808 = vmatmul.mubr.msk.f32.gmra.mxu0 %vm5425_vm2, %v5362_v39  ;;  %v2260_v9 = vld [vmem:[#allocation2 + $0xfa] sm:$0xff]  ;;  %v5367_v63 = vld [vmem:[%s10833_s3 + $0x70] sm:$0xff] }
 0x3b9   :  { %v9204_v61 = vadd.f32 %v4412_v8, %v4028_v30  ;;  %v4039_v49 = vpop.f32.mrf.mxu1  ;;  %6810 = vmatprep.mubr.msk.f32.mxu0 %vm5425_vm2, %v5363_v36  ;;  %v2261_v8 = vld [vmem:[#allocation2 + $0x10a] sm:$0xff] }
 0x3ba   :  { %v4414_v29 = vpop.f32.mrf.mxu0 }
 0x3bb   :  { %v4042_v15 = vpop.f32.mrf.mxu1  ;;  %6719 = vmatmul.mubr.f32.gmra.mxu1 %v2258_v22  ;;  %v5368_v22 = vld [vmem:[%s10833_s3 + $0x78] sm:$0xff] }
 0x3bc   :  { %v4043_v25 = vadd.f32 %v4042_v15, %v8957_v19  ;;  %v4417_v30 = vpop.f32.mrf.mxu0  ;;  %6721 = vmatprep.mubr.f32.mxu1 %v2259_v62  ;;  %6811 = vmatmul.mubr.msk.f32.gmra.mxu0 %vm5425_vm2, %v5364_v18  ;;  %v2262_v15 = vld [vmem:[#allocation2 + $0x112] sm:$0xff]  ;;  %v5369_v62 = vld [vmem:[%s10833_s3 + $0x80] sm:$0xff] }
 0x3bd   :  { %v9215_v39 = vadd.f32 %v4417_v30, %v4033_v31  ;;  %v4044_v50 = vpop.f32.mrf.mxu1  ;;  %6813 = vmatprep.mubr.msk.f32.mxu0 %vm5425_vm2, %v5365_v5  ;;  %v2263_v30 = vld [vmem:[#allocation2 + $0x122] sm:$0xff] }
 0x3be   :  { %v4419_v36 = vpop.f32.mrf.mxu0 }
 0x3bf   :  { %v4047_v19 = vpop.f32.mrf.mxu1  ;;  %6722 = vmatmul.mubr.f32.gmra.mxu1 %v2260_v9  ;;  %v5370_v9 = vld [vmem:[%s10833_s3 + $0x88] sm:$0xff] }
 0x3c0   :  { %v4048_v49 = vadd.f32 %v4047_v19, %v8959_v23  ;;  %v4422_v31 = vpop.f32.mrf.mxu0  ;;  %6724 = vmatprep.mubr.f32.mxu1 %v2261_v8  ;;  %6814 = vmatmul.mubr.msk.f32.gmra.mxu0 %vm5425_vm2, %v5366_v28  ;;  %v2264_v19 = vld [vmem:[#allocation2 + $0x12a] sm:$0xff] }
 0x3c1   :  { %v9226_v18 = vadd.f32 %v4422_v31, %v4038_v13  ;;  %v4049_v29 = vpop.f32.mrf.mxu1  ;;  %6816 = vmatprep.mubr.msk.f32.mxu0 %vm5425_vm2, %v5367_v63  ;;  %v5371_v8 = vld [vmem:[%s10833_s3 + $0x90] sm:$0xff]  ;;  %v2265_v31 = vld [vmem:[#allocation2 + $0x13a] sm:$0xff] }
 0x3c2   :  { %v4424_v5 = vpop.f32.mrf.mxu0 }
 0x3c3   :  { %v4052_v23 = vpop.f32.mrf.mxu1  ;;  %6725 = vmatmul.mubr.f32.gmra.mxu1 %v2262_v15  ;;  %v5372_v15 = vld [vmem:[%s10833_s3 + $0x98] sm:$0xff] }
 0x3c4   :  { %v4053_v50 = vadd.f32 %v4052_v23, %v8961_v53  ;;  %v4427_v13 = vpop.f32.mrf.mxu0  ;;  %6727 = vmatprep.mubr.f32.mxu1 %v2263_v30  ;;  %6817 = vmatmul.mubr.msk.f32.gmra.mxu0 %vm5425_vm2, %v5368_v22  ;;  %v2266_v23 = vld [vmem:[#allocation2 + $0x142] sm:$0xff] }
 0x3c5   :  { %v9237_v28 = vadd.f32 %v4427_v13, %v4043_v25  ;;  %v4054_v36 = vpop.f32.mrf.mxu1  ;;  %6819 = vmatprep.mubr.msk.f32.mxu0 %vm5425_vm2, %v5369_v62  ;;  %v5373_v30 = vld [vmem:[%s10833_s3 + $0xa0] sm:$0xff]  ;;  %v2267_v13 = vld [vmem:[#allocation2 + $0x152] sm:$0xff] }
 0x3c6   :  { %v4429_v63 = vpop.f32.mrf.mxu0 }
 0x3c7   :  { %v4057_v53 = vpop.f32.mrf.mxu1  ;;  %6728 = vmatmul.mubr.f32.gmra.mxu1 %v2264_v19  ;;  %v5374_v19 = vld [vmem:[%s10833_s3 + $0xa8] sm:$0xff] }
 0x3c8   :  { %v4058_v29 = vadd.f32 %v4057_v53, %v8966_v11  ;;  %v4432_v25 = vpop.f32.mrf.mxu0  ;;  %6730 = vmatprep.mubr.f32.mxu1 %v2265_v31  ;;  %6820 = vmatmul.mubr.msk.f32.gmra.mxu0 %vm5425_vm2, %v5370_v9  ;;  %v2268_v53 = vld [vmem:[#allocation2 + $0x15a] sm:$0xff]  ;;  %v5375_v31 = vld [vmem:[%s10833_s3 + $0xb0] sm:$0xff] }
 0x3c9   :  { %v9248_v22 = vadd.f32 %v4432_v25, %v4048_v49  ;;  %v4059_v5 = vpop.f32.mrf.mxu1  ;;  %6822 = vmatprep.mubr.msk.f32.mxu0 %vm5425_vm2, %v5371_v8  ;;  %v2269_v25 = vld [vmem:[#allocation2 + $0x16a] sm:$0xff] }
 0x3ca   :  { %v4434_v62 = vpop.f32.mrf.mxu0 }
 0x3cb   :  { %v4062_v11 = vpop.f32.mrf.mxu1  ;;  %6731 = vmatmul.mubr.f32.gmra.mxu1 %v2266_v23  ;;  %v5376_v23 = vld [vmem:[%s10833_s3 + $0xb8] sm:$0xff] }
 0x3cc   :  { %v4063_v36 = vadd.f32 %v4062_v11, %v8968_v20  ;;  %v4437_v49 = vpop.f32.mrf.mxu0  ;;  %6733 = vmatprep.mubr.f32.mxu1 %v2267_v13  ;;  %6823 = vmatmul.mubr.msk.f32.gmra.mxu0 %vm5425_vm2, %v5372_v15  ;;  %v2270_v11 = vld [vmem:[#allocation2 + $0x172] sm:$0xff]  ;;  %v5377_v13 = vld [vmem:[%s10833_s3 + $0xc0] sm:$0xff] }
 0x3cd   :  { %v9259_v9 = vadd.f32 %v4437_v49, %v4053_v50  ;;  %v4064_v63 = vpop.f32.mrf.mxu1  ;;  %6825 = vmatprep.mubr.msk.f32.mxu0 %vm5425_vm2, %v5373_v30  ;;  %v2271_v49 = vld [vmem:[#allocation2 + $0x182] sm:$0xff] }
 0x3ce   :  { %v4439_v8 = vpop.f32.mrf.mxu0 }
 0x3cf   :  { %v4067_v20 = vpop.f32.mrf.mxu1  ;;  %6734 = vmatmul.mubr.f32.gmra.mxu1 %v2268_v53  ;;  %v2273_v53 = vld [vmem:[#allocation2 + $0x19a] sm:$0xff] }
 0x3d0   :  { %v4068_v5 = vadd.f32 %v4067_v20, %v8970_v42  ;;  %v4442_v50 = vpop.f32.mrf.mxu0  ;;  %6736 = vmatprep.mubr.f32.mxu1 %v2269_v25  ;;  %6826 = vmatmul.mubr.msk.f32.gmra.mxu0 %vm5425_vm2, %v5374_v19  ;;  %v2272_v25 = vld [vmem:[#allocation2 + $0x18a] sm:$0xff] }
 0x3d1   :  { %v9270_v15 = vadd.f32 %v4442_v50, %v4058_v29  ;;  %v4069_v62 = vpop.f32.mrf.mxu1  ;;  %6828 = vmatprep.mubr.msk.f32.mxu0 %vm5425_vm2, %v5375_v31  ;;  %v5378_v31 = vld [vmem:[%s10833_s3 + $0xc8] sm:$0xff] }
 0x3d2   :  { %v4444_v30 = vpop.f32.mrf.mxu0 }
 0x3d3   :  { %v4072_v42 = vpop.f32.mrf.mxu1  ;;  %6737 = vmatmul.mubr.f32.gmra.mxu1 %v2270_v11 }
 0x3d4   :  { %v4073_v63 = vadd.f32 %v4072_v42, %v8972_v7  ;;  %v4447_v29 = vpop.f32.mrf.mxu0  ;;  %6739 = vmatprep.mubr.f32.mxu1 %v2271_v49  ;;  %6829 = vmatmul.mubr.msk.f32.gmra.mxu0 %vm5425_vm2, %v5376_v23  ;;  %v5379_v7 = vld [vmem:[%s10833_s3 + $0xd0] sm:$0xff]  ;;  %v2274_v23 = vld [vmem:[#allocation2 + $0x1a2] sm:$0xff] }
 0x3d5   :  { %v9281_v19 = vadd.f32 %v4447_v29, %v4063_v36  ;;  %v4074_v8 = vpop.f32.mrf.mxu1  ;;  %6831 = vmatprep.mubr.msk.f32.mxu0 %vm5425_vm2, %v5377_v13  ;;  %v5380_v13 = vld [vmem:[%s10833_s3 + $0xd8] sm:$0xff]  ;;  %v5381_v49 = vld [vmem:[%s10833_s3 + $0xe0] sm:$0xff] }
 0x3d6   :  { %v4449_v20 = vpop.f32.mrf.mxu0  ;;  %v2275_v29 = vld [vmem:[#allocation2 + $0x1e2] sm:$0xff] }
 0x3d7   :  { %v4077_v50 = vpop.f32.mrf.mxu1  ;;  %6740 = vmatmul.mubr.f32.gmra.mxu1 %v2272_v25  ;;  %v5382_v20 = vld [vmem:[%s10833_s3 + $0xe8] sm:$0xff] }
 0x3d8   :  { %v4078_v62 = vadd.f32 %v4077_v50, %v8977_v16  ;;  %v4452_v36 = vpop.f32.mrf.mxu0  ;;  %6742 = vmatprep.mubr.f32.mxu1 %v2273_v53  ;;  %6832 = vmatmul.mubr.msk.f32.gmra.mxu0 %vm5425_vm2, %v5378_v31  ;;  %v5383_v50 = vld [vmem:[%s10833_s3 + $0xf0] sm:$0xff] }
 0x3d9   :  { %v9292_v30 = vadd.f32 %v4452_v36, %v4068_v5  ;;  %v4079_v11 = vpop.f32.mrf.mxu1  ;;  %6834 = vmatprep.mubr.msk.f32.mxu0 %vm5425_vm2, %v5379_v7  ;;  %v2276_v7 = vld [vmem:[#allocation2 + $0x1ea] sm:$0xff]  ;;  %v2277_v36 = vld [vmem:[#allocation2 + $0x1fa] sm:$0xff] }
 0x3da   :  { %v4454_v42 = vpop.f32.mrf.mxu0 }
 0x3db   :  { %v4082_v16 = vpop.f32.mrf.mxu1  ;;  %6743 = vmatmul.mubr.f32.gmra.mxu1 %v2274_v23  ;;  %v5384_v42 = vld [vmem:[%s10833_s3 + $0xf8] sm:$0xff] }
 0x3dc   :  { %v4083_v8 = vadd.f32 %v4082_v16, %v8979_v57  ;;  %v4457_v53 = vpop.f32.mrf.mxu0  ;;  %6745 = vmatprep.mubr.f32.mxu1 %v2275_v29  ;;  %6835 = vmatmul.mubr.msk.f32.gmra.mxu0 %vm5425_vm2, %v5380_v13  ;;  %v2278_v16 = vld [vmem:[#allocation2 + $0x202] sm:$0xff] }
 0x3dd   :  { %v9303_v5 = vadd.f32 %v4457_v53, %v4073_v63  ;;  %v4084_v31 = vpop.f32.mrf.mxu1  ;;  %6837 = vmatprep.mubr.msk.f32.mxu0 %vm5425_vm2, %v5381_v49  ;;  %v5385_v29 = vld [vmem:[%s10833_s3 + $0x100] sm:$0xff]  ;;  %v2279_v53 = vld [vmem:[#allocation2 + $0x212] sm:$0xff] }
 0x3de   :  { %v4459_v25 = vpop.f32.mrf.mxu0 }
 0x3df   :  { %v4087_v57 = vpop.f32.mrf.mxu1  ;;  %6746 = vmatmul.mubr.f32.gmra.mxu1 %v2276_v7  ;;  %v5386_v7 = vld [vmem:[%s10833_s3 + $0x108] sm:$0xff] }
 0x3e0   :  { %v4088_v23 = vadd.f32 %v4087_v57, %v8981_v4  ;;  %v4462_v63 = vpop.f32.mrf.mxu0  ;;  %6748 = vmatprep.mubr.f32.mxu1 %v2277_v36  ;;  %6838 = vmatmul.mubr.msk.f32.gmra.mxu0 %vm5425_vm2, %v5382_v20  ;;  %v2280_v57 = vld [vmem:[#allocation2 + $0x21a] sm:$0xff]  ;;  %v5387_v36 = vld [vmem:[%s10833_s3 + $0x110] sm:$0xff] }
 0x3e1   :  { %v9314_v11 = vadd.f32 %v4462_v63, %v4078_v62  ;;  %v4089_v13 = vpop.f32.mrf.mxu1  ;;  %6840 = vmatprep.mubr.msk.f32.mxu0 %vm5425_vm2, %v5383_v50  ;;  %v2281_v63 = vld [vmem:[#allocation2 + $0x22a] sm:$0xff] }
 0x3e2   :  { %v4464_v49 = vpop.f32.mrf.mxu0 }
 0x3e3   :  { %v4092_v4 = vpop.f32.mrf.mxu1  ;;  %6749 = vmatmul.mubr.f32.gmra.mxu1 %v2278_v16  ;;  %v5388_v16 = vld [vmem:[%s10833_s3 + $0x118] sm:$0xff] }
 0x3e4   :  { %v4093_v31 = vadd.f32 %v4092_v4, %v8983_v26  ;;  %v4467_v62 = vpop.f32.mrf.mxu0  ;;  %6751 = vmatprep.mubr.f32.mxu1 %v2279_v53  ;;  %6841 = vmatmul.mubr.msk.f32.gmra.mxu0 %vm5425_vm2, %v5384_v42  ;;  %v2282_v4 = vld [vmem:[#allocation2 + $0x232] sm:$0xff]  ;;  %v5389_v53 = vld [vmem:[%s10833_s3 + $0x120] sm:$0xff] }
 0x3e5   :  { %v9325_v20 = vadd.f32 %v4467_v62, %v4083_v8  ;;  %v4094_v25 = vpop.f32.mrf.mxu1  ;;  %6843 = vmatprep.mubr.msk.f32.mxu0 %vm5425_vm2, %v5385_v29  ;;  %v2283_v62 = vld [vmem:[#allocation2 + $0x242] sm:$0xff] }
 0x3e6   :  { %v4469_v50 = vpop.f32.mrf.mxu0 }
 0x3e7   :  { %v4097_v26 = vpop.f32.mrf.mxu1  ;;  %6752 = vmatmul.mubr.f32.gmra.mxu1 %v2280_v57  ;;  %v5390_v57 = vld [vmem:[%s10833_s3 + $0x128] sm:$0xff] }
 0x3e8   :  { %v4098_v13 = vadd.f32 %v4097_v26, %v8988_v40  ;;  %v4472_v8 = vpop.f32.mrf.mxu0  ;;  %6754 = vmatprep.mubr.f32.mxu1 %v2281_v63  ;;  %6844 = vmatmul.mubr.msk.f32.gmra.mxu0 %vm5425_vm2, %v5386_v7  ;;  %v2284_v26 = vld [vmem:[#allocation2 + $0x24a] sm:$0xff] }
 0x3e9   :  { %v9336_v42 = vadd.f32 %v4472_v8, %v4088_v23  ;;  %v4099_v49 = vpop.f32.mrf.mxu1  ;;  %6846 = vmatprep.mubr.msk.f32.mxu0 %vm5425_vm2, %v5387_v36  ;;  %v5391_v63 = vld [vmem:[%s10833_s3 + $0x130] sm:$0xff]  ;;  %v2285_v8 = vld [vmem:[#allocation2 + $0x25a] sm:$0xff] }
 0x3ea   :  { %v4474_v29 = vpop.f32.mrf.mxu0 }
 0x3eb   :  { %v4102_v40 = vpop.f32.mrf.mxu1  ;;  %6755 = vmatmul.mubr.f32.gmra.mxu1 %v2282_v4  ;;  %v5392_v4 = vld [vmem:[%s10833_s3 + $0x138] sm:$0xff] }
 0x3ec   :  { %v4103_v25 = vadd.f32 %v4102_v40, %v8990_v46  ;;  %v4477_v23 = vpop.f32.mrf.mxu0  ;;  %6757 = vmatprep.mubr.f32.mxu1 %v2283_v62  ;;  %6847 = vmatmul.mubr.msk.f32.gmra.mxu0 %vm5425_vm2, %v5388_v16  ;;  %v2286_v40 = vld [vmem:[#allocation2 + $0x262] sm:$0xff] }
 0x3ed   :  { %v9347_v7 = vadd.f32 %v4477_v23, %v4093_v31  ;;  %v4104_v50 = vpop.f32.mrf.mxu1  ;;  %6849 = vmatprep.mubr.msk.f32.mxu0 %vm5425_vm2, %v5389_v53  ;;  %v5393_v62 = vld [vmem:[%s10833_s3 + $0x140] sm:$0xff]  ;;  %v2287_v23 = vld [vmem:[#allocation2 + $0x272] sm:$0xff] }
 0x3ee   :  { %v4479_v36 = vpop.f32.mrf.mxu0 }
 0x3ef   :  { %v4107_v46 = vpop.f32.mrf.mxu1  ;;  %6758 = vmatmul.mubr.f32.gmra.mxu1 %v2284_v26  ;;  %v5394_v26 = vld [vmem:[%s10833_s3 + $0x148] sm:$0xff] }
 0x3f0   :  { %v4108_v49 = vadd.f32 %v4107_v46, %v8992_v34  ;;  %v4482_v31 = vpop.f32.mrf.mxu0  ;;  %6760 = vmatprep.mubr.f32.mxu1 %v2285_v8  ;;  %6850 = vmatmul.mubr.msk.f32.gmra.mxu0 %vm5425_vm2, %v5390_v57  ;;  %v2288_v46 = vld [vmem:[#allocation2 + $0x27a] sm:$0xff]  ;;  %v5395_v8 = vld [vmem:[%s10833_s3 + $0x150] sm:$0xff] }
 0x3f1   :  { %v9358_v16 = vadd.f32 %v4482_v31, %v4098_v13  ;;  %v4109_v29 = vpop.f32.mrf.mxu1  ;;  %6852 = vmatprep.mubr.msk.f32.mxu0 %vm5425_vm2, %v5391_v63  ;;  %v2289_v31 = vld [vmem:[#allocation2 + $0x28a] sm:$0xff] }
 0x3f2   :  { %v4484_v53 = vpop.f32.mrf.mxu0 }
 0x3f3   :  { %v4112_v34 = vpop.f32.mrf.mxu1  ;;  %6761 = vmatmul.mubr.f32.gmra.mxu1 %v2286_v40  ;;  %v5396_v40 = vld [vmem:[%s10833_s3 + $0x158] sm:$0xff] }
 0x3f4   :  { %v4113_v50 = vadd.f32 %v4112_v34, %v8994_v33  ;;  %v4487_v13 = vpop.f32.mrf.mxu0  ;;  %6763 = vmatprep.mubr.f32.mxu1 %v2287_v23  ;;  %6853 = vmatmul.mubr.msk.f32.gmra.mxu0 %vm5425_vm2, %v5392_v4  ;;  %v2290_v34 = vld [vmem:[#allocation2 + $0x292] sm:$0xff]  ;;  %v5397_v23 = vld [vmem:[%s10833_s3 + $0x160] sm:$0xff] }
 0x3f5   :  { %v9369_v57 = vadd.f32 %v4487_v13, %v4103_v25  ;;  %v4114_v36 = vpop.f32.mrf.mxu1  ;;  %6855 = vmatprep.mubr.msk.f32.mxu0 %vm5425_vm2, %v5393_v62 }
 0x3f6   :  { %v4489_v63 = vpop.f32.mrf.mxu0 }
 0x3f7   :  { %v4117_v33 = vpop.f32.mrf.mxu1  ;;  %6764 = vmatmul.mubr.f32.gmra.mxu1 %v2288_v46  ;;  %v5398_v46 = vld [vmem:[%s10833_s3 + $0x168] sm:$0xff] }
 0x3f8   :  { %v4118_v29 = vadd.f32 %v4117_v33, %v8999_v14  ;;  %v4492_v25 = vpop.f32.mrf.mxu0  ;;  %6766 = vmatprep.mubr.f32.mxu1 %v2289_v31  ;;  %6856 = vmatmul.mubr.msk.f32.gmra.mxu0 %vm5425_vm2, %v5394_v26  ;;  %v5399_v33 = vld [vmem:[%s10833_s3 + $0x170] sm:$0xff] }
 0x3f9   :  { %v9380_v4 = vadd.f32 %v4492_v25, %v4108_v49  ;;  %v4119_v53 = vpop.f32.mrf.mxu1  ;;  %6858 = vmatprep.mubr.msk.f32.mxu0 %vm5425_vm2, %v5395_v8  ;;  %v6912_v49 = vld [vmem:[#allocation2 + $0x2a2] sm:$0xff]  ;;  %v6913_v31 = vld [vmem:[#allocation2 + $0x2aa] sm:$0xff] }
 0x3fa   :  { %v4494_v62 = vpop.f32.mrf.mxu0 }
 0x3fb   :  { %v4122_v14 = vpop.f32.mrf.mxu1  ;;  %6767 = vmatmul.mubr.f32.gmra.mxu1 %v2290_v34  ;;  %v5400_v62 = vld [vmem:[%s10833_s3 + $0x178] sm:$0xff] }
 0x3fc   :  { %v4123_v13 = vadd.f32 %v4122_v14, %v9001_v38  ;;  %v4497_v36 = vpop.f32.mrf.mxu0  ;;  %6769 = vmatprep.mubr.f32.mxu1 %v6912_v49  ;;  %6859 = vmatmul.mubr.msk.f32.gmra.mxu0 %vm5425_vm2, %v5396_v40  ;;  %v5402_v49 = vld [vmem:[%s10833_s3 + $0x188] sm:$0xff] }
 0x3fd   :  { %v9391_v26 = vadd.f32 %v4497_v36, %v4113_v50  ;;  %v4124_v63 = vpop.f32.mrf.mxu1  ;;  %6861 = vmatprep.mubr.msk.f32.mxu0 %vm5425_vm2, %v5397_v23  ;;  %v5401_v23 = vld [vmem:[%s10833_s3 + $0x180] sm:$0xff] }
 0x3fe   :  { %v4499_v8 = vpop.f32.mrf.mxu0 }
 0x3ff   :  { %v4127_v38 = vpop.f32.mrf.mxu1  ;;  %6770 = vmatmul.mubr.f32.gmra.mxu1 %v6913_v31 }
 0x400   :  { %v4128_v25 = vadd.f32 %v4127_v38, %v9003_v12  ;;  %v4502_v53 = vpop.f32.mrf.mxu0  ;;  %6772 = vmatprep.mubr.f32.mxu1 %v9065_v37  ;;  %6862 = vmatmul.mubr.msk.f32.gmra.mxu0 %vm5425_vm2, %v5398_v46 }
 0x401   :  { %v9403_v50 = vadd.f32 %v4502_v53, %v4118_v29  ;;  %v4129_v40 = vpop.f32.mrf.mxu1  ;;  %6864 = vmatprep.mubr.msk.f32.mxu0 %vm5425_vm2, %v5399_v33  ;;  %v5404_v33 = vld [vmem:[%s10833_s3 + $0x198] sm:$0xff] }
 0x402   :  { %v4504_v34 = vpop.f32.mrf.mxu0  ;;  %v5406_v40 = vld [vmem:[%s10833_s3 + $0x1a8] sm:$0xff] }
 0x403   :  { %v4132_v12 = vpop.f32.mrf.mxu1  ;;  %6773 = vmatmul.mubr.f32.gmra.mxu1 %v9071_v44  ;;  %v5403_v44 = vld [vmem:[%s10833_s3 + $0x190] sm:$0xff] }
 0x404   :  { %v4133_v37 = vadd.f32 %v4132_v12, %v9005_v58  ;;  %v4507_v14 = vpop.f32.mrf.mxu0  ;;  %6775 = vmatprep.mubr.f32.mxu1 %v9077_v56  ;;  %6865 = vmatmul.mubr.msk.f32.gmra.mxu0 %vm5425_vm2, %v5400_v62 }
 0x405   :  { %v9416_v29 = vadd.f32 %v4507_v14, %v4123_v13  ;;  %v4134_v36 = vpop.f32.mrf.mxu1  ;;  %6867 = vmatprep.mubr.msk.f32.mxu0 %vm5425_vm2, %v5401_v23  ;;  %v5408_v14 = vld [vmem:[%s10833_s3 + $0x1b8] sm:$0xff] }
 0x406   :  { %v4509_v63 = vpop.f32.mrf.mxu0 }
 0x407   :  { %v4137_v58 = vpop.f32.mrf.mxu1  ;;  %6776 = vmatmul.mubr.f32.gmra.mxu1 %v9083_v6  ;;  %v5405_v6 = vld [vmem:[%s10833_s3 + $0x1a0] sm:$0xff] }
 0x408   :  { %v4138_v56 = vadd.f32 %v4137_v58, %v9010_v41  ;;  %v4512_v46 = vpop.f32.mrf.mxu0  ;;  %6778 = vmatprep.mubr.f32.mxu1 %v9089_v1  ;;  %6868 = vmatmul.mubr.msk.f32.gmra.mxu0 %vm5425_vm2, %v5402_v49 }
 0x409   :  { %v9429_v13 = vadd.f32 %v4512_v46, %v4128_v25  ;;  %v4139_v8 = vpop.f32.mrf.mxu1  ;;  %6870 = vmatprep.mubr.msk.f32.mxu0 %vm5425_vm2, %v5403_v44  ;;  %v2305_v46 = vld [vmem:[#allocation2 + $0x34a] sm:$0xff] }
 0x40a   :  { %v4514_v38 = vpop.f32.mrf.mxu0  ;;  %v5410_v8 = vld [vmem:[%s10833_s3 + $0x1c8] sm:$0xff] }
 0x40b   :  { %v4142_v41 = vpop.f32.mrf.mxu1  ;;  %6779 = vmatmul.mubr.f32.gmra.mxu1 %v9095_v60  ;;  %v5407_v60 = vld [vmem:[%s10833_s3 + $0x1b0] sm:$0xff] }
 0x40c   :  { %v4143_v1 = vadd.f32 %v4142_v41, %v9012_v54  ;;  %v4517_v31 = vpop.f32.mrf.mxu0  ;;  %6781 = vmatprep.mubr.f32.mxu1 %v9101_v10  ;;  %6871 = vmatmul.mubr.msk.f32.gmra.mxu0 %vm5425_vm2, %v5404_v33  ;;  %v11214_v10 = vld [vmem:[#allocation14_spill] sm:$0xff] }
 0x40d   :  { %v9442_v25 = vadd.f32 %v4517_v31, %v4133_v37  ;;  %v4144_v53 = vpop.f32.mrf.mxu1  ;;  %6873 = vmatprep.mubr.msk.f32.mxu0 %vm5425_vm2, %v5405_v6 }
 0x40e   :  { %v4519_v62 = vpop.f32.mrf.mxu0 }
 0x40f   :  { %v4147_v54 = vpop.f32.mrf.mxu1  ;;  %6782 = vmatmul.mubr.f32.gmra.mxu1 %v9107_v51  ;;  %v5409_v51 = vld [vmem:[%s10833_s3 + $0x1c0] sm:$0xff] }
 0x410   :  { %v4148_v34 = vadd.f32 %v4147_v54, %v11214_v10  ;;  %v4522_v23 = vpop.f32.mrf.mxu0  ;;  %6784 = vmatprep.mubr.f32.mxu1 %v9113_v27  ;;  %6874 = vmatmul.mubr.msk.f32.gmra.mxu0 %vm5425_vm2, %v5406_v40  ;;  %v11215_v27 = vld [vmem:[#allocation13_spill] sm:$0xff]  ;;  %v5412_v40 = vld [vmem:[%s10833_s3 + $0x1d8] sm:$0xff] }
 0x411   :  { %v9455_v12 = vadd.f32 %v4522_v23, %v4138_v56  ;;  %v4149_v37 = vpop.f32.mrf.mxu1  ;;  %6876 = vmatprep.mubr.msk.f32.mxu0 %vm5425_vm2, %v5407_v60  ;;  %v11217_v54 = vld [vmem:[#allocation18_spill] sm:$0xff] }
 0x412   :  { %v4524_v36 = vpop.f32.mrf.mxu0 }
 0x413   :  { %v4152_v49 = vpop.f32.mrf.mxu1  ;;  %6785 = vmatmul.mubr.f32.gmra.mxu1 %v9119_v17  ;;  %v5411_v17 = vld [vmem:[%s10833_s3 + $0x1d0] sm:$0xff] }
 0x414   :  { %v4153_v63 = vadd.f32 %v4152_v49, %v11215_v27  ;;  %v4527_v44 = vpop.f32.mrf.mxu0  ;;  %6787 = vmatprep.mubr.f32.mxu1 %v9125_v59  ;;  %6877 = vmatmul.mubr.msk.f32.gmra.mxu0 %vm5425_vm2, %v5408_v14  ;;  %v11216_v59 = vld [vmem:[#allocation16_spill] sm:$0xff]  ;;  %v11218_v27 = vld [vmem:[#allocation17_spill] sm:$0xff] }
 0x415   :  { %v9468_v58 = vadd.f32 %v4527_v44, %v4143_v1  ;;  %v4154_v56 = vpop.f32.mrf.mxu1  ;;  %6879 = vmatprep.mubr.msk.f32.mxu0 %vm5425_vm2, %v5409_v51  ;;  %v2306_v1 = vld [vmem:[#allocation2 + $0x352] sm:$0xff]  ;;  %v5414_v14 = vld [vmem:[%s10833_s3 + $0x1e8] sm:$0xff] }
 0x416   :  { %v4529_v33 = vpop.f32.mrf.mxu0  ;;  %v5415_v51 = vld [vmem:[%s10833_s3 + $0x1f0] sm:$0xff] }
 0x417   :  { %v4157_v38 = vpop.f32.mrf.mxu1  ;;  %6788 = vmatmul.mubr.f32.gmra.mxu1 %v9131_v45  ;;  %v5413_v45 = vld [vmem:[%s10833_s3 + $0x1e0] sm:$0xff] }
 0x418   :  { %v4158_v6 = vadd.f32 %v4157_v38, %v11216_v59  ;;  %v4532_v41 = vpop.f32.mrf.mxu0  ;;  %6790 = vmatprep.mubr.f32.mxu1 %v2305_v46  ;;  %6880 = vmatmul.mubr.msk.f32.gmra.mxu0 %vm5425_vm2, %v5410_v8  ;;  %v5416_v8 = vld [vmem:[%s10833_s3 + $0x1f8] sm:$0xff]  ;;  %v11219_v38 = vld [vmem:[#allocation20_spill] sm:$0xff] }
 0x419   :  { %v9480_v31 = vadd.f32 %v4532_v41, %v4148_v34  ;;  %v4159_v53 = vpop.f32.mrf.mxu1  ;;  %6882 = vmatprep.mubr.msk.f32.mxu0 %vm5425_vm2, %v5411_v17 }
 0x41a   :  { %v4534_v62 = vpop.f32.mrf.mxu0 }
 0x41b   :  { %v4162_v60 = vpop.f32.mrf.mxu1  ;;  %6791 = vmatmul.mubr.f32.gmra.mxu1 %v2306_v1  ;;  %v11220_v62 = vld [vmem:[#allocation19_spill] sm:$0xff] }
 0x41c   :  { %v4163_v10 = vadd.f32 %v4162_v60, %v11217_v54  ;;  %v4537_v23 = vpop.f32.mrf.mxu0  ;;  %6883 = vmatmul.mubr.msk.f32.gmra.mxu0 %vm5425_vm2, %v5412_v40 }
 0x41d   :  { %v9491_v34 = vadd.f32 %v4537_v23, %v4153_v63  ;;  %v4164_v37 = vpop.f32.mrf.mxu1  ;;  %6885 = vmatprep.mubr.msk.f32.mxu0 %vm5425_vm2, %v5413_v45 }
 0x41e   :  { %v4539_v36 = vpop.f32.mrf.mxu0 }
 0x41f   :  { %v4167_v49 = vpop.f32.mrf.mxu1  ;;  %v11221_v36 = vld [vmem:[#allocation22_spill] sm:$0xff] }
 0x420   :  { %v4168_v44 = vadd.f32 %v4167_v49, %v11218_v27  ;;  %v4542_v56 = vpop.f32.mrf.mxu0  ;;  %6886 = vmatmul.mubr.msk.f32.gmra.mxu0 %vm5425_vm2, %v5414_v14 }
 0x421   :  { %v9502_v63 = vadd.f32 %v4542_v56, %v4158_v6  ;;  %v4169_v46 = vpop.f32.mrf.mxu1  ;;  %6888 = vmatprep.mubr.msk.f32.mxu0 %vm5425_vm2, %v5415_v51 }
 0x422   :  { %v4544_v33 = vpop.f32.mrf.mxu0 }
 0x423   :  { %v4172_v17 = vpop.f32.mrf.mxu1 }
 0x424   :  { %v4173_v59 = vadd.f32 %v4172_v17, %v11219_v38  ;;  %v4547_v41 = vpop.f32.mrf.mxu0  ;;  %6889 = vmatmul.mubr.msk.f32.gmra.mxu0 %vm5425_vm2, %v5416_v8  ;;  %v11222_v8 = vld [vmem:[#allocation21_spill] sm:$0xff] }
 0x425   :  { %v9510_v1 = vadd.f32 %v4547_v41, %v4163_v10  ;;  %v4174_v53 = vpop.f32.mrf.mxu1 }
 0x426   :  { %v4549_v40 = vpop.f32.mrf.mxu0 }
 0x427   :  { %v4177_v6 = vpop.f32.mrf.mxu1  ;;  %v11224_v40 = vld [vmem:[#allocation23_spill] sm:$0xff] }
 0x428   :  { %v4178_v45 = vadd.f32 %v4177_v6, %v11220_v62  ;;  %v4552_v60 = vpop.f32.mrf.mxu0 }
 0x429   :  { %v9513_v54 = vadd.f32 %v4552_v60, %v4168_v44  ;;  %v4179_v23 = vpop.f32.mrf.mxu1 }
 0x42a   :  { %v4554_v37 = vpop.f32.mrf.mxu0 }
 0x42b   :  { %v4182_v14 = vpop.f32.mrf.mxu1 }
 0x42c   :  { %v4183_v51 = vadd.f32 %v4182_v14, %v11221_v36  ;;  %v4557_v49 = vpop.f32.mrf.mxu0  ;;  %v11225_v14 = vld [vmem:[#allocation26_spill] sm:$0xff] }
 0x42d   :  { %v9516_v27 = vadd.f32 %v4557_v49, %v4173_v59  ;;  %v4184_v56 = vpop.f32.mrf.mxu1 }
 0x42e   :  { %v4559_v46 = vpop.f32.mrf.mxu0 }
 0x42f   :  { %v4187_v10 = vpop.f32.mrf.mxu1 }
 0x430   :  { %v4188_v33 = vadd.f32 %v4187_v10, %v11222_v8  ;;  %v4562_v17 = vpop.f32.mrf.mxu0  ;;  %v11227_v8 = vld [vmem:[#allocation7_spill] sm:$0xff] }
 0x431   :  { %v9519_v38 = vadd.f32 %v4562_v17, %v4178_v45  ;;  %v4189_v41 = vpop.f32.mrf.mxu1 }
 0x432   :  { %v4564_v53 = vpop.f32.mrf.mxu0 }
 0x433   :  { %11223 = vst [vmem:[#allocation14_spill] sm:$0xff] %v9519_v38  ;;  %v4192_v44 = vpop.f32.mrf.mxu1 }
 0x434   :  { %v4193_v6 = vadd.f32 %v4192_v44, %v11224_v40  ;;  %v4567_v62 = vpop.f32.mrf.mxu0 }
 0x435   :  { %v9522_v60 = vadd.f32 %v4567_v62, %v4183_v51  ;;  %v4194_v23 = vpop.f32.mrf.mxu1  ;;  %v11229_v62 = vld [vmem:[#allocation8_spill] sm:$0xff] }
 0x436   :  { %v4569_v37 = vpop.f32.mrf.mxu0 }
 0x437   :  { %v4197_v59 = vpop.f32.mrf.mxu1 }
 0x438   :  { %v4198_v36 = vadd.f32 %v4197_v59, %v11225_v14  ;;  %v4572_v49 = vpop.f32.mrf.mxu0 }
 0x439   :  { %v9525_v56 = vadd.f32 %v4572_v49, %v4188_v33  ;;  %v4199_v46 = vpop.f32.mrf.mxu1  ;;  %v11231_v49 = vld [vmem:[#allocation10_spill] sm:$0xff] }
 0x43a   :  { %v4574_v10 = vpop.f32.mrf.mxu0 }
 0x43b   :  { %11226 = vst [vmem:[#allocation13_spill] sm:$0xff] %v9525_v56  ;;  %v4202_v45 = vpop.f32.mrf.mxu1 }
 0x43c   :  { %v4203_v17 = vadd.f32 %v4202_v45, %v11227_v8  ;;  %v4577_v41 = vpop.f32.mrf.mxu0 }
 0x43d   :  { %v9528_v53 = vadd.f32 %v4577_v41, %v4193_v6  ;;  %v4204_v44 = vpop.f32.mrf.mxu1  ;;  %v11233_v41 = vld [vmem:[#allocation9_spill] sm:$0xff] }
 0x43e   :  { %v4579_v40 = vpop.f32.mrf.mxu0 }
 0x43f   :  { %11228 = vst [vmem:[#allocation16_spill] sm:$0xff] %v9528_v53  ;;  %v4207_v51 = vpop.f32.mrf.mxu1 }
 0x440   :  { %v4208_v23 = vadd.f32 %v4207_v51, %v11229_v62  ;;  %v4582_v37 = vpop.f32.mrf.mxu0 }
 0x441   :  { %v9531_v38 = vadd.f32 %v4582_v37, %v4198_v36  ;;  %v4209_v59 = vpop.f32.mrf.mxu1  ;;  %v11234_v37 = vld [vmem:[#allocation12_spill] sm:$0xff] }
 0x442   :  { %v4584_v14 = vpop.f32.mrf.mxu0 }
 0x443   :  { %11230 = vst [vmem:[#allocation18_spill] sm:$0xff] %v9531_v38  ;;  %v4212_v33 = vpop.f32.mrf.mxu1 }
 0x444   :  { %v4213_v46 = vadd.f32 %v4212_v33, %v11231_v49  ;;  %v4587_v10 = vpop.f32.mrf.mxu0 }
 0x445   :  { %v9534_v56 = vadd.f32 %v4587_v10, %v4203_v17  ;;  %v4214_v45 = vpop.f32.mrf.mxu1  ;;  %v11235_v10 = vld [vmem:[#allocation11_spill] sm:$0xff] }
 0x446   :  { %v4589_v8 = vpop.f32.mrf.mxu0 }
 0x447   :  { %11232 = vst [vmem:[#allocation17_spill] sm:$0xff] %v9534_v56  ;;  %v4217_v6 = vpop.f32.mrf.mxu1 }
 0x448   :  { %v4218_v44 = vadd.f32 %v4217_v6, %v11233_v41  ;;  %v4592_v40 = vpop.f32.mrf.mxu0 }
 0x449   :  { %v9537_v53 = vadd.f32 %v4592_v40, %v4208_v23  ;;  %v4219_v51 = vpop.f32.mrf.mxu1 }
 0x44a   :  { %v4594_v62 = vpop.f32.mrf.mxu0 }
 0x44b   :  { %v4222_v36 = vpop.f32.mrf.mxu1 }
 0x44c   :  { %v4223_v59 = vadd.f32 %v4222_v36, %v11234_v37  ;;  %v4597_v14 = vpop.f32.mrf.mxu0 }
 0x44d   :  { %v9540_v38 = vadd.f32 %v4597_v14, %v4213_v46  ;;  %v4224_v33 = vpop.f32.mrf.mxu1 }
 0x44e   :  { %v4599_v49 = vpop.f32.mrf.mxu0 }
 0x44f   :  { %v4227_v17 = vpop.f32.mrf.mxu1 }
 0x450   :  { %v4228_v45 = vadd.f32 %v4227_v17, %v11235_v10  ;;  %v4602_v8 = vpop.f32.mrf.mxu0 }
 0x451   :  { %v9543_v56 = vadd.f32 %v4602_v8, %v4218_v44  ;;  %v4229_v6 = vpop.f32.mrf.mxu1 }
 0x452   :  { %v4604_v41 = vpop.f32.mrf.mxu0 }
 0x453   :  { %v4232_v23 = vpop.f32.mrf.mxu1 }
 0x454   :  { %v4233_v40 = vadd.f32 %v4232_v23, %v9052_v47  ;;  %v4607_v51 = vpop.f32.mrf.mxu0 }
 0x455   :  { %v9546_v62 = vadd.f32 %v4607_v51, %v4223_v59  ;;  %v4234_v36 = vpop.f32.mrf.mxu1 }
 0x456   :  { %v4609_v37 = vpop.f32.mrf.mxu0 }
 0x457   :  { %v4237_v46 = vpop.f32.mrf.mxu1 }
 0x458   :  { %v4238_v14 = vadd.f32 %v4237_v46, %v9056_v3  ;;  %v4612_v33 = vpop.f32.mrf.mxu0 }
 0x459   :  { %v9549_v49 = vadd.f32 %v4612_v33, %v4228_v45  ;;  %v4239_v17 = vpop.f32.mrf.mxu1 }
 0x45a   :  { %v4614_v10 = vpop.f32.mrf.mxu0 }
 0x45b   :  { %v4242_v44 = vpop.f32.mrf.mxu1 }
 0x45c   :  { %v4243_v8 = vadd.f32 %v4242_v44, %v9060_v21  ;;  %v4617_v6 = vpop.f32.mrf.mxu0 }
 0x45d   :  { %v9552_v41 = vadd.f32 %v4617_v6, %v4233_v40  ;;  %v4244_v47 = vpop.f32.mrf.mxu1 }
 0x45e   :  { %v4619_v23 = vpop.f32.mrf.mxu0  ;;  %v11241_v47 = vld [vmem:[#allocation15_spill] sm:$0xff] }
 0x45f   :  { %v6699_v59 = vpop.f32.mrf.mxu1 }
 0x460   :  { %v4622_v51 = vpop.f32.mrf.mxu0  ;;  %v9557_v3 = vadd.f32 %v6699_v59, %v9069_v52  ;;  %v11239_v52 = vld [vmem:[#allocation24_spill] sm:$0xff] }
 0x461   :  { %v9554_v36 = vadd.f32 %v4622_v51, %v4238_v14  ;;  %v4697_v37 = vpop.f32.mrf.mxu1 }
 0x462   :  { %11237 = vst [vmem:[#allocation19_spill] sm:$0xff] %v9557_v3  ;;  %v4624_v45 = vpop.f32.mrf.mxu0  ;;  %v9560_v46 = vadd.f32 %v4697_v37, %v9063_v55  ;;  %v5087_v14 = vmul.f32 %v9557_v3, %v9557_v3 }
 0x463   :  { %11236 = vst [vmem:[#allocation20_spill] sm:$0xff] %v9554_v36  ;;  %v6702_v33 = vpop.f32.mrf.mxu1 }
 0x464   :  { %11238 = vst [vmem:[#allocation22_spill] sm:$0xff] %v9560_v46  ;;  %v5086_v21 = vmul.f32 %v9560_v46, %v9560_v46  ;;  %v4627_v40 = vpop.f32.mrf.mxu0  ;;  %v5016_v44 = vadd.f32 %v9557_v3, %v9560_v46  ;;  %v9571_v6 = vadd.f32 %v6702_v33, %v11239_v52 }
 0x465   :  { %v9564_v17 = vadd.f32 %v4627_v40, %v4243_v8  ;;  %v4707_v10 = vpop.f32.mrf.mxu1  ;;  %v11244_v40 = vld [vmem:[#allocation28_spill] sm:$0xff] }
 0x466   :  { %11240 = vst [vmem:[#allocation21_spill] sm:$0xff] %v9571_v6  ;;  %v9574_v55 = vadd.f32 %v4707_v10, %v11241_v47  ;;  %v4629_v23 = vpop.f32.mrf.mxu0  ;;  %v5150_v51 = vadd.f32 %v5087_v14, %v5086_v21  ;;  %v5089_v33 = vmul.f32 %v9571_v6, %v9571_v6  ;;  %v11246_v47 = vld [vmem:[#allocation25_spill] sm:$0xff] }
 0x467   :  { %v6705_v59 = vpop.f32.mrf.mxu1 }
 0x468   :  { %11242 = vst [vmem:[#allocation23_spill] sm:$0xff] %v9574_v55  ;;  %v5017_v37 = vadd.f32 %v5016_v44, %v9574_v55  ;;  %v5088_v8 = vmul.f32 %v9574_v55, %v9574_v55  ;;  %v9579_v45 = vpop.f32.mrf.mxu0  ;;  %v9582_v36 = vadd.f32 %v6705_v59, %v11244_v40 }
 0x469   :  { %11243 = vst [vmem:[#allocation26_spill] sm:$0xff] %v9579_v45  ;;  %v4717_v3 = vpop.f32.mrf.mxu1 }
 0x46a   :  { %11245 = vst [vmem:[#allocation7_spill] sm:$0xff] %v9582_v36  ;;  %v5018_v10 = vadd.f32 %v5017_v37, %v9571_v6  ;;  %v5151_v52 = vadd.f32 %v5150_v51, %v5088_v8  ;;  %v9588_v23 = vadd.f32 %v4717_v3, %v11246_v47  ;;  %v9590_v21 = vpop.f32.mrf.mxu0  ;;  %v5091_v46 = vmul.f32 %v9582_v36, %v9582_v36  ;;  %v11250_v51 = vld [vmem:[#allocation29_spill] sm:$0xff]  ;;  %v11252_v3 = vld [vmem:[#allocation27_spill] sm:$0xff] }
 0x46b   :  { %11248 = vst [vmem:[#allocation10_spill] sm:$0xff] %v9590_v21  ;;  %v6708_v14 = vpop.f32.mrf.mxu1 }
 0x46c   :  { %11247 = vst [vmem:[#allocation8_spill] sm:$0xff] %v9588_v23  ;;  %v5152_v44 = vadd.f32 %v5151_v52, %v5089_v33  ;;  %v5019_v55 = vadd.f32 %v5018_v10, %v9588_v23  ;;  %v5090_v59 = vmul.f32 %v9588_v23, %v9588_v23  ;;  %v9595_v40 = vpop.f32.mrf.mxu0  ;;  %v9600_v8 = vadd.f32 %v6708_v14, %v11250_v51 }
 0x46d   :  { %11249 = vst [vmem:[#allocation9_spill] sm:$0xff] %v9595_v40  ;;  %v4727_v45 = vpop.f32.mrf.mxu1 }
 0x46e   :  { %v5153_v37 = vadd.f32 %v5152_v44, %v5090_v59  ;;  %11251 = vst [vmem:[#allocation12_spill] sm:$0xff] %v9600_v8  ;;  %v9603_v47 = vadd.f32 %v4727_v45, %v11252_v3  ;;  %v5020_v33 = vadd.f32 %v5019_v55, %v9582_v36  ;;  %v9606_v52 = vpop.f32.mrf.mxu0  ;;  %v11256_v44 = vld [vmem:[#allocation31_spill] sm:$0xff]  ;;  %v5093_v45 = vmul.f32 %v9600_v8, %v9600_v8  ;;  %v11258_v55 = vld [vmem:[#allocation30_spill] sm:$0xff] }
 0x46f   :  { %11254 = vst [vmem:[#allocation24_spill] sm:$0xff] %v9606_v52  ;;  %v6711_v10 = vpop.f32.mrf.mxu1 }
 0x470   :  { %11253 = vst [vmem:[#allocation11_spill] sm:$0xff] %v9603_v47  ;;  %v5021_v23 = vadd.f32 %v5020_v33, %v9603_v47  ;;  %v5092_v6 = vmul.f32 %v9603_v47, %v9603_v47  ;;  %v5154_v40 = vadd.f32 %v5153_v37, %v5091_v46  ;;  %v9611_v21 = vpop.f32.mrf.mxu0  ;;  %v9614_v59 = vadd.f32 %v6711_v10, %v11256_v44 }
 0x471   :  { %11255 = vst [vmem:[#allocation15_spill] sm:$0xff] %v9611_v21  ;;  %v4737_v14 = vpop.f32.mrf.mxu1 }
 0x472   :  { %11257 = vst [vmem:[#allocation28_spill] sm:$0xff] %v9614_v59  ;;  %v5155_v51 = vadd.f32 %v5154_v40, %v5092_v6  ;;  %v9619_v3 = vadd.f32 %v4737_v14, %v11258_v55  ;;  %v5022_v36 = vadd.f32 %v5021_v23, %v9600_v8  ;;  %v9622_v33 = vpop.f32.mrf.mxu0  ;;  %v5095_v47 = vmul.f32 %v9614_v59, %v9614_v59  ;;  %v11262_v14 = vld [vmem:[#allocation33_spill] sm:$0xff]  ;;  %v11264_v23 = vld [vmem:[#allocation32_spill] sm:$0xff] }
 0x473   :  { %11260 = vst [vmem:[#allocation29_spill] sm:$0xff] %v9622_v33  ;;  %v6714_v52 = vpop.f32.mrf.mxu1 }
 0x474   :  { %11259 = vst [vmem:[#allocation25_spill] sm:$0xff] %v9619_v3  ;;  %v5023_v46 = vadd.f32 %v5022_v36, %v9619_v3  ;;  %v5094_v37 = vmul.f32 %v9619_v3, %v9619_v3  ;;  %v5156_v10 = vadd.f32 %v5155_v51, %v5093_v45  ;;  %v9627_v44 = vpop.f32.mrf.mxu0  ;;  %v9632_v55 = vadd.f32 %v6714_v52, %v11262_v14 }
 0x475   :  { %11261 = vst [vmem:[#allocation27_spill] sm:$0xff] %v9627_v44  ;;  %v4747_v6 = vpop.f32.mrf.mxu1 }
 0x476   :  { %v5157_v40 = vadd.f32 %v5156_v10, %v5094_v37  ;;  %11263 = vst [vmem:[#allocation31_spill] sm:$0xff] %v9632_v55  ;;  %v9635_v8 = vadd.f32 %v4747_v6, %v11264_v23  ;;  %v5024_v33 = vadd.f32 %v5023_v46, %v9614_v59  ;;  %v9638_v36 = vpop.f32.mrf.mxu0  ;;  %v5097_v10 = vmul.f32 %v9632_v55, %v9632_v55  ;;  %v11267_v46 = vld [vmem:[#allocation34_spill] sm:$0xff] }
 0x477   :  { %v6717_v21 = vpop.f32.mrf.mxu1 }
 0x478   :  { %11265 = vst [vmem:[#allocation30_spill] sm:$0xff] %v9635_v8  ;;  %v5025_v45 = vadd.f32 %v5024_v33, %v9635_v8  ;;  %v5096_v51 = vmul.f32 %v9635_v8, %v9635_v8  ;;  %v5158_v3 = vadd.f32 %v5157_v40, %v5095_v47  ;;  %v9643_v44 = vpop.f32.mrf.mxu0  ;;  %v9646_v37 = vadd.f32 %v6717_v21, %v9138_v2 }
 0x479   :  { %v4757_v52 = vpop.f32.mrf.mxu1 }
 0x47a   :  { %11266 = vst [vmem:[#allocation33_spill] sm:$0xff] %v9646_v37  ;;  %v5159_v6 = vadd.f32 %v5158_v3, %v5096_v51  ;;  %v9651_v14 = vadd.f32 %v4757_v52, %v11267_v46  ;;  %v5026_v23 = vadd.f32 %v5025_v45, %v9632_v55  ;;  %v9654_v33 = vpop.f32.mrf.mxu0  ;;  %v5099_v8 = vmul.f32 %v9646_v37, %v9646_v37 }
 0x47b   :  { %v6720_v59 = vpop.f32.mrf.mxu1 }
 0x47c   :  { %11268 = vst [vmem:[#allocation32_spill] sm:$0xff] %v9651_v14  ;;  %v5027_v47 = vadd.f32 %v5026_v23, %v9651_v14  ;;  %v5098_v40 = vmul.f32 %v9651_v14, %v9651_v14  ;;  %v5160_v2 = vadd.f32 %v5159_v6, %v5097_v10  ;;  %v9659_v21 = vpop.f32.mrf.mxu0  ;;  %v9664_v52 = vadd.f32 %v6720_v59, %v9149_v32 }
 0x47d   :  { %11269 = vst [vmem:[#allocation34_spill] sm:$0xff] %v9659_v21  ;;  %v4767_v3 = vpop.f32.mrf.mxu1 }
 0x47e   :  { %v5161_v51 = vadd.f32 %v5160_v2, %v5098_v40  ;;  %11270 = vst [vmem:[#allocation35_spill] sm:$0xff] %v9664_v52  ;;  %v9667_v45 = vadd.f32 %v4767_v3, %v9142_v24  ;;  %v5028_v46 = vadd.f32 %v5027_v47, %v9646_v37  ;;  %v9670_v23 = vpop.f32.mrf.mxu0  ;;  %v5101_v24 = vmul.f32 %v9664_v52, %v9664_v52 }
 0x47f   :  { %v6723_v55 = vpop.f32.mrf.mxu1 }
 0x480   :  { %11271 = vst [vmem:[#allocation36_spill] sm:$0xff] %v9667_v45  ;;  %v5029_v10 = vadd.f32 %v5028_v46, %v9667_v45  ;;  %v5100_v6 = vmul.f32 %v9667_v45, %v9667_v45  ;;  %v5162_v14 = vadd.f32 %v5161_v51, %v5099_v8  ;;  %v9675_v21 = vpop.f32.mrf.mxu0  ;;  %v9678_v40 = vadd.f32 %v6723_v55, %v9171_v0 }
 0x481   :  { %v4777_v32 = vpop.f32.mrf.mxu1 }
 0x482   :  { %11272 = vst [vmem:[#allocation37_spill] sm:$0xff] %v9678_v40  ;;  %v5163_v59 = vadd.f32 %v5162_v14, %v5100_v6  ;;  %v9683_v47 = vadd.f32 %v4777_v32, %v9160_v35  ;;  %v5030_v2 = vadd.f32 %v5029_v10, %v9664_v52  ;;  %v9686_v3 = vpop.f32.mrf.mxu0  ;;  %v5103_v45 = vmul.f32 %v9678_v40, %v9678_v40 }
 0x483   :  { %v6726_v46 = vpop.f32.mrf.mxu1 }
 0x484   :  { %11273 = vst [vmem:[#allocation38_spill] sm:$0xff] %v9683_v47  ;;  %v5031_v8 = vadd.f32 %v5030_v2, %v9683_v47  ;;  %v5102_v51 = vmul.f32 %v9683_v47, %v9683_v47  ;;  %v5164_v0 = vadd.f32 %v5163_v59, %v5101_v24  ;;  %v9691_v55 = vpop.f32.mrf.mxu0  ;;  %v9696_v35 = vadd.f32 %v6726_v46, %v9193_v48 }
 0x485   :  { %v4787_v14 = vpop.f32.mrf.mxu1 }
 0x486   :  { %v5165_v6 = vadd.f32 %v5164_v0, %v5102_v51  ;;  %11274 = vst [vmem:[#allocation39_spill] sm:$0xff] %v9696_v35  ;;  %v9699_v10 = vadd.f32 %v4787_v14, %v9182_v43  ;;  %v5032_v32 = vadd.f32 %v5031_v8, %v9678_v40  ;;  %v9702_v2 = vpop.f32.mrf.mxu0  ;;  %v5105_v43 = vmul.f32 %v9696_v35, %v9696_v35 }
 0x487   :  { %v6729_v52 = vpop.f32.mrf.mxu1 }
 0x488   :  { %11275 = vst [vmem:[#allocation40_spill] sm:$0xff] %v9699_v10  ;;  %v5033_v24 = vadd.f32 %v5032_v32, %v9699_v10  ;;  %v5104_v59 = vmul.f32 %v9699_v10, %v9699_v10  ;;  %v5166_v47 = vadd.f32 %v5165_v6, %v5103_v45  ;;  %v9707_v37 = vpop.f32.mrf.mxu0  ;;  %v9710_v51 = vadd.f32 %v6729_v52, %v9215_v39 }
 0x489   :  { %v4797_v48 = vpop.f32.mrf.mxu1 }
 0x48a   :  { %11276 = vst [vmem:[#allocation41_spill] sm:$0xff] %v9710_v51  ;;  %v5167_v46 = vadd.f32 %v5166_v47, %v5104_v59  ;;  %v9715_v8 = vadd.f32 %v4797_v48, %v9204_v61  ;;  %v5034_v0 = vadd.f32 %v5033_v24, %v9696_v35  ;;  %v9718_v14 = vpop.f32.mrf.mxu0  ;;  %v5107_v10 = vmul.f32 %v9710_v51, %v9710_v51 }
 0x48b   :  { %v6732_v32 = vpop.f32.mrf.mxu1 }
 0x48c   :  { %11277 = vst [vmem:[#allocation42_spill] sm:$0xff] %v9715_v8  ;;  %v5035_v45 = vadd.f32 %v5034_v0, %v9715_v8  ;;  %v5106_v6 = vmul.f32 %v9715_v8, %v9715_v8  ;;  %v5168_v39 = vadd.f32 %v5167_v46, %v5105_v43  ;;  %v9723_v52 = vpop.f32.mrf.mxu0  ;;  %v9728_v61 = vadd.f32 %v6732_v32, %v9237_v28 }
 0x48d   :  { %v4807_v47 = vpop.f32.mrf.mxu1 }
 0x48e   :  { %v5169_v59 = vadd.f32 %v5168_v39, %v5106_v6  ;;  %11278 = vst [vmem:[#allocation43_spill] sm:$0xff] %v9728_v61  ;;  %v9731_v24 = vadd.f32 %v4807_v47, %v9226_v18  ;;  %v5036_v48 = vadd.f32 %v5035_v45, %v9710_v51  ;;  %v9734_v0 = vpop.f32.mrf.mxu0  ;;  %v5109_v18 = vmul.f32 %v9728_v61, %v9728_v61 }
 0x48f   :  { %v6735_v35 = vpop.f32.mrf.mxu1 }
 0x490   :  { %11279 = vst [vmem:[#allocation44_spill] sm:$0xff] %v9731_v24  ;;  %v5037_v43 = vadd.f32 %v5036_v48, %v9731_v24  ;;  %v5108_v46 = vmul.f32 %v9731_v24, %v9731_v24  ;;  %v5170_v8 = vadd.f32 %v5169_v59, %v5107_v10  ;;  %v9739_v40 = vpop.f32.mrf.mxu0  ;;  %v9742_v6 = vadd.f32 %v6735_v35, %v9259_v9 }
 0x491   :  { %v4817_v28 = vpop.f32.mrf.mxu1 }
 0x492   :  { %11280 = vst [vmem:[#allocation45_spill] sm:$0xff] %v9742_v6  ;;  %v5171_v32 = vadd.f32 %v5170_v8, %v5108_v46  ;;  %v9747_v45 = vadd.f32 %v4817_v28, %v9248_v22  ;;  %v5038_v39 = vadd.f32 %v5037_v43, %v9728_v61  ;;  %v9750_v47 = vpop.f32.mrf.mxu0  ;;  %v5111_v24 = vmul.f32 %v9742_v6, %v9742_v6 }
 0x493   :  { %v6738_v48 = vpop.f32.mrf.mxu1 }
 0x494   :  { %11281 = vst [vmem:[#allocation46_spill] sm:$0xff] %v9747_v45  ;;  %v5039_v10 = vadd.f32 %v5038_v39, %v9747_v45  ;;  %v5110_v59 = vmul.f32 %v9747_v45, %v9747_v45  ;;  %v5172_v9 = vadd.f32 %v5171_v32, %v5109_v18  ;;  %v9755_v35 = vpop.f32.mrf.mxu0  ;;  %v9760_v22 = vadd.f32 %v6738_v48, %v9281_v19 }
 0x495   :  { %v4827_v8 = vpop.f32.mrf.mxu1 }
 0x496   :  { %v5173_v46 = vadd.f32 %v5172_v9, %v5110_v59  ;;  %11282 = vst [vmem:[#allocation47_spill] sm:$0xff] %v9760_v22  ;;  %v9763_v43 = vadd.f32 %v4827_v8, %v9270_v15  ;;  %v5040_v28 = vadd.f32 %v5039_v10, %v9742_v6  ;;  %v9766_v39 = vpop.f32.mrf.mxu0  ;;  %v5113_v15 = vmul.f32 %v9760_v22, %v9760_v22 }
 0x497   :  { %v6741_v61 = vpop.f32.mrf.mxu1 }
 0x498   :  { %11283 = vst [vmem:[#allocation48_spill] sm:$0xff] %v9763_v43  ;;  %v5041_v18 = vadd.f32 %v5040_v28, %v9763_v43  ;;  %v5112_v32 = vmul.f32 %v9763_v43, %v9763_v43  ;;  %v5174_v45 = vadd.f32 %v5173_v46, %v5111_v24  ;;  %v9771_v51 = vpop.f32.mrf.mxu0  ;;  %v9774_v59 = vadd.f32 %v6741_v61, %v9303_v5 }
 0x499   :  { %v4837_v19 = vpop.f32.mrf.mxu1 }
 0x49a   :  { %11284 = vst [vmem:[#allocation49_spill] sm:$0xff] %v9774_v59  ;;  %v5175_v48 = vadd.f32 %v5174_v45, %v5112_v32  ;;  %v9779_v10 = vadd.f32 %v4837_v19, %v9292_v30  ;;  %v5042_v9 = vadd.f32 %v5041_v18, %v9760_v22  ;;  %v9782_v8 = vpop.f32.mrf.mxu0  ;;  %v5115_v43 = vmul.f32 %v9774_v59, %v9774_v59 }
 0x49b   :  { %v6744_v28 = vpop.f32.mrf.mxu1 }
 0x49c   :  { %11285 = vst [vmem:[#allocation50_spill] sm:$0xff] %v9779_v10  ;;  %v5043_v24 = vadd.f32 %v5042_v9, %v9779_v10  ;;  %v5114_v46 = vmul.f32 %v9779_v10, %v9779_v10  ;;  %v5176_v5 = vadd.f32 %v5175_v48, %v5113_v15  ;;  %v9787_v61 = vpop.f32.mrf.mxu0  ;;  %v9792_v30 = vadd.f32 %v6744_v28, %v9325_v20 }
 0x49d   :  { %v4847_v45 = vpop.f32.mrf.mxu1 }
 0x49e   :  { %v5177_v32 = vadd.f32 %v5176_v5, %v5114_v46  ;;  %11286 = vst [vmem:[#allocation51_spill] sm:$0xff] %v9792_v30  ;;  %v9795_v18 = vadd.f32 %v4847_v45, %v9314_v11  ;;  %v5044_v19 = vadd.f32 %v5043_v24, %v9774_v59  ;;  %v9798_v9 = vpop.f32.mrf.mxu0  ;;  %v5117_v11 = vmul.f32 %v9792_v30, %v9792_v30 }
 0x49f   :  { %v6747_v22 = vpop.f32.mrf.mxu1 }
 0x4a0   :  { %11287 = vst [vmem:[#allocation52_spill] sm:$0xff] %v9795_v18  ;;  %v5045_v15 = vadd.f32 %v5044_v19, %v9795_v18  ;;  %v5116_v48 = vmul.f32 %v9795_v18, %v9795_v18  ;;  %v5178_v10 = vadd.f32 %v5177_v32, %v5115_v43  ;;  %v9803_v6 = vpop.f32.mrf.mxu0  ;;  %v9806_v46 = vadd.f32 %v6747_v22, %v9347_v7 }
 0x4a1   :  { %v4857_v20 = vpop.f32.mrf.mxu1 }
 0x4a2   :  { %11288 = vst [vmem:[#allocation53_spill] sm:$0xff] %v9806_v46  ;;  %v5179_v28 = vadd.f32 %v5178_v10, %v5116_v48  ;;  %v9811_v24 = vadd.f32 %v4857_v20, %v9336_v42  ;;  %v5046_v5 = vadd.f32 %v5045_v15, %v9792_v30  ;;  %v9814_v45 = vpop.f32.mrf.mxu0  ;;  %v5119_v18 = vmul.f32 %v9806_v46, %v9806_v46 }
 0x4a3   :  { %v6750_v19 = vpop.f32.mrf.mxu1 }
 0x4a4   :  { %11289 = vst [vmem:[#allocation54_spill] sm:$0xff] %v9811_v24  ;;  %v5047_v43 = vadd.f32 %v5046_v5, %v9811_v24  ;;  %v5118_v32 = vmul.f32 %v9811_v24, %v9811_v24  ;;  %v5180_v7 = vadd.f32 %v5179_v28, %v5117_v11  ;;  %v9819_v22 = vpop.f32.mrf.mxu0  ;;  %v9824_v42 = vadd.f32 %v6750_v19, %v9369_v57 }
 0x4a5   :  { %v4867_v10 = vpop.f32.mrf.mxu1 }
 0x4a6   :  { %v5181_v48 = vadd.f32 %v5180_v7, %v5118_v32  ;;  %11290 = vst [vmem:[#allocation55_spill] sm:$0xff] %v9824_v42  ;;  %v9827_v15 = vadd.f32 %v4867_v10, %v9358_v16  ;;  %v5048_v20 = vadd.f32 %v5047_v43, %v9806_v46  ;;  %v9830_v5 = vpop.f32.mrf.mxu0  ;;  %v5121_v16 = vmul.f32 %v9824_v42, %v9824_v42 }
 0x4a7   :  { %v6753_v30 = vpop.f32.mrf.mxu1 }
 0x4a8   :  { %11291 = vst [vmem:[#allocation56_spill] sm:$0xff] %v9827_v15  ;;  %v5049_v11 = vadd.f32 %v5048_v20, %v9827_v15  ;;  %v5120_v28 = vmul.f32 %v9827_v15, %v9827_v15  ;;  %v5182_v24 = vadd.f32 %v5181_v48, %v5119_v18  ;;  %v9835_v59 = vpop.f32.mrf.mxu0  ;;  %v9838_v32 = vadd.f32 %v6753_v30, %v9391_v26 }
 0x4a9   :  { %v4877_v57 = vpop.f32.mrf.mxu1 }
 0x4aa   :  { %11292 = vst [vmem:[#allocation57_spill] sm:$0xff] %v9838_v32  ;;  %v5183_v19 = vadd.f32 %v5182_v24, %v5120_v28  ;;  %v9843_v43 = vadd.f32 %v4877_v57, %v9380_v4  ;;  %v5050_v7 = vadd.f32 %v5049_v11, %v9824_v42  ;;  %v9846_v10 = vpop.f32.mrf.mxu0  ;;  %v5123_v15 = vmul.f32 %v9838_v32, %v9838_v32 }
 0x4ab   :  { %v6756_v20 = vpop.f32.mrf.mxu1 }
 0x4ac   :  { %11293 = vst [vmem:[#allocation58_spill] sm:$0xff] %v9843_v43  ;;  %v5051_v18 = vadd.f32 %v5050_v7, %v9843_v43  ;;  %v5122_v48 = vmul.f32 %v9843_v43, %v9843_v43  ;;  %v5184_v26 = vadd.f32 %v5183_v19, %v5121_v16  ;;  %v9851_v30 = vpop.f32.mrf.mxu0  ;;  %v9856_v4 = vadd.f32 %v6756_v20, %v9416_v29 }
 0x4ad   :  { %v4887_v24 = vpop.f32.mrf.mxu1 }
 0x4ae   :  { %v5185_v28 = vadd.f32 %v5184_v26, %v5122_v48  ;;  %11294 = vst [vmem:[#allocation59_spill] sm:$0xff] %v9856_v4  ;;  %v9859_v11 = vadd.f32 %v4887_v24, %v9403_v50  ;;  %v5052_v57 = vadd.f32 %v5051_v18, %v9838_v32  ;;  %v9862_v7 = vpop.f32.mrf.mxu0  ;;  %v5125_v50 = vmul.f32 %v9856_v4, %v9856_v4 }
 0x4af   :  { %v6759_v42 = vpop.f32.mrf.mxu1 }
 0x4b0   :  { %11295 = vst [vmem:[#allocation60_spill] sm:$0xff] %v9859_v11  ;;  %v5053_v16 = vadd.f32 %v5052_v57, %v9859_v11  ;;  %v5124_v19 = vmul.f32 %v9859_v11, %v9859_v11  ;;  %v5186_v43 = vadd.f32 %v5185_v28, %v5123_v15  ;;  %v9867_v46 = vpop.f32.mrf.mxu0  ;;  %v9870_v48 = vadd.f32 %v6759_v42, %v9442_v25 }
 0x4b1   :  { %v4897_v29 = vpop.f32.mrf.mxu1 }
 0x4b2   :  { %11296 = vst [vmem:[#allocation61_spill] sm:$0xff] %v9870_v48  ;;  %v5187_v20 = vadd.f32 %v5186_v43, %v5124_v19  ;;  %v9875_v18 = vadd.f32 %v4897_v29, %v9429_v13  ;;  %v5054_v26 = vadd.f32 %v5053_v16, %v9856_v4  ;;  %v9878_v24 = vpop.f32.mrf.mxu0  ;;  %v5127_v11 = vmul.f32 %v9870_v48, %v9870_v48 }
 0x4b3   :  { %v6762_v57 = vpop.f32.mrf.mxu1 }
 0x4b4   :  { %11297 = vst [vmem:[#allocation62_spill] sm:$0xff] %v9875_v18  ;;  %v5055_v15 = vadd.f32 %v5054_v26, %v9875_v18  ;;  %v5126_v28 = vmul.f32 %v9875_v18, %v9875_v18  ;;  %v5188_v25 = vadd.f32 %v5187_v20, %v5125_v50  ;;  %v9883_v42 = vpop.f32.mrf.mxu0  ;;  %v9888_v13 = vadd.f32 %v6762_v57, %v9468_v58 }
 0x4b5   :  { %v4907_v43 = vpop.f32.mrf.mxu1 }
 0x4b6   :  { %v5189_v19 = vadd.f32 %v5188_v25, %v5126_v28  ;;  %11298 = vst [vmem:[#allocation63_spill] sm:$0xff] %v9888_v13  ;;  %v9891_v16 = vadd.f32 %v4907_v43, %v9455_v12  ;;  %v5056_v29 = vadd.f32 %v5055_v15, %v9870_v48  ;;  %v9894_v26 = vpop.f32.mrf.mxu0  ;;  %v5129_v12 = vmul.f32 %v9888_v13, %v9888_v13 }
 0x4b7   :  { %v6765_v4 = vpop.f32.mrf.mxu1 }
 0x4b8   :  { %11299 = vst [vmem:[#allocation64_spill] sm:$0xff] %v9891_v16  ;;  %v5057_v50 = vadd.f32 %v5056_v29, %v9891_v16  ;;  %v5128_v20 = vmul.f32 %v9891_v16, %v9891_v16  ;;  %v5190_v18 = vadd.f32 %v5189_v19, %v5127_v11  ;;  %v9899_v32 = vpop.f32.mrf.mxu0  ;;  %v9902_v28 = vadd.f32 %v6765_v4, %v9491_v34 }
 0x4b9   :  { %v4917_v58 = vpop.f32.mrf.mxu1 }
 0x4ba   :  { %11300 = vst [vmem:[#allocation65_spill] sm:$0xff] %v9902_v28  ;;  %v5191_v57 = vadd.f32 %v5190_v18, %v5128_v20  ;;  %v9907_v15 = vadd.f32 %v4917_v58, %v9480_v31  ;;  %v5058_v25 = vadd.f32 %v5057_v50, %v9888_v13  ;;  %v9910_v43 = vpop.f32.mrf.mxu0  ;;  %v5131_v16 = vmul.f32 %v9902_v28, %v9902_v28 }
 0x4bb   :  { %v6768_v29 = vpop.f32.mrf.mxu1 }
 0x4bc   :  { %11301 = vst [vmem:[#allocation66_spill] sm:$0xff] %v9907_v15  ;;  %v5059_v11 = vadd.f32 %v5058_v25, %v9907_v15  ;;  %v5130_v19 = vmul.f32 %v9907_v15, %v9907_v15  ;;  %v5192_v34 = vadd.f32 %v5191_v57, %v5129_v12  ;;  %v9915_v4 = vpop.f32.mrf.mxu0  ;;  %v9920_v31 = vadd.f32 %v6768_v29, %v9510_v1 }
 0x4bd   :  { %v4927_v18 = vpop.f32.mrf.mxu1 }
 0x4be   :  { %v5193_v20 = vadd.f32 %v5192_v34, %v5130_v19  ;;  %11302 = vst [vmem:[#allocation67_spill] sm:$0xff] %v9920_v31  ;;  %v9923_v50 = vadd.f32 %v4927_v18, %v9502_v63  ;;  %v5060_v58 = vadd.f32 %v5059_v11, %v9902_v28  ;;  %v9926_v25 = vpop.f32.mrf.mxu0  ;;  %v5133_v63 = vmul.f32 %v9920_v31, %v9920_v31 }
 0x4bf   :  { %v6771_v13 = vpop.f32.mrf.mxu1 }
 0x4c0   :  { %11303 = vst [vmem:[#allocation68_spill] sm:$0xff] %v9923_v50  ;;  %v5061_v12 = vadd.f32 %v5060_v58, %v9923_v50  ;;  %v5132_v57 = vmul.f32 %v9923_v50, %v9923_v50  ;;  %v5194_v15 = vadd.f32 %v5193_v20, %v5131_v16  ;;  %v9931_v48 = vpop.f32.mrf.mxu0  ;;  %v9934_v19 = vadd.f32 %v6771_v13, %v9516_v27 }
 0x4c1   :  { %v4937_v1 = vpop.f32.mrf.mxu1 }
 0x4c2   :  { %11304 = vst [vmem:[#allocation69_spill] sm:$0xff] %v9934_v19  ;;  %v5195_v29 = vadd.f32 %v5194_v15, %v5132_v57  ;;  %v9939_v11 = vadd.f32 %v4937_v1, %v9513_v54  ;;  %v5062_v34 = vadd.f32 %v5061_v12, %v9920_v31  ;;  %v9942_v18 = vpop.f32.mrf.mxu0  ;;  %v5135_v28 = vmul.f32 %v9934_v19, %v9934_v19  ;;  %v11308_v12 = vld [vmem:[#allocation14_spill] sm:$0xff] }
 0x4c3   :  { %v6774_v58 = vpop.f32.mrf.mxu1 }
 0x4c4   :  { %11305 = vst [vmem:[#allocation70_spill] sm:$0xff] %v9939_v11  ;;  %v5063_v16 = vadd.f32 %v5062_v34, %v9939_v11  ;;  %v5134_v20 = vmul.f32 %v9939_v11, %v9939_v11  ;;  %v5196_v27 = vadd.f32 %v5195_v29, %v5133_v63  ;;  %v9947_v13 = vpop.f32.mrf.mxu0  ;;  %v9952_v54 = vadd.f32 %v6774_v58, %v9522_v60 }
 0x4c5   :  { %11306 = vst [vmem:[#allocation71_spill] sm:$0xff] %v9947_v13  ;;  %v4947_v15 = vpop.f32.mrf.mxu1 }
 0x4c6   :  { %v5197_v57 = vadd.f32 %v5196_v27, %v5134_v20  ;;  %11307 = vst [vmem:[#allocation72_spill] sm:$0xff] %v9952_v54  ;;  %v9955_v1 = vadd.f32 %v4947_v15, %v11308_v12  ;;  %v5064_v31 = vadd.f32 %v5063_v16, %v9934_v19  ;;  %v9958_v34 = vpop.f32.mrf.mxu0  ;;  %v11312_v20 = vld [vmem:[#allocation16_spill] sm:$0xff]  ;;  %v5137_v58 = vmul.f32 %v9952_v54, %v9952_v54  ;;  %v11314_v16 = vld [vmem:[#allocation13_spill] sm:$0xff] }
 0x4c7   :  { %11310 = vst [vmem:[#allocation73_spill] sm:$0xff] %v9958_v34  ;;  %v6777_v50 = vpop.f32.mrf.mxu1 }
 0x4c8   :  { %11309 = vst [vmem:[#allocation14_spill] sm:$0xff] %v9955_v1  ;;  %v5065_v63 = vadd.f32 %v5064_v31, %v9955_v1  ;;  %v5136_v29 = vmul.f32 %v9955_v1, %v9955_v1  ;;  %v5198_v11 = vadd.f32 %v5197_v57, %v5135_v28  ;;  %v9963_v13 = vpop.f32.mrf.mxu0  ;;  %v9966_v27 = vadd.f32 %v6777_v50, %v11312_v20 }
 0x4c9   :  { %11311 = vst [vmem:[#allocation74_spill] sm:$0xff] %v9963_v13  ;;  %v4957_v60 = vpop.f32.mrf.mxu1 }
 0x4ca   :  { %11313 = vst [vmem:[#allocation16_spill] sm:$0xff] %v9966_v27  ;;  %v5199_v15 = vadd.f32 %v5198_v11, %v5136_v29  ;;  %v9971_v12 = vadd.f32 %v4957_v60, %v11314_v16  ;;  %v5066_v19 = vadd.f32 %v5065_v63, %v9952_v54  ;;  %v9974_v31 = vpop.f32.mrf.mxu0  ;;  %v5139_v1 = vmul.f32 %v9966_v27, %v9966_v27  ;;  %v11318_v60 = vld [vmem:[#allocation17_spill] sm:$0xff]  ;;  %v11320_v63 = vld [vmem:[#allocation18_spill] sm:$0xff] }
 0x4cb   :  { %11316 = vst [vmem:[#allocation75_spill] sm:$0xff] %v9974_v31  ;;  %v6780_v34 = vpop.f32.mrf.mxu1 }
 0x4cc   :  { %11315 = vst [vmem:[#allocation13_spill] sm:$0xff] %v9971_v12  ;;  %v5067_v28 = vadd.f32 %v5066_v19, %v9971_v12  ;;  %v5138_v57 = vmul.f32 %v9971_v12, %v9971_v12  ;;  %v5200_v50 = vadd.f32 %v5199_v15, %v5137_v58  ;;  %v9979_v20 = vpop.f32.mrf.mxu0  ;;  %v9984_v16 = vadd.f32 %v6780_v34, %v11318_v60 }
 0x4cd   :  { %11317 = vst [vmem:[#allocation76_spill] sm:$0xff] %v9979_v20  ;;  %v4967_v11 = vpop.f32.mrf.mxu1 }
 0x4ce   :  { %v5201_v29 = vadd.f32 %v5200_v50, %v5138_v57  ;;  %11319 = vst [vmem:[#allocation17_spill] sm:$0xff] %v9984_v16  ;;  %v9987_v54 = vadd.f32 %v4967_v11, %v11320_v63  ;;  %v5068_v31 = vadd.f32 %v5067_v28, %v9966_v27  ;;  %v9990_v19 = vpop.f32.mrf.mxu0  ;;  %v5141_v50 = vmul.f32 %v9984_v16, %v9984_v16 }
 0x4cf   :  { %v6783_v13 = vpop.f32.mrf.mxu1 }
 0x4d0   :  { %11321 = vst [vmem:[#allocation18_spill] sm:$0xff] %v9987_v54  ;;  %v5069_v58 = vadd.f32 %v5068_v31, %v9987_v54  ;;  %v5140_v15 = vmul.f32 %v9987_v54, %v9987_v54  ;;  %v5202_v12 = vadd.f32 %v5201_v29, %v5139_v1  ;;  %v9995_v20 = vpop.f32.mrf.mxu0  ;;  %v9998_v57 = vadd.f32 %v6783_v13, %v9540_v38 }
 0x4d1   :  { %v4977_v34 = vpop.f32.mrf.mxu1 }
 0x4d2   :  { %11322 = vst [vmem:[#allocation77_spill] sm:$0xff] %v9998_v57  ;;  %v5203_v11 = vadd.f32 %v5202_v12, %v5140_v15  ;;  %v10003_v28 = vadd.f32 %v4977_v34, %v9537_v53  ;;  %v5070_v60 = vadd.f32 %v5069_v58, %v9984_v16  ;;  %v10009_v54 = vpop.f32.mrf.mxu0  ;;  %v5143_v38 = vmul.f32 %v9998_v57, %v9998_v57 }
 0x4d3   :  { %v6786_v31 = vpop.f32.mrf.mxu1 }
 0x4d4   :  { %11323 = vst [vmem:[#allocation78_spill] sm:$0xff] %v10003_v28  ;;  %v5071_v63 = vadd.f32 %v5070_v60, %v10003_v28  ;;  %v5142_v1 = vmul.f32 %v10003_v28, %v10003_v28  ;;  %v5204_v29 = vadd.f32 %v5203_v11, %v5141_v50  ;;  %v10014_v12 = vadd.f32 %v6786_v31, %v9546_v62  ;;  %v10023_v60 = vpop.f32.mrf.mxu0 }
 0x4d5   :  { %v4987_v13 = vpop.f32.mrf.mxu1 }
 0x4d6   :  { %v5205_v27 = vadd.f32 %v5204_v29, %v5142_v1  ;;  %11324 = vst [vmem:[#allocation79_spill] sm:$0xff] %v10014_v12  ;;  %v10017_v53 = vadd.f32 %v4987_v13, %v9543_v56  ;;  %v5072_v58 = vadd.f32 %v5071_v63, %v9998_v57  ;;  %v5145_v62 = vmul.f32 %v10014_v12, %v10014_v12 }
 0x4d7   :  { %v6789_v15 = vpop.f32.mrf.mxu1 }
 0x4d8   :  { %11325 = vst [vmem:[#allocation80_spill] sm:$0xff] %v10017_v53  ;;  %v5073_v34 = vadd.f32 %v5072_v58, %v10017_v53  ;;  %v5144_v50 = vmul.f32 %v10017_v53, %v10017_v53  ;;  %v5206_v11 = vadd.f32 %v5205_v27, %v5143_v38  ;;  %v10026_v28 = vadd.f32 %v6789_v15, %v9552_v41  ;;  %v10037_v58 = vpop.f32.mrf.mxu0 }
 0x4d9   :  { %v4997_v1 = vpop.f32.mrf.mxu1 }
 0x4da   :  { %11326 = vst [vmem:[#allocation81_spill] sm:$0xff] %v10026_v28  ;;  %v5207_v56 = vadd.f32 %v5206_v11, %v5144_v50  ;;  %v10031_v31 = vadd.f32 %v4997_v1, %v9549_v49  ;;  %v5074_v63 = vadd.f32 %v5073_v34, %v10014_v12  ;;  %v5147_v41 = vmul.f32 %v10026_v28, %v10026_v28  ;;  %v11329_v49 = vld [vmem:[#allocation20_spill] sm:$0xff]  ;;  %v10051_v1 = vld [vmem:[%s10835_s5] ss:$0 sm:$0xff]  ;;  %s6937_s5 = smov [#allocation4]  }
 0x4db   :  { %v6792_v29 = vpop.f32.mrf.mxu1  ;;  %11331 = vst [vmem:[#allocation84_spill] sm:$0xff] %v10051_v1  ;;  %s6203_s26 = sshll.u32 %s6937_s5, 4  ;;  %s6204_s26 = int_to_ptr.vmem [resolvable:$true] %s6203_s26 }
 0x4dc   :  { %11327 = vst [vmem:[#allocation82_spill] sm:$0xff] %v10031_v31  ;;  %v5075_v13 = vadd.f32 %v5074_v63, %v10031_v31  ;;  %v5146_v27 = vmul.f32 %v10031_v31, %v10031_v31  ;;  %v5208_v38 = vadd.f32 %v5207_v56, %v5145_v62  ;;  %v10042_v50 = vadd.f32 %v6792_v29, %v9564_v17  ;;  %s6914_s27 = scalar_lea.vmem %s6204_s26, 8192  ;;  %p6919_p1 = scmp.lt.s32.totalorder %s6204_s26, %s6204_s26 }
 0x4dd   :  { %v5007_v15 = vpop.f32.mrf.mxu1  ;;  %p6915_p0 = scmp.ne.s32.totalorder %s6204_s26, %s6914_s27  ;;  %p6920_p2 = scmp.lt.s32.totalorder %s6914_s27, %s6914_s27 }
 0x4de   :  { %v5209_v53 = vadd.f32 %v5208_v38, %v5146_v27  ;;  %11328 = vst [vmem:[#allocation83_spill] sm:$0xff] %v10042_v50  ;;  %v10045_v11 = vadd.f32 %v5007_v15, %v11329_v49  ;;  %v5076_v34 = vadd.f32 %v5075_v13, %v10026_v28  ;;  %v10056_v27 = vpop.f32.mrf.mxu0  ;;  %v5149_v17 = vmul.f32 %v10042_v50, %v10042_v50  ;;  %v11332_v13 = vld [vmem:[#allocation26_spill] sm:$0xff] }
 0x4df   :  { %v10063_v15 = vadd.f32 %v11332_v13, %v10051_v1  ;;  %v11334_v49 = vld [vmem:[#allocation10_spill] sm:$0xff]  ;;  %v11339_v13 = vld [vmem:[#allocation29_spill] sm:$0xff]  ;;  %p6921_p3 = por %p6920_p2, %p6919_p1 }
 0x4e0   :  { %11330 = vst [vmem:[#allocation20_spill] sm:$0xff] %v10045_v11  ;;  %v5077_v62 = vadd.f32 %v5076_v34, %v10045_v11  ;;  %v5148_v56 = vmul.f32 %v10045_v11, %v10045_v11  ;;  %v5210_v63 = vadd.f32 %v5209_v53, %v5147_v41  ;;  %v10067_v28 = vadd.f32 %v10051_v1, %v11334_v49  ;;  %v11335_v34 = vld [vmem:[#allocation9_spill] sm:$0xff]  ;;  %v11336_v53 = vld [vmem:[#allocation24_spill] sm:$0xff]  ;;  %v11387_v11 = vld [vmem:[#allocation75_spill] sm:$0xff] }
 0x4e1   :  { %11333 = vst [vmem:[#allocation26_spill] sm:$0xff] %v10063_v15  ;;  %v10071_v31 = vadd.f32 %v11335_v34, %v10051_v1  ;;  %v10075_v41 = vadd.f32 %v10051_v1, %v11336_v53  ;;  %v10085_v49 = vadd.f32 %v10051_v1, %v11339_v13  ;;  %v11341_v15 = vld [vmem:[#allocation27_spill] sm:$0xff]  ;;  %v10093_v53 = vadd.f32 %v10051_v1, %v9638_v36  ;;  %v11344_v13 = vld [vmem:[#allocation34_spill] sm:$0xff]  ;;  %p6922_p4 = pnand %p6921_p3, %p6915_p0 }
 0x4e2   :  { %v5078_v29 = vadd.f32 %v5077_v62, %v10042_v50  ;;  %v5211_v38 = vadd.f32 %v5210_v63, %v5148_v56  ;;  %v10077_v62 = vpop.f32.mrf.mxu0  ;;  %v11337_v56 = vld [vmem:[#allocation15_spill] sm:$0xff]  ;;  %v10089_v34 = vadd.f32 %v11341_v15, %v10051_v1  ;;  %v10109_v15 = vadd.f32 %v10051_v1, %v9670_v23 }
 0x4e3   :  { %v10081_v63 = vadd.f32 %v11337_v56, %v10051_v1  ;;  %11340 = vst [vmem:[#allocation9_spill] sm:$0xff] %v10085_v49  ;;  %v10105_v49 = vadd.f32 %v11344_v13, %v10051_v1  ;;  %v10113_v36 = vadd.f32 %v9675_v21, %v10051_v1  ;;  %v10133_v21 = vadd.f32 %v10051_v1, %v9718_v14 }
 0x4e4   :  { %v5079_v12 = vrot.slane %v5078_v29, 4  ;;  %v5212_v57 = vadd.f32 %v5211_v38, %v5149_v17  ;;  %v10097_v17 = vadd.f32 %v9643_v44, %v10051_v1  ;;  %v10101_v38 = vadd.f32 %v10051_v1, %v9654_v33  ;;  %11346 = vst [vmem:[#allocation27_spill] sm:$0xff] %v10109_v15  ;;  %v6884_v23 = vpop.f32.mrf.mxu0 }
 0x4e5   :  { %11338 = vst [vmem:[#allocation10_spill] sm:$0xff] %v10081_v63  ;;  %11345 = vst [vmem:[#allocation29_spill] sm:$0xff] %v10105_v49  ;;  %v10117_v44 = vadd.f32 %v10051_v1, %v9686_v3  ;;  %v10121_v33 = vadd.f32 %v9691_v55, %v10051_v1  ;;  %v10129_v49 = vadd.f32 %v9707_v37, %v10051_v1 }
 0x4e6   :  { %11342 = vst [vmem:[#allocation24_spill] sm:$0xff] %v10097_v17  ;;  %11343 = vst [vmem:[#allocation15_spill] sm:$0xff] %v10101_v38  ;;  %v5080_v56 = vadd.f32 %v5079_v12, %v5078_v29  ;;  %v5213_v63 = vrot.slane %v5212_v57, 4  ;;  %v10125_v12 = vadd.f32 %v10051_v1, %v9702_v2  ;;  %v10137_v3 = vadd.f32 %v9723_v52, %v10051_v1 }
 0x4e7   :  { %11347 = vst [vmem:[#allocation34_spill] sm:$0xff] %v10113_v36  ;;  %11348 = vst [vmem:[#allocation85_spill] sm:$0xff] %v10117_v44  ;;  %v10141_v55 = vadd.f32 %v10051_v1, %v9734_v0  ;;  %v10145_v2 = vadd.f32 %v9739_v40, %v10051_v1  ;;  %v10149_v37 = vadd.f32 %v10051_v1, %v9750_v47 }
 0x4e8   :  { %11349 = vst [vmem:[#allocation86_spill] sm:$0xff] %v10121_v33  ;;  %11350 = vst [vmem:[#allocation87_spill] sm:$0xff] %v10125_v12  ;;  %v5081_v29 = vrot.slane %v5080_v56, 2  ;;  %v5214_v13 = vadd.f32 %v5213_v63, %v5212_v57  ;;  %v10153_v14 = vadd.f32 %v9755_v35, %v10051_v1  ;;  %v10157_v52 = vadd.f32 %v10051_v1, %v9766_v39  ;;  %v5977_v39 = vpop.f32.mrf.mxu0 }
 0x4e9   :  { %11351 = vst [vmem:[#allocation88_spill] sm:$0xff] %v10129_v49  ;;  %11352 = vst [vmem:[#allocation89_spill] sm:$0xff] %v10133_v21  ;;  %v10161_v0 = vadd.f32 %v9771_v51, %v10051_v1  ;;  %v10165_v40 = vadd.f32 %v10051_v1, %v9782_v8  ;;  %v10169_v47 = vadd.f32 %v9787_v61, %v10051_v1 }
 0x4ea   :  { %11353 = vst [vmem:[#allocation90_spill] sm:$0xff] %v10137_v3  ;;  %11354 = vst [vmem:[#allocation91_spill] sm:$0xff] %v10141_v55  ;;  %v5082_v57 = vadd.f32 %v5081_v29, %v5080_v56  ;;  %v5215_v63 = vrot.slane %v5214_v13, 2  ;;  %v10173_v35 = vadd.f32 %v10051_v1, %v9798_v9  ;;  %v10181_v51 = vadd.f32 %v10051_v1, %v9814_v45  ;;  %v11493_v36 = vld [vmem:[#allocation9_spill] sm:$0xff] }
 0x4eb   :  { %11355 = vst [vmem:[#allocation92_spill] sm:$0xff] %v10145_v2  ;;  %11356 = vst [vmem:[#allocation93_spill] sm:$0xff] %v10149_v37  ;;  %v10185_v8 = vadd.f32 %v9819_v22, %v10051_v1  ;;  %v10189_v61 = vadd.f32 %v10051_v1, %v9830_v5  ;;  %v10193_v9 = vadd.f32 %v9835_v59, %v10051_v1 }
 0x4ec   :  { %11357 = vst [vmem:[#allocation94_spill] sm:$0xff] %v10153_v14  ;;  %11358 = vst [vmem:[#allocation95_spill] sm:$0xff] %v10157_v52  ;;  %v5083_v56 = vrot.slane %v5082_v57, 1  ;;  %v5216_v29 = vadd.f32 %v5215_v63, %v5214_v13  ;;  %v10177_v14 = vadd.f32 %v9803_v6, %v10051_v1  ;;  %v10197_v6 = vadd.f32 %v10051_v1, %v9846_v10  ;;  %v11494_v38 = vld [vmem:[#allocation10_spill] sm:$0xff] }
 0x4ed   :  { %11359 = vst [vmem:[#allocation96_spill] sm:$0xff] %v10161_v0  ;;  %11360 = vst [vmem:[#allocation97_spill] sm:$0xff] %v10165_v40  ;;  %v10201_v45 = vadd.f32 %v9851_v30, %v10051_v1  ;;  %v10205_v22 = vadd.f32 %v10051_v1, %v9862_v7  ;;  %v10209_v5 = vadd.f32 %v9867_v46, %v10051_v1 }
 0x4ee   :  { %11361 = vst [vmem:[#allocation98_spill] sm:$0xff] %v10169_v47  ;;  %11362 = vst [vmem:[#allocation99_spill] sm:$0xff] %v10173_v35  ;;  %v5084_v13 = vadd.f32 %v5083_v56, %v5082_v57  ;;  %v5217_v63 = vrot.slane %v5216_v29, 1  ;;  %v10213_v59 = vadd.f32 %v10051_v1, %v9878_v24  ;;  %v10217_v10 = vadd.f32 %v9883_v42, %v10051_v1  ;;  %v6887_v56 = vpop.f32.mrf.mxu0  ;;  %v11445_v47 = vld [vmem:[#allocation52_spill] sm:$0xff]  ;;  %v11452_v35 = vld [vmem:[#allocation58_spill] sm:$0xff] }
 0x4ef   :  { %11363 = vst [vmem:[#allocation100_spill] sm:$0xff] %v10177_v14  ;;  %11364 = vst [vmem:[#allocation101_spill] sm:$0xff] %v10181_v51  ;;  %v10221_v30 = vadd.f32 %v10051_v1, %v9894_v26  ;;  %v10227_v46 = vadd.f32 %v9899_v32, %v10051_v1  ;;  %v10231_v24 = vadd.f32 %v10051_v1, %v9910_v43  ;;  %v11449_v14 = vld [vmem:[#allocation53_spill] sm:$0xff] }
 0x4f0   :  { %11365 = vst [vmem:[#allocation102_spill] sm:$0xff] %v10185_v8  ;;  %11366 = vst [vmem:[#allocation103_spill] sm:$0xff] %v10189_v61  ;;  %v10223_v57 = vmul.f32 0.001953125, %v5084_v13  ;;  %v5218_v7 = vadd.f32 %v5217_v63, %v5216_v29  ;;  %v10235_v42 = vadd.f32 %v9915_v4, %v10051_v1  ;;  %v10239_v26 = vadd.f32 %v10051_v1, %v9926_v25  ;;  %v11381_v4 = vld [vmem:[#allocation71_spill] sm:$0xff]  ;;  %v11383_v25 = vld [vmem:[#allocation73_spill] sm:$0xff] }
 0x4f1   :  { %11367 = vst [vmem:[#allocation104_spill] sm:$0xff] %v10193_v9  ;;  %11368 = vst [vmem:[#allocation105_spill] sm:$0xff] %v10197_v6  ;;  %v10247_v63 = vadd.f32 %v9931_v48, %v10051_v1  ;;  %v10251_v43 = vadd.f32 %v10051_v1, %v9942_v18  ;;  %v10267_v48 = vadd.f32 %v10051_v1, %v11387_v11  ;;  %v11389_v18 = vld [vmem:[#allocation76_spill] sm:$0xff]  ;;  %v11447_v8 = vld [vmem:[#allocation51_spill] sm:$0xff] }
 0x4f2   :  { %11369 = vst [vmem:[#allocation106_spill] sm:$0xff] %v10201_v45  ;;  %11370 = vst [vmem:[#allocation107_spill] sm:$0xff] %v10205_v22  ;;  %v5219_v13 = vmul.f32 0.001953125, %v5218_v7  ;;  %v5220_v29 = vmul.f32 %v10223_v57, %v10223_v57  ;;  %v10259_v7 = vadd.f32 %v10051_v1, %v11383_v25  ;;  %v10279_v25 = vadd.f32 %v9995_v20, %v10051_v1  ;;  %v11444_v45 = vld [vmem:[#allocation49_spill] sm:$0xff]  ;;  %v11448_v61 = vld [vmem:[#allocation54_spill] sm:$0xff] }
 0x4f3   :  { %11371 = vst [vmem:[#allocation108_spill] sm:$0xff] %v10209_v5  ;;  %11372 = vst [vmem:[#allocation109_spill] sm:$0xff] %v10213_v59  ;;  %v10287_v11 = vadd.f32 %v10023_v60, %v10051_v1  ;;  %v10299_v20 = vadd.f32 %v10051_v1, %v10077_v62  ;;  %v11406_v60 = vld [vmem:[#allocation8_spill] sm:$0xff]  ;;  %v11410_v62 = vld [vmem:[#allocation25_spill] sm:$0xff]  ;;  %v5252_v51 = vsub.f32 %v11444_v45, %v10223_v57 }
 0x4f4   :  { %11373 = vst [vmem:[#allocation110_spill] sm:$0xff] %v10217_v10  ;;  %11374 = vst [vmem:[#allocation111_spill] sm:$0xff] %v10221_v30  ;;  %v5221_v32 = vsub.f32 %v5219_v13, %v5220_v29  ;;  %v10291_v13 = vadd.f32 %v10051_v1, %v10037_v58  ;;  %v10310_v58 = vadd.f32 %v6887_v56, %v10051_v1  ;;  %v11414_v56 = vld [vmem:[#allocation32_spill] sm:$0xff]  ;;  %v11427_v10 = vld [vmem:[#allocation45_spill] sm:$0xff] }
 0x4f5   :  { %11375 = vst [vmem:[#allocation112_spill] sm:$0xff] %v10223_v57  ;;  %11376 = vst [vmem:[#allocation113_spill] sm:$0xff] %v10227_v46  ;;  %v11385_v46 = vld [vmem:[#allocation74_spill] sm:$0xff]  ;;  %v11428_v30 = vld [vmem:[#allocation48_spill] sm:$0xff]  ;;  %v5253_v16 = vsub.f32 %v11445_v47, %v10223_v57  ;;  %v5254_v40 = vsub.f32 %v11447_v8, %v10223_v57  ;;  %v5255_v52 = vsub.f32 %v11448_v61, %v10223_v57 }
 0x4f6   :  { %11377 = vst [vmem:[#allocation114_spill] sm:$0xff] %v10231_v24  ;;  %11378 = vst [vmem:[#allocation115_spill] sm:$0xff] %v10235_v42  ;;  %v10255_v42 = vadd.f32 %v11381_v4, %v10051_v1  ;;  %v10263_v24 = vadd.f32 %v11385_v46, %v10051_v1  ;;  %v10275_v4 = vadd.f32 %v10051_v1, %v9990_v19  ;;  %v5222_v29 = vmax.f32 %v5221_v32, 0.0  ;;  %v11429_v5 = vld [vmem:[#allocation47_spill] sm:$0xff]  ;;  %v11430_v59 = vld [vmem:[#allocation50_spill] sm:$0xff] }
 0x4f7   :  { %11379 = vst [vmem:[#allocation116_spill] sm:$0xff] %v10247_v63  ;;  %11380 = vst [vmem:[#allocation117_spill] sm:$0xff] %v10251_v43  ;;  %v10271_v43 = vadd.f32 %v11389_v18, %v10051_v1  ;;  %v10283_v46 = vadd.f32 %v10051_v1, %v10009_v54  ;;  %v10295_v19 = vadd.f32 %v10056_v27, %v10051_v1  ;;  %v11399_v18 = vld [vmem:[#allocation22_spill] sm:$0xff]  ;;  %v11450_v45 = vld [vmem:[#allocation56_spill] sm:$0xff] }
 0x4f8   :  { %11382 = vst [vmem:[#allocation71_spill] sm:$0xff] %v10255_v42  ;;  %11384 = vst [vmem:[#allocation73_spill] sm:$0xff] %v10259_v7  ;;  %v5987_v42 = vpop.f32.mrf.mxu0  ;;  %v10302_v54 = vadd.f32 %v6884_v23, %v10051_v1  ;;  %v5287_v27 = vadd.f32 1e-05, %v5222_v29  ;;  %v11409_v29 = vld [vmem:[#allocation12_spill] sm:$0xff]  ;;  %v11425_v7 = vld [vmem:[#allocation43_spill] sm:$0xff]  ;;  %v5256_v2 = vsub.f32 %v11449_v14, %v10223_v57  ;;  %v5257_v0 = vsub.f32 %v11450_v45, %v10223_v57 }
 0x4f9   :  { %11386 = vst [vmem:[#allocation74_spill] sm:$0xff] %v10263_v24  ;;  %11388 = vst [vmem:[#allocation75_spill] sm:$0xff] %v10267_v48  ;;  %v10313_v32 = vadd.f32 %v10051_v1, %v5987_v42  ;;  %v11411_v23 = vld [vmem:[#allocation28_spill] sm:$0xff]  ;;  %v11415_v42 = vld [vmem:[#allocation33_spill] sm:$0xff]  ;;  %v5259_v22 = vsub.f32 %v11452_v35, %v10223_v57 }
 0x4fa   :  { %11390 = vst [vmem:[#allocation76_spill] sm:$0xff] %v10271_v43  ;;  %11391 = vst [vmem:[#allocation118_spill] sm:$0xff] %v10275_v4  ;;  %6907 = vrsqrt.f32 %v5287_v27  ;;  %v11416_v27 = vld [vmem:[#allocation36_spill] sm:$0xff]  ;;  %v11421_v43 = vld [vmem:[#allocation39_spill] sm:$0xff] }
 0x4fb   :  { %11392 = vst [vmem:[#allocation119_spill] sm:$0xff] %v10279_v25  ;;  %11393 = vst [vmem:[#allocation120_spill] sm:$0xff] %v10283_v46  ;;  %v11418_v46 = vld [vmem:[#allocation38_spill] sm:$0xff]  ;;  %v11419_v25 = vld [vmem:[#allocation37_spill] sm:$0xff] }
 0x4fc   :  { %11394 = vst [vmem:[#allocation121_spill] sm:$0xff] %v10287_v11  ;;  %11395 = vst [vmem:[#allocation122_spill] sm:$0xff] %v10291_v13  ;;  %v10307_v11 = vadd.f32 %v10051_v1, %v5977_v39  ;;  %v11412_v13 = vld [vmem:[#allocation30_spill] sm:$0xff]  ;;  %v11413_v39 = vld [vmem:[#allocation31_spill] sm:$0xff] }
 0x4fd   :  { %11396 = vst [vmem:[#allocation123_spill] sm:$0xff] %v10295_v19  ;;  %11397 = vst [vmem:[#allocation124_spill] sm:$0xff] %v10299_v20  ;;  %v11403_v19 = vld [vmem:[#allocation19_spill] sm:$0xff]  ;;  %v11420_v4 = vld [vmem:[#allocation40_spill] sm:$0xff] }
 0x4fe   :  { %11398 = vst [vmem:[#allocation125_spill] sm:$0xff] %v10302_v54  ;;  %11400 = vst [vmem:[#allocation22_spill] sm:$0xff] %v10307_v11  ;;  %v11404_v20 = vld [vmem:[#allocation23_spill] sm:$0xff]  ;;  %v11405_v54 = vld [vmem:[#allocation21_spill] sm:$0xff] }
 0x4ff   :  { %11401 = vst [vmem:[#allocation126_spill] sm:$0xff] %v10310_v58  ;;  %11402 = vst [vmem:[#allocation127_spill] sm:$0xff] %v10313_v32  ;;  %v11407_v11 = vld [vmem:[#allocation7_spill] sm:$0xff]  ;;  %v11422_v48 = vld [vmem:[#allocation42_spill] sm:$0xff] }
 0x500   :  { %v11408_v58 = vld [vmem:[#allocation11_spill] sm:$0xff]  ;;  %v11423_v32 = vld [vmem:[#allocation41_spill] sm:$0xff]  ;;  %v11424_v24 = vld [vmem:[#allocation44_spill] sm:$0xff] }
 0x501   :  { %v11417_v1 = vld [vmem:[#allocation35_spill] sm:$0xff]  ;;  %v11426_v63 = vld [vmem:[#allocation46_spill] sm:$0xff]  ;;  %v11453_v6 = vld [vmem:[#allocation57_spill] sm:$0xff] }
 0x502   :  { %v11451_v47 = vld [vmem:[#allocation55_spill] sm:$0xff]  ;;  %v5260_v50 = vsub.f32 %v11453_v6, %v10223_v57  ;;  %v11454_v8 = vld [vmem:[#allocation60_spill] sm:$0xff]  ;;  %v11456_v14 = vld [vmem:[#allocation62_spill] sm:$0xff] }
 0x503   :  { %v5258_v9 = vsub.f32 %v11451_v47, %v10223_v57  ;;  %v5261_v37 = vsub.f32 %v11454_v8, %v10223_v57  ;;  %v11455_v61 = vld [vmem:[#allocation59_spill] sm:$0xff]  ;;  %v5263_v55 = vsub.f32 %v11456_v14, %v10223_v57  ;;  %v11457_v45 = vld [vmem:[#allocation61_spill] sm:$0xff]  ;;  %v11458_v47 = vld [vmem:[#allocation64_spill] sm:$0xff] }
 0x504   :  { %v5262_v3 = vsub.f32 %v11455_v61, %v10223_v57  ;;  %v5264_v49 = vsub.f32 %v11457_v45, %v10223_v57  ;;  %v5265_v21 = vsub.f32 %v11458_v47, %v10223_v57  ;;  %v11459_v35 = vld [vmem:[#allocation63_spill] sm:$0xff]  ;;  %v11463_v45 = vsub.f32 %v11399_v18, %v10223_v57 }
 0x505   :  { %v5266_v6 = vsub.f32 %v11459_v35, %v10223_v57  ;;  %v11464_v47 = vsub.f32 %v11403_v19, %v10223_v57  ;;  %v11465_v35 = vsub.f32 %v11404_v20, %v10223_v57  ;;  %v11466_v61 = vsub.f32 %v11405_v54, %v10223_v57 }
 0x506   :  { %v11467_v18 = vsub.f32 %v11406_v60, %v10223_v57  ;;  %v11468_v19 = vsub.f32 %v11407_v11, %v10223_v57  ;;  %v11469_v20 = vsub.f32 %v11408_v58, %v10223_v57  ;;  %v11470_v54 = vsub.f32 %v11409_v29, %v10223_v57 }
 0x507   :  { %v10431_v33 = vpop.eup %6907  ;;  %v11471_v60 = vsub.f32 %v11410_v62, %v10223_v57  ;;  %v11472_v11 = vsub.f32 %v11411_v23, %v10223_v57  ;;  %v11473_v58 = vsub.f32 %v11412_v13, %v10223_v57  ;;  %v11474_v29 = vsub.f32 %v11413_v39, %v10223_v57 }
 0x508   :  { %v5289_v15 = vmul.f32 %v10431_v33, %v11463_v45  ;;  %v5290_v17 = vmul.f32 %v10431_v33, %v11464_v47  ;;  %v5291_v8 = vmul.f32 %v10431_v33, %v11465_v35  ;;  %v5292_v14 = vmul.f32 %v10431_v33, %v11466_v61 }
 0x509   :  { %v5293_v45 = vmul.f32 %v10431_v33, %v11467_v18  ;;  %v5294_v47 = vmul.f32 %v10431_v33, %v11468_v19  ;;  %v5295_v35 = vmul.f32 %v10431_v33, %v11469_v20  ;;  %v5296_v61 = vmul.f32 %v10431_v33, %v11470_v54 }
 0x50a   :  { %v5297_v18 = vmul.f32 %v10431_v33, %v11471_v60  ;;  %v5298_v19 = vmul.f32 %v10431_v33, %v11472_v11  ;;  %v5299_v20 = vmul.f32 %v10431_v33, %v11473_v58  ;;  %v5300_v54 = vmul.f32 %v10431_v33, %v11474_v29 }
 0x50b   :  { %v11475_v62 = vsub.f32 %v11414_v56, %v10223_v57  ;;  %v11476_v23 = vsub.f32 %v11415_v42, %v10223_v57  ;;  %v11477_v13 = vsub.f32 %v11416_v27, %v10223_v57  ;;  %v11478_v39 = vsub.f32 %v11417_v1, %v10223_v57 }
 0x50c   :  { %v11479_v56 = vsub.f32 %v11418_v46, %v10223_v57  ;;  %v11480_v42 = vsub.f32 %v11419_v25, %v10223_v57  ;;  %v11481_v27 = vsub.f32 %v11420_v4, %v10223_v57  ;;  %v11482_v1 = vsub.f32 %v11421_v43, %v10223_v57 }
 0x50d   :  { %v5301_v60 = vmul.f32 %v10431_v33, %v11475_v62  ;;  %v5302_v11 = vmul.f32 %v10431_v33, %v11476_v23  ;;  %v5303_v58 = vmul.f32 %v10431_v33, %v11477_v13  ;;  %v5304_v29 = vmul.f32 %v10431_v33, %v11478_v39 }
 0x50e   :  { %v5305_v62 = vmul.f32 %v10431_v33, %v11479_v56  ;;  %v5306_v23 = vmul.f32 %v10431_v33, %v11480_v42  ;;  %v5307_v13 = vmul.f32 %v10431_v33, %v11481_v27  ;;  %v5308_v39 = vmul.f32 %v10431_v33, %v11482_v1 }
 0x50f   :  { %v11483_v46 = vsub.f32 %v11422_v48, %v10223_v57  ;;  %v11484_v25 = vsub.f32 %v11423_v32, %v10223_v57  ;;  %v11485_v4 = vsub.f32 %v11424_v24, %v10223_v57  ;;  %v11486_v43 = vsub.f32 %v11425_v7, %v10223_v57 }
 0x510   :  { %v11487_v48 = vsub.f32 %v11426_v63, %v10223_v57  ;;  %v11488_v32 = vsub.f32 %v11427_v10, %v10223_v57  ;;  %v11489_v24 = vsub.f32 %v11428_v30, %v10223_v57  ;;  %v11490_v7 = vsub.f32 %v11429_v5, %v10223_v57 }
 0x511   :  { %v5309_v56 = vmul.f32 %v10431_v33, %v11483_v46  ;;  %v5310_v42 = vmul.f32 %v10431_v33, %v11484_v25  ;;  %v5311_v27 = vmul.f32 %v10431_v33, %v11485_v4  ;;  %v5312_v1 = vmul.f32 %v10431_v33, %v11486_v43 }
 0x512   :  { %v5313_v46 = vmul.f32 %v10431_v33, %v11487_v48  ;;  %v5314_v25 = vmul.f32 %v10431_v33, %v11488_v32  ;;  %v5315_v4 = vmul.f32 %v10431_v33, %v11489_v24  ;;  %v5316_v43 = vmul.f32 %v10431_v33, %v11490_v7 }
 0x513   :  { %v11491_v63 = vsub.f32 %v11430_v59, %v10223_v57  ;;  %v5318_v44 = vmul.f32 %v10431_v33, %v5252_v51  ;;  %v5319_v10 = vmul.f32 %v10431_v33, %v5253_v16  ;;  %v5320_v32 = vmul.f32 %v10431_v33, %v5254_v40  ;;  %v11492_v57 = vld [vmem:[#allocation26_spill] sm:$0xff] }
 0x514   :  { %v5321_v30 = vmul.f32 %v10431_v33, %v5255_v52  ;;  %v5322_v24 = vmul.f32 %v10431_v33, %v5256_v2  ;;  %v5323_v12 = vmul.f32 %v10431_v33, %v5257_v0  ;;  %v5324_v5 = vmul.f32 %v10431_v33, %v5258_v9 }
 0x515   :  { %v5317_v48 = vmul.f32 %v10431_v33, %v11491_v63  ;;  %v5325_v7 = vmul.f32 %v10431_v33, %v5259_v22  ;;  %v5326_v59 = vmul.f32 %v10431_v33, %v5260_v50  ;;  %v5327_v63 = vmul.f32 %v10431_v33, %v5261_v37 }
 0x516   :  { %v5328_v51 = vmul.f32 %v10431_v33, %v5262_v3  ;;  %v5329_v16 = vmul.f32 %v10431_v33, %v5263_v55  ;;  %v5330_v40 = vmul.f32 %v10431_v33, %v5264_v49  ;;  %v5331_v52 = vmul.f32 %v10431_v33, %v5265_v21 }
 0x517   :  { %v5332_v2 = vmul.f32 %v10431_v33, %v5266_v6  ;;  %v6006_v0 = vadd.f32 %v10067_v28, %v5289_v15  ;;  %v6007_v9 = vadd.f32 %v11492_v57, %v5290_v17  ;;  %v6008_v22 = vadd.f32 %v10075_v41, %v5291_v8  ;;  %v11495_v6 = vld [vmem:[#allocation15_spill] sm:$0xff]  ;;  %v11496_v17 = vld [vmem:[#allocation24_spill] sm:$0xff] }
 0x518   :  { %v6009_v50 = vadd.f32 %v10071_v31, %v5292_v14  ;;  %v6048_v37 = vadd.f32 %v10239_v26, %v5331_v52  ;;  %v6010_v3 = vadd.f32 %v11493_v36, %v5293_v45  ;;  %v6011_v55 = vadd.f32 %v11494_v38, %v5294_v47  ;;  %v11497_v41 = vld [vmem:[#allocation27_spill] sm:$0xff]  ;;  %v11498_v26 = vld [vmem:[#allocation29_spill] sm:$0xff]  ;;  %v11502_v47 = vld [vmem:[#allocation86_spill] sm:$0xff] }
 0x519   :  { %v10580_v49 = vadd.f32 %v10093_v53, %v5295_v35  ;;  %v10583_v21 = vadd.f32 %v10089_v34, %v5296_v61  ;;  %v10586_v28 = vadd.f32 %v11495_v6, %v5297_v18  ;;  %v10589_v15 = vadd.f32 %v11496_v17, %v5298_v19  ;;  %v11499_v38 = vld [vmem:[#allocation85_spill] sm:$0xff]  ;;  %v11500_v53 = vld [vmem:[#allocation34_spill] sm:$0xff]  ;;  %v11501_v34 = vld [vmem:[#allocation87_spill] sm:$0xff] }
 0x51a   :  { %v10592_v31 = vadd.f32 %v11497_v41, %v5299_v20  ;;  %v6112_v57 = vmax.f32 %v6048_v37, 0.0  ;;  %v10595_v36 = vadd.f32 %v11498_v26, %v5300_v54  ;;  %v10598_v8 = vadd.f32 %v11499_v38, %v5301_v60  ;;  %v11503_v61 = vld [vmem:[#allocation89_spill] sm:$0xff]  ;;  %v11504_v19 = vld [vmem:[#allocation88_spill] sm:$0xff]  ;;  %v11505_v54 = vld [vmem:[#allocation91_spill] sm:$0xff] }
 0x51b   :  { %v10601_v14 = vadd.f32 %v11500_v53, %v5302_v11  ;;  %v10604_v45 = vadd.f32 %v11501_v34, %v5303_v58  ;;  %v10607_v35 = vadd.f32 %v11502_v47, %v5304_v29  ;;  %v10610_v18 = vadd.f32 %v11503_v61, %v5305_v62  ;;  %v11506_v60 = vld [vmem:[#allocation90_spill] sm:$0xff]  ;;  %v11507_v11 = vld [vmem:[#allocation93_spill] sm:$0xff]  ;;  %v11508_v58 = vld [vmem:[#allocation92_spill] sm:$0xff] }
 0x51c   :  { %v10613_v20 = vadd.f32 %v11504_v19, %v5306_v23  ;;  %6176 = vst [vmem:[#allocation4 + $0x150] sm:$0xff] %v6112_v57  ;;  %v10616_v52 = vadd.f32 %v11505_v54, %v5307_v13  ;;  %v10619_v37 = vadd.f32 %v11506_v60, %v5308_v39  ;;  %v10622_v6 = vadd.f32 %v11507_v11, %v5309_v56  ;;  %v11509_v29 = vld [vmem:[#allocation95_spill] sm:$0xff]  ;;  %v11510_v62 = vld [vmem:[#allocation94_spill] sm:$0xff]  ;;  %v11511_v23 = vld [vmem:[#allocation97_spill] sm:$0xff] }
 0x51d   :  { %v10625_v17 = vadd.f32 %v11508_v58, %v5310_v42  ;;  %v10628_v41 = vadd.f32 %v11509_v29, %v5311_v27  ;;  %v10631_v26 = vadd.f32 %v11510_v62, %v5312_v1  ;;  %v10634_v57 = vadd.f32 %v11511_v23, %v5313_v46  ;;  %v11512_v13 = vld [vmem:[#allocation96_spill] sm:$0xff]  ;;  %v11513_v39 = vld [vmem:[#allocation99_spill] sm:$0xff]  ;;  %v11514_v56 = vld [vmem:[#allocation98_spill] sm:$0xff] }
 0x51e   :  { %v10637_v38 = vadd.f32 %v11512_v13, %v5314_v25  ;;  %v10640_v53 = vadd.f32 %v11513_v39, %v5315_v4  ;;  %v10643_v34 = vadd.f32 %v11514_v56, %v5316_v43  ;;  %v11515_v42 = vld [vmem:[#allocation101_spill] sm:$0xff]  ;;  %v11516_v27 = vld [vmem:[#allocation100_spill] sm:$0xff]  ;;  %v11517_v1 = vld [vmem:[#allocation103_spill] sm:$0xff] }
 0x51f   :  { %v10646_v47 = vadd.f32 %v11515_v42, %v5317_v48  ;;  %v10649_v61 = vadd.f32 %v11516_v27, %v5318_v44  ;;  %v10652_v19 = vadd.f32 %v11517_v1, %v5319_v10  ;;  %v11518_v46 = vld [vmem:[#allocation102_spill] sm:$0xff]  ;;  %v11519_v25 = vld [vmem:[#allocation105_spill] sm:$0xff]  ;;  %v11520_v4 = vld [vmem:[#allocation104_spill] sm:$0xff] }
 0x520   :  { %v10655_v54 = vadd.f32 %v11518_v46, %v5320_v32  ;;  %v10658_v60 = vadd.f32 %v11519_v25, %v5321_v30  ;;  %v10661_v11 = vadd.f32 %v11520_v4, %v5322_v24  ;;  %v11521_v43 = vld [vmem:[#allocation107_spill] sm:$0xff]  ;;  %v11522_v48 = vld [vmem:[#allocation106_spill] sm:$0xff]  ;;  %v11523_v44 = vld [vmem:[#allocation109_spill] sm:$0xff]  ;;  %v6070_v25 = vmax.f32 %v6006_v0, 0.0 }
 0x521   :  { %v10664_v58 = vadd.f32 %v11521_v43, %v5323_v12  ;;  %v10667_v29 = vadd.f32 %v11522_v48, %v5324_v5  ;;  %v10670_v62 = vadd.f32 %v11523_v44, %v5325_v7  ;;  %v11524_v10 = vld [vmem:[#allocation108_spill] sm:$0xff]  ;;  %v11525_v32 = vld [vmem:[#allocation111_spill] sm:$0xff]  ;;  %v11526_v30 = vld [vmem:[#allocation110_spill] sm:$0xff]  ;;  %v6072_v4 = vmax.f32 %v6008_v22, 0.0 }
 0x522   :  { %v10673_v23 = vadd.f32 %v11524_v10, %v5326_v59  ;;  %v10676_v13 = vadd.f32 %v11525_v32, %v5327_v63  ;;  %v10679_v39 = vadd.f32 %v11526_v30, %v5328_v51  ;;  %v11527_v24 = vld [vmem:[#allocation114_spill] sm:$0xff]  ;;  %v11528_v12 = vld [vmem:[#allocation113_spill] sm:$0xff]  ;;  %v11529_v5 = vld [vmem:[#allocation115_spill] sm:$0xff]  ;;  %v6071_v63 = vmax.f32 %v6007_v9, 0.0  ;;  %6134 = vst [vmem:[#allocation4] sm:$0xff] %v6070_v25 }
 0x523   :  { %v10682_v56 = vadd.f32 %v11527_v24, %v5329_v16  ;;  %v10685_v42 = vadd.f32 %v11528_v12, %v5330_v40  ;;  %v10688_v27 = vadd.f32 %v11529_v5, %v5332_v2  ;;  %v11530_v7 = vld [vmem:[#allocation65_spill] sm:$0xff]  ;;  %v11531_v1 = vld [vmem:[#allocation112_spill] sm:$0xff]  ;;  %v6073_v43 = vmax.f32 %v6009_v50, 0.0  ;;  %6136 = vst [vmem:[#allocation4 + $0x10] sm:$0xff] %v6072_v4 }
 0x524   :  { %v11532_v46 = vsub.f32 %v11530_v7, %v11531_v1  ;;  %v6074_v51 = vmax.f32 %v6010_v3, 0.0  ;;  %v6075_v48 = vmax.f32 %v6011_v55, 0.0  ;;  %v11533_v44 = vld [vmem:[#allocation116_spill] sm:$0xff]  ;;  %v6076_v10 = vmax.f32 %v10580_v49, 0.0  ;;  %6135 = vst [vmem:[#allocation4 + $0x8] sm:$0xff] %v6071_v63  ;;  %v11540_v12 = vld [vmem:[#allocation69_spill] sm:$0xff] }
 0x525   :  { %v6077_v40 = vmax.f32 %v10583_v21, 0.0  ;;  %v6078_v2 = vmax.f32 %v10586_v28, 0.0  ;;  %v6079_v32 = vmax.f32 %v10589_v15, 0.0  ;;  %v6080_v30 = vmax.f32 %v10592_v31, 0.0  ;;  %6137 = vst [vmem:[#allocation4 + $0x18] sm:$0xff] %v6073_v43  ;;  %v11545_v63 = vld [vmem:[#allocation72_spill] sm:$0xff] }
 0x526   :  { %v5334_v59 = vmul.f32 %v10431_v33, %v11532_v46  ;;  %v6081_v0 = vmax.f32 %v10595_v36, 0.0  ;;  %v6082_v9 = vmax.f32 %v10598_v8, 0.0  ;;  %6138 = vst [vmem:[#allocation4 + $0x20] sm:$0xff] %v6074_v51  ;;  %6139 = vst [vmem:[#allocation4 + $0x28] sm:$0xff] %v6075_v48  ;;  %v6083_v50 = vmax.f32 %v10601_v14, 0.0  ;;  %v11547_v51 = vld [vmem:[#allocation14_spill] sm:$0xff] }
 0x527   :  { %v6084_v3 = vmax.f32 %v10604_v45, 0.0  ;;  %v6085_v55 = vmax.f32 %v10607_v35, 0.0  ;;  %6140 = vst [vmem:[#allocation4 + $0x30] sm:$0xff] %v6076_v10  ;;  %6141 = vst [vmem:[#allocation4 + $0x38] sm:$0xff] %v6077_v40  ;;  %v6086_v49 = vmax.f32 %v10610_v18, 0.0  ;;  %v6087_v21 = vmax.f32 %v10613_v20, 0.0 }
 0x528   :  { %v6051_v16 = vadd.f32 %v11533_v44, %v5334_v59  ;;  %6142 = vst [vmem:[#allocation4 + $0x40] sm:$0xff] %v6078_v2  ;;  %v6088_v28 = vmax.f32 %v10616_v52, 0.0  ;;  %v6089_v15 = vmax.f32 %v10619_v37, 0.0  ;;  %6143 = vst [vmem:[#allocation4 + $0x48] sm:$0xff] %v6079_v32  ;;  %v6090_v31 = vmax.f32 %v10622_v6, 0.0  ;;  %v11544_v59 = vld [vmem:[#allocation117_spill] sm:$0xff] }
 0x529   :  { %6144 = vst [vmem:[#allocation4 + $0x50] sm:$0xff] %v6080_v30  ;;  %6145 = vst [vmem:[#allocation4 + $0x58] sm:$0xff] %v6081_v0  ;;  %v6091_v36 = vmax.f32 %v10625_v17, 0.0  ;;  %v6092_v8 = vmax.f32 %v10628_v41, 0.0  ;;  %v6093_v14 = vmax.f32 %v10631_v26, 0.0  ;;  %v6094_v45 = vmax.f32 %v10634_v57, 0.0 }
 0x52a   :  { %v6115_v22 = vmax.f32 %v6051_v16, 0.0  ;;  %6146 = vst [vmem:[#allocation4 + $0x60] sm:$0xff] %v6082_v9  ;;  %6147 = vst [vmem:[#allocation4 + $0x68] sm:$0xff] %v6083_v50  ;;  %v6095_v35 = vmax.f32 %v10637_v38, 0.0  ;;  %v6096_v18 = vmax.f32 %v10640_v53, 0.0  ;;  %v6097_v20 = vmax.f32 %v10643_v34, 0.0 }
 0x52b   :  { %6148 = vst [vmem:[#allocation4 + $0x70] sm:$0xff] %v6084_v3  ;;  %6149 = vst [vmem:[#allocation4 + $0x78] sm:$0xff] %v6085_v55  ;;  %v6098_v52 = vmax.f32 %v10646_v47, 0.0  ;;  %v6099_v37 = vmax.f32 %v10649_v61, 0.0  ;;  %v6100_v6 = vmax.f32 %v10652_v19, 0.0  ;;  %v6101_v17 = vmax.f32 %v10655_v54, 0.0 }
 0x52c   :  { %6179 = vst [vmem:[#allocation4 + $0x168] sm:$0xff] %v6115_v22  ;;  %6150 = vst [vmem:[#allocation4 + $0x80] sm:$0xff] %v6086_v49  ;;  %v6102_v41 = vmax.f32 %v10658_v60, 0.0  ;;  %v6103_v26 = vmax.f32 %v10661_v11, 0.0  ;;  %v6104_v57 = vmax.f32 %v10664_v58, 0.0  ;;  %v6105_v38 = vmax.f32 %v10667_v29, 0.0 }
 0x52d   :  { %6151 = vst [vmem:[#allocation4 + $0x88] sm:$0xff] %v6087_v21  ;;  %6152 = vst [vmem:[#allocation4 + $0x90] sm:$0xff] %v6088_v28  ;;  %v6106_v53 = vmax.f32 %v10670_v62, 0.0  ;;  %v6107_v34 = vmax.f32 %v10673_v23, 0.0  ;;  %v6108_v47 = vmax.f32 %v10676_v13, 0.0  ;;  %v6109_v61 = vmax.f32 %v10679_v39, 0.0 }
 0x52e   :  { %6153 = vst [vmem:[#allocation4 + $0x98] sm:$0xff] %v6089_v15  ;;  %6154 = vst [vmem:[#allocation4 + $0xa0] sm:$0xff] %v6090_v31  ;;  %v6110_v19 = vmax.f32 %v10682_v56, 0.0  ;;  %v6111_v54 = vmax.f32 %v10685_v42, 0.0  ;;  %v6113_v60 = vmax.f32 %v10688_v27, 0.0  ;;  %v11534_v11 = vld [vmem:[#allocation66_spill] sm:$0xff]  ;;  %v11541_v42 = vsub.f32 %v11540_v12, %v11531_v1 }
 0x52f   :  { %6155 = vst [vmem:[#allocation4 + $0xa8] sm:$0xff] %v6091_v36  ;;  %6156 = vst [vmem:[#allocation4 + $0xb0] sm:$0xff] %v6092_v8  ;;  %v11535_v58 = vsub.f32 %v11534_v11, %v11531_v1  ;;  %v11536_v62 = vld [vmem:[#allocation67_spill] sm:$0xff]  ;;  %v11538_v39 = vld [vmem:[#allocation68_spill] sm:$0xff]  ;;  %v11546_v4 = vsub.f32 %v11545_v63, %v11531_v1  ;;  %v11548_v48 = vsub.f32 %v11547_v51, %v11531_v1 }
 0x530   :  { %6157 = vst [vmem:[#allocation4 + $0xb8] sm:$0xff] %v6093_v14  ;;  %6158 = vst [vmem:[#allocation4 + $0xc0] sm:$0xff] %v6094_v45  ;;  %v11537_v23 = vsub.f32 %v11536_v62, %v11531_v1  ;;  %v11539_v24 = vsub.f32 %v11538_v39, %v11531_v1  ;;  %v5338_v5 = vmul.f32 %v10431_v33, %v11541_v42  ;;  %v11542_v27 = vld [vmem:[#allocation70_spill] sm:$0xff]  ;;  %v11549_v16 = vld [vmem:[#allocation16_spill] sm:$0xff] }
 0x531   :  { %6159 = vst [vmem:[#allocation4 + $0xc8] sm:$0xff] %v6095_v35  ;;  %6160 = vst [vmem:[#allocation4 + $0xd0] sm:$0xff] %v6096_v18  ;;  %v5333_v29 = vmul.f32 %v10431_v33, %v11535_v58  ;;  %v11543_v7 = vsub.f32 %v11542_v27, %v11531_v1  ;;  %v5340_v43 = vmul.f32 %v10431_v33, %v11546_v4  ;;  %v11551_v2 = vld [vmem:[#allocation71_spill] sm:$0xff]  ;;  %v11552_v30 = vld [vmem:[#allocation73_spill] sm:$0xff] }
 0x532   :  { %6161 = vst [vmem:[#allocation4 + $0xd8] sm:$0xff] %v6097_v20  ;;  %6162 = vst [vmem:[#allocation4 + $0xe0] sm:$0xff] %v6098_v52  ;;  %v5336_v13 = vmul.f32 %v10431_v33, %v11537_v23  ;;  %v5335_v56 = vmul.f32 %v10431_v33, %v11539_v24  ;;  %v5339_v44 = vmul.f32 %v10431_v33, %v11548_v48  ;;  %v11553_v9 = vld [vmem:[#allocation74_spill] sm:$0xff]  ;;  %v11554_v50 = vld [vmem:[#allocation75_spill] sm:$0xff] }
 0x533   :  { %6163 = vst [vmem:[#allocation4 + $0xe8] sm:$0xff] %v6099_v37  ;;  %6164 = vst [vmem:[#allocation4 + $0xf0] sm:$0xff] %v6100_v6  ;;  %v5337_v46 = vmul.f32 %v10431_v33, %v11543_v7  ;;  %v6050_v25 = vadd.f32 %v11544_v59, %v5333_v29  ;;  %v11550_v10 = vsub.f32 %v11549_v16, %v11531_v1  ;;  %v11555_v49 = vld [vmem:[#allocation76_spill] sm:$0xff]  ;;  %v11556_v28 = vld [vmem:[#allocation118_spill] sm:$0xff] }
 0x534   :  { %6165 = vst [vmem:[#allocation4 + $0xf8] sm:$0xff] %v6101_v17  ;;  %6166 = vst [vmem:[#allocation4 + $0x100] sm:$0xff] %v6102_v41  ;;  %v6053_v32 = vadd.f32 %v11551_v2, %v5336_v13  ;;  %v6052_v0 = vadd.f32 %v11552_v30, %v5335_v56  ;;  %v6055_v22 = vadd.f32 %v11553_v9, %v5338_v5  ;;  %v11557_v31 = vld [vmem:[#allocation119_spill] sm:$0xff]  ;;  %v11558_v37 = vld [vmem:[#allocation13_spill] sm:$0xff]  ;;  %v6890_v41 = vpop.f32.mrf.mxu0 }
 0x535   :  { %6167 = vst [vmem:[#allocation4 + $0x108] sm:$0xff] %v6103_v26  ;;  %6168 = vst [vmem:[#allocation4 + $0x110] sm:$0xff] %v6104_v57  ;;  %v5342_v40 = vmul.f32 %v10431_v33, %v11550_v10  ;;  %v6054_v3 = vadd.f32 %v11554_v50, %v5337_v46  ;;  %v6114_v55 = vmax.f32 %v6050_v25, 0.0  ;;  %v6057_v21 = vadd.f32 %v11555_v49, %v5340_v43  ;;  %v11560_v26 = vld [vmem:[#allocation17_spill] sm:$0xff]  ;;  %v11568_v29 = vld [vmem:[#allocation120_spill] sm:$0xff] }
 0x536   :  { %6169 = vst [vmem:[#allocation4 + $0x118] sm:$0xff] %v6105_v38  ;;  %6170 = vst [vmem:[#allocation4 + $0x120] sm:$0xff] %v6106_v53  ;;  %v6056_v15 = vadd.f32 %v11556_v28, %v5339_v44  ;;  %v6117_v8 = vmax.f32 %v6053_v32, 0.0  ;;  %v6116_v14 = vmax.f32 %v6052_v0, 0.0  ;;  %v6119_v45 = vmax.f32 %v6055_v22, 0.0  ;;  %v11562_v53 = vld [vmem:[#allocation18_spill] sm:$0xff]  ;;  %v5997_v30 = vpop.f32.mrf.mxu0 }
 0x537   :  { %6171 = vst [vmem:[#allocation4 + $0x128] sm:$0xff] %v6107_v34  ;;  %6172 = vst [vmem:[#allocation4 + $0x130] sm:$0xff] %v6108_v47  ;;  %v6059_v36 = vadd.f32 %v11557_v31, %v5342_v40  ;;  %v6118_v35 = vmax.f32 %v6054_v3, 0.0  ;;  %v6121_v18 = vmax.f32 %v6057_v21, 0.0  ;;  %v11559_v6 = vsub.f32 %v11558_v37, %v11531_v1  ;;  %v11569_v23 = vld [vmem:[#allocation79_spill] sm:$0xff]  ;;  %v11571_v24 = vld [vmem:[#allocation80_spill] sm:$0xff] }
 0x538   :  { %6173 = vst [vmem:[#allocation4 + $0x138] sm:$0xff] %v6109_v61  ;;  %6174 = vst [vmem:[#allocation4 + $0x140] sm:$0xff] %v6110_v19  ;;  %v6120_v20 = vmax.f32 %v6056_v15, 0.0  ;;  %v11561_v57 = vsub.f32 %v11560_v26, %v11531_v1  ;;  %v11563_v34 = vsub.f32 %v11562_v53, %v11531_v1  ;;  %v11564_v61 = vld [vmem:[#allocation77_spill] sm:$0xff]  ;;  %v11570_v13 = vsub.f32 %v11569_v23, %v11531_v1  ;;  %v11576_v59 = vld [vmem:[#allocation122_spill] sm:$0xff] }
 0x539   :  { %6175 = vst [vmem:[#allocation4 + $0x148] sm:$0xff] %v6111_v54  ;;  %6177 = vst [vmem:[#allocation4 + $0x158] sm:$0xff] %v6113_v60  ;;  %v6123_v52 = vmax.f32 %v6059_v36, 0.0  ;;  %v5341_v17 = vmul.f32 %v10431_v33, %v11559_v6  ;;  %v11565_v19 = vsub.f32 %v11564_v61, %v11531_v1  ;;  %v11566_v60 = vld [vmem:[#allocation78_spill] sm:$0xff]  ;;  %v11572_v56 = vsub.f32 %v11571_v24, %v11531_v1  ;;  %v11573_v42 = vld [vmem:[#allocation81_spill] sm:$0xff] }
 0x53a   :  { %6178 = vst [vmem:[#allocation4 + $0x160] sm:$0xff] %v6114_v55  ;;  %6181 = vst [vmem:[#allocation4 + $0x178] sm:$0xff] %v6117_v8  ;;  %v5344_v38 = vmul.f32 %v10431_v33, %v11561_v57  ;;  %v5343_v47 = vmul.f32 %v10431_v33, %v11563_v34  ;;  %v11567_v11 = vsub.f32 %v11566_v60, %v11531_v1  ;;  %v11575_v7 = vld [vmem:[#allocation121_spill] sm:$0xff]  ;;  %v11577_v63 = vld [vmem:[#allocation123_spill] sm:$0xff] }
 0x53b   :  { %6180 = vst [vmem:[#allocation4 + $0x170] sm:$0xff] %v6116_v14  ;;  %6183 = vst [vmem:[#allocation4 + $0x188] sm:$0xff] %v6119_v45  ;;  %v5346_v54 = vmul.f32 %v10431_v33, %v11565_v19  ;;  %v6058_v62 = vadd.f32 %v11568_v29, %v5341_v17  ;;  %v5348_v39 = vmul.f32 %v10431_v33, %v11570_v13  ;;  %v11578_v43 = vld [vmem:[#allocation124_spill] sm:$0xff]  ;;  %v11579_v44 = vld [vmem:[#allocation125_spill] sm:$0xff] }
 0x53c   :  { %6182 = vst [vmem:[#allocation4 + $0x180] sm:$0xff] %v6118_v35  ;;  %v5345_v58 = vmul.f32 %v10431_v33, %v11567_v11  ;;  %6185 = vst [vmem:[#allocation4 + $0x198] sm:$0xff] %v6121_v18  ;;  %v5347_v12 = vmul.f32 %v10431_v33, %v11572_v56  ;;  %v11574_v5 = vsub.f32 %v11573_v42, %v11531_v1  ;;  %v11580_v10 = vld [vmem:[#allocation22_spill] sm:$0xff]  ;;  %v11584_v31 = vld [vmem:[#allocation83_spill] sm:$0xff] }
 0x53d   :  { %6184 = vst [vmem:[#allocation4 + $0x190] sm:$0xff] %v6120_v20  ;;  %6187 = vst [vmem:[#allocation4 + $0x1a8] sm:$0xff] %v6123_v52  ;;  %v6061_v46 = vadd.f32 %v11575_v7, %v5344_v38  ;;  %v6060_v25 = vadd.f32 %v11576_v59, %v5343_v47  ;;  %v6063_v4 = vadd.f32 %v11577_v63, %v5346_v54  ;;  %v6122_v48 = vmax.f32 %v6058_v62, 0.0  ;;  %v11581_v2 = vld [vmem:[#allocation126_spill] sm:$0xff]  ;;  %v11586_v14 = vld [vmem:[#allocation84_spill] sm:$0xff] }
 0x53e   :  { %v5350_v27 = vmul.f32 %v10431_v33, %v11574_v5  ;;  %v6062_v51 = vadd.f32 %v11578_v43, %v5345_v58  ;;  %v6065_v16 = vadd.f32 %v11579_v44, %v5348_v39  ;;  %v6064_v40 = vadd.f32 %v11580_v10, %v5347_v12  ;;  %v11582_v21 = vld [vmem:[#allocation82_spill] sm:$0xff]  ;;  %v11587_v35 = vld [vmem:[#allocation20_spill] sm:$0xff]  ;;  %v11589_v37 = vld [vmem:[#allocation127_spill] sm:$0xff] }
 0x53f   :  { %v6125_v0 = vmax.f32 %v6061_v46, 0.0  ;;  %v6124_v9 = vmax.f32 %v6060_v25, 0.0  ;;  %v6127_v22 = vmax.f32 %v6063_v4, 0.0  ;;  %6186 = vst [vmem:[#allocation4 + $0x1a0] sm:$0xff] %v6122_v48  ;;  %v11583_v28 = vsub.f32 %v11582_v21, %v11531_v1 }
 0x540   :  { %v6067_v32 = vadd.f32 %v11581_v2, %v5350_v27  ;;  %v6126_v50 = vmax.f32 %v6062_v51, 0.0  ;;  %v6129_v3 = vmax.f32 %v6065_v16, 0.0  ;;  %v6128_v55 = vmax.f32 %v6064_v40, 0.0 }
 0x541   :  { %v5349_v15 = vmul.f32 %v10431_v33, %v11583_v28  ;;  %6189 = vst [vmem:[#allocation4 + $0x1b8] sm:$0xff] %v6125_v0  ;;  %6188 = vst [vmem:[#allocation4 + $0x1b0] sm:$0xff] %v6124_v9  ;;  %v11585_v36 = vsub.f32 %v11584_v31, %v11531_v1  ;;  %v6003_v45 = vadd.f32 %v6890_v41, %v11586_v14 }
 0x542   :  { %v6131_v49 = vmax.f32 %v6067_v32, 0.0  ;;  %6191 = vst [vmem:[#allocation4 + $0x1c8] sm:$0xff] %v6127_v22  ;;  %6190 = vst [vmem:[#allocation4 + $0x1c0] sm:$0xff] %v6126_v50  ;;  %v11588_v18 = vsub.f32 %v11587_v35, %v11531_v1  ;;  %v5998_v52 = vadd.f32 %v11586_v14, %v5997_v30 }
 0x543   :  { %v5352_v8 = vmul.f32 %v10431_v33, %v11585_v36  ;;  %6193 = vst [vmem:[#allocation4 + $0x1d8] sm:$0xff] %v6129_v3  ;;  %6192 = vst [vmem:[#allocation4 + $0x1d0] sm:$0xff] %v6128_v55  ;;  %v6066_v6 = vadd.f32 %v11589_v37, %v5349_v15 }
 0x544   :  { %v5351_v20 = vmul.f32 %v10431_v33, %v11588_v18  ;;  %6195 = vst [vmem:[#allocation4 + $0x1e8] sm:$0xff] %v6131_v49 }
 0x545   :  { %v6069_v17 = vadd.f32 %v6003_v45, %v5352_v8  ;;  %v6130_v57 = vmax.f32 %v6066_v6, 0.0 }
 0x546   :  { %v6068_v26 = vadd.f32 %v5998_v52, %v5351_v20 }
 0x547   :  { %v6133_v38 = vmax.f32 %v6069_v17, 0.0  ;;  %6194 = vst [vmem:[#allocation4 + $0x1e0] sm:$0xff] %v6130_v57 }
 0x548   :  { %v6132_v53 = vmax.f32 %v6068_v26, 0.0 }
 0x549   :  { %6197 = vst [vmem:[#allocation4 + $0x1f8] sm:$0xff] %v6133_v38 }
 0x54a   :  { %6196 = vst [vmem:[#allocation4 + $0x1f0] sm:$0xff] %v6132_v53 }
 0x54b   :  { %6925 = shalt.err (!%p6922_p4)
}
 0x54c   :  { %s6938_s28 = smov 128   ;;  %s6939_s29 = smov 8  }
 0x54d   :  { %6209 = dma.vmem_to_hbm [thread:$0]  %s6204_s26, 8192, %s10836_s6, [#allocation5], %s6938_s28, %s6938_s28, %s6939_s29  }
 0x54e   :  { %6934 = dma.done.wait [#allocation5], 8192  }
 0x54f   :  { %6935 = vsyncadd [#allocation5], 4294959104 }
 0x550   :  { %6213 = vsyncpa [#allocation5], 1 }

</bundles_post_ra>
